<compile_context>
chip_gen: v6e
topology: v6e:2x2x1
jax: 0.10.0
libtpu: 0.0.40
codegen_flags: <defaults>
</compile_context>

<pallas_src>
import functools

import jax
import jax.numpy as jnp
from jax import lax
from jax.experimental import pallas as pl
from jax.experimental.pallas import tpu as pltpu

LANE = 128
SUBLANE = 8
COMPUTE_DTYPE = jnp.bfloat16     # MXU operand / intermediate-storage dtype
BN_EPS = 1e-5


def _round_up(x, m):
    return ((x + m - 1) // m) * m


def _vmem_limit_bytes():
    # v7x: 64 MiB physical -> ~44 MiB scoped; v5e/v6e: 128 MiB -> capped 96 MiB.
    try:
        cap = pltpu.get_tpu_info().vmem_capacity_bytes
        return int(min(cap * 0.7, 96 * 1024 * 1024))
    except Exception:
        return 48 * 1024 * 1024


# ----------------------------------------------------------------------------
# Kernel 1: 3x3 "same" conv on one (batch, row-stripe) tile via nine
# accumulating MXU dots, with the previous layer's BN+ReLU optionally fused
# into the input path, plus per-(batch, stripe) mean-centred BN partials.
# ----------------------------------------------------------------------------
def _conv3x3_kernel(x_ref, xtop_ref, xbot_ref, w_ref, b_ref, scale_ref,
                    shift_ref, y_ref, sum_ref, m2_ref, xpad_ref,
                    *, fuse_input_bn_relu):
    # x_ref    : (1, TH, W, Cin)     input row stripe (f32 layer1 / bf16 layer2)
    # xtop_ref : (1, 1,  W, Cin)     row just above the stripe (clamped index)
    # xbot_ref : (1, 1,  W, Cin)     row just below the stripe (clamped index)
    # w_ref    : (9, Cin_p, Cout_p)  bf16 per-tap weights (zero-padded channels)
    # b_ref    : (1, Cout_p)         f32 bias
    # scale_ref: (1, Cin)            f32 previous-layer BN scale (fused path)
    # shift_ref: (1, Cin)            f32 previous-layer BN shift (fused path)
    # y_ref    : (1, TH*W, Cout_p)   conv output (pre-BN), flat row-major
    # sum_ref  : (1, 1, 1, Cout_p)   per-(batch, stripe) sum of y
    # m2_ref   : (1, 1, 1, Cout_p)   per-(batch, stripe) sum of squared devs
    # xpad_ref : (TH+2, W+2, Cin_p)  bf16 VMEM scratch: halo-padded stripe
    TH, W, Cin = x_ref.shape[1], x_ref.shape[2], x_ref.shape[3]
    Cin_p = xpad_ref.shape[2]
    Cout_p = w_ref.shape[2]
    j = pl.program_id(1)
    n_stripes = pl.num_programs(1)

    scale = scale_ref[0]                                   # (Cin,)
    shift = shift_ref[0]

    def prep(v):
        v = v.astype(jnp.float32)
        if fuse_input_bn_relu:
            v = jnp.maximum(v * scale + shift, 0.0)        # fused BN + ReLU
        return v.astype(COMPUTE_DTYPE)

    # --- halo-padded stripe in VMEM: zero only the 1-pixel frame ------------
    zero_row = jnp.zeros((1, W + 2, Cin_p), COMPUTE_DTYPE)
    zero_col = jnp.zeros((TH + 2, 1, Cin_p), COMPUTE_DTYPE)
    xpad_ref[0:1, :, :] = zero_row
    xpad_ref[TH + 1:TH + 2, :, :] = zero_row
    xpad_ref[:, 0:1, :] = zero_col
    xpad_ref[:, W + 1:W + 2, :] = zero_col

    xpad_ref[1:TH + 1, 1:W + 1, :Cin] = prep(x_ref[0])
    if Cin < Cin_p:                                        # static branch
        xpad_ref[1:TH + 1, 1:W + 1, Cin:] = jnp.zeros(
            (TH, W, Cin_p - Cin), COMPUTE_DTYPE)

    @pl.when(j > 0)
    def _():
        xpad_ref[0:1, 1:W + 1, :Cin] = prep(xtop_ref[0])

    @pl.when(j < n_stripes - 1)
    def _():
        xpad_ref[TH + 1:TH + 2, 1:W + 1, :Cin] = prep(xbot_ref[0])

    # --- nine accumulating MXU dots (no materialised patch matrix) ----------
    acc = None
    for dh in range(3):
        for dw in range(3):
            col = xpad_ref[dh:dh + TH, dw:dw + W, :].reshape(TH * W, Cin_p)
            part = jnp.dot(col, w_ref[dh * 3 + dw],
                           preferred_element_type=jnp.float32)
            acc = part if acc is None else acc + part
    acc = acc + b_ref[0].astype(jnp.float32)               # (TH*W, Cout_p) f32

    y_ref[0] = acc.astype(y_ref.dtype)                     # lane-dense store

    # --- BN partials: sum and mean-centred M2 (Chan-combinable) -------------
    count = float(TH * W)
    s = jnp.sum(acc, axis=0, keepdims=True)                # (1, Cout_p)
    dev = acc - s * (1.0 / count)
    sum_ref[0, 0] = s
    m2_ref[0, 0] = jnp.sum(dev * dev, axis=0, keepdims=True)


def conv3x3(x_nhwc, w_packed, bias_p, scale_p, shift_p, *, stripe_rows,
            out_dtype, fuse_input_bn_relu, vmem_limit):
    N, H, W, Cin = x_nhwc.shape
    n_taps, cin_p, cout_p = w_packed.shape
    TH = stripe_rows
    assert H % TH == 0 and (TH == H or (TH * W) % SUBLANE == 0)
    n_stripes = H // TH
    hw_t = TH * W

    kernel = functools.partial(_conv3x3_kernel,
                               fuse_input_bn_relu=fuse_input_bn_relu)
    out_shapes = (
        jax.ShapeDtypeStruct((N, H * W, cout_p), out_dtype),      # pre-BN conv
        jax.ShapeDtypeStruct((N, n_stripes, 1, cout_p), jnp.float32),
        jax.ShapeDtypeStruct((N, n_stripes, 1, cout_p), jnp.float32),
    )
    return pl.pallas_call(
        kernel,
        out_shape=out_shapes,
        grid_spec=pltpu.PrefetchScalarGridSpec(
            num_scalar_prefetch=0,
            grid=(N, n_stripes),
            in_specs=[
                pl.BlockSpec((1, TH, W, Cin), lambda b, j: (b, j, 0, 0)),
                pl.BlockSpec((1, 1, W, Cin),
                             lambda b, j: (b, jnp.maximum(j * TH - 1, 0), 0, 0)),
                pl.BlockSpec((1, 1, W, Cin),
                             lambda b, j: (b, jnp.minimum(j * TH + TH, H - 1),
                                           0, 0)),
                pl.BlockSpec((n_taps, cin_p, cout_p), lambda b, j: (0, 0, 0)),
                pl.BlockSpec((1, cout_p), lambda b, j: (0, 0)),
                pl.BlockSpec((1, Cin), lambda b, j: (0, 0)),
                pl.BlockSpec((1, Cin), lambda b, j: (0, 0)),
            ],
            out_specs=(
                pl.BlockSpec((1, hw_t, cout_p), lambda b, j: (b, j, 0)),
                pl.BlockSpec((1, 1, 1, cout_p), lambda b, j: (b, j, 0, 0)),
                pl.BlockSpec((1, 1, 1, cout_p), lambda b, j: (b, j, 0, 0)),
            ),
            scratch_shapes=[
                pltpu.VMEM((TH + 2, W + 2, cin_p), COMPUTE_DTYPE),
            ],
        ),
        compiler_params=pltpu.CompilerParams(
            dimension_semantics=("parallel", "parallel"),
            vmem_limit_bytes=vmem_limit),
    )(x_nhwc, x_nhwc, x_nhwc, w_packed, bias_p, scale_p, shift_p)


# ----------------------------------------------------------------------------
# Kernel 2: final BatchNorm (folded scale/shift) + ReLU, tiled over HW, with
# the pad-channel slice fused into the store (writes only Cout channels).
# ----------------------------------------------------------------------------
def _bn_relu_kernel(x_ref, scale_ref, shift_ref, o_ref):
    cout = o_ref.shape[-1]
    y = jnp.maximum(x_ref[0] * scale_ref[0] + shift_ref[0], 0.0)
    o_ref[0] = y[:, :cout].astype(o_ref.dtype)


def bn_relu(y_flat, scale, shift, cout, *, chunk_rows, vmem_limit):
    N, HW, cp = y_flat.shape
    T = chunk_rows
    assert HW % T == 0 and (T == HW or T % SUBLANE == 0)
    return pl.pallas_call(
        _bn_relu_kernel,
        out_shape=jax.ShapeDtypeStruct((N, HW, cout), jnp.float32),
        grid_spec=pltpu.PrefetchScalarGridSpec(
            num_scalar_prefetch=0,
            grid=(N, HW // T),
            in_specs=[
                pl.BlockSpec((1, T, cp), lambda b, t: (b, t, 0)),
                pl.BlockSpec((1, cp), lambda b, t: (0, 0)),
                pl.BlockSpec((1, cp), lambda b, t: (0, 0)),
            ],
            out_specs=pl.BlockSpec((1, T, cout), lambda b, t: (b, t, 0)),
        ),
        compiler_params=pltpu.CompilerParams(
            dimension_semantics=("parallel", "parallel"),
            vmem_limit_bytes=vmem_limit),
    )(y_flat, scale, shift)


# ----------------------------------------------------------------------------
# Wrapper-side helpers.
# ----------------------------------------------------------------------------
def _pack_conv_weights(w, cin_p, cout_p, dtype):
    kh, kw, cin, cout = w.shape
    wp = jnp.zeros((kh * kw, cin_p, cout_p), jnp.float32)
    wp = wp.at[:, :cin, :cout].set(w.reshape(kh * kw, cin, cout))
    return wp.astype(dtype)                                  # (9, Cin_p, Cout_p)


def _pad_vec(v, cp, fill):
    return jnp.full((cp,), fill, jnp.float32).at[:v.shape[0]].set(v)


def _bn_scale_shift(sums, m2s, gamma_p, beta_p, count_per_part, eps):
    # Chan / Welford-style combine of per-(batch, stripe) partials.
    cp = sums.shape[-1]
    s = sums.reshape(-1, cp)
    m2 = m2s.reshape(-1, cp)
    n_i = float(count_per_part)
    total = s.shape[0] * n_i
    mean = jnp.sum(s, axis=0) / total
    part_mean = s / n_i
    m2_total = jnp.sum(m2, axis=0) + n_i * jnp.sum((part_mean - mean) ** 2,
                                                   axis=0)
    var = m2_total / total                                   # biased variance
    scale = gamma_p * lax.rsqrt(var + eps)
    shift = beta_p - mean * scale
    return scale.reshape(1, cp), shift.reshape(1, cp)


def _stripe_cost_bytes(th, W, cin_p, cout_p):
    xin = 2 * th * W * cin_p * 4          # input stripe blocks (double-buffered)
    xpad = (th + 2) * (W + 2) * cin_p * 2
    yout = 2 * th * W * cout_p * 4        # output stripe blocks (double-buffered)
    acc = 2 * th * W * cout_p * 4         # f32 accumulator + column temporary
    return xin + xpad + yout + acc


def _choose_stripe_rows(H, W, cin_p, cout_p, budget_bytes):
    best = H
    for th in range(H, 0, -1):
        if H % th:
            continue
        if th != H and (th * W) % SUBLANE:
            continue
        best = th
        if _stripe_cost_bytes(th, W, cin_p, cout_p) <= budget_bytes:
            return th
    return best


def _choose_hw_chunk(HW, max_rows=8192):
    for c in range(min(HW, max_rows), 0, -1):
        if HW % c == 0 and (c == HW or c % SUBLANE == 0):
            return c
    return HW


# ----------------------------------------------------------------------------
# VGGBlock forward (NCHW in / NCHW out, like the PyTorch module).
# ----------------------------------------------------------------------------
def vgg_block_forward(x_nchw, params, *, stripe_rows=None, eps=BN_EPS):
    x = jnp.transpose(x_nchw, (0, 2, 3, 1)).astype(jnp.float32)   # -> NHWC
    N, H, W, cin = x.shape
    cmid = params["w1"].shape[-1]
    cout = params["w2"].shape[-1]

    cin1_p = _round_up(cin, SUBLANE)        # narrow K for small Cin (no 9x zeros)
    cmid_p = _round_up(cmid, LANE)          # lane-dense intermediate width
    cout_p = _round_up(cout, LANE)          # lane-dense conv2 output width

    vmem_limit = _vmem_limit_bytes()
    if stripe_rows is None:
        stripe_rows = _choose_stripe_rows(H, W, max(cin1_p, cmid_p),
                                          max(cmid_p, cout_p), vmem_limit // 4)
    TH = stripe_rows
    count_per_part = TH * W

    w1 = _pack_conv_weights(params["w1"], cin1_p, cmid_p, COMPUTE_DTYPE)
    w2 = _pack_conv_weights(params["w2"], cmid_p, cout_p, COMPUTE_DTYPE)
    b1 = _pad_vec(params["b1"], cmid_p, 0.0).reshape(1, cmid_p)
    b2 = _pad_vec(params["b2"], cout_p, 0.0).reshape(1, cout_p)
    g1 = _pad_vec(params["g1"], cmid_p, 0.0)   # gamma pad = 0 -> pad lanes stay 0
    g2 = _pad_vec(params["g2"], cout_p, 0.0)
    be1 = _pad_vec(params["beta1"], cmid_p, 0.0)
    be2 = _pad_vec(params["beta2"], cout_p, 0.0)

    ones = jnp.ones((1, cin), jnp.float32)
    zeros = jnp.zeros((1, cin), jnp.float32)

    # Layer 1: conv straight from the un-padded NHWC input; intermediate is
    # stored bf16 lane-dense; BN1 partial statistics are f32.
    y1, s1, m21 = conv3x3(x, w1, b1, ones, zeros,
                          stripe_rows=TH, out_dtype=COMPUTE_DTYPE,
                          fuse_input_bn_relu=False, vmem_limit=vmem_limit)
    scale1, shift1 = _bn_scale_shift(s1, m21, g1, be1, count_per_part, eps)

    # Layer 2: BN1 + ReLU fused into the conv2 input path.
    y1_nhwc = y1.reshape(N, H, W, cmid_p)                  # metadata-only
    y2, s2, m22 = conv3x3(y1_nhwc, w2, b2, scale1, shift1,
                          stripe_rows=TH, out_dtype=jnp.float32,
                          fuse_input_bn_relu=True, vmem_limit=vmem_limit)
    scale2, shift2 = _bn_scale_shift(s2, m22, g2, be2, count_per_part, eps)

    # Final BN2 + ReLU, pad-channel slice fused into the kernel store.
    chunk = _choose_hw_chunk(H * W)
    out = bn_relu(y2, scale2, shift2, cout, chunk_rows=chunk,
                  vmem_limit=vmem_limit)                   # (N, H*W, Cout)
    out = out.reshape(N, H, W, cout)
    return jnp.transpose(out, (0, 3, 1, 2))                # -> NCHW


# ----------------------------------------------------------------------------
# Pure-JAX reference.  conv_dtype=f32 reproduces the PyTorch module exactly;
# conv_dtype=bf16 + intermediate_dtype=bf16 reproduces the kernel's operand /
# intermediate-storage rounding (stats computed on f32 pre-rounding values,
# exactly like the kernel) for a tight apples-to-apples check.
# ----------------------------------------------------------------------------
def _ref_forward(x_nchw, params, eps=BN_EPS, conv_dtype=jnp.float32,
                 intermediate_dtype=jnp.float32):
    x = jnp.transpose(x_nchw, (0, 2, 3, 1)).astype(jnp.float32)

    def block(x, w, b, g, beta, store_dtype):
        y = lax.conv_general_dilated(
            x.astype(conv_dtype), w.astype(conv_dtype), (1, 1), "SAME",
            dimension_numbers=("NHWC", "HWIO", "NHWC"),
            preferred_element_type=jnp.float32) + b.reshape(1, 1, 1, -1)
        m = y.mean(axis=(0, 1, 2))
        v = y.var(axis=(0, 1, 2))
        y = y.astype(store_dtype).astype(jnp.float32)
        y = (y - m) / jnp.sqrt(v + eps) * g + beta
        return jnp.maximum(y, 0.0)

    y = block(x, params["w1"], params["b1"], params["g1"], params["beta1"],
              intermediate_dtype)
    y = block(y, params["w2"], params["b2"], params["g2"], params["beta2"],
              jnp.float32)
    return jnp.transpose(y, (0, 3, 1, 2))


if __name__ == "__main__":
    key = jax.random.PRNGKey(0)
    kx, k1, k2, k3, k4 = jax.random.split(key, 5)

    # VGGBlock(in_channels=4, middle_channels=8, out_channels=4)
    Cin, Cmid, Cout = 4, 8, 4
    N, H, W = 2, 16, 16

    params = {
        "w1": jax.random.normal(k1, (3, 3, Cin, Cmid), jnp.float32)
              * (1.0 / jnp.sqrt(9.0 * Cin)),
        "b1": jax.random.normal(k2, (Cmid,), jnp.float32) * 0.1,
        "g1": jnp.ones((Cmid,), jnp.float32),
        "beta1": jnp.zeros((Cmid,), jnp.float32),
        "w2": jax.random.normal(k3, (3, 3, Cmid, Cout), jnp.float32)
              * (1.0 / jnp.sqrt(9.0 * Cmid)),
        "b2": jax.random.normal(k4, (Cout,), jnp.float32) * 0.1,
        "g2": jnp.ones((Cout,), jnp.float32),
        "beta2": jnp.zeros((Cout,), jnp.float32),
    }

    x = jax.random.normal(kx, (N, Cin, H, W), jnp.float32)   # NCHW (PyTorch)

    fwd = jax.jit(vgg_block_forward, static_argnames=("stripe_rows",))

    out = jax.block_until_ready(fwd(x, params))
    assert out.shape == (N, Cout, H, W), out.shape

    # Explicitly exercise the multi-stripe halo path (4 stripes of 4 rows).
    out_striped = jax.block_until_ready(fwd(x, params, stripe_rows=4))
    assert jnp.allclose(out, out_striped, atol=1e-3, rtol=1e-3), (
        float(jnp.max(jnp.abs(out - out_striped))))

    # Tight check: reference with the same bf16 matmul operands and bf16
    # intermediate storage as the kernel (isolates kernel-logic errors).
    ref_bf16 = jax.block_until_ready(
        _ref_forward(x, params, conv_dtype=COMPUTE_DTYPE,
                     intermediate_dtype=COMPUTE_DTYPE))
    assert jnp.allclose(out, ref_bf16, atol=1e-2, rtol=1e-2), (
        float(jnp.max(jnp.abs(out - ref_bf16))))

    # Loose check: full-f32 reference (budget for bf16 operand rounding).
    ref_f32 = jax.block_until_ready(_ref_forward(x, params))
    assert jnp.allclose(out, ref_f32, atol=5e-2, rtol=5e-2), (
        float(jnp.max(jnp.abs(out - ref_f32))))

    print("KERNEL_OK")
</pallas_src>

<mosaic_0001>
module attributes {stable_mosaic.version = 11 : i64} {
  func.func @_conv3x3_kernel(%arg0: i32, %arg1: i32, %arg2: memref<1x16x16x4xf32, #tpu.memory_space<vmem>>, %arg3: memref<1x1x16x4xf32, #tpu.memory_space<vmem>>, %arg4: memref<1x1x16x4xf32, #tpu.memory_space<vmem>>, %arg5: memref<9x8x128xbf16, #tpu.memory_space<vmem>>, %arg6: memref<1x128xf32, #tpu.memory_space<vmem>>, %arg7: memref<1x4xf32, #tpu.memory_space<vmem>>, %arg8: memref<1x4xf32, #tpu.memory_space<vmem>>, %arg9: memref<1x256x128xbf16, #tpu.memory_space<vmem>>, %arg10: memref<1x1x1x128xf32, #tpu.memory_space<vmem>>, %arg11: memref<1x1x1x128xf32, #tpu.memory_space<vmem>>, %arg12: memref<18x18x8xbf16, #tpu.memory_space<vmem>>) attributes {dimension_semantics = [#tpu.dimension_semantics<parallel>, #tpu.dimension_semantics<parallel>], iteration_bounds = array<i64: 2, 1>, scalar_prefetch = 0 : i64, scratch_operands = 1 : i64, tpu.core_type = #tpu.core_type<tc>, window_params = [{transform_indices = @transform_0, window_bounds = array<i64: 1, 16, 16, 4>}, {transform_indices = @transform_1, window_bounds = array<i64: 1, 1, 16, 4>}, {transform_indices = @transform_2, window_bounds = array<i64: 1, 1, 16, 4>}, {pipeline_mode = #tpu.pipeline_mode<synchronous>, transform_indices = @transform_3, window_bounds = array<i64: 9, 8, 128>}, {pipeline_mode = #tpu.pipeline_mode<synchronous>, transform_indices = @transform_4, window_bounds = array<i64: 1, 128>}, {pipeline_mode = #tpu.pipeline_mode<synchronous>, transform_indices = @transform_5, window_bounds = array<i64: 1, 4>}, {pipeline_mode = #tpu.pipeline_mode<synchronous>, transform_indices = @transform_6, window_bounds = array<i64: 1, 4>}, {transform_indices = @transform_7, window_bounds = array<i64: 1, 256, 128>}, {transform_indices = @transform_8, window_bounds = array<i64: 1, 1, 1, 128>}, {transform_indices = @transform_9, window_bounds = array<i64: 1, 1, 1, 128>}]} {
    %cst = arith.constant 0.000000e+00 : bf16
    %0 = vector.broadcast %cst : bf16 to vector<1x18x8xbf16>
    %cst_0 = arith.constant 0.000000e+00 : bf16
    %1 = vector.broadcast %cst_0 : bf16 to vector<18x1x8xbf16>
    %c0 = arith.constant 0 : index
    %c0_1 = arith.constant 0 : index
    %c0_2 = arith.constant 0 : index
    %2 = vector.load %arg12[%c0, %c0_1, %c0_2] : memref<18x18x8xbf16, #tpu.memory_space<vmem>>, vector<1x18x8xbf16>
    tpu.vector_store %arg12[%c0, %c0_1, %c0_2], %0 {strides = array<i32>} : memref<18x18x8xbf16, #tpu.memory_space<vmem>>, vector<1x18x8xbf16>,
    %c17 = arith.constant 17 : index
    %c0_3 = arith.constant 0 : index
    %c0_4 = arith.constant 0 : index
    %3 = vector.load %arg12[%c17, %c0_3, %c0_4] : memref<18x18x8xbf16, #tpu.memory_space<vmem>>, vector<1x18x8xbf16>
    tpu.vector_store %arg12[%c17, %c0_3, %c0_4], %0 {strides = array<i32>} : memref<18x18x8xbf16, #tpu.memory_space<vmem>>, vector<1x18x8xbf16>,
    %c0_5 = arith.constant 0 : index
    %c0_6 = arith.constant 0 : index
    %c0_7 = arith.constant 0 : index
    %4 = vector.load %arg12[%c0_5, %c0_6, %c0_7] : memref<18x18x8xbf16, #tpu.memory_space<vmem>>, vector<18x1x8xbf16>
    tpu.vector_store %arg12[%c0_5, %c0_6, %c0_7], %1 {strides = array<i32>} : memref<18x18x8xbf16, #tpu.memory_space<vmem>>, vector<18x1x8xbf16>,
    %c0_8 = arith.constant 0 : index
    %c17_9 = arith.constant 17 : index
    %c0_10 = arith.constant 0 : index
    %5 = vector.load %arg12[%c0_8, %c17_9, %c0_10] : memref<18x18x8xbf16, #tpu.memory_space<vmem>>, vector<18x1x8xbf16>
    tpu.vector_store %arg12[%c0_8, %c17_9, %c0_10], %1 {strides = array<i32>} : memref<18x18x8xbf16, #tpu.memory_space<vmem>>, vector<18x1x8xbf16>,
    %c0_11 = arith.constant 0 : index
    %c0_12 = arith.constant 0 : index
    %c0_13 = arith.constant 0 : index
    %c0_14 = arith.constant 0 : index
    %6 = vector.load %arg2[%c0_11, %c0_12, %c0_13, %c0_14] : memref<1x16x16x4xf32, #tpu.memory_space<vmem>>, vector<1x16x16x4xf32>
    %7 = vector.shape_cast %6 : vector<1x16x16x4xf32> to vector<16x16x4xf32>
    %8 = arith.truncf %7 : vector<16x16x4xf32> to vector<16x16x4xbf16>
    %c1 = arith.constant 1 : index
    %c1_15 = arith.constant 1 : index
    %c0_16 = arith.constant 0 : index
    %9 = vector.load %arg12[%c1, %c1_15, %c0_16] : memref<18x18x8xbf16, #tpu.memory_space<vmem>>, vector<16x16x4xbf16>
    tpu.vector_store %arg12[%c1, %c1_15, %c0_16], %8 {strides = array<i32>} : memref<18x18x8xbf16, #tpu.memory_space<vmem>>, vector<16x16x4xbf16>,
    %cst_17 = arith.constant 0.000000e+00 : bf16
    %10 = vector.broadcast %cst_17 : bf16 to vector<16x16x4xbf16>
    %c1_18 = arith.constant 1 : index
    %c1_19 = arith.constant 1 : index
    %c4 = arith.constant 4 : index
    %11 = vector.load %arg12[%c1_18, %c1_19, %c4] : memref<18x18x8xbf16, #tpu.memory_space<vmem>>, vector<16x16x4xbf16>
    tpu.vector_store %arg12[%c1_18, %c1_19, %c4], %10 {strides = array<i32>} : memref<18x18x8xbf16, #tpu.memory_space<vmem>>, vector<16x16x4xbf16>,
    %c0_i32 = arith.constant 0 : i32
    %12 = arith.cmpi sgt, %arg1, %c0_i32 : i32
    %13 = arith.extui %12 : i1 to i32
    %c0_i32_20 = arith.constant 0 : i32
    %14 = arith.cmpi ne, %13, %c0_i32_20 : i32
    scf.if %14 {
      %c0_96 = arith.constant 0 : index
      %c0_97 = arith.constant 0 : index
      %c0_98 = arith.constant 0 : index
      %c0_99 = arith.constant 0 : index
      %95 = vector.load %arg3[%c0_96, %c0_97, %c0_98, %c0_99] : memref<1x1x16x4xf32, #tpu.memory_space<vmem>>, vector<1x1x16x4xf32>
      %96 = vector.shape_cast %95 : vector<1x1x16x4xf32> to vector<1x16x4xf32>
      %97 = arith.truncf %96 : vector<1x16x4xf32> to vector<1x16x4xbf16>
      %c0_100 = arith.constant 0 : index
      %c1_101 = arith.constant 1 : index
      %c0_102 = arith.constant 0 : index
      %98 = vector.load %arg12[%c0_100, %c1_101, %c0_102] : memref<18x18x8xbf16, #tpu.memory_space<vmem>>, vector<1x16x4xbf16>
      tpu.vector_store %arg12[%c0_100, %c1_101, %c0_102], %97 {strides = array<i32>} : memref<18x18x8xbf16, #tpu.memory_space<vmem>>, vector<1x16x4xbf16>,
    } else {
    }
    %c0_i32_21 = arith.constant 0 : i32
    %15 = arith.cmpi slt, %arg1, %c0_i32_21 : i32
    %16 = arith.extui %15 : i1 to i32
    %c0_i32_22 = arith.constant 0 : i32
    %17 = arith.cmpi ne, %16, %c0_i32_22 : i32
    scf.if %17 {
      %c0_96 = arith.constant 0 : index
      %c0_97 = arith.constant 0 : index
      %c0_98 = arith.constant 0 : index
      %c0_99 = arith.constant 0 : index
      %95 = vector.load %arg4[%c0_96, %c0_97, %c0_98, %c0_99] : memref<1x1x16x4xf32, #tpu.memory_space<vmem>>, vector<1x1x16x4xf32>
      %96 = vector.shape_cast %95 : vector<1x1x16x4xf32> to vector<1x16x4xf32>
      %97 = arith.truncf %96 : vector<1x16x4xf32> to vector<1x16x4xbf16>
      %c17_100 = arith.constant 17 : index
      %c1_101 = arith.constant 1 : index
      %c0_102 = arith.constant 0 : index
      %98 = vector.load %arg12[%c17_100, %c1_101, %c0_102] : memref<18x18x8xbf16, #tpu.memory_space<vmem>>, vector<1x16x4xbf16>
      tpu.vector_store %arg12[%c17_100, %c1_101, %c0_102], %97 {strides = array<i32>} : memref<18x18x8xbf16, #tpu.memory_space<vmem>>, vector<1x16x4xbf16>,
    } else {
    }
    %c0_23 = arith.constant 0 : index
    %c0_24 = arith.constant 0 : index
    %c0_25 = arith.constant 0 : index
    %18 = vector.load %arg12[%c0_23, %c0_24, %c0_25] : memref<18x18x8xbf16, #tpu.memory_space<vmem>>, vector<16x16x8xbf16>
    %19 = vector.shape_cast %18 : vector<16x16x8xbf16> to vector<256x8xbf16>
    %c0_26 = arith.constant 0 : index
    %c0_27 = arith.constant 0 : index
    %c0_28 = arith.constant 0 : index
    %20 = vector.load %arg5[%c0_26, %c0_27, %c0_28] : memref<9x8x128xbf16, #tpu.memory_space<vmem>>, vector<1x8x128xbf16>
    %21 = vector.shape_cast %20 : vector<1x8x128xbf16> to vector<8x128xbf16>
    %cst_29 = arith.constant dense<0.000000e+00> : vector<256x128xf32>
    %22 = tpu.matmul %19, %21, %cst_29 {dimension_numbers = #tpu.dot_dimension_numbers<[1], [0], [0], [1], [0, 0, 1, 1], [], []>} : vector<256x8xbf16>, vector<8x128xbf16>, vector<256x128xf32> -> vector<256x128xf32>
    %c0_30 = arith.constant 0 : index
    %c1_31 = arith.constant 1 : index
    %c0_32 = arith.constant 0 : index
    %23 = vector.load %arg12[%c0_30, %c1_31, %c0_32] : memref<18x18x8xbf16, #tpu.memory_space<vmem>>, vector<16x16x8xbf16>
    %24 = vector.shape_cast %23 : vector<16x16x8xbf16> to vector<256x8xbf16>
    %c1_33 = arith.constant 1 : index
    %c0_34 = arith.constant 0 : index
    %c0_35 = arith.constant 0 : index
    %25 = vector.load %arg5[%c1_33, %c0_34, %c0_35] : memref<9x8x128xbf16, #tpu.memory_space<vmem>>, vector<1x8x128xbf16>
    %26 = vector.shape_cast %25 : vector<1x8x128xbf16> to vector<8x128xbf16>
    %cst_36 = arith.constant dense<0.000000e+00> : vector<256x128xf32>
    %27 = tpu.matmul %24, %26, %cst_36 {dimension_numbers = #tpu.dot_dimension_numbers<[1], [0], [0], [1], [0, 0, 1, 1], [], []>} : vector<256x8xbf16>, vector<8x128xbf16>, vector<256x128xf32> -> vector<256x128xf32>
    %28 = arith.addf %22, %27 : vector<256x128xf32>
    %c0_37 = arith.constant 0 : index
    %c2 = arith.constant 2 : index
    %c0_38 = arith.constant 0 : index
    %29 = vector.load %arg12[%c0_37, %c2, %c0_38] : memref<18x18x8xbf16, #tpu.memory_space<vmem>>, vector<16x16x8xbf16>
    %30 = vector.shape_cast %29 : vector<16x16x8xbf16> to vector<256x8xbf16>
    %c2_39 = arith.constant 2 : index
    %c0_40 = arith.constant 0 : index
    %c0_41 = arith.constant 0 : index
    %31 = vector.load %arg5[%c2_39, %c0_40, %c0_41] : memref<9x8x128xbf16, #tpu.memory_space<vmem>>, vector<1x8x128xbf16>
    %32 = vector.shape_cast %31 : vector<1x8x128xbf16> to vector<8x128xbf16>
    %cst_42 = arith.constant dense<0.000000e+00> : vector<256x128xf32>
    %33 = tpu.matmul %30, %32, %cst_42 {dimension_numbers = #tpu.dot_dimension_numbers<[1], [0], [0], [1], [0, 0, 1, 1], [], []>} : vector<256x8xbf16>, vector<8x128xbf16>, vector<256x128xf32> -> vector<256x128xf32>
    %34 = arith.addf %28, %33 : vector<256x128xf32>
    %c1_43 = arith.constant 1 : index
    %c0_44 = arith.constant 0 : index
    %c0_45 = arith.constant 0 : index
    %35 = vector.load %arg12[%c1_43, %c0_44, %c0_45] : memref<18x18x8xbf16, #tpu.memory_space<vmem>>, vector<16x16x8xbf16>
    %36 = vector.shape_cast %35 : vector<16x16x8xbf16> to vector<256x8xbf16>
    %c3 = arith.constant 3 : index
    %c0_46 = arith.constant 0 : index
    %c0_47 = arith.constant 0 : index
    %37 = vector.load %arg5[%c3, %c0_46, %c0_47] : memref<9x8x128xbf16, #tpu.memory_space<vmem>>, vector<1x8x128xbf16>
    %38 = vector.shape_cast %37 : vector<1x8x128xbf16> to vector<8x128xbf16>
    %cst_48 = arith.constant dense<0.000000e+00> : vector<256x128xf32>
    %39 = tpu.matmul %36, %38, %cst_48 {dimension_numbers = #tpu.dot_dimension_numbers<[1], [0], [0], [1], [0, 0, 1, 1], [], []>} : vector<256x8xbf16>, vector<8x128xbf16>, vector<256x128xf32> -> vector<256x128xf32>
    %40 = arith.addf %34, %39 : vector<256x128xf32>
    %c1_49 = arith.constant 1 : index
    %c1_50 = arith.constant 1 : index
    %c0_51 = arith.constant 0 : index
    %41 = vector.load %arg12[%c1_49, %c1_50, %c0_51] : memref<18x18x8xbf16, #tpu.memory_space<vmem>>, vector<16x16x8xbf16>
    %42 = vector.shape_cast %41 : vector<16x16x8xbf16> to vector<256x8xbf16>
    %c4_52 = arith.constant 4 : index
    %c0_53 = arith.constant 0 : index
    %c0_54 = arith.constant 0 : index
    %43 = vector.load %arg5[%c4_52, %c0_53, %c0_54] : memref<9x8x128xbf16, #tpu.memory_space<vmem>>, vector<1x8x128xbf16>
    %44 = vector.shape_cast %43 : vector<1x8x128xbf16> to vector<8x128xbf16>
    %cst_55 = arith.constant dense<0.000000e+00> : vector<256x128xf32>
    %45 = tpu.matmul %42, %44, %cst_55 {dimension_numbers = #tpu.dot_dimension_numbers<[1], [0], [0], [1], [0, 0, 1, 1], [], []>} : vector<256x8xbf16>, vector<8x128xbf16>, vector<256x128xf32> -> vector<256x128xf32>
    %46 = arith.addf %40, %45 : vector<256x128xf32>
    %c1_56 = arith.constant 1 : index
    %c2_57 = arith.constant 2 : index
    %c0_58 = arith.constant 0 : index
    %47 = vector.load %arg12[%c1_56, %c2_57, %c0_58] : memref<18x18x8xbf16, #tpu.memory_space<vmem>>, vector<16x16x8xbf16>
    %48 = vector.shape_cast %47 : vector<16x16x8xbf16> to vector<256x8xbf16>
    %c5 = arith.constant 5 : index
    %c0_59 = arith.constant 0 : index
    %c0_60 = arith.constant 0 : index
    %49 = vector.load %arg5[%c5, %c0_59, %c0_60] : memref<9x8x128xbf16, #tpu.memory_space<vmem>>, vector<1x8x128xbf16>
    %50 = vector.shape_cast %49 : vector<1x8x128xbf16> to vector<8x128xbf16>
    %cst_61 = arith.constant dense<0.000000e+00> : vector<256x128xf32>
    %51 = tpu.matmul %48, %50, %cst_61 {dimension_numbers = #tpu.dot_dimension_numbers<[1], [0], [0], [1], [0, 0, 1, 1], [], []>} : vector<256x8xbf16>, vector<8x128xbf16>, vector<256x128xf32> -> vector<256x128xf32>
    %52 = arith.addf %46, %51 : vector<256x128xf32>
    %c2_62 = arith.constant 2 : index
    %c0_63 = arith.constant 0 : index
    %c0_64 = arith.constant 0 : index
    %53 = vector.load %arg12[%c2_62, %c0_63, %c0_64] : memref<18x18x8xbf16, #tpu.memory_space<vmem>>, vector<16x16x8xbf16>
    %54 = vector.shape_cast %53 : vector<16x16x8xbf16> to vector<256x8xbf16>
    %c6 = arith.constant 6 : index
    %c0_65 = arith.constant 0 : index
    %c0_66 = arith.constant 0 : index
    %55 = vector.load %arg5[%c6, %c0_65, %c0_66] : memref<9x8x128xbf16, #tpu.memory_space<vmem>>, vector<1x8x128xbf16>
    %56 = vector.shape_cast %55 : vector<1x8x128xbf16> to vector<8x128xbf16>
    %cst_67 = arith.constant dense<0.000000e+00> : vector<256x128xf32>
    %57 = tpu.matmul %54, %56, %cst_67 {dimension_numbers = #tpu.dot_dimension_numbers<[1], [0], [0], [1], [0, 0, 1, 1], [], []>} : vector<256x8xbf16>, vector<8x128xbf16>, vector<256x128xf32> -> vector<256x128xf32>
    %58 = arith.addf %52, %57 : vector<256x128xf32>
    %c2_68 = arith.constant 2 : index
    %c1_69 = arith.constant 1 : index
    %c0_70 = arith.constant 0 : index
    %59 = vector.load %arg12[%c2_68, %c1_69, %c0_70] : memref<18x18x8xbf16, #tpu.memory_space<vmem>>, vector<16x16x8xbf16>
    %60 = vector.shape_cast %59 : vector<16x16x8xbf16> to vector<256x8xbf16>
    %c7 = arith.constant 7 : index
    %c0_71 = arith.constant 0 : index
    %c0_72 = arith.constant 0 : index
    %61 = vector.load %arg5[%c7, %c0_71, %c0_72] : memref<9x8x128xbf16, #tpu.memory_space<vmem>>, vector<1x8x128xbf16>
    %62 = vector.shape_cast %61 : vector<1x8x128xbf16> to vector<8x128xbf16>
    %cst_73 = arith.constant dense<0.000000e+00> : vector<256x128xf32>
    %63 = tpu.matmul %60, %62, %cst_73 {dimension_numbers = #tpu.dot_dimension_numbers<[1], [0], [0], [1], [0, 0, 1, 1], [], []>} : vector<256x8xbf16>, vector<8x128xbf16>, vector<256x128xf32> -> vector<256x128xf32>
    %64 = arith.addf %58, %63 : vector<256x128xf32>
    %c2_74 = arith.constant 2 : index
    %c2_75 = arith.constant 2 : index
    %c0_76 = arith.constant 0 : index
    %65 = vector.load %arg12[%c2_74, %c2_75, %c0_76] : memref<18x18x8xbf16, #tpu.memory_space<vmem>>, vector<16x16x8xbf16>
    %66 = vector.shape_cast %65 : vector<16x16x8xbf16> to vector<256x8xbf16>
    %c8 = arith.constant 8 : index
    %c0_77 = arith.constant 0 : index
    %c0_78 = arith.constant 0 : index
    %67 = vector.load %arg5[%c8, %c0_77, %c0_78] : memref<9x8x128xbf16, #tpu.memory_space<vmem>>, vector<1x8x128xbf16>
    %68 = vector.shape_cast %67 : vector<1x8x128xbf16> to vector<8x128xbf16>
    %cst_79 = arith.constant dense<0.000000e+00> : vector<256x128xf32>
    %69 = tpu.matmul %66, %68, %cst_79 {dimension_numbers = #tpu.dot_dimension_numbers<[1], [0], [0], [1], [0, 0, 1, 1], [], []>} : vector<256x8xbf16>, vector<8x128xbf16>, vector<256x128xf32> -> vector<256x128xf32>
    %70 = arith.addf %64, %69 : vector<256x128xf32>
    %c0_80 = arith.constant 0 : index
    %c0_81 = arith.constant 0 : index
    %71 = vector.load %arg6[%c0_80, %c0_81] : memref<1x128xf32, #tpu.memory_space<vmem>>, vector<1x128xf32>
    %72 = vector.shape_cast %71 : vector<1x128xf32> to vector<128xf32>
    %73 = vector.shape_cast %72 : vector<128xf32> to vector<1x128xf32>
    %74 = vector.broadcast %73 : vector<1x128xf32> to vector<256x128xf32>
    %75 = arith.addf %70, %74 : vector<256x128xf32>
    %76 = arith.truncf %75 : vector<256x128xf32> to vector<256x128xbf16>
    %c0_82 = arith.constant 0 : index
    %c0_83 = arith.constant 0 : index
    %c0_84 = arith.constant 0 : index
    %77 = vector.load %arg9[%c0_82, %c0_83, %c0_84] : memref<1x256x128xbf16, #tpu.memory_space<vmem>>, vector<1x256x128xbf16>
    %78 = vector.shape_cast %77 : vector<1x256x128xbf16> to vector<256x128xbf16>
    %79 = vector.shape_cast %76 : vector<256x128xbf16> to vector<1x256x128xbf16>
    tpu.vector_store %arg9[%c0_82, %c0_83, %c0_84], %79 {strides = array<i32>} : memref<1x256x128xbf16, #tpu.memory_space<vmem>>, vector<1x256x128xbf16>,
    %cst_85 = arith.constant dense<0.000000e+00> : vector<128xf32>
    %80 = vector.multi_reduction <add>, %75, %cst_85 [0] : vector<256x128xf32> to vector<128xf32>
    %81 = vector.shape_cast %80 : vector<128xf32> to vector<1x128xf32>
    %cst_86 = arith.constant 3.906250e-03 : f32
    %82 = vector.broadcast %cst_86 : f32 to vector<1x128xf32>
    %83 = arith.mulf %81, %82 : vector<1x128xf32>
    %84 = vector.broadcast %83 : vector<1x128xf32> to vector<256x128xf32>
    %85 = arith.subf %75, %84 : vector<256x128xf32>
    %c0_87 = arith.constant 0 : index
    %c0_88 = arith.constant 0 : index
    %c0_89 = arith.constant 0 : index
    %c0_90 = arith.constant 0 : index
    %86 = vector.load %arg10[%c0_87, %c0_88, %c0_89, %c0_90] : memref<1x1x1x128xf32, #tpu.memory_space<vmem>>, vector<1x1x1x128xf32>
    %87 = vector.shape_cast %86 : vector<1x1x1x128xf32> to vector<1x128xf32>
    %88 = vector.shape_cast %81 : vector<1x128xf32> to vector<1x1x1x128xf32>
    tpu.vector_store %arg10[%c0_87, %c0_88, %c0_89, %c0_90], %88 {strides = array<i32>} : memref<1x1x1x128xf32, #tpu.memory_space<vmem>>, vector<1x1x1x128xf32>,
    %89 = arith.mulf %85, %85 : vector<256x128xf32>
    %cst_91 = arith.constant dense<0.000000e+00> : vector<128xf32>
    %90 = vector.multi_reduction <add>, %89, %cst_91 [0] : vector<256x128xf32> to vector<128xf32>
    %91 = vector.shape_cast %90 : vector<128xf32> to vector<1x128xf32>
    %c0_92 = arith.constant 0 : index
    %c0_93 = arith.constant 0 : index
    %c0_94 = arith.constant 0 : index
    %c0_95 = arith.constant 0 : index
    %92 = vector.load %arg11[%c0_92, %c0_93, %c0_94, %c0_95] : memref<1x1x1x128xf32, #tpu.memory_space<vmem>>, vector<1x1x1x128xf32>
    %93 = vector.shape_cast %92 : vector<1x1x1x128xf32> to vector<1x128xf32>
    %94 = vector.shape_cast %91 : vector<1x128xf32> to vector<1x1x1x128xf32>
    tpu.vector_store %arg11[%c0_92, %c0_93, %c0_94, %c0_95], %94 {strides = array<i32>} : memref<1x1x1x128xf32, #tpu.memory_space<vmem>>, vector<1x1x1x128xf32>,
    return
  }
  func.func @transform_0(%arg0: i32, %arg1: i32) -> (i32, i32, i32, i32) {
    %c0_i32 = arith.constant 0 : i32
    %c0_i32_0 = arith.constant 0 : i32
    %c0_i32_1 = arith.constant 0 : i32
    return %arg0, %arg1, %c0_i32, %c0_i32_0 : i32, i32, i32, i32
  }
  func.func @transform_1(%arg0: i32, %arg1: i32) -> (i32, i32, i32, i32) {
    %c16_i32 = arith.constant 16 : i32
    %0 = arith.muli %arg1, %c16_i32 : i32
    %c1_i32 = arith.constant 1 : i32
    %1 = arith.subi %0, %c1_i32 : i32
    %c0_i32 = arith.constant 0 : i32
    %2 = arith.maxsi %1, %c0_i32 : i32
    %c0_i32_0 = arith.constant 0 : i32
    %c0_i32_1 = arith.constant 0 : i32
    %c0_i32_2 = arith.constant 0 : i32
    return %arg0, %2, %c0_i32_0, %c0_i32_1 : i32, i32, i32, i32
  }
  func.func @transform_2(%arg0: i32, %arg1: i32) -> (i32, i32, i32, i32) {
    %c16_i32 = arith.constant 16 : i32
    %0 = arith.muli %arg1, %c16_i32 : i32
    %c16_i32_0 = arith.constant 16 : i32
    %1 = arith.addi %0, %c16_i32_0 : i32
    %c15_i32 = arith.constant 15 : i32
    %2 = arith.minsi %1, %c15_i32 : i32
    %c0_i32 = arith.constant 0 : i32
    %c0_i32_1 = arith.constant 0 : i32
    %c0_i32_2 = arith.constant 0 : i32
    return %arg0, %2, %c0_i32, %c0_i32_1 : i32, i32, i32, i32
  }
  func.func @transform_3(%arg0: i32, %arg1: i32) -> (i32, i32, i32) {
    %c0_i32 = arith.constant 0 : i32
    %c0_i32_0 = arith.constant 0 : i32
    %c0_i32_1 = arith.constant 0 : i32
    %c0_i32_2 = arith.constant 0 : i32
    return %c0_i32, %c0_i32_0, %c0_i32_1 : i32, i32, i32
  }
  func.func @transform_4(%arg0: i32, %arg1: i32) -> (i32, i32) {
    %c0_i32 = arith.constant 0 : i32
    %c0_i32_0 = arith.constant 0 : i32
    %c0_i32_1 = arith.constant 0 : i32
    return %c0_i32, %c0_i32_0 : i32, i32
  }
  func.func @transform_5(%arg0: i32, %arg1: i32) -> (i32, i32) {
    %c0_i32 = arith.constant 0 : i32
    %c0_i32_0 = arith.constant 0 : i32
    %c0_i32_1 = arith.constant 0 : i32
    return %c0_i32, %c0_i32_0 : i32, i32
  }
  func.func @transform_6(%arg0: i32, %arg1: i32) -> (i32, i32) {
    %c0_i32 = arith.constant 0 : i32
    %c0_i32_0 = arith.constant 0 : i32
    %c0_i32_1 = arith.constant 0 : i32
    return %c0_i32, %c0_i32_0 : i32, i32
  }
  func.func @transform_7(%arg0: i32, %arg1: i32) -> (i32, i32, i32) {
    %c0_i32 = arith.constant 0 : i32
    %c0_i32_0 = arith.constant 0 : i32
    return %arg0, %arg1, %c0_i32 : i32, i32, i32
  }
  func.func @transform_8(%arg0: i32, %arg1: i32) -> (i32, i32, i32, i32) {
    %c0_i32 = arith.constant 0 : i32
    %c0_i32_0 = arith.constant 0 : i32
    %c0_i32_1 = arith.constant 0 : i32
    return %arg0, %arg1, %c0_i32, %c0_i32_0 : i32, i32, i32, i32
  }
  func.func @transform_9(%arg0: i32, %arg1: i32) -> (i32, i32, i32, i32) {
    %c0_i32 = arith.constant 0 : i32
    %c0_i32_0 = arith.constant 0 : i32
    %c0_i32_1 = arith.constant 0 : i32
    return %arg0, %arg1, %c0_i32, %c0_i32_0 : i32, i32, i32, i32
  }
}

module attributes {stable_mosaic.version = 11 : i64} {
  func.func @_bn_relu_kernel(%arg0: i32, %arg1: i32, %arg2: memref<1x256x128xf32, #tpu.memory_space<vmem>>, %arg3: memref<1x128xf32, #tpu.memory_space<vmem>>, %arg4: memref<1x128xf32, #tpu.memory_space<vmem>>, %arg5: memref<1x256x4xf32, #tpu.memory_space<vmem>>) attributes {dimension_semantics = [#tpu.dimension_semantics<parallel>, #tpu.dimension_semantics<parallel>], iteration_bounds = array<i64: 2, 1>, scalar_prefetch = 0 : i64, scratch_operands = 0 : i64, tpu.core_type = #tpu.core_type<tc>, window_params = [{transform_indices = @transform_0, window_bounds = array<i64: 1, 256, 128>}, {pipeline_mode = #tpu.pipeline_mode<synchronous>, transform_indices = @transform_1, window_bounds = array<i64: 1, 128>}, {pipeline_mode = #tpu.pipeline_mode<synchronous>, transform_indices = @transform_2, window_bounds = array<i64: 1, 128>}, {transform_indices = @transform_3, window_bounds = array<i64: 1, 256, 4>}]} {
    %c0 = arith.constant 0 : index
    %c0_0 = arith.constant 0 : index
    %c0_1 = arith.constant 0 : index
    %0 = vector.load %arg2[%c0, %c0_0, %c0_1] : memref<1x256x128xf32, #tpu.memory_space<vmem>>, vector<1x256x128xf32>
    %1 = vector.shape_cast %0 : vector<1x256x128xf32> to vector<256x128xf32>
    %c0_2 = arith.constant 0 : index
    %c0_3 = arith.constant 0 : index
    %2 = vector.load %arg3[%c0_2, %c0_3] : memref<1x128xf32, #tpu.memory_space<vmem>>, vector<1x128xf32>
    %3 = vector.shape_cast %2 : vector<1x128xf32> to vector<128xf32>
    %4 = vector.shape_cast %3 : vector<128xf32> to vector<1x128xf32>
    %5 = vector.broadcast %4 : vector<1x128xf32> to vector<256x128xf32>
    %6 = arith.mulf %1, %5 : vector<256x128xf32>
    %c0_4 = arith.constant 0 : index
    %c0_5 = arith.constant 0 : index
    %7 = vector.load %arg4[%c0_4, %c0_5] : memref<1x128xf32, #tpu.memory_space<vmem>>, vector<1x128xf32>
    %8 = vector.shape_cast %7 : vector<1x128xf32> to vector<128xf32>
    %9 = vector.shape_cast %8 : vector<128xf32> to vector<1x128xf32>
    %10 = vector.broadcast %9 : vector<1x128xf32> to vector<256x128xf32>
    %11 = arith.addf %6, %10 : vector<256x128xf32>
    %cst = arith.constant 0.000000e+00 : f32
    %12 = vector.broadcast %cst : f32 to vector<256x128xf32>
    %13 = arith.maximumf %11, %12 : vector<256x128xf32>
    %14 = vector.extract_strided_slice %13 {offsets = [0, 0], sizes = [256, 4], strides = [1, 1]} : vector<256x128xf32> to vector<256x4xf32>
    %c0_6 = arith.constant 0 : index
    %c0_7 = arith.constant 0 : index
    %c0_8 = arith.constant 0 : index
    %15 = vector.load %arg5[%c0_6, %c0_7, %c0_8] : memref<1x256x4xf32, #tpu.memory_space<vmem>>, vector<1x256x4xf32>
    %16 = vector.shape_cast %15 : vector<1x256x4xf32> to vector<256x4xf32>
    %17 = vector.shape_cast %14 : vector<256x4xf32> to vector<1x256x4xf32>
    tpu.vector_store %arg5[%c0_6, %c0_7, %c0_8], %17 {strides = array<i32>} : memref<1x256x4xf32, #tpu.memory_space<vmem>>, vector<1x256x4xf32>,
    return
  }
  func.func @transform_0(%arg0: i32, %arg1: i32) -> (i32, i32, i32) {
    %c0_i32 = arith.constant 0 : i32
    %c0_i32_0 = arith.constant 0 : i32
    return %arg0, %arg1, %c0_i32 : i32, i32, i32
  }
  func.func @transform_1(%arg0: i32, %arg1: i32) -> (i32, i32) {
    %c0_i32 = arith.constant 0 : i32
    %c0_i32_0 = arith.constant 0 : i32
    %c0_i32_1 = arith.constant 0 : i32
    return %c0_i32, %c0_i32_0 : i32, i32
  }
  func.func @transform_2(%arg0: i32, %arg1: i32) -> (i32, i32) {
    %c0_i32 = arith.constant 0 : i32
    %c0_i32_0 = arith.constant 0 : i32
    %c0_i32_1 = arith.constant 0 : i32
    return %c0_i32, %c0_i32_0 : i32, i32
  }
  func.func @transform_3(%arg0: i32, %arg1: i32) -> (i32, i32, i32) {
    %c0_i32 = arith.constant 0 : i32
    %c0_i32_0 = arith.constant 0 : i32
    return %arg0, %arg1, %c0_i32 : i32, i32, i32
  }
}

module attributes {stable_mosaic.version = 11 : i64} {
  func.func @_conv3x3_kernel(%arg0: i32, %arg1: i32, %arg2: memref<1x16x16x128xbf16, #tpu.memory_space<vmem>>, %arg3: memref<1x1x16x128xbf16, #tpu.memory_space<vmem>>, %arg4: memref<1x1x16x128xbf16, #tpu.memory_space<vmem>>, %arg5: memref<9x128x128xbf16, #tpu.memory_space<vmem>>, %arg6: memref<1x128xf32, #tpu.memory_space<vmem>>, %arg7: memref<1x128xf32, #tpu.memory_space<vmem>>, %arg8: memref<1x128xf32, #tpu.memory_space<vmem>>, %arg9: memref<1x256x128xf32, #tpu.memory_space<vmem>>, %arg10: memref<1x1x1x128xf32, #tpu.memory_space<vmem>>, %arg11: memref<1x1x1x128xf32, #tpu.memory_space<vmem>>, %arg12: memref<18x18x128xbf16, #tpu.memory_space<vmem>>) attributes {dimension_semantics = [#tpu.dimension_semantics<parallel>, #tpu.dimension_semantics<parallel>], iteration_bounds = array<i64: 2, 1>, scalar_prefetch = 0 : i64, scratch_operands = 1 : i64, tpu.core_type = #tpu.core_type<tc>, window_params = [{transform_indices = @transform_0, window_bounds = array<i64: 1, 16, 16, 128>}, {transform_indices = @transform_1, window_bounds = array<i64: 1, 1, 16, 128>}, {transform_indices = @transform_2, window_bounds = array<i64: 1, 1, 16, 128>}, {pipeline_mode = #tpu.pipeline_mode<synchronous>, transform_indices = @transform_3, window_bounds = array<i64: 9, 128, 128>}, {pipeline_mode = #tpu.pipeline_mode<synchronous>, transform_indices = @transform_4, window_bounds = array<i64: 1, 128>}, {pipeline_mode = #tpu.pipeline_mode<synchronous>, transform_indices = @transform_5, window_bounds = array<i64: 1, 128>}, {pipeline_mode = #tpu.pipeline_mode<synchronous>, transform_indices = @transform_6, window_bounds = array<i64: 1, 128>}, {transform_indices = @transform_7, window_bounds = array<i64: 1, 256, 128>}, {transform_indices = @transform_8, window_bounds = array<i64: 1, 1, 1, 128>}, {transform_indices = @transform_9, window_bounds = array<i64: 1, 1, 1, 128>}]} {
    %c0 = arith.constant 0 : index
    %c0_0 = arith.constant 0 : index
    %0 = vector.load %arg7[%c0, %c0_0] : memref<1x128xf32, #tpu.memory_space<vmem>>, vector<1x128xf32>
    %1 = vector.shape_cast %0 : vector<1x128xf32> to vector<128xf32>
    %c0_1 = arith.constant 0 : index
    %c0_2 = arith.constant 0 : index
    %2 = vector.load %arg8[%c0_1, %c0_2] : memref<1x128xf32, #tpu.memory_space<vmem>>, vector<1x128xf32>
    %3 = vector.shape_cast %2 : vector<1x128xf32> to vector<128xf32>
    %cst = arith.constant 0.000000e+00 : bf16
    %4 = vector.broadcast %cst : bf16 to vector<1x18x128xbf16>
    %cst_3 = arith.constant 0.000000e+00 : bf16
    %5 = vector.broadcast %cst_3 : bf16 to vector<18x1x128xbf16>
    %c0_4 = arith.constant 0 : index
    %c0_5 = arith.constant 0 : index
    %c0_6 = arith.constant 0 : index
    %6 = vector.load %arg12[%c0_4, %c0_5, %c0_6] : memref<18x18x128xbf16, #tpu.memory_space<vmem>>, vector<1x18x128xbf16>
    tpu.vector_store %arg12[%c0_4, %c0_5, %c0_6], %4 {strides = array<i32>} : memref<18x18x128xbf16, #tpu.memory_space<vmem>>, vector<1x18x128xbf16>,
    %c17 = arith.constant 17 : index
    %c0_7 = arith.constant 0 : index
    %c0_8 = arith.constant 0 : index
    %7 = vector.load %arg12[%c17, %c0_7, %c0_8] : memref<18x18x128xbf16, #tpu.memory_space<vmem>>, vector<1x18x128xbf16>
    tpu.vector_store %arg12[%c17, %c0_7, %c0_8], %4 {strides = array<i32>} : memref<18x18x128xbf16, #tpu.memory_space<vmem>>, vector<1x18x128xbf16>,
    %c0_9 = arith.constant 0 : index
    %c0_10 = arith.constant 0 : index
    %c0_11 = arith.constant 0 : index
    %8 = vector.load %arg12[%c0_9, %c0_10, %c0_11] : memref<18x18x128xbf16, #tpu.memory_space<vmem>>, vector<18x1x128xbf16>
    tpu.vector_store %arg12[%c0_9, %c0_10, %c0_11], %5 {strides = array<i32>} : memref<18x18x128xbf16, #tpu.memory_space<vmem>>, vector<18x1x128xbf16>,
    %c0_12 = arith.constant 0 : index
    %c17_13 = arith.constant 17 : index
    %c0_14 = arith.constant 0 : index
    %9 = vector.load %arg12[%c0_12, %c17_13, %c0_14] : memref<18x18x128xbf16, #tpu.memory_space<vmem>>, vector<18x1x128xbf16>
    tpu.vector_store %arg12[%c0_12, %c17_13, %c0_14], %5 {strides = array<i32>} : memref<18x18x128xbf16, #tpu.memory_space<vmem>>, vector<18x1x128xbf16>,
    %c0_15 = arith.constant 0 : index
    %c0_16 = arith.constant 0 : index
    %c0_17 = arith.constant 0 : index
    %c0_18 = arith.constant 0 : index
    %10 = vector.load %arg2[%c0_15, %c0_16, %c0_17, %c0_18] : memref<1x16x16x128xbf16, #tpu.memory_space<vmem>>, vector<1x16x16x128xbf16>
    %11 = vector.shape_cast %10 : vector<1x16x16x128xbf16> to vector<16x16x128xbf16>
    %12 = arith.extf %11 : vector<16x16x128xbf16> to vector<16x16x128xf32>
    %13 = vector.shape_cast %1 : vector<128xf32> to vector<1x1x128xf32>
    %14 = vector.broadcast %13 : vector<1x1x128xf32> to vector<16x16x128xf32>
    %15 = arith.mulf %12, %14 : vector<16x16x128xf32>
    %16 = vector.shape_cast %3 : vector<128xf32> to vector<1x1x128xf32>
    %17 = vector.broadcast %16 : vector<1x1x128xf32> to vector<16x16x128xf32>
    %18 = arith.addf %15, %17 : vector<16x16x128xf32>
    %cst_19 = arith.constant 0.000000e+00 : f32
    %19 = vector.broadcast %cst_19 : f32 to vector<16x16x128xf32>
    %20 = arith.maximumf %18, %19 : vector<16x16x128xf32>
    %21 = arith.truncf %20 : vector<16x16x128xf32> to vector<16x16x128xbf16>
    %c1 = arith.constant 1 : index
    %c1_20 = arith.constant 1 : index
    %c0_21 = arith.constant 0 : index
    %22 = vector.load %arg12[%c1, %c1_20, %c0_21] : memref<18x18x128xbf16, #tpu.memory_space<vmem>>, vector<16x16x128xbf16>
    tpu.vector_store %arg12[%c1, %c1_20, %c0_21], %21 {strides = array<i32>} : memref<18x18x128xbf16, #tpu.memory_space<vmem>>, vector<16x16x128xbf16>,
    %c0_i32 = arith.constant 0 : i32
    %23 = arith.cmpi sgt, %arg1, %c0_i32 : i32
    %24 = arith.extui %23 : i1 to i32
    %c0_i32_22 = arith.constant 0 : i32
    %25 = arith.cmpi ne, %24, %c0_i32_22 : i32
    scf.if %25 {
      %c0_97 = arith.constant 0 : index
      %c0_98 = arith.constant 0 : index
      %c0_99 = arith.constant 0 : index
      %c0_100 = arith.constant 0 : index
      %105 = vector.load %arg3[%c0_97, %c0_98, %c0_99, %c0_100] : memref<1x1x16x128xbf16, #tpu.memory_space<vmem>>, vector<1x1x16x128xbf16>
      %106 = vector.shape_cast %105 : vector<1x1x16x128xbf16> to vector<1x16x128xbf16>
      %107 = arith.extf %106 : vector<1x16x128xbf16> to vector<1x16x128xf32>
      %108 = vector.shape_cast %1 : vector<128xf32> to vector<1x1x128xf32>
      %109 = vector.broadcast %108 : vector<1x1x128xf32> to vector<1x16x128xf32>
      %110 = arith.mulf %107, %109 : vector<1x16x128xf32>
      %111 = vector.shape_cast %3 : vector<128xf32> to vector<1x1x128xf32>
      %112 = vector.broadcast %111 : vector<1x1x128xf32> to vector<1x16x128xf32>
      %113 = arith.addf %110, %112 : vector<1x16x128xf32>
      %cst_101 = arith.constant 0.000000e+00 : f32
      %114 = vector.broadcast %cst_101 : f32 to vector<1x16x128xf32>
      %115 = arith.maximumf %113, %114 : vector<1x16x128xf32>
      %116 = arith.truncf %115 : vector<1x16x128xf32> to vector<1x16x128xbf16>
      %c0_102 = arith.constant 0 : index
      %c1_103 = arith.constant 1 : index
      %c0_104 = arith.constant 0 : index
      %117 = vector.load %arg12[%c0_102, %c1_103, %c0_104] : memref<18x18x128xbf16, #tpu.memory_space<vmem>>, vector<1x16x128xbf16>
      tpu.vector_store %arg12[%c0_102, %c1_103, %c0_104], %116 {strides = array<i32>} : memref<18x18x128xbf16, #tpu.memory_space<vmem>>, vector<1x16x128xbf16>,
    } else {
    }
    %c0_i32_23 = arith.constant 0 : i32
    %26 = arith.cmpi slt, %arg1, %c0_i32_23 : i32
    %27 = arith.extui %26 : i1 to i32
    %c0_i32_24 = arith.constant 0 : i32
    %28 = arith.cmpi ne, %27, %c0_i32_24 : i32
    scf.if %28 {
      %c0_97 = arith.constant 0 : index
      %c0_98 = arith.constant 0 : index
      %c0_99 = arith.constant 0 : index
      %c0_100 = arith.constant 0 : index
      %105 = vector.load %arg4[%c0_97, %c0_98, %c0_99, %c0_100] : memref<1x1x16x128xbf16, #tpu.memory_space<vmem>>, vector<1x1x16x128xbf16>
      %106 = vector.shape_cast %105 : vector<1x1x16x128xbf16> to vector<1x16x128xbf16>
      %107 = arith.extf %106 : vector<1x16x128xbf16> to vector<1x16x128xf32>
      %108 = vector.shape_cast %1 : vector<128xf32> to vector<1x1x128xf32>
      %109 = vector.broadcast %108 : vector<1x1x128xf32> to vector<1x16x128xf32>
      %110 = arith.mulf %107, %109 : vector<1x16x128xf32>
      %111 = vector.shape_cast %3 : vector<128xf32> to vector<1x1x128xf32>
      %112 = vector.broadcast %111 : vector<1x1x128xf32> to vector<1x16x128xf32>
      %113 = arith.addf %110, %112 : vector<1x16x128xf32>
      %cst_101 = arith.constant 0.000000e+00 : f32
      %114 = vector.broadcast %cst_101 : f32 to vector<1x16x128xf32>
      %115 = arith.maximumf %113, %114 : vector<1x16x128xf32>
      %116 = arith.truncf %115 : vector<1x16x128xf32> to vector<1x16x128xbf16>
      %c17_102 = arith.constant 17 : index
      %c1_103 = arith.constant 1 : index
      %c0_104 = arith.constant 0 : index
      %117 = vector.load %arg12[%c17_102, %c1_103, %c0_104] : memref<18x18x128xbf16, #tpu.memory_space<vmem>>, vector<1x16x128xbf16>
      tpu.vector_store %arg12[%c17_102, %c1_103, %c0_104], %116 {strides = array<i32>} : memref<18x18x128xbf16, #tpu.memory_space<vmem>>, vector<1x16x128xbf16>,
    } else {
    }
    %c0_25 = arith.constant 0 : index
    %c0_26 = arith.constant 0 : index
    %c0_27 = arith.constant 0 : index
    %29 = vector.load %arg12[%c0_25, %c0_26, %c0_27] : memref<18x18x128xbf16, #tpu.memory_space<vmem>>, vector<16x16x128xbf16>
    %30 = vector.shape_cast %29 : vector<16x16x128xbf16> to vector<256x128xbf16>
    %c0_28 = arith.constant 0 : index
    %c0_29 = arith.constant 0 : index
    %c0_30 = arith.constant 0 : index
    %31 = vector.load %arg5[%c0_28, %c0_29, %c0_30] : memref<9x128x128xbf16, #tpu.memory_space<vmem>>, vector<1x128x128xbf16>
    %32 = vector.shape_cast %31 : vector<1x128x128xbf16> to vector<128x128xbf16>
    %cst_31 = arith.constant dense<0.000000e+00> : vector<256x128xf32>
    %33 = tpu.matmul %30, %32, %cst_31 {dimension_numbers = #tpu.dot_dimension_numbers<[1], [0], [0], [1], [0, 0, 1, 1], [], []>} : vector<256x128xbf16>, vector<128x128xbf16>, vector<256x128xf32> -> vector<256x128xf32>
    %c0_32 = arith.constant 0 : index
    %c1_33 = arith.constant 1 : index
    %c0_34 = arith.constant 0 : index
    %34 = vector.load %arg12[%c0_32, %c1_33, %c0_34] : memref<18x18x128xbf16, #tpu.memory_space<vmem>>, vector<16x16x128xbf16>
    %35 = vector.shape_cast %34 : vector<16x16x128xbf16> to vector<256x128xbf16>
    %c1_35 = arith.constant 1 : index
    %c0_36 = arith.constant 0 : index
    %c0_37 = arith.constant 0 : index
    %36 = vector.load %arg5[%c1_35, %c0_36, %c0_37] : memref<9x128x128xbf16, #tpu.memory_space<vmem>>, vector<1x128x128xbf16>
    %37 = vector.shape_cast %36 : vector<1x128x128xbf16> to vector<128x128xbf16>
    %cst_38 = arith.constant dense<0.000000e+00> : vector<256x128xf32>
    %38 = tpu.matmul %35, %37, %cst_38 {dimension_numbers = #tpu.dot_dimension_numbers<[1], [0], [0], [1], [0, 0, 1, 1], [], []>} : vector<256x128xbf16>, vector<128x128xbf16>, vector<256x128xf32> -> vector<256x128xf32>
    %39 = arith.addf %33, %38 : vector<256x128xf32>
    %c0_39 = arith.constant 0 : index
    %c2 = arith.constant 2 : index
    %c0_40 = arith.constant 0 : index
    %40 = vector.load %arg12[%c0_39, %c2, %c0_40] : memref<18x18x128xbf16, #tpu.memory_space<vmem>>, vector<16x16x128xbf16>
    %41 = vector.shape_cast %40 : vector<16x16x128xbf16> to vector<256x128xbf16>
    %c2_41 = arith.constant 2 : index
    %c0_42 = arith.constant 0 : index
    %c0_43 = arith.constant 0 : index
    %42 = vector.load %arg5[%c2_41, %c0_42, %c0_43] : memref<9x128x128xbf16, #tpu.memory_space<vmem>>, vector<1x128x128xbf16>
    %43 = vector.shape_cast %42 : vector<1x128x128xbf16> to vector<128x128xbf16>
    %cst_44 = arith.constant dense<0.000000e+00> : vector<256x128xf32>
    %44 = tpu.matmul %41, %43, %cst_44 {dimension_numbers = #tpu.dot_dimension_numbers<[1], [0], [0], [1], [0, 0, 1, 1], [], []>} : vector<256x128xbf16>, vector<128x128xbf16>, vector<256x128xf32> -> vector<256x128xf32>
    %45 = arith.addf %39, %44 : vector<256x128xf32>
    %c1_45 = arith.constant 1 : index
    %c0_46 = arith.constant 0 : index
    %c0_47 = arith.constant 0 : index
    %46 = vector.load %arg12[%c1_45, %c0_46, %c0_47] : memref<18x18x128xbf16, #tpu.memory_space<vmem>>, vector<16x16x128xbf16>
    %47 = vector.shape_cast %46 : vector<16x16x128xbf16> to vector<256x128xbf16>
    %c3 = arith.constant 3 : index
    %c0_48 = arith.constant 0 : index
    %c0_49 = arith.constant 0 : index
    %48 = vector.load %arg5[%c3, %c0_48, %c0_49] : memref<9x128x128xbf16, #tpu.memory_space<vmem>>, vector<1x128x128xbf16>
    %49 = vector.shape_cast %48 : vector<1x128x128xbf16> to vector<128x128xbf16>
    %cst_50 = arith.constant dense<0.000000e+00> : vector<256x128xf32>
    %50 = tpu.matmul %47, %49, %cst_50 {dimension_numbers = #tpu.dot_dimension_numbers<[1], [0], [0], [1], [0, 0, 1, 1], [], []>} : vector<256x128xbf16>, vector<128x128xbf16>, vector<256x128xf32> -> vector<256x128xf32>
    %51 = arith.addf %45, %50 : vector<256x128xf32>
    %c1_51 = arith.constant 1 : index
    %c1_52 = arith.constant 1 : index
    %c0_53 = arith.constant 0 : index
    %52 = vector.load %arg12[%c1_51, %c1_52, %c0_53] : memref<18x18x128xbf16, #tpu.memory_space<vmem>>, vector<16x16x128xbf16>
    %53 = vector.shape_cast %52 : vector<16x16x128xbf16> to vector<256x128xbf16>
    %c4 = arith.constant 4 : index
    %c0_54 = arith.constant 0 : index
    %c0_55 = arith.constant 0 : index
    %54 = vector.load %arg5[%c4, %c0_54, %c0_55] : memref<9x128x128xbf16, #tpu.memory_space<vmem>>, vector<1x128x128xbf16>
    %55 = vector.shape_cast %54 : vector<1x128x128xbf16> to vector<128x128xbf16>
    %cst_56 = arith.constant dense<0.000000e+00> : vector<256x128xf32>
    %56 = tpu.matmul %53, %55, %cst_56 {dimension_numbers = #tpu.dot_dimension_numbers<[1], [0], [0], [1], [0, 0, 1, 1], [], []>} : vector<256x128xbf16>, vector<128x128xbf16>, vector<256x128xf32> -> vector<256x128xf32>
    %57 = arith.addf %51, %56 : vector<256x128xf32>
    %c1_57 = arith.constant 1 : index
    %c2_58 = arith.constant 2 : index
    %c0_59 = arith.constant 0 : index
    %58 = vector.load %arg12[%c1_57, %c2_58, %c0_59] : memref<18x18x128xbf16, #tpu.memory_space<vmem>>, vector<16x16x128xbf16>
    %59 = vector.shape_cast %58 : vector<16x16x128xbf16> to vector<256x128xbf16>
    %c5 = arith.constant 5 : index
    %c0_60 = arith.constant 0 : index
    %c0_61 = arith.constant 0 : index
    %60 = vector.load %arg5[%c5, %c0_60, %c0_61] : memref<9x128x128xbf16, #tpu.memory_space<vmem>>, vector<1x128x128xbf16>
    %61 = vector.shape_cast %60 : vector<1x128x128xbf16> to vector<128x128xbf16>
    %cst_62 = arith.constant dense<0.000000e+00> : vector<256x128xf32>
    %62 = tpu.matmul %59, %61, %cst_62 {dimension_numbers = #tpu.dot_dimension_numbers<[1], [0], [0], [1], [0, 0, 1, 1], [], []>} : vector<256x128xbf16>, vector<128x128xbf16>, vector<256x128xf32> -> vector<256x128xf32>
    %63 = arith.addf %57, %62 : vector<256x128xf32>
    %c2_63 = arith.constant 2 : index
    %c0_64 = arith.constant 0 : index
    %c0_65 = arith.constant 0 : index
    %64 = vector.load %arg12[%c2_63, %c0_64, %c0_65] : memref<18x18x128xbf16, #tpu.memory_space<vmem>>, vector<16x16x128xbf16>
    %65 = vector.shape_cast %64 : vector<16x16x128xbf16> to vector<256x128xbf16>
    %c6 = arith.constant 6 : index
    %c0_66 = arith.constant 0 : index
    %c0_67 = arith.constant 0 : index
    %66 = vector.load %arg5[%c6, %c0_66, %c0_67] : memref<9x128x128xbf16, #tpu.memory_space<vmem>>, vector<1x128x128xbf16>
    %67 = vector.shape_cast %66 : vector<1x128x128xbf16> to vector<128x128xbf16>
    %cst_68 = arith.constant dense<0.000000e+00> : vector<256x128xf32>
    %68 = tpu.matmul %65, %67, %cst_68 {dimension_numbers = #tpu.dot_dimension_numbers<[1], [0], [0], [1], [0, 0, 1, 1], [], []>} : vector<256x128xbf16>, vector<128x128xbf16>, vector<256x128xf32> -> vector<256x128xf32>
    %69 = arith.addf %63, %68 : vector<256x128xf32>
    %c2_69 = arith.constant 2 : index
    %c1_70 = arith.constant 1 : index
    %c0_71 = arith.constant 0 : index
    %70 = vector.load %arg12[%c2_69, %c1_70, %c0_71] : memref<18x18x128xbf16, #tpu.memory_space<vmem>>, vector<16x16x128xbf16>
    %71 = vector.shape_cast %70 : vector<16x16x128xbf16> to vector<256x128xbf16>
    %c7 = arith.constant 7 : index
    %c0_72 = arith.constant 0 : index
    %c0_73 = arith.constant 0 : index
    %72 = vector.load %arg5[%c7, %c0_72, %c0_73] : memref<9x128x128xbf16, #tpu.memory_space<vmem>>, vector<1x128x128xbf16>
    %73 = vector.shape_cast %72 : vector<1x128x128xbf16> to vector<128x128xbf16>
    %cst_74 = arith.constant dense<0.000000e+00> : vector<256x128xf32>
    %74 = tpu.matmul %71, %73, %cst_74 {dimension_numbers = #tpu.dot_dimension_numbers<[1], [0], [0], [1], [0, 0, 1, 1], [], []>} : vector<256x128xbf16>, vector<128x128xbf16>, vector<256x128xf32> -> vector<256x128xf32>
    %75 = arith.addf %69, %74 : vector<256x128xf32>
    %c2_75 = arith.constant 2 : index
    %c2_76 = arith.constant 2 : index
    %c0_77 = arith.constant 0 : index
    %76 = vector.load %arg12[%c2_75, %c2_76, %c0_77] : memref<18x18x128xbf16, #tpu.memory_space<vmem>>, vector<16x16x128xbf16>
    %77 = vector.shape_cast %76 : vector<16x16x128xbf16> to vector<256x128xbf16>
    %c8 = arith.constant 8 : index
    %c0_78 = arith.constant 0 : index
    %c0_79 = arith.constant 0 : index
    %78 = vector.load %arg5[%c8, %c0_78, %c0_79] : memref<9x128x128xbf16, #tpu.memory_space<vmem>>, vector<1x128x128xbf16>
    %79 = vector.shape_cast %78 : vector<1x128x128xbf16> to vector<128x128xbf16>
    %cst_80 = arith.constant dense<0.000000e+00> : vector<256x128xf32>
    %80 = tpu.matmul %77, %79, %cst_80 {dimension_numbers = #tpu.dot_dimension_numbers<[1], [0], [0], [1], [0, 0, 1, 1], [], []>} : vector<256x128xbf16>, vector<128x128xbf16>, vector<256x128xf32> -> vector<256x128xf32>
    %81 = arith.addf %75, %80 : vector<256x128xf32>
    %c0_81 = arith.constant 0 : index
    %c0_82 = arith.constant 0 : index
    %82 = vector.load %arg6[%c0_81, %c0_82] : memref<1x128xf32, #tpu.memory_space<vmem>>, vector<1x128xf32>
    %83 = vector.shape_cast %82 : vector<1x128xf32> to vector<128xf32>
    %84 = vector.shape_cast %83 : vector<128xf32> to vector<1x128xf32>
    %85 = vector.broadcast %84 : vector<1x128xf32> to vector<256x128xf32>
    %86 = arith.addf %81, %85 : vector<256x128xf32>
    %c0_83 = arith.constant 0 : index
    %c0_84 = arith.constant 0 : index
    %c0_85 = arith.constant 0 : index
    %87 = vector.load %arg9[%c0_83, %c0_84, %c0_85] : memref<1x256x128xf32, #tpu.memory_space<vmem>>, vector<1x256x128xf32>
    %88 = vector.shape_cast %87 : vector<1x256x128xf32> to vector<256x128xf32>
    %89 = vector.shape_cast %86 : vector<256x128xf32> to vector<1x256x128xf32>
    tpu.vector_store %arg9[%c0_83, %c0_84, %c0_85], %89 {strides = array<i32>} : memref<1x256x128xf32, #tpu.memory_space<vmem>>, vector<1x256x128xf32>,
    %cst_86 = arith.constant dense<0.000000e+00> : vector<128xf32>
    %90 = vector.multi_reduction <add>, %86, %cst_86 [0] : vector<256x128xf32> to vector<128xf32>
    %91 = vector.shape_cast %90 : vector<128xf32> to vector<1x128xf32>
    %cst_87 = arith.constant 3.906250e-03 : f32
    %92 = vector.broadcast %cst_87 : f32 to vector<1x128xf32>
    %93 = arith.mulf %91, %92 : vector<1x128xf32>
    %94 = vector.broadcast %93 : vector<1x128xf32> to vector<256x128xf32>
    %95 = arith.subf %86, %94 : vector<256x128xf32>
    %c0_88 = arith.constant 0 : index
    %c0_89 = arith.constant 0 : index
    %c0_90 = arith.constant 0 : index
    %c0_91 = arith.constant 0 : index
    %96 = vector.load %arg10[%c0_88, %c0_89, %c0_90, %c0_91] : memref<1x1x1x128xf32, #tpu.memory_space<vmem>>, vector<1x1x1x128xf32>
    %97 = vector.shape_cast %96 : vector<1x1x1x128xf32> to vector<1x128xf32>
    %98 = vector.shape_cast %91 : vector<1x128xf32> to vector<1x1x1x128xf32>
    tpu.vector_store %arg10[%c0_88, %c0_89, %c0_90, %c0_91], %98 {strides = array<i32>} : memref<1x1x1x128xf32, #tpu.memory_space<vmem>>, vector<1x1x1x128xf32>,
    %99 = arith.mulf %95, %95 : vector<256x128xf32>
    %cst_92 = arith.constant dense<0.000000e+00> : vector<128xf32>
    %100 = vector.multi_reduction <add>, %99, %cst_92 [0] : vector<256x128xf32> to vector<128xf32>
    %101 = vector.shape_cast %100 : vector<128xf32> to vector<1x128xf32>
    %c0_93 = arith.constant 0 : index
    %c0_94 = arith.constant 0 : index
    %c0_95 = arith.constant 0 : index
    %c0_96 = arith.constant 0 : index
    %102 = vector.load %arg11[%c0_93, %c0_94, %c0_95, %c0_96] : memref<1x1x1x128xf32, #tpu.memory_space<vmem>>, vector<1x1x1x128xf32>
    %103 = vector.shape_cast %102 : vector<1x1x1x128xf32> to vector<1x128xf32>
    %104 = vector.shape_cast %101 : vector<1x128xf32> to vector<1x1x1x128xf32>
    tpu.vector_store %arg11[%c0_93, %c0_94, %c0_95, %c0_96], %104 {strides = array<i32>} : memref<1x1x1x128xf32, #tpu.memory_space<vmem>>, vector<1x1x1x128xf32>,
    return
  }
  func.func @transform_0(%arg0: i32, %arg1: i32) -> (i32, i32, i32, i32) {
    %c0_i32 = arith.constant 0 : i32
    %c0_i32_0 = arith.constant 0 : i32
    %c0_i32_1 = arith.constant 0 : i32
    return %arg0, %arg1, %c0_i32, %c0_i32_0 : i32, i32, i32, i32
  }
  func.func @transform_1(%arg0: i32, %arg1: i32) -> (i32, i32, i32, i32) {
    %c16_i32 = arith.constant 16 : i32
    %0 = arith.muli %arg1, %c16_i32 : i32
    %c1_i32 = arith.constant 1 : i32
    %1 = arith.subi %0, %c1_i32 : i32
    %c0_i32 = arith.constant 0 : i32
    %2 = arith.maxsi %1, %c0_i32 : i32
    %c0_i32_0 = arith.constant 0 : i32
    %c0_i32_1 = arith.constant 0 : i32
    %c0_i32_2 = arith.constant 0 : i32
    return %arg0, %2, %c0_i32_0, %c0_i32_1 : i32, i32, i32, i32
  }
  func.func @transform_2(%arg0: i32, %arg1: i32) -> (i32, i32, i32, i32) {
    %c16_i32 = arith.constant 16 : i32
    %0 = arith.muli %arg1, %c16_i32 : i32
    %c16_i32_0 = arith.constant 16 : i32
    %1 = arith.addi %0, %c16_i32_0 : i32
    %c15_i32 = arith.constant 15 : i32
    %2 = arith.minsi %1, %c15_i32 : i32
    %c0_i32 = arith.constant 0 : i32
    %c0_i32_1 = arith.constant 0 : i32
    %c0_i32_2 = arith.constant 0 : i32
    return %arg0, %2, %c0_i32, %c0_i32_1 : i32, i32, i32, i32
  }
  func.func @transform_3(%arg0: i32, %arg1: i32) -> (i32, i32, i32) {
    %c0_i32 = arith.constant 0 : i32
    %c0_i32_0 = arith.constant 0 : i32
    %c0_i32_1 = arith.constant 0 : i32
    %c0_i32_2 = arith.constant 0 : i32
    return %c0_i32, %c0_i32_0, %c0_i32_1 : i32, i32, i32
  }
  func.func @transform_4(%arg0: i32, %arg1: i32) -> (i32, i32) {
    %c0_i32 = arith.constant 0 : i32
    %c0_i32_0 = arith.constant 0 : i32
    %c0_i32_1 = arith.constant 0 : i32
    return %c0_i32, %c0_i32_0 : i32, i32
  }
  func.func @transform_5(%arg0: i32, %arg1: i32) -> (i32, i32) {
    %c0_i32 = arith.constant 0 : i32
    %c0_i32_0 = arith.constant 0 : i32
    %c0_i32_1 = arith.constant 0 : i32
    return %c0_i32, %c0_i32_0 : i32, i32
  }
  func.func @transform_6(%arg0: i32, %arg1: i32) -> (i32, i32) {
    %c0_i32 = arith.constant 0 : i32
    %c0_i32_0 = arith.constant 0 : i32
    %c0_i32_1 = arith.constant 0 : i32
    return %c0_i32, %c0_i32_0 : i32, i32
  }
  func.func @transform_7(%arg0: i32, %arg1: i32) -> (i32, i32, i32) {
    %c0_i32 = arith.constant 0 : i32
    %c0_i32_0 = arith.constant 0 : i32
    return %arg0, %arg1, %c0_i32 : i32, i32, i32
  }
  func.func @transform_8(%arg0: i32, %arg1: i32) -> (i32, i32, i32, i32) {
    %c0_i32 = arith.constant 0 : i32
    %c0_i32_0 = arith.constant 0 : i32
    %c0_i32_1 = arith.constant 0 : i32
    return %arg0, %arg1, %c0_i32, %c0_i32_0 : i32, i32, i32, i32
  }
  func.func @transform_9(%arg0: i32, %arg1: i32) -> (i32, i32, i32, i32) {
    %c0_i32 = arith.constant 0 : i32
    %c0_i32_0 = arith.constant 0 : i32
    %c0_i32_1 = arith.constant 0 : i32
    return %arg0, %arg1, %c0_i32, %c0_i32_0 : i32, i32, i32, i32
  }
}

</mosaic_0001>

<bundles_post_ra>
// kernel: vgg_block_forward.5
= control target key start
LH: loop header
LB: loop body
LE: loop exit
PB: predicated region body
PF: predicated region fallthrough
CT: control target
= control target key end

     0   :  { %s555_s12 = smov 0   ;;  %s557_s13 = smov 0   ;;  %s762_s0 = inlined_call_operand.vmem [shape: f32[2,256,128], index: 0, kind: input, shape index: {}]   ;;  %s763_s1 = inlined_call_operand.vmem [shape: f32[1,128], index: 1, kind: input, shape index: {}]   ;;  %s764_s2 = inlined_call_operand.vmem [shape: f32[1,128], index: 2, kind: input, shape index: {}]   ;;  %s765_s3 = inlined_call_operand.vmem [shape: f32[2,256,4], index: 3, kind: output, shape index: {}]  }
   0x1   :  { %s559_s14 = smov 0  }
   0x2 LB: > { %s25_s15 = sadd.s32 1, %s529_s13  ;;  %p476_p0 = scmp.ge.s32.totalorder %s533_s14, 1  ;;  %s533_s14 = sphi %s559_s14, %s13_s14   ;;  %s529_s13 = sphi %s557_s13, %s767_s13   ;;  %s525_s12 = sphi %s555_s12, %s766_s12  }
   0x3   : > { %p27_p1 = scmp.ge.s32.totalorder %s25_s15, 2  ;;  %p158_p2 = scmp.lt.s32.totalorder %s533_s14, 3 }
   0x5   : > { %s769_s15 = smov (%p27_p1, %s25_s15), 0  ;;  %p159_p3 = pnand %p476_p0, %p158_p2 }
   0x6   : > { %p191_p4 = scmp.lt.s32.totalorder (!%p159_p3), %s525_s12, 1 }
   0x7   : > { %162 = sbr.rel (%p159_p3) target bundleno = 45 (0x2d), region = 32 }
   0xc   : > { %s771_s12 = smov (!%p191_p4, %s525_s12), 1  ;;  %v576_v0 = vld [vmem:[%s763_s1] ss:$0 sm:$0xff]  ;;  %vm352_vm0 = vcmask 31744  }
   0xd   : > { %s485_s16 = sshll.u32 %s771_s12, 8  ;;  %v586_v1 = vld [vmem:[%s764_s2] ss:$0 sm:$0xff] }
   0xe   : > { %s581_s21 = scalar_lea.vmem %s762_s0, %s485_s16  ;;  %s609_s26 = scalar_lea.vmem %s765_s3, %s485_s16 }
   0xf   : > { %v210_v2 = vld [vmem:[%s581_s21] sm:$0xff]  ;;  %v211_v3 = vld [vmem:[%s581_s21 + $0x8] sm:$0xff]  ;;  %v212_v4 = vld [vmem:[%s581_s21 + $0x10] sm:$0xff] }
  0x10   : > { %v249_v5 = vmul.f32 %v576_v0, %v210_v2  ;;  %v250_v6 = vmul.f32 %v576_v0, %v211_v3  ;;  %v251_v7 = vmul.f32 %v576_v0, %v212_v4  ;;  %v213_v8 = vld [vmem:[%s581_s21 + $0x18] sm:$0xff]  ;;  %v214_v9 = vld [vmem:[%s581_s21 + $0x20] sm:$0xff]  ;;  %v215_v10 = vld [vmem:[%s581_s21 + $0x28] sm:$0xff] }
  0x11   : > { %v252_v11 = vmul.f32 %v576_v0, %v213_v8  ;;  %v253_v12 = vmul.f32 %v576_v0, %v214_v9  ;;  %v254_v13 = vmul.f32 %v576_v0, %v215_v10  ;;  %v216_v14 = vld [vmem:[%s581_s21 + $0x30] sm:$0xff]  ;;  %v217_v15 = vld [vmem:[%s581_s21 + $0x38] sm:$0xff]  ;;  %v218_v24 = vld [vmem:[%s581_s21 + $0x40] sm:$0xff] }
  0x12   : > { %v288_v16 = vadd.f32 %v586_v1, %v249_v5  ;;  %v289_v17 = vadd.f32 %v586_v1, %v250_v6  ;;  %v290_v18 = vadd.f32 %v586_v1, %v251_v7  ;;  %v255_v19 = vmul.f32 %v576_v0, %v216_v14  ;;  %v219_v25 = vld [vmem:[%s581_s21 + $0x48] sm:$0xff]  ;;  %v220_v26 = vld [vmem:[%s581_s21 + $0x50] sm:$0xff]  ;;  %v221_v31 = vld [vmem:[%s581_s21 + $0x58] sm:$0xff] }
  0x13   : > { %v291_v20 = vadd.f32 %v586_v1, %v252_v11  ;;  %v292_v21 = vadd.f32 %v586_v1, %v253_v12  ;;  %v293_v22 = vadd.f32 %v586_v1, %v254_v13  ;;  %v256_v23 = vmul.f32 %v576_v0, %v217_v15  ;;  %v222_v32 = vld [vmem:[%s581_s21 + $0x60] sm:$0xff]  ;;  %v223_v33 = vld [vmem:[%s581_s21 + $0x68] sm:$0xff]  ;;  %v224_v38 = vld [vmem:[%s581_s21 + $0x70] sm:$0xff] }
  0x14   : > { %v320_v27 = vmax.f32 %v288_v16, 0.0  ;;  %v321_v28 = vmax.f32 %v289_v17, 0.0  ;;  %v322_v29 = vmax.f32 %v290_v18, 0.0  ;;  %v294_v30 = vadd.f32 %v586_v1, %v255_v19  ;;  %v225_v43 = vld [vmem:[%s581_s21 + $0x78] sm:$0xff]  ;;  %v226_v56 = vld [vmem:[%s581_s21 + $0x80] sm:$0xff]  ;;  %v227_v57 = vld [vmem:[%s581_s21 + $0x88] sm:$0xff] }
  0x15   : > { %v323_v34 = vmax.f32 %v291_v20, 0.0  ;;  %v324_v35 = vmax.f32 %v292_v21, 0.0  ;;  %v325_v36 = vmax.f32 %v293_v22, 0.0  ;;  %v295_v37 = vadd.f32 %v586_v1, %v256_v23  ;;  %v228_v58 = vld [vmem:[%s581_s21 + $0x90] sm:$0xff]  ;;  %v229_v63 = vld [vmem:[%s581_s21 + $0x98] sm:$0xff]  ;;  %v230_v2 = vld [vmem:[%s581_s21 + $0xa0] sm:$0xff] }
  0x16   : > { %353 = vst.msk [vmem:[%s609_s26] sm:$0xff] %vm352_vm0, %v320_v27  ;;  %354 = vst.msk [vmem:[%s609_s26 + $0x8] sm:$0xff] %vm352_vm0, %v321_v28  ;;  %v326_v39 = vmax.f32 %v294_v30, 0.0  ;;  %v257_v40 = vmul.f32 %v576_v0, %v218_v24  ;;  %v258_v41 = vmul.f32 %v576_v0, %v219_v25  ;;  %v259_v42 = vmul.f32 %v576_v0, %v220_v26  ;;  %v231_v3 = vld [vmem:[%s581_s21 + $0xa8] sm:$0xff]  ;;  %v232_v8 = vld [vmem:[%s581_s21 + $0xb0] sm:$0xff] }
  0x17   : > { %355 = vst.msk [vmem:[%s609_s26 + $0x10] sm:$0xff] %vm352_vm0, %v322_v29  ;;  %356 = vst.msk [vmem:[%s609_s26 + $0x18] sm:$0xff] %vm352_vm0, %v323_v34  ;;  %v327_v44 = vmax.f32 %v295_v37, 0.0  ;;  %v260_v45 = vmul.f32 %v576_v0, %v221_v31  ;;  %v261_v46 = vmul.f32 %v576_v0, %v222_v32  ;;  %v262_v47 = vmul.f32 %v576_v0, %v223_v33  ;;  %v233_v13 = vld [vmem:[%s581_s21 + $0xb8] sm:$0xff]  ;;  %v234_v26 = vld [vmem:[%s581_s21 + $0xc0] sm:$0xff] }
  0x18   : > { %357 = vst.msk [vmem:[%s609_s26 + $0x20] sm:$0xff] %vm352_vm0, %v324_v35  ;;  %358 = vst.msk [vmem:[%s609_s26 + $0x28] sm:$0xff] %vm352_vm0, %v325_v36  ;;  %v296_v48 = vadd.f32 %v586_v1, %v257_v40  ;;  %v297_v49 = vadd.f32 %v586_v1, %v258_v41  ;;  %v298_v50 = vadd.f32 %v586_v1, %v259_v42  ;;  %v235_v27 = vld [vmem:[%s581_s21 + $0xc8] sm:$0xff]  ;;  %v236_v28 = vld [vmem:[%s581_s21 + $0xd0] sm:$0xff] }
  0x19   : > { %359 = vst.msk [vmem:[%s609_s26 + $0x30] sm:$0xff] %vm352_vm0, %v326_v39  ;;  %v263_v51 = vmul.f32 %v576_v0, %v224_v38  ;;  %360 = vst.msk [vmem:[%s609_s26 + $0x38] sm:$0xff] %vm352_vm0, %v327_v44  ;;  %v299_v52 = vadd.f32 %v586_v1, %v260_v45  ;;  %v300_v53 = vadd.f32 %v586_v1, %v261_v46  ;;  %v237_v33 = vld [vmem:[%s581_s21 + $0xd8] sm:$0xff]  ;;  %v238_v34 = vld [vmem:[%s581_s21 + $0xe0] sm:$0xff] }
  0x1a   : > { %v301_v54 = vadd.f32 %v586_v1, %v262_v47  ;;  %v264_v55 = vmul.f32 %v576_v0, %v225_v43  ;;  %v328_v59 = vmax.f32 %v296_v48, 0.0  ;;  %v329_v60 = vmax.f32 %v297_v49, 0.0  ;;  %v239_v35 = vld [vmem:[%s581_s21 + $0xe8] sm:$0xff]  ;;  %v240_v40 = vld [vmem:[%s581_s21 + $0xf0] sm:$0xff]  ;;  %v241_v45 = vld [vmem:[%s581_s21 + $0xf8] sm:$0xff] }
  0x1b   : > { %v330_v61 = vmax.f32 %v298_v50, 0.0  ;;  %v302_v62 = vadd.f32 %v586_v1, %v263_v51  ;;  %v331_v4 = vmax.f32 %v299_v52, 0.0  ;;  %v332_v5 = vmax.f32 %v300_v53, 0.0 }
  0x1c   : > { %v333_v6 = vmax.f32 %v301_v54, 0.0  ;;  %v303_v7 = vadd.f32 %v586_v1, %v264_v55  ;;  %361 = vst.msk [vmem:[%s609_s26 + $0x40] sm:$0xff] %vm352_vm0, %v328_v59  ;;  %362 = vst.msk [vmem:[%s609_s26 + $0x48] sm:$0xff] %vm352_vm0, %v329_v60  ;;  %v265_v10 = vmul.f32 %v576_v0, %v226_v56  ;;  %v266_v11 = vmul.f32 %v576_v0, %v227_v57 }
  0x1d   : > { %363 = vst.msk [vmem:[%s609_s26 + $0x50] sm:$0xff] %vm352_vm0, %v330_v61  ;;  %v334_v9 = vmax.f32 %v302_v62, 0.0  ;;  %v267_v12 = vmul.f32 %v576_v0, %v228_v58  ;;  %364 = vst.msk [vmem:[%s609_s26 + $0x58] sm:$0xff] %vm352_vm0, %v331_v4  ;;  %v268_v15 = vmul.f32 %v576_v0, %v229_v63  ;;  %v269_v16 = vmul.f32 %v576_v0, %v230_v2 }
  0x1e   : > { %365 = vst.msk [vmem:[%s609_s26 + $0x60] sm:$0xff] %vm352_vm0, %v332_v5  ;;  %366 = vst.msk [vmem:[%s609_s26 + $0x68] sm:$0xff] %vm352_vm0, %v333_v6  ;;  %v335_v14 = vmax.f32 %v303_v7, 0.0  ;;  %v270_v17 = vmul.f32 %v576_v0, %v231_v3  ;;  %v304_v18 = vadd.f32 %v586_v1, %v265_v10  ;;  %v305_v19 = vadd.f32 %v586_v1, %v266_v11 }
  0x1f   : > { %367 = vst.msk [vmem:[%s609_s26 + $0x70] sm:$0xff] %vm352_vm0, %v334_v9  ;;  %v306_v20 = vadd.f32 %v586_v1, %v267_v12  ;;  %v271_v21 = vmul.f32 %v576_v0, %v232_v8  ;;  %v307_v22 = vadd.f32 %v586_v1, %v268_v15  ;;  %v308_v23 = vadd.f32 %v586_v1, %v269_v16 }
  0x20   : > { %368 = vst.msk [vmem:[%s609_s26 + $0x78] sm:$0xff] %vm352_vm0, %v335_v14  ;;  %v309_v24 = vadd.f32 %v586_v1, %v270_v17  ;;  %v272_v25 = vmul.f32 %v576_v0, %v233_v13  ;;  %v336_v29 = vmax.f32 %v304_v18, 0.0  ;;  %v337_v30 = vmax.f32 %v305_v19, 0.0 }
  0x21   : > { %v338_v31 = vmax.f32 %v306_v20, 0.0  ;;  %v310_v32 = vadd.f32 %v586_v1, %v271_v21  ;;  %v339_v36 = vmax.f32 %v307_v22, 0.0  ;;  %v340_v37 = vmax.f32 %v308_v23, 0.0 }
  0x22   : > { %v341_v38 = vmax.f32 %v309_v24, 0.0  ;;  %v311_v39 = vadd.f32 %v586_v1, %v272_v25  ;;  %369 = vst.msk [vmem:[%s609_s26 + $0x80] sm:$0xff] %vm352_vm0, %v336_v29  ;;  %370 = vst.msk [vmem:[%s609_s26 + $0x88] sm:$0xff] %vm352_vm0, %v337_v30  ;;  %v273_v42 = vmul.f32 %v576_v0, %v234_v26  ;;  %v274_v43 = vmul.f32 %v576_v0, %v235_v27 }
  0x23   : > { %371 = vst.msk [vmem:[%s609_s26 + $0x90] sm:$0xff] %vm352_vm0, %v338_v31  ;;  %v342_v41 = vmax.f32 %v310_v32, 0.0  ;;  %v275_v44 = vmul.f32 %v576_v0, %v236_v28  ;;  %372 = vst.msk [vmem:[%s609_s26 + $0x98] sm:$0xff] %vm352_vm0, %v339_v36  ;;  %v276_v47 = vmul.f32 %v576_v0, %v237_v33  ;;  %v277_v48 = vmul.f32 %v576_v0, %v238_v34 }
  0x24   : > { %373 = vst.msk [vmem:[%s609_s26 + $0xa0] sm:$0xff] %vm352_vm0, %v340_v37  ;;  %374 = vst.msk [vmem:[%s609_s26 + $0xa8] sm:$0xff] %vm352_vm0, %v341_v38  ;;  %v343_v46 = vmax.f32 %v311_v39, 0.0  ;;  %v278_v49 = vmul.f32 %v576_v0, %v239_v35  ;;  %v312_v50 = vadd.f32 %v586_v1, %v273_v42  ;;  %v313_v51 = vadd.f32 %v586_v1, %v274_v43 }
  0x25   : > { %375 = vst.msk [vmem:[%s609_s26 + $0xb0] sm:$0xff] %vm352_vm0, %v342_v41  ;;  %v314_v52 = vadd.f32 %v586_v1, %v275_v44  ;;  %v279_v53 = vmul.f32 %v576_v0, %v240_v40  ;;  %v315_v54 = vadd.f32 %v586_v1, %v276_v47  ;;  %v316_v55 = vadd.f32 %v586_v1, %v277_v48 }
  0x26   : > { %376 = vst.msk [vmem:[%s609_s26 + $0xb8] sm:$0xff] %vm352_vm0, %v343_v46  ;;  %v317_v56 = vadd.f32 %v586_v1, %v278_v49  ;;  %v280_v57 = vmul.f32 %v576_v0, %v241_v45  ;;  %v344_v58 = vmax.f32 %v312_v50, 0.0  ;;  %v345_v59 = vmax.f32 %v313_v51, 0.0 }
  0x27   : > { %v346_v60 = vmax.f32 %v314_v52, 0.0  ;;  %v318_v61 = vadd.f32 %v586_v1, %v279_v53  ;;  %v347_v62 = vmax.f32 %v315_v54, 0.0  ;;  %v348_v63 = vmax.f32 %v316_v55, 0.0 }
  0x28   : > { %v349_v2 = vmax.f32 %v317_v56, 0.0  ;;  %v319_v3 = vadd.f32 %v586_v1, %v280_v57  ;;  %377 = vst.msk [vmem:[%s609_s26 + $0xc0] sm:$0xff] %vm352_vm0, %v344_v58  ;;  %378 = vst.msk [vmem:[%s609_s26 + $0xc8] sm:$0xff] %vm352_vm0, %v345_v59 }
  0x29   : > { %379 = vst.msk [vmem:[%s609_s26 + $0xd0] sm:$0xff] %vm352_vm0, %v346_v60  ;;  %v350_v4 = vmax.f32 %v318_v61, 0.0  ;;  %380 = vst.msk [vmem:[%s609_s26 + $0xd8] sm:$0xff] %vm352_vm0, %v347_v62 }
  0x2a   : > { %381 = vst.msk [vmem:[%s609_s26 + $0xe0] sm:$0xff] %vm352_vm0, %v348_v63  ;;  %382 = vst.msk [vmem:[%s609_s26 + $0xe8] sm:$0xff] %vm352_vm0, %v349_v2  ;;  %v351_v0 = vmax.f32 %v319_v3, 0.0 }
  0x2b   : > { %383 = vst.msk [vmem:[%s609_s26 + $0xf0] sm:$0xff] %vm352_vm0, %v350_v4 }
  0x2c   : > { %384 = vst.msk [vmem:[%s609_s26 + $0xf8] sm:$0xff] %vm352_vm0, %v351_v0 }
  0x2d PF: > { %s13_s14 = sadd.s32 1, %s533_s14   ;;  %s766_s12 = smov %s529_s13 }
  0x2e   : > { %p10_p5 = scmp.ge.s32.totalorder %s13_s14, 4   ;;  %s767_s13 = smov %s769_s15 }
  0x30   :  { %12 = sbr.rel (!%p10_p5) target bundleno = 2 (0x2), region = 62 }

// kernel: vgg_block_forward.4
= control target key start
LH: loop header
LB: loop body
LE: loop exit
PB: predicated region body
PF: predicated region fallthrough
CT: control target
= control target key end

     0   :  { %s8154_s28 = smov 0   ;;  %s8156_s29 = smov 0   ;;  %s11044_s0 = inlined_call_operand.vmem [shape: bf16[2,16,16,128], index: 0, kind: input, shape index: {}, may-alias: {0,1,2}]   ;;  %s11045_s1 = inlined_call_operand.vmem [shape: bf16[2,16,16,128], index: 1, kind: input, shape index: {}, may-alias: {0,1,2}]   ;;  %s11046_s2 = inlined_call_operand.vmem [shape: bf16[2,16,16,128], index: 2, kind: input, shape index: {}, may-alias: {0,1,2}]   ;;  %s11047_s3 = inlined_call_operand.vmem [shape: bf16[9,128,128], index: 3, kind: input, shape index: {}]   ;;  %s11048_s4 = inlined_call_operand.vmem [shape: f32[1,128], index: 4, kind: input, shape index: {}]   ;;  %s11049_s5 = inlined_call_operand.vmem [shape: f32[1,128], index: 5, kind: input, shape index: {}]   ;;  %s11050_s6 = inlined_call_operand.vmem [shape: f32[1,128], index: 6, kind: input, shape index: {}]   ;;  %s11051_s7 = inlined_call_operand.vmem [shape: f32[2,256,128], index: 7, kind: output, shape index: {0}]   ;;  %s11052_s8 = inlined_call_operand.vmem [shape: f32[2,1,1,128], index: 8, kind: output, shape index: {1}]   ;;  %s11053_s9 = inlined_call_operand.vmem [shape: f32[2,1,1,128], index: 9, kind: output, shape index: {2}]  }
   0x1   :  { %s8158_s30 = smov 0  }
   0x2 LB: > { %s32_s10 = sadd.s32 1, %s8097_s29  ;;  %p6680_p0 = scmp.ge.s32.totalorder %s8101_s30, 1  ;;  %s8101_s30 = sphi %s8158_s30, %s20_s30   ;;  %s8097_s29 = sphi %s8156_s29, %s11321_s29   ;;  %s8093_s28 = sphi %s8154_s28, %s11320_s28  }
   0x3   : > { %p34_p1 = scmp.ge.s32.totalorder %s32_s10, 2  ;;  %p382_p2 = scmp.lt.s32.totalorder %s8101_s30, 3 }
   0x5   : > { %s11323_s10 = smov (%p34_p1, %s32_s10), 0  ;;  %p383_p3 = pnand %p6680_p0, %p382_p2 }
   0x7   : > { %386 = sbr.rel (%p383_p3) target bundleno = 769 (0x301), region = 48 }
   0xc   : > { %v7931_v0 = vld [vmem:[%s11047_s3 + $0x78] sm:$0xff]   ;;  %v7932_v1 = vld [vmem:[%s11047_s3 + $0x70] sm:$0xff]   ;;  %v8103_v2 = vmov 0   ;;  %p466_p4 = scmp.lt.s32.totalorder %s8093_s28, 1  ;;  %v7933_v3 = vld [vmem:[%s11047_s3 + $0x68] sm:$0xff]   ;;  %vm542_vm0 = vcmask 1040384  }
   0xd   : > { %535 = vst [vmem:[#allocation2] sm:$0xf] %v8103_v2  ;;  %536 = vst [vmem:[#allocation2 + $0x4] sm:$0xf] %v8103_v2  ;;  %7458 = vmatprep.subr.bf16.mxu0 %v7931_v0  ;;  %7890 = vmatprep.subr.bf16.mxu1 %v7931_v0  ;;  %v7934_v4 = vld [vmem:[%s11047_s3 + $0x60] sm:$0xff]   ;;  %v11066_v6 = vmov 0 }
   0xe   : > { %537 = vst [vmem:[#allocation2 + $0x8] sm:$0x1] %v8103_v2  ;;  %539 = vst [vmem:[#allocation2 + $0xcc] sm:$0xf] %v8103_v2  ;;  %7459 = vmatpush3.bf16.msra.mxu0 %v7931_v0  ;;  %7898 = vmatpush3.bf16.msra.mxu1 %v7931_v0  ;;  %s11325_s28 = smov (!%p466_p4, %s8093_s28), 1  ;;  %v11069_v10 = vmov 0 }
   0xf   : > { %540 = vst [vmem:[#allocation2 + $0xd0] sm:$0xf] %v8103_v2  ;;  %541 = vst [vmem:[#allocation2 + $0xd4] sm:$0x1] %v8103_v2  ;;  %7460 = vmatprep.subr.bf16.mxu0 %v7932_v1  ;;  %7891 = vmatprep.subr.bf16.mxu1 %v7932_v1  ;;  %s7122_s17 = sshll.u32 %s11325_s28, 7  ;;  %v7935_v14 = vld [vmem:[%s11047_s3 + $0x58] sm:$0xff]   ;;  %s531_s20 = scalar_lea.vmem %s11053_s9, %s11325_s28 }
  0x10   : > { %s8190_s22 = scalar_lea.vmem %s11044_s0, %s7122_s17  ;;  %vm543_vm1 = vsmask.f32 256  ;;  %vm599_vm2 = vsmask.f32 7938  ;;  %vm1518_vm5 = vsmask.f32 3328  ;;  %s525_s17 = scalar_lea.vmem %s11052_s8, %s11325_s28 }
  0x11   : > { %vm8194_vm3 = vmand %vm542_vm0, %vm543_vm1  ;;  %v7164_v13 = vld [vmem:[%s8190_s22] sm:$0xff]   ;;  %v548_v22 = vld [vmem:[#allocation2 + $0xc] sm:$0x1]  ;;  %vm1246_vm6 = vcmask 1043456   ;;  %vm1519_vm7 = vsmask.f32 7440 }
  0x12   : > { %7461 = vmatpush3.bf16.msra.mxu0 %v7932_v1  ;;  %7899 = vmatpush3.bf16.msra.mxu1 %v7932_v1  ;;  %v11067_v6 = vsel %vm8194_vm3, 4294967295, %v11066_v6  ;;  %vm8202_vm4 = vmand %vm542_vm0, %vm599_vm2  ;;  %v8215_v16 = vld [vmem:[%s11049_s5] ss:$0 sm:$0xff]  ;;  %v7165_v18 = vunpack.c.l.bf16 %v7164_v13  ;;  %v7166_v19 = vunpack.c.h.bf16 %v7164_v13  ;;  %v604_v23 = vld [vmem:[#allocation2 + $0x14] sm:$0x1]  ;;  %v549_v24 = vsel %vm8194_vm3, 0, %v548_v22 }
  0x13   : > { %7462 = vmatprep.subr.bf16.mxu0 %v7933_v3  ;;  %7892 = vmatprep.subr.bf16.mxu1 %v7933_v3  ;;  %11068 = vst [vmem:[#allocation3_spill] sm:$0xff] %v11067_v6  ;;  %v11070_v10 = vsel %vm8202_vm4, 4294967295, %v11069_v10  ;;  %v8220_v17 = vld [vmem:[%s11050_s6] ss:$0 sm:$0xff]  ;;  %v605_v25 = vsel %vm8202_vm4, 0, %v604_v23  ;;  %v7233_v33 = vld [vmem:[%s8190_s22 + $0x38] sm:$0xff]   ;;  %vm8260_vm9 = vmor %vm1518_vm5, %vm1519_vm7 }
  0x14   : > { %v545_v5 = vld [vmem:[#allocation2] sm:$0x1]  ;;  %v1455_v8 = vld [vmem:[#allocation2 + $0x4] sm:$0xf]  ;;  %11071 = vst [vmem:[#allocation4_spill] sm:$0xff] %v11070_v10  ;;  %v725_v26 = vmul.f32 %v7165_v18, %v8215_v16  ;;  %v726_v27 = vmul.f32 %v7166_v19, %v8215_v16  ;;  %v7936_v34 = vld [vmem:[%s11047_s3 + $0x50] sm:$0xff]   ;;  %v7193_v37 = vunpack.c.l.bf16 %v7233_v33  ;;  %v7194_v38 = vunpack.c.h.bf16 %v7233_v33 }
  0x15   : > { %v601_v7 = vld [vmem:[#allocation2 + $0x8] sm:$0x1]  ;;  %v546_v9 = vsel %vm8194_vm3, 0, %v545_v5  ;;  %v1531_v11 = vshll.u32 %v1455_v8, 16  ;;  %v1535_v12 = vshrl.u32 %v1455_v8, 16  ;;  %v7234_v58 = vld [vmem:[%s8190_s22 + $0x40] sm:$0xff]   ;;  %vm8272_vm10 = vmand %vm1246_vm6, %vm599_vm2 }
  0x16   : > { %7463 = vmatpush3.bf16.msra.mxu0 %v7933_v3  ;;  %7900 = vmatpush3.bf16.msra.mxu1 %v7933_v3  ;;  %547 = vst [vmem:[#allocation2] sm:$0x1] %v546_v9  ;;  %v602_v15 = vsel %vm8202_vm4, 0, %v601_v7  ;;  %v569_v28 = vld [vmem:[#allocation2 + $0x60] sm:$0x1]  ;;  %v763_v35 = vadd.f32 %v8220_v17, %v725_v26  ;;  %v764_v36 = vadd.f32 %v8220_v17, %v726_v27  ;;  %v7937_v45 = vld [vmem:[%s11047_s3 + $0x48] sm:$0xff]   ;;  %v7197_v9 = vunpack.c.l.bf16 %v7234_v58 }
  0x17   : > { %7464 = vmatprep.subr.bf16.mxu0 %v7934_v4  ;;  %7893 = vmatprep.subr.bf16.mxu1 %v7934_v4  ;;  %603 = vst [vmem:[#allocation2 + $0x8] sm:$0x1] %v602_v15  ;;  %v8222_v20 = vrot.slane %v1531_v11, 5  ;;  %v1537_v21 = vrot.slane %v1535_v12, 4  ;;  %v625_v29 = vld [vmem:[#allocation2 + $0x68] sm:$0x1]  ;;  %v739_v41 = vmul.f32 %v7193_v37, %v8215_v16  ;;  %v740_v42 = vmul.f32 %v7194_v38, %v8215_v16 }
  0x18   : > { %550 = vst [vmem:[#allocation2 + $0xc] sm:$0x1] %v549_v24  ;;  %606 = vst [vmem:[#allocation2 + $0x14] sm:$0x1] %v605_v25  ;;  %v570_v31 = vsel %vm8194_vm3, 0, %v569_v28  ;;  %v626_v32 = vsel %vm8202_vm4, 0, %v625_v29  ;;  %v7198_v18 = vunpack.c.h.bf16 %v7234_v58 }
  0x19   : > { %v1538_v30 = vor.u32 %v1537_v21, %v8222_v20  ;;  %571 = vst [vmem:[#allocation2 + $0x60] sm:$0x1] %v570_v31  ;;  %627 = vst [vmem:[#allocation2 + $0x68] sm:$0x1] %v626_v32  ;;  %vm923_vm8 = vsmask.f32 4368  ;;  %v777_v56 = vadd.f32 %v8220_v17, %v739_v41  ;;  %v778_v57 = vadd.f32 %v8220_v17, %v740_v42 }
  0x1a   : > { %7465 = vmatpush3.bf16.msra.mxu0 %v7934_v4  ;;  %7901 = vmatpush3.bf16.msra.mxu1 %v7934_v4  ;;  %v795_v39 = vmax.f32 %v763_v35, 0.0  ;;  %v796_v40 = vmax.f32 %v764_v36, 0.0  ;;  %v572_v43 = vld [vmem:[#allocation2 + $0x6c] sm:$0x1]  ;;  %v628_v44 = vld [vmem:[#allocation2 + $0x74] sm:$0x1]  ;;  %vm8278_vm11 = vmor %vm543_vm1, %vm923_vm8 }
  0x1b   : > { %7466 = vmatprep.subr.bf16.mxu0 %v7935_v14  ;;  %7894 = vmatprep.subr.bf16.mxu1 %v7935_v14  ;;  %v8246_v47 = vrot.slane %v1538_v30, 4  ;;  %v573_v48 = vsel %vm8194_vm3, 0, %v572_v43  ;;  %v629_v49 = vsel %vm8202_vm4, 0, %v628_v44  ;;  %v809_v3 = vmax.f32 %v777_v56, 0.0  ;;  %v7938_v4 = vld [vmem:[%s11047_s3 + $0x40] sm:$0xff]   ;;  %v8290_v35 = vld [vmem:[%s11047_s3 + $0x38] sm:$0xff]  }
  0x1c   : > { %v7127_v53 = vpack.c.bf16 %v795_v39, %v795_v39  ;;  %v7128_v54 = vpack.c.bf16 %v796_v40, %v796_v40  ;;  %574 = vst [vmem:[#allocation2 + $0x6c] sm:$0x1] %v573_v48  ;;  %630 = vst [vmem:[#allocation2 + $0x74] sm:$0x1] %v629_v49  ;;  %v810_v8 = vmax.f32 %v778_v57, 0.0  ;;  %v11074_v13 = vmov 0 }
  0x1d   : > { %v1454_v46 = vld [vmem:[#allocation2] sm:$0xf]  ;;  %v11075_v13 = vsel %vm8272_vm10, 4294967295, %v11074_v13  ;;  %v7141_v15 = vpack.c.bf16 %v809_v3, %v809_v3  ;;  %v11077_v21 = vmov 0  ;;  %v551_v30 = vld [vmem:[#allocation2 + $0x18] sm:$0x1] }
  0x1e   : > { %7467 = vmatpush3.bf16.msra.mxu0 %v7935_v14  ;;  %7902 = vmatpush3.bf16.msra.mxu1 %v7935_v14  ;;  %v8252_v50 = vld [vmem:[#allocation2 + $0x8] sm:$0x1]  ;;  %v1522_v51 = vshrl.u32 %v1454_v46, 16  ;;  %v1525_v52 = vshll.u32 %v1454_v46, 16  ;;  %v926_v62 = vshrl.u32 %v7127_v53, 16  ;;  %v929_v63 = vshll.u32 %v7127_v53, 16 }
  0x1f   : > { %7468 = vmatprep.subr.bf16.mxu0 %v7936_v34  ;;  %7895 = vmatprep.subr.bf16.mxu1 %v7936_v34  ;;  %v1541_v55 = vshll.u32 %v8252_v50, 16  ;;  %v934_v1 = vshrl.u32 %v7128_v54, 16  ;;  %v937_v2 = vshll.u32 %v7128_v54, 16  ;;  %11076 = vst [vmem:[#allocation5_spill] sm:$0xff] %v11075_v13  ;;  %v1248_v14 = vld [vmem:[#allocation2 + $0xc] sm:$0xf]  ;;  %v7142_v25 = vpack.c.bf16 %v810_v8, %v810_v8 }
  0x20   : > { %v1524_v60 = vrot.slane %v1522_v51, 4  ;;  %v1527_v61 = vrot.slane %v1525_v52, 5  ;;  %v928_v7 = vrot.slane %v926_v62, 7  ;;  %v11078_v21 = vsel %vm8278_vm11, 4294967295, %v11077_v21  ;;  %v1252_v24 = vld [vmem:[#allocation2 + $0x14] sm:$0x1] }
  0x21   : > { %v1543_v0 = vrot.slane %v1541_v55, 5  ;;  %v936_v12 = vrot.slane %v934_v1, 7  ;;  %11079 = vst [vmem:[#allocation6_spill] sm:$0xff] %v11078_v21  ;;  %v1045_v28 = vshrl.u32 %v7141_v15, 16  ;;  %v1048_v29 = vshll.u32 %v7141_v15, 16  ;;  %v7227_v37 = vld [vmem:[%s8190_s22 + $0x8] sm:$0xff]  }
  0x22   : > { %7469 = vmatpush3.bf16.msra.mxu0 %v7936_v34  ;;  %7903 = vmatpush3.bf16.msra.mxu1 %v7936_v34  ;;  %v1528_v5 = vor.u32 %v1527_v61, %v1524_v60  ;;  %v931_v22 = vor.u32 %v929_v63, %v928_v7  ;;  %v932_v23 = vrot.slane %v928_v7, 4  ;;  %v1053_v33 = vshrl.u32 %v7142_v25, 16  ;;  %v607_v36 = vld [vmem:[#allocation2 + $0x20] sm:$0x1]  ;;  %v1301_v42 = vld [vmem:[#allocation2 + $0x68] sm:$0x1] }
  0x23   : > { %7470 = vmatprep.subr.bf16.mxu0 %v7937_v45  ;;  %7896 = vmatprep.subr.bf16.mxu1 %v7937_v45  ;;  %v1544_v11 = vsel %vm8260_vm9, %v8246_v47, %v1543_v0  ;;  %v939_v26 = vor.u32 %v937_v2, %v936_v12  ;;  %v941_v27 = vrot.slane %v936_v12, 4  ;;  %v1056_v34 = vshll.u32 %v7142_v25, 16  ;;  %v1297_v41 = vld [vmem:[#allocation2 + $0x60] sm:$0xf]  ;;  %v8300_v43 = vld [vmem:[%s11047_s3 + $0xb8] sm:$0xff]   ;;  %v7228_v0 = vld [vmem:[%s8190_s22 + $0x10] sm:$0xff]  }
  0x24   : > { %v1529_v19 = vrot.slane %v1528_v5, 4  ;;  %v1249_v32 = vsel %vm8272_vm10, %v931_v22, %v1248_v14  ;;  %v1047_v40 = vrot.slane %v1045_v28, 7  ;;  %v1055_v44 = vrot.slane %v1053_v33, 7  ;;  %v554_v48 = vld [vmem:[#allocation2 + $0x24] sm:$0x1]  ;;  %s7126_s27 = sshll.u32 %s11325_s28, 8 }
  0x25   : > { %v940_v39 = vsel %vm8278_vm11, %v932_v23, %v939_v26  ;;  %1250 = vst [vmem:[#allocation2 + $0xc] sm:$0xf] %v1249_v32  ;;  %v742_v46 = vmul.f32 %v7198_v18, %v8215_v16  ;;  %v552_v47 = vsel %vm8194_vm3, 0, %v551_v30  ;;  %v608_v52 = vsel %vm8202_vm4, 0, %v607_v36  ;;  %v610_v58 = vld [vmem:[#allocation2 + $0x2c] sm:$0x1]  ;;  %s10662_s14 = scalar_lea.vmem %s11051_s7, %s7126_s27 }
  0x26   : > { %7471 = vmatpush3.bf16.msra.mxu0 %v7937_v45  ;;  %7904 = vmatpush3.bf16.msra.mxu1 %v7937_v45  ;;  %v1534_v31 = vsel %vm8260_vm9, %v1529_v19, %v8222_v20  ;;  %v1253_v20 = vsel %vm8194_vm3, %v941_v27, %v1252_v24  ;;  %1251 = vst [vmem:[#allocation2 + $0x10] sm:$0xf] %v940_v39  ;;  %v1051_v51 = vrot.slane %v1047_v40, 4  ;;  %553 = vst [vmem:[#allocation2 + $0x18] sm:$0x1] %v552_v47  ;;  %vm2548_vm12 = vcmask 1042432  }
  0x27   : > { %7472 = vmatprep.subr.bf16.mxu0 %v7938_v4  ;;  %7897 = vmatprep.subr.bf16.mxu1 %v7938_v4  ;;  %v6743_v38 = vcombine.low %v1534_v31, %v1544_v11  ;;  %1254 = vst [vmem:[#allocation2 + $0x14] sm:$0x1] %v1253_v20  ;;  %v741_v45 = vmul.f32 %v7197_v9, %v8215_v16  ;;  %v7169_v53 = vunpack.c.l.bf16 %v7227_v37  ;;  %v1060_v55 = vrot.slane %v1055_v44, 4  ;;  %v575_v1 = vld [vmem:[#allocation2 + $0x78] sm:$0x1] }
  0x28   : > { %v1050_v49 = vor.u32 %v1048_v29, %v1047_v40  ;;  %v1058_v54 = vor.u32 %v1056_v34, %v1055_v44  ;;  %v780_v57 = vadd.f32 %v8220_v17, %v742_v46  ;;  %609 = vst [vmem:[#allocation2 + $0x20] sm:$0x1] %v608_v52  ;;  %v7170_v61 = vunpack.c.h.bf16 %v7227_v37 }
  0x29   : > { %7474 = vmatprep.mubr.bf16.mxu0 %v6743_v38  ;;  %v779_v56 = vadd.f32 %v8220_v17, %v741_v45  ;;  %v727_v62 = vmul.f32 %v7169_v53, %v8215_v16  ;;  %v555_v63 = vsel %vm8194_vm3, 0, %v554_v48  ;;  %v1302_v3 = vsel %vm8194_vm3, %v1060_v55, %v1301_v42 }
  0x2a   : > { %7473 = vmatpush3.bf16.msra.mxu0 %v7938_v4  ;;  %7905 = vmatpush3.bf16.msra.mxu1 %v7938_v4  ;;  %v1298_v60 = vsel %vm8272_vm10, %v1050_v49, %v1297_v41  ;;  %v1059_v2 = vsel %vm8278_vm11, %v1051_v51, %v1058_v54  ;;  %v812_v5 = vmax.f32 %v780_v57, 0.0  ;;  %556 = vst [vmem:[#allocation2 + $0x24] sm:$0x1] %v555_v63  ;;  %v2556_v7 = vrot.slane %v8252_v50, 5 }
  0x2b   : > { %7506 = vmatprep.subr.bf16.mxu1 %v8290_v35  ;;  %7554 = vmatprep.subr.bf16.mxu0 %v8300_v43  ;;  %1299 = vst [vmem:[#allocation2 + $0x60] sm:$0xf] %v1298_v60  ;;  %v811_v4 = vmax.f32 %v779_v56, 0.0  ;;  %1300 = vst [vmem:[#allocation2 + $0x64] sm:$0xf] %v1059_v2  ;;  %v728_v8 = vmul.f32 %v7170_v61, %v8215_v16  ;;  %v8325_v9 = vadd.f32 %v8220_v17, %v727_v62  ;;  %vm2549_vm13 = vcmask 1046532  }
  0x2c   : > { %1303 = vst [vmem:[#allocation2 + $0x68] sm:$0x1] %v1302_v3  ;;  %v611_v11 = vsel %vm8202_vm4, 0, %v610_v58  ;;  %v1456_v12 = vld [vmem:[#allocation2 + $0xc] sm:$0xf]  ;;  %v8329_v15 = vpack.c.bf16 %v812_v5, %v812_v5  ;;  %v7173_v18 = vunpack.c.l.bf16 %v7228_v0  ;;  %v576_v19 = vsel %vm8194_vm3, 0, %v575_v1  ;;  %vm8708_vm14 = vmor %vm2548_vm12, %vm2549_vm13 }
  0x2d   : > { %v7143_v14 = vpack.c.bf16 %v811_v4, %v811_v4  ;;  %612 = vst [vmem:[#allocation2 + $0x2c] sm:$0x1] %v611_v11  ;;  %v1457_v22 = vld [vmem:[#allocation2 + $0x10] sm:$0xf]  ;;  %v1546_v24 = vshrl.u32 %v1456_v12, 16  ;;  %v1549_v25 = vshll.u32 %v1456_v12, 16  ;;  %v766_v26 = vadd.f32 %v8220_v17, %v728_v8 }
  0x2e   : > { %v8333_v23 = vld [vmem:[#allocation2 + $0x14] sm:$0x1]  ;;  %v7174_v27 = vunpack.c.h.bf16 %v7228_v0  ;;  %577 = vst [vmem:[#allocation2 + $0x78] sm:$0x1] %v576_v19  ;;  %v1555_v28 = vshll.u32 %v1457_v22, 16  ;;  %v1559_v29 = vshrl.u32 %v1457_v22, 16  ;;  %v729_v52 = vmul.f32 %v7173_v18, %v8215_v16 }
  0x2f   : > { %v1565_v30 = vshll.u32 %v8333_v23, 16  ;;  %v2563_v31 = vrot.slane %v8333_v23, 5  ;;  %v1548_v32 = vrot.slane %v1546_v24, 4  ;;  %v1551_v33 = vrot.slane %v1549_v25, 5  ;;  %v1304_v2 = vld [vmem:[#allocation2 + $0x6c] sm:$0xf] }
  0x30   : > { %v1062_v34 = vshrl.u32 %v7143_v14, 16  ;;  %v1065_v36 = vshll.u32 %v7143_v14, 16  ;;  %v1557_v37 = vrot.slane %v1555_v28, 5  ;;  %v1561_v38 = vrot.slane %v1559_v29, 4  ;;  %v1308_v14 = vld [vmem:[#allocation2 + $0x74] sm:$0x1] }
  0x31   : > { %v1567_v39 = vrot.slane %v1565_v30, 5  ;;  %v1070_v20 = vshrl.u32 %v8329_v15, 16  ;;  %v1552_v40 = vor.u32 %v1551_v33, %v1548_v32  ;;  %v1073_v44 = vshll.u32 %v8329_v15, 16  ;;  %v7942_v15 = vld [vmem:[%s11047_s3 + $0xb0] sm:$0xff]  }
  0x32   : > { %v1470_v41 = vld [vmem:[#allocation2 + $0x60] sm:$0xf]  ;;  %v1064_v42 = vrot.slane %v1062_v34, 7  ;;  %v797_v45 = vmax.f32 %v8325_v9, 0.0  ;;  %v1562_v46 = vor.u32 %v1561_v38, %v1557_v37  ;;  %v1471_v47 = vld [vmem:[#allocation2 + $0x64] sm:$0xf]  ;;  %v730_v61 = vmul.f32 %v7174_v27, %v8215_v16 }
  0x33   : > { %v1510_v48 = vld [vmem:[#allocation2 + $0x68] sm:$0x1]  ;;  %v1714_v49 = vshrl.u32 %v1470_v41, 16  ;;  %v1717_v51 = vshll.u32 %v1470_v41, 16  ;;  %v1553_v53 = vrot.slane %v1552_v40, 4  ;;  %v1723_v54 = vshll.u32 %v1471_v47, 16 }
  0x34   : > { %v1727_v55 = vshrl.u32 %v1471_v47, 16  ;;  %v1733_v56 = vshll.u32 %v1510_v48, 16  ;;  %v1563_v57 = vrot.slane %v1562_v46, 4  ;;  %v1067_v5 = vor.u32 %v1065_v36, %v1064_v42  ;;  %v631_v36 = vld [vmem:[#allocation2 + $0x80] sm:$0x1] }
  0x35   : > { %v1716_v58 = vrot.slane %v1714_v49, 4  ;;  %v1719_v60 = vrot.slane %v1717_v51, 5  ;;  %v1558_v62 = vsel %vm8260_vm9, %v1553_v53, %v1557_v37  ;;  %v1725_v63 = vrot.slane %v1723_v54, 5  ;;  %v7235_v37 = vld [vmem:[%s8190_s22 + $0x48] sm:$0xff]   ;;  %v1255_v41 = vld [vmem:[#allocation2 + $0x18] sm:$0xf] }
  0x36   : > { %v1729_v0 = vrot.slane %v1727_v55, 4  ;;  %v1735_v1 = vrot.slane %v1733_v56, 5  ;;  %v1568_v3 = vsel %vm8260_vm9, %v1563_v57, %v1567_v39  ;;  %v1068_v8 = vrot.slane %v1064_v42, 4  ;;  %v1259_v54 = vld [vmem:[#allocation2 + $0x20] sm:$0x1] }
  0x37   : > { %v1720_v4 = vor.u32 %v1719_v60, %v1716_v58  ;;  %v6744_v9 = vcombine.low %v1558_v62, %v1568_v3  ;;  %v1072_v12 = vrot.slane %v1070_v20, 7  ;;  %v798_v18 = vmax.f32 %v766_v26, 0.0  ;;  %v7946_v62 = vld [vmem:[%s11047_s3 + $0xa0] sm:$0xff]  }
  0x38   : > { %v1730_v11 = vor.u32 %v1729_v0, %v1725_v63  ;;  %v1305_v22 = vsel %vm8272_vm10, %v1067_v5, %v1304_v2  ;;  %v7129_v24 = vpack.c.bf16 %v797_v45, %v797_v45  ;;  %v767_v25 = vadd.f32 %v8220_v17, %v729_v52 }
  0x39   : > { %v1721_v19 = vrot.slane %v1720_v4, 4  ;;  %7475 = vmatmul.mubr.bf16.vlgmr.msra.gmra.mxu0 %v6744_v9  ;;  %v1075_v28 = vor.u32 %v1073_v44, %v1072_v12  ;;  %v1077_v29 = vrot.slane %v1072_v12, 4  ;;  %1306 = vst [vmem:[#allocation2 + $0x6c] sm:$0xf] %v1305_v22  ;;  %v7130_v30 = vpack.c.bf16 %v798_v18, %v798_v18  ;;  %v8377_v4 = vld [vmem:[%s8190_s22 + $0x50] sm:$0xff]   ;;  %v7948_v22 = vld [vmem:[%s11047_s3 + $0x98] sm:$0xff]  }
  0x3a   : > { %v1731_v27 = vrot.slane %v1730_v11, 4  ;;  %7555 = vmatpush3.bf16.msra.mxu0 %v8300_v43  ;;  %v943_v26 = vshrl.u32 %v7129_v24, 16  ;;  %v946_v33 = vshll.u32 %v7129_v24, 16  ;;  %v768_v34 = vadd.f32 %v8220_v17, %v730_v61  ;;  %v7944_v43 = vld [vmem:[%s11047_s3 + $0xa8] sm:$0xff]   ;;  %v1262_v12 = vld [vmem:[#allocation2 + $0x24] sm:$0xf] }
  0x3b   : > { %v1726_v32 = vsel %vm8260_vm9, %v1721_v19, %v1725_v63  ;;  %v1076_v39 = vsel %vm8278_vm11, %v1068_v8, %v1075_v28  ;;  %v1309_v20 = vsel %vm8194_vm3, %v1077_v29, %v1308_v14  ;;  %7556 = vmatprep.subr.bf16.mxu0 %v7942_v15  ;;  %v951_v40 = vshrl.u32 %v7130_v30, 16 }
  0x3c   : > { %v1736_v38 = vsel %vm8260_vm9, %v1731_v27, %v1735_v1  ;;  %1307 = vst [vmem:[#allocation2 + $0x70] sm:$0xf] %v1076_v39  ;;  %1310 = vst [vmem:[#allocation2 + $0x74] sm:$0x1] %v1309_v20  ;;  %v945_v44 = vrot.slane %v943_v26, 7  ;;  %v954_v45 = vshll.u32 %v7130_v30, 16  ;;  %v7201_v51 = vunpack.c.l.bf16 %v7235_v37 }
  0x3d   : > { %v6751_v42 = vcombine.low %v1726_v32, %v1736_v38  ;;  %v799_v46 = vmax.f32 %v767_v25, 0.0  ;;  %v953_v47 = vrot.slane %v951_v40, 7  ;;  %v800_v48 = vmax.f32 %v768_v34, 0.0  ;;  %v578_v30 = vld [vmem:[#allocation2 + $0x84] sm:$0x1] }
  0x3e   : > { %v632_v49 = vsel %vm8202_vm4, 0, %v631_v36  ;;  %7557 = vmatpush3.bf16.msra.mxu0 %v7942_v15  ;;  %v948_v52 = vor.u32 %v946_v33, %v945_v44  ;;  %v949_v53 = vrot.slane %v945_v44, 4  ;;  %v7202_v56 = vunpack.c.h.bf16 %v7235_v37  ;;  %v634_v40 = vld [vmem:[#allocation2 + $0x8c] sm:$0x1] }
  0x3f   : > { %7490 = vmatprep.mubr.bf16.mxu1 %v6751_v42  ;;  %v7131_v55 = vpack.c.bf16 %v799_v46, %v799_v46  ;;  %633 = vst [vmem:[#allocation2 + $0x80] sm:$0x1] %v632_v49  ;;  %v956_v57 = vor.u32 %v954_v45, %v953_v47  ;;  %v958_v58 = vrot.slane %v953_v47, 4  ;;  %v7132_v60 = vpack.c.bf16 %v800_v48, %v800_v48  ;;  %v7950_v49 = vld [vmem:[%s11047_s3 + $0x90] sm:$0xff]  }
  0x40   : > { %v743_v61 = vmul.f32 %v7201_v51, %v8215_v16  ;;  %7558 = vmatprep.subr.bf16.mxu0 %v7944_v43  ;;  %v1472_v63 = vld [vmem:[#allocation2 + $0x6c] sm:$0xf]  ;;  %v1256_v0 = vsel %vm8272_vm10, %v948_v52, %v1255_v41  ;;  %v744_v3 = vmul.f32 %v7202_v56, %v8215_v16  ;;  %v7205_v32 = vunpack.c.l.bf16 %v8377_v4 }
  0x41   : > { %v960_v1 = vshrl.u32 %v7131_v55, 16  ;;  %v963_v2 = vshll.u32 %v7131_v55, 16  ;;  %v1738_v5 = vshrl.u32 %v1472_v63, 16  ;;  %v1741_v8 = vshll.u32 %v1472_v63, 16  ;;  %1257 = vst [vmem:[#allocation2 + $0x18] sm:$0xf] %v1256_v0 }
  0x42   : > { %v957_v9 = vsel %vm8278_vm11, %v949_v53, %v956_v57  ;;  %v1260_v11 = vsel %vm8194_vm3, %v958_v58, %v1259_v54  ;;  %v968_v15 = vshrl.u32 %v7132_v60, 16  ;;  %v971_v18 = vshll.u32 %v7132_v60, 16  ;;  %7559 = vmatpush3.bf16.msra.mxu0 %v7944_v43  ;;  %v1266_v53 = vld [vmem:[#allocation2 + $0x2c] sm:$0x1] }
  0x43   : > { %1258 = vst [vmem:[#allocation2 + $0x1c] sm:$0xf] %v957_v9  ;;  %1261 = vst [vmem:[#allocation2 + $0x20] sm:$0x1] %v1260_v11  ;;  %v962_v14 = vrot.slane %v960_v1, 7  ;;  %v781_v19 = vadd.f32 %v8220_v17, %v743_v61  ;;  %v1740_v27 = vrot.slane %v1738_v5, 4  ;;  %v782_v29 = vadd.f32 %v8220_v17, %v744_v3  ;;  %7560 = vmatprep.subr.bf16.mxu0 %v7946_v62 }
  0x44   : > { %v1473_v24 = vld [vmem:[#allocation2 + $0x70] sm:$0xf]  ;;  %v1511_v25 = vld [vmem:[#allocation2 + $0x74] sm:$0x1]  ;;  %v1743_v28 = vrot.slane %v1741_v8, 5  ;;  %v970_v39 = vrot.slane %v968_v15, 7 }
  0x45   : > { %v1747_v26 = vshll.u32 %v1473_v24, 16  ;;  %v1751_v33 = vshrl.u32 %v1473_v24, 16  ;;  %v1757_v34 = vshll.u32 %v1511_v25, 16  ;;  %v965_v36 = vor.u32 %v963_v2, %v962_v14 }
  0x46   : > { %v1744_v37 = vor.u32 %v1743_v28, %v1740_v27  ;;  %v966_v38 = vrot.slane %v962_v14, 4  ;;  %v813_v20 = vmax.f32 %v781_v19, 0.0  ;;  %7561 = vmatpush3.bf16.msra.mxu0 %v7946_v62  ;;  %v973_v46 = vor.u32 %v971_v18, %v970_v39 }
  0x47   : > { %v1749_v41 = vrot.slane %v1747_v26, 5  ;;  %v1753_v43 = vrot.slane %v1751_v33, 4  ;;  %v1759_v42 = vrot.slane %v1757_v34, 5  ;;  %v1263_v44 = vsel %vm8272_vm10, %v965_v36, %v1262_v12  ;;  %7562 = vmatprep.subr.bf16.mxu0 %v7948_v22  ;;  %v7952_v12 = vld [vmem:[%s11047_s3 + $0x88] sm:$0xff]   ;;  %v7954_v36 = vld [vmem:[%s11047_s3 + $0x80] sm:$0xff]  }
  0x48   : > { %v1745_v45 = vrot.slane %v1744_v37, 4  ;;  %v975_v47 = vrot.slane %v970_v39, 4  ;;  %1264 = vst [vmem:[#allocation2 + $0x24] sm:$0xf] %v1263_v44  ;;  %v814_v48 = vmax.f32 %v782_v29, 0.0  ;;  %v7145_v54 = vpack.c.bf16 %v813_v20, %v813_v20 }
  0x49   : > { %v1754_v51 = vor.u32 %v1753_v43, %v1749_v41  ;;  %v1458_v52 = vld [vmem:[#allocation2 + $0x18] sm:$0xf]  ;;  %v579_v55 = vsel %vm8194_vm3, 0, %v578_v30  ;;  %v635_v56 = vsel %vm8202_vm4, 0, %v634_v40  ;;  %v974_v63 = vsel %vm8278_vm11, %v966_v38, %v973_v46  ;;  %v7943_v40 = vld [vmem:[%s11047_s3 + $0x28] sm:$0xff]  }
  0x4a   : > { %v1750_v57 = vsel %vm8260_vm9, %v1745_v45, %v1749_v41  ;;  %v1459_v58 = vld [vmem:[#allocation2 + $0x1c] sm:$0xf]  ;;  %v1504_v60 = vld [vmem:[#allocation2 + $0x20] sm:$0x1]  ;;  %v1570_v61 = vshrl.u32 %v1458_v52, 16  ;;  %v1573_v62 = vshll.u32 %v1458_v52, 16  ;;  %7563 = vmatpush3.bf16.msra.mxu0 %v7948_v22  ;;  %v1267_v9 = vsel %vm8194_vm3, %v975_v47, %v1266_v53 }
  0x4b   : > { %580 = vst [vmem:[#allocation2 + $0x84] sm:$0x1] %v579_v55  ;;  %636 = vst [vmem:[#allocation2 + $0x8c] sm:$0x1] %v635_v56  ;;  %v1755_v0 = vrot.slane %v1754_v51, 4  ;;  %v1579_v1 = vshll.u32 %v1459_v58, 16  ;;  %v7146_v11 = vpack.c.bf16 %v814_v48, %v814_v48  ;;  %7564 = vmatprep.subr.bf16.mxu0 %v7950_v49  ;;  %v7206_v34 = vunpack.c.h.bf16 %v8377_v4 }
  0x4c   : > { %v1583_v2 = vshrl.u32 %v1459_v58, 16  ;;  %v1589_v3 = vshll.u32 %v1504_v60, 16  ;;  %1265 = vst [vmem:[#allocation2 + $0x28] sm:$0xf] %v974_v63  ;;  %v1572_v5 = vrot.slane %v1570_v61, 4  ;;  %v1575_v8 = vrot.slane %v1573_v62, 5 }
  0x4d   : > { %v1760_v14 = vsel %vm8260_vm9, %v1755_v0, %v1759_v42  ;;  %v1581_v15 = vrot.slane %v1579_v1, 5  ;;  %1268 = vst [vmem:[#allocation2 + $0x2c] sm:$0x1] %v1267_v9  ;;  %v7941_v22 = vld [vmem:[%s11047_s3 + $0x30] sm:$0xff]   ;;  %v1079_v27 = vshrl.u32 %v7145_v54, 16  ;;  %v1082_v28 = vshll.u32 %v7145_v54, 16 }
  0x4e   : > { %v1585_v18 = vrot.slane %v1583_v2, 4  ;;  %v1591_v19 = vrot.slane %v1589_v3, 5  ;;  %v6752_v24 = vcombine.low %v1750_v57, %v1760_v14  ;;  %v1576_v25 = vor.u32 %v1575_v8, %v1572_v5  ;;  %7565 = vmatpush3.bf16.msra.mxu0 %v7950_v49  ;;  %v1311_v42 = vld [vmem:[#allocation2 + $0x78] sm:$0xf]  ;;  %v1315_v44 = vld [vmem:[#allocation2 + $0x80] sm:$0x1] }
  0x4f   : > { %v1460_v30 = vld [vmem:[#allocation2 + $0x24] sm:$0xf]  ;;  %v1087_v26 = vshrl.u32 %v7146_v11, 16  ;;  %v1090_v33 = vshll.u32 %v7146_v11, 16  ;;  %v1081_v20 = vrot.slane %v1079_v27, 7  ;;  %7566 = vmatprep.subr.bf16.mxu0 %v7952_v12  ;;  %v745_v45 = vmul.f32 %v7205_v32, %v8215_v16  ;;  %v7958_v63 = vld [vmem:[%s11047_s3 + $0x138] sm:$0xff]  }
  0x50   : > { %v1586_v29 = vor.u32 %v1585_v18, %v1581_v15  ;;  %7491 = vmatmul.mubr.bf16.vlgmr.msra.gmra.mxu1 %v6752_v24  ;;  %v1577_v37 = vrot.slane %v1576_v25, 4  ;;  %v1594_v38 = vshrl.u32 %v1460_v30, 16  ;;  %v1597_v39 = vshll.u32 %v1460_v30, 16  ;;  %v557_v53 = vld [vmem:[#allocation2 + $0x30] sm:$0x1]  ;;  %v7945_v62 = vld [vmem:[%s11047_s3 + $0x20] sm:$0xff]  }
  0x51   : > { %7507 = vmatpush3.bf16.msra.mxu1 %v8290_v35  ;;  %v1089_v43 = vrot.slane %v1087_v26, 7  ;;  %v746_v46 = vmul.f32 %v7206_v34, %v8215_v16  ;;  %v1084_v52 = vor.u32 %v1082_v28, %v1081_v20  ;;  %v1085_v56 = vrot.slane %v1081_v20, 4  ;;  %v613_v4 = vld [vmem:[#allocation2 + $0x38] sm:$0x1]  ;;  %v560_v8 = vld [vmem:[#allocation2 + $0x3c] sm:$0x1] }
  0x52   : > { %v1587_v41 = vrot.slane %v1586_v29, 4  ;;  %7508 = vmatprep.subr.bf16.mxu1 %v7941_v22  ;;  %v1582_v47 = vsel %vm8260_vm9, %v1577_v37, %v1581_v15  ;;  %v1596_v49 = vrot.slane %v1594_v38, 4  ;;  %v1599_v51 = vrot.slane %v1597_v39, 5  ;;  %7567 = vmatpush3.bf16.msra.mxu0 %v7952_v12  ;;  %v7229_v5 = vld [vmem:[%s8190_s22 + $0x18] sm:$0xff]   ;;  %v616_v15 = vld [vmem:[#allocation2 + $0x44] sm:$0x1] }
  0x53   : > { %v1461_v48 = vld [vmem:[#allocation2 + $0x28] sm:$0xf]  ;;  %v1092_v60 = vor.u32 %v1090_v33, %v1089_v43  ;;  %v1094_v61 = vrot.slane %v1089_v43, 4  ;;  %7568 = vmatprep.subr.bf16.mxu0 %v7954_v36  ;;  %v1312_v3 = vsel %vm8272_vm10, %v1084_v52, %v1311_v42  ;;  %v783_v14 = vadd.f32 %v8220_v17, %v745_v45  ;;  %v7230_v18 = vld [vmem:[%s8190_s22 + $0x20] sm:$0xff]   ;;  %v8453_v38 = vld [vmem:[%s8190_s22 + $0x58] sm:$0xff]  }
  0x54   : > { %v1592_v35 = vsel %vm8260_vm9, %v1587_v41, %v1591_v19  ;;  %v1603_v54 = vshll.u32 %v1461_v48, 16  ;;  %v1607_v55 = vshrl.u32 %v1461_v48, 16  ;;  %v1505_v57 = vld [vmem:[#allocation2 + $0x2c] sm:$0x1]  ;;  %v1600_v58 = vor.u32 %v1599_v51, %v1596_v49  ;;  %1313 = vst [vmem:[#allocation2 + $0x78] sm:$0xf] %v1312_v3 }
  0x55   : > { %v6745_v32 = vcombine.low %v1582_v47, %v1592_v35  ;;  %7509 = vmatpush3.bf16.msra.mxu1 %v7941_v22  ;;  %v1613_v2 = vshll.u32 %v1505_v57, 16  ;;  %v1093_v11 = vsel %vm8278_vm11, %v1085_v56, %v1092_v60  ;;  %v1316_v12 = vsel %vm8194_vm3, %v1094_v61, %v1315_v44  ;;  %v7949_v51 = vld [vmem:[%s11047_s3 + $0x10] sm:$0xff]  }
  0x56   : > { %v1605_v0 = vrot.slane %v1603_v54, 5  ;;  %v1609_v1 = vrot.slane %v1607_v55, 4  ;;  %v1601_v9 = vrot.slane %v1600_v58, 4  ;;  %7510 = vmatprep.subr.bf16.mxu1 %v7943_v40  ;;  %1314 = vst [vmem:[#allocation2 + $0x7c] sm:$0xf] %v1093_v11  ;;  %v784_v22 = vadd.f32 %v8220_v17, %v746_v46  ;;  %7569 = vmatpush3.bf16.msra.mxu0 %v7954_v36 }
  0x57   : > { %7478 = vmatprep.mubr.bf16.mxu0 %v6745_v32  ;;  %v1615_v24 = vrot.slane %v1613_v2, 5  ;;  %1317 = vst [vmem:[#allocation2 + $0x80] sm:$0x1] %v1316_v12  ;;  %v558_v25 = vsel %vm8194_vm3, 0, %v557_v53  ;;  %v815_v28 = vmax.f32 %v783_v14, 0.0  ;;  %v614_v29 = vsel %vm8202_vm4, 0, %v613_v4  ;;  %7650 = vmatprep.subr.bf16.mxu0 %v7958_v63 }
  0x58   : > { %v1610_v19 = vor.u32 %v1609_v1, %v1605_v0  ;;  %v1606_v27 = vsel %vm8260_vm9, %v1601_v9, %v1605_v0  ;;  %559 = vst [vmem:[#allocation2 + $0x30] sm:$0x1] %v558_v25  ;;  %v7177_v30 = vunpack.c.l.bf16 %v7229_v5  ;;  %v816_v33 = vmax.f32 %v784_v22, 0.0  ;;  %615 = vst [vmem:[#allocation2 + $0x38] sm:$0x1] %v614_v29  ;;  %v7951_v22 = vld [vmem:[%s11047_s3 + $0x8] sm:$0xff]  }
  0x59   : > { %7511 = vmatpush3.bf16.msra.mxu1 %v7943_v40  ;;  %v7178_v34 = vunpack.c.h.bf16 %v7229_v5  ;;  %v561_v37 = vsel %vm8194_vm3, 0, %v560_v8  ;;  %v7147_v36 = vpack.c.bf16 %v815_v28, %v815_v28  ;;  %v617_v20 = vsel %vm8202_vm4, 0, %v616_v15  ;;  %v7947_v40 = vld [vmem:[%s11047_s3 + $0x18] sm:$0xff]   ;;  %v1322_v14 = vld [vmem:[#allocation2 + $0x8c] sm:$0x1] }
  0x5a   : > { %v1611_v26 = vrot.slane %v1610_v19, 4  ;;  %7512 = vmatprep.subr.bf16.mxu1 %v7945_v62  ;;  %v731_v39 = vmul.f32 %v7177_v30, %v8215_v16  ;;  %562 = vst [vmem:[#allocation2 + $0x3c] sm:$0x1] %v561_v37  ;;  %v7181_v41 = vunpack.c.l.bf16 %v7230_v18  ;;  %v7148_v42 = vpack.c.bf16 %v816_v33, %v816_v33  ;;  %618 = vst [vmem:[#allocation2 + $0x44] sm:$0x1] %v617_v20 }
  0x5b   : > { %v732_v44 = vmul.f32 %v7178_v34, %v8215_v16  ;;  %v7182_v45 = vunpack.c.h.bf16 %v7230_v18  ;;  %v1096_v47 = vshrl.u32 %v7147_v36, 16  ;;  %v1099_v48 = vshll.u32 %v7147_v36, 16  ;;  %v1474_v52 = vld [vmem:[#allocation2 + $0x78] sm:$0xf]  ;;  %v8484_v37 = vld [vmem:[%s11050_s6] ss:$0 sm:$0xff] }
  0x5c   : > { %v1616_v43 = vsel %vm8260_vm9, %v1611_v26, %v1615_v24  ;;  %v769_v49 = vadd.f32 %v8220_v17, %v731_v39  ;;  %v1104_v53 = vshrl.u32 %v7148_v42, 16  ;;  %v1107_v35 = vshll.u32 %v7148_v42, 16  ;;  %v581_v24 = vld [vmem:[#allocation2 + $0x90] sm:$0x1]  ;;  %v637_v30 = vld [vmem:[#allocation2 + $0x98] sm:$0x1] }
  0x5d   : > { %v6746_v46 = vcombine.low %v1606_v27, %v1616_v43  ;;  %7513 = vmatpush3.bf16.msra.mxu1 %v7945_v62  ;;  %v770_v54 = vadd.f32 %v8220_v17, %v732_v44  ;;  %v733_v55 = vmul.f32 %v7181_v41, %v8215_v16  ;;  %v1475_v56 = vld [vmem:[#allocation2 + $0x7c] sm:$0xf]  ;;  %v1762_v32 = vshrl.u32 %v1474_v52, 16  ;;  %v1318_v17 = vld [vmem:[#allocation2 + $0x84] sm:$0xf] }
  0x5e   : > { %v1512_v4 = vld [vmem:[#allocation2 + $0x80] sm:$0x1]  ;;  %v1765_v57 = vshll.u32 %v1474_v52, 16  ;;  %v734_v58 = vmul.f32 %v7182_v45, %v8215_v16  ;;  %v7209_v60 = vunpack.c.l.bf16 %v8453_v38  ;;  %7514 = vmatprep.subr.bf16.mxu1 %v7947_v40  ;;  %v1771_v61 = vshll.u32 %v1475_v56, 16 }
  0x5f   : > { %7479 = vmatmul.mubr.bf16.gmra.mxu0 %v6746_v46  ;;  %v1775_v63 = vshrl.u32 %v1475_v56, 16  ;;  %v1781_v0 = vshll.u32 %v1512_v4, 16  ;;  %v1098_v1 = vrot.slane %v1096_v47, 7  ;;  %v1764_v2 = vrot.slane %v1762_v32, 4  ;;  %v7953_v43 = vld [vmem:[%s11047_s3] sm:$0xff]  }
  0x60   : > { %v1767_v62 = vrot.slane %v1765_v57, 5  ;;  %v1106_v3 = vrot.slane %v1104_v53, 7  ;;  %v801_v5 = vmax.f32 %v769_v49, 0.0  ;;  %v1773_v8 = vrot.slane %v1771_v61, 5  ;;  %v1269_v44 = vld [vmem:[#allocation2 + $0x30] sm:$0xf] }
  0x61   : > { %v1777_v9 = vrot.slane %v1775_v63, 4  ;;  %v1783_v11 = vrot.slane %v1781_v0, 5  ;;  %v1101_v12 = vor.u32 %v1099_v48, %v1098_v1  ;;  %7515 = vmatpush3.bf16.msra.mxu1 %v7947_v40  ;;  %v1102_v16 = vrot.slane %v1098_v1, 4  ;;  %v1273_v61 = vld [vmem:[#allocation2 + $0x38] sm:$0x1] }
  0x62   : > { %v1768_v15 = vor.u32 %v1767_v62, %v1764_v2  ;;  %v1109_v18 = vor.u32 %v1107_v35, %v1106_v3  ;;  %v1111_v19 = vrot.slane %v1106_v3, 4  ;;  %7516 = vmatprep.subr.bf16.mxu1 %v7949_v51  ;;  %v802_v28 = vmax.f32 %v770_v54, 0.0  ;;  %v8506_v2 = vld [vmem:[%s11049_s5] ss:$0 sm:$0xff]  ;;  %v7956_v3 = vld [vmem:[%s11047_s3 + $0xf8] sm:$0xff]  }
  0x63   : > { %v1778_v25 = vor.u32 %v1777_v9, %v1773_v8  ;;  %v1319_v27 = vsel %vm8272_vm10, %v1101_v12, %v1318_v17  ;;  %v7133_v29 = vpack.c.bf16 %v801_v5, %v801_v5  ;;  %v771_v36 = vadd.f32 %v8484_v37, %v733_v55 }
  0x64   : > { %v1769_v26 = vrot.slane %v1768_v15, 4  ;;  %v1110_v33 = vsel %vm8278_vm11, %v1102_v16, %v1109_v18  ;;  %1320 = vst [vmem:[#allocation2 + $0x84] sm:$0xf] %v1319_v27  ;;  %v1323_v34 = vsel %vm8194_vm3, %v1111_v19, %v1322_v14  ;;  %v7134_v20 = vpack.c.bf16 %v802_v28, %v802_v28  ;;  %v640_v27 = vld [vmem:[#allocation2 + $0xa4] sm:$0x1] }
  0x65   : > { %v1779_v39 = vrot.slane %v1778_v25, 4  ;;  %1321 = vst [vmem:[#allocation2 + $0x88] sm:$0xf] %v1110_v33  ;;  %1324 = vst [vmem:[#allocation2 + $0x8c] sm:$0x1] %v1323_v34  ;;  %v977_v41 = vshrl.u32 %v7133_v29, 16  ;;  %7517 = vmatpush3.bf16.msra.mxu1 %v7949_v51  ;;  %v772_v45 = vadd.f32 %v8484_v37, %v734_v58  ;;  %v7210_v57 = vunpack.c.h.bf16 %v8453_v38 }
  0x66   : > { %v980_v40 = vshll.u32 %v7133_v29, 16  ;;  %v1774_v42 = vsel %vm8260_vm9, %v1769_v26, %v1773_v8  ;;  %v803_v46 = vmax.f32 %v771_v36, 0.0  ;;  %v582_v47 = vsel %vm8194_vm3, 0, %v581_v24  ;;  %7518 = vmatprep.subr.bf16.mxu1 %v7951_v22  ;;  %v8501_v58 = vld [vmem:[%s8190_s22 + $0x60] sm:$0xff]   ;;  %v584_v25 = vld [vmem:[#allocation2 + $0x9c] sm:$0x1] }
  0x67   : > { %v1784_v48 = vsel %vm8260_vm9, %v1779_v39, %v1783_v11  ;;  %v979_v49 = vrot.slane %v977_v41, 7  ;;  %v985_v51 = vshrl.u32 %v7134_v20, 16  ;;  %v988_v52 = vshll.u32 %v7134_v20, 16  ;;  %583 = vst [vmem:[#allocation2 + $0x90] sm:$0x1] %v582_v47 }
  0x68   : > { %v6753_v53 = vcombine.low %v1774_v42, %v1784_v48  ;;  %v804_v35 = vmax.f32 %v772_v45, 0.0  ;;  %v7135_v54 = vpack.c.bf16 %v803_v46, %v803_v46  ;;  %v638_v55 = vsel %vm8202_vm4, 0, %v637_v30  ;;  %v1276_v33 = vld [vmem:[#allocation2 + $0x3c] sm:$0xf] }
  0x69   : > { %v982_v56 = vor.u32 %v980_v40, %v979_v49  ;;  %v983_v4 = vrot.slane %v979_v49, 4  ;;  %v987_v32 = vrot.slane %v985_v51, 7  ;;  %639 = vst [vmem:[#allocation2 + $0x98] sm:$0x1] %v638_v55  ;;  %7519 = vmatpush3.bf16.msra.mxu1 %v7951_v22  ;;  %v747_v62 = vmul.f32 %v8506_v2, %v7209_v60  ;;  %v1280_v51 = vld [vmem:[#allocation2 + $0x44] sm:$0x1] }
  0x6a   : > { %7494 = vmatprep.mubr.bf16.mxu1 %v6753_v53  ;;  %v7136_v63 = vpack.c.bf16 %v804_v35, %v804_v35  ;;  %v994_v0 = vshrl.u32 %v7135_v54, 16  ;;  %v997_v1 = vshll.u32 %v7135_v54, 16  ;;  %7520 = vmatprep.subr.bf16.mxu1 %v7953_v43  ;;  %v748_v11 = vmul.f32 %v8506_v2, %v7210_v57 }
  0x6b   : > { %v1476_v17 = vld [vmem:[#allocation2 + $0x84] sm:$0xf]  ;;  %v990_v5 = vor.u32 %v988_v52, %v987_v32  ;;  %v992_v8 = vrot.slane %v987_v32, 4  ;;  %v1270_v9 = vsel %vm8272_vm10, %v982_v56, %v1269_v44  ;;  %v785_v38 = vadd.f32 %v8484_v37, %v747_v62 }
  0x6c   : > { %v1477_v12 = vld [vmem:[#allocation2 + $0x88] sm:$0xf]  ;;  %v1513_v14 = vld [vmem:[#allocation2 + $0x8c] sm:$0x1]  ;;  %v1786_v15 = vshrl.u32 %v1476_v17, 16  ;;  %v1789_v16 = vshll.u32 %v1476_v17, 16  ;;  %v7213_v60 = vunpack.c.l.bf16 %v8501_v58  ;;  %v786_v46 = vadd.f32 %v8484_v37, %v748_v11 }
  0x6d   : > { %1271 = vst [vmem:[#allocation2 + $0x30] sm:$0xf] %v1270_v9  ;;  %v1795_v18 = vshll.u32 %v1477_v12, 16  ;;  %v1799_v19 = vshrl.u32 %v1477_v12, 16  ;;  %v1805_v24 = vshll.u32 %v1513_v14, 16  ;;  %v991_v22 = vsel %vm8278_vm11, %v983_v4, %v990_v5  ;;  %7521 = vmatpush3.bf16.msra.mxu1 %v7953_v43  ;;  %v8548_v14 = vld [vmem:[%s8190_s22 + $0x28] sm:$0xff]  }
  0x6e   : > { %v1788_v28 = vrot.slane %v1786_v15, 4  ;;  %v1791_v29 = vrot.slane %v1789_v16, 5  ;;  %1272 = vst [vmem:[#allocation2 + $0x34] sm:$0xf] %v991_v22  ;;  %v1274_v30 = vsel %vm8194_vm3, %v992_v8, %v1273_v61  ;;  %v996_v26 = vrot.slane %v994_v0, 7  ;;  %7602 = vmatprep.subr.bf16.mxu1 %v7956_v3 }
  0x6f   : > { %v1797_v34 = vrot.slane %v1795_v18, 5  ;;  %v1801_v36 = vrot.slane %v1799_v19, 4  ;;  %v1807_v39 = vrot.slane %v1805_v24, 5  ;;  %1275 = vst [vmem:[#allocation2 + $0x38] sm:$0x1] %v1274_v30  ;;  %v1002_v20 = vshrl.u32 %v7136_v63, 16 }
  0x70   : > { %v1792_v41 = vor.u32 %v1791_v29, %v1788_v28  ;;  %v999_v40 = vor.u32 %v997_v1, %v996_v26  ;;  %v1000_v42 = vrot.slane %v996_v26, 4  ;;  %v1005_v44 = vshll.u32 %v7136_v63, 16 }
  0x71   : > { %v1802_v45 = vor.u32 %v1801_v36, %v1797_v34  ;;  %v1004_v43 = vrot.slane %v1002_v20, 7  ;;  %v817_v47 = vmax.f32 %v785_v38, 0.0  ;;  %v585_v52 = vsel %vm8194_vm3, 0, %v584_v25  ;;  %v1325_v36 = vld [vmem:[#allocation2 + $0x90] sm:$0xf] }
  0x72   : > { %v1793_v48 = vrot.slane %v1792_v41, 4  ;;  %v1277_v49 = vsel %vm8272_vm10, %v999_v40, %v1276_v33  ;;  %v641_v53 = vsel %vm8202_vm4, 0, %v640_v27  ;;  %v818_v4 = vmax.f32 %v786_v46, 0.0  ;;  %586 = vst [vmem:[#allocation2 + $0x9c] sm:$0x1] %v585_v52 }
  0x73   : > { %v1803_v35 = vrot.slane %v1802_v45, 4  ;;  %v1007_v55 = vor.u32 %v1005_v44, %v1004_v43  ;;  %v1009_v56 = vrot.slane %v1004_v43, 4  ;;  %1278 = vst [vmem:[#allocation2 + $0x3c] sm:$0xf] %v1277_v49  ;;  %642 = vst [vmem:[#allocation2 + $0xa4] sm:$0x1] %v641_v53  ;;  %v7149_v63 = vpack.c.bf16 %v817_v47, %v817_v47 }
  0x74   : > { %v8530_v54 = vld [vmem:[#allocation2 + $0x30] sm:$0xf]  ;;  %v1798_v32 = vsel %vm8260_vm9, %v1793_v48, %v1797_v34  ;;  %v7150_v17 = vpack.c.bf16 %v818_v4, %v818_v4  ;;  %v7214_v30 = vunpack.c.h.bf16 %v8501_v58  ;;  %v7185_v20 = vunpack.c.l.bf16 %v8548_v14  ;;  %v1329_v48 = vld [vmem:[#allocation2 + $0x98] sm:$0x1]  ;;  %v563_v49 = vld [vmem:[#allocation2 + $0x48] sm:$0x1] }
  0x75   : > { %v1618_v57 = vshrl.u32 %v8530_v54, 16  ;;  %v1621_v61 = vshll.u32 %v8530_v54, 16  ;;  %v1808_v0 = vsel %vm8260_vm9, %v1803_v35, %v1807_v39  ;;  %v8538_v1 = vld [vmem:[#allocation2 + $0x34] sm:$0xf]  ;;  %v1008_v62 = vsel %vm8278_vm11, %v1000_v42, %v1007_v55  ;;  %v619_v55 = vld [vmem:[#allocation2 + $0x50] sm:$0x1] }
  0x76   : > { %v1281_v3 = vsel %vm8194_vm3, %v1009_v56, %v1280_v51  ;;  %v6754_v5 = vcombine.low %v1798_v32, %v1808_v0  ;;  %v8544_v8 = vld [vmem:[#allocation2 + $0x38] sm:$0x1]  ;;  %v1627_v12 = vshll.u32 %v8538_v1, 16  ;;  %1279 = vst [vmem:[#allocation2 + $0x40] sm:$0xf] %v1008_v62  ;;  %v1631_v15 = vshrl.u32 %v8538_v1, 16 }
  0x77   : > { %v1620_v9 = vrot.slane %v1618_v57, 4  ;;  %v1623_v11 = vrot.slane %v1621_v61, 5  ;;  %1282 = vst [vmem:[#allocation2 + $0x44] sm:$0x1] %v1281_v3  ;;  %v1637_v16 = vshll.u32 %v8544_v8, 16  ;;  %v1113_v38 = vshrl.u32 %v7149_v63, 16 }
  0x78   : > { %v1116_v18 = vshll.u32 %v7149_v63, 16  ;;  %7495 = vmatmul.mubr.bf16.gmra.mxu1 %v6754_v5  ;;  %v1629_v24 = vrot.slane %v1627_v12, 5  ;;  %v1121_v22 = vshrl.u32 %v7150_v17, 16  ;;  %v1124_v25 = vshll.u32 %v7150_v17, 16  ;;  %v566_v61 = vld [vmem:[#allocation2 + $0x54] sm:$0x1] }
  0x79   : > { %v1624_v19 = vor.u32 %v1623_v11, %v1620_v9  ;;  %v1633_v27 = vrot.slane %v1631_v15, 4  ;;  %v1639_v28 = vrot.slane %v1637_v16, 5  ;;  %v1115_v29 = vrot.slane %v1113_v38, 7  ;;  %v622_v17 = vld [vmem:[#allocation2 + $0x5c] sm:$0x1] }
  0x7a   : > { %v8553_v33 = vld [vmem:[#allocation2 + $0x3c] sm:$0xf]  ;;  %v1123_v34 = vrot.slane %v1121_v22, 7  ;;  %v749_v39 = vmul.f32 %v8506_v2, %v7213_v60  ;;  %v750_v35 = vmul.f32 %v8506_v2, %v7214_v30  ;;  %v620_v22 = vsel %vm8202_vm4, 0, %v619_v55 }
  0x7b   : > { %v1625_v26 = vrot.slane %v1624_v19, 4  ;;  %v1634_v41 = vor.u32 %v1633_v27, %v1629_v24  ;;  %v1642_v40 = vshrl.u32 %v8553_v33, 16  ;;  %v1645_v42 = vshll.u32 %v8553_v33, 16  ;;  %621 = vst [vmem:[#allocation2 + $0x50] sm:$0x1] %v620_v22 }
  0x7c   : > { %v1118_v44 = vor.u32 %v1116_v18, %v1115_v29  ;;  %v1119_v43 = vrot.slane %v1115_v29, 4  ;;  %v1126_v46 = vor.u32 %v1124_v25, %v1123_v34  ;;  %v1128_v47 = vrot.slane %v1123_v34, 4 }
  0x7d   : > { %v1630_v45 = vsel %vm8260_vm9, %v1625_v26, %v1629_v24  ;;  %v1635_v51 = vrot.slane %v1634_v41, 4  ;;  %v8563_v58 = vld [vmem:[#allocation2 + $0x40] sm:$0xf]  ;;  %v1644_v52 = vrot.slane %v1642_v40, 4  ;;  %v1647_v56 = vrot.slane %v1645_v42, 5  ;;  %v7232_v41 = vld [vmem:[%s8190_s22 + $0x30] sm:$0xff]  }
  0x7e   : > { %v8565_v60 = vld [vmem:[#allocation2 + $0x44] sm:$0x1]  ;;  %v1326_v53 = vsel %vm8272_vm10, %v1118_v44, %v1325_v36  ;;  %v1651_v4 = vshll.u32 %v8563_v58, 16  ;;  %v1655_v32 = vshrl.u32 %v8563_v58, 16  ;;  %v1127_v0 = vsel %vm8278_vm11, %v1119_v43, %v1126_v46 }
  0x7f   : > { %v1661_v57 = vshll.u32 %v8565_v60, 16  ;;  %1327 = vst [vmem:[#allocation2 + $0x90] sm:$0xf] %v1326_v53  ;;  %v1640_v63 = vsel %vm8260_vm9, %v1635_v51, %v1639_v28  ;;  %v1330_v62 = vsel %vm8194_vm3, %v1128_v47, %v1329_v48  ;;  %v787_v3 = vadd.f32 %v8484_v37, %v749_v39  ;;  %1328 = vst [vmem:[#allocation2 + $0x94] sm:$0xf] %v1127_v0 }
  0x80   : > { %v6747_v5 = vcombine.low %v1630_v45, %v1640_v63  ;;  %v1648_v9 = vor.u32 %v1647_v56, %v1644_v52  ;;  %v1653_v11 = vrot.slane %v1651_v4, 5  ;;  %v1657_v12 = vrot.slane %v1655_v32, 4  ;;  %1331 = vst [vmem:[#allocation2 + $0x98] sm:$0x1] %v1330_v62 }
  0x81   : > { %v1663_v15 = vrot.slane %v1661_v57, 5  ;;  %v788_v16 = vadd.f32 %v8484_v37, %v750_v35  ;;  %v819_v38 = vmax.f32 %v787_v3, 0.0  ;;  %v564_v18 = vsel %vm8194_vm3, 0, %v563_v49  ;;  %v1332_v57 = vld [vmem:[#allocation2 + $0x9c] sm:$0xf] }
  0x82   : > { %7482 = vmatprep.mubr.bf16.mxu0 %v6747_v5  ;;  %v1649_v19 = vrot.slane %v1648_v9, 4  ;;  %v1658_v24 = vor.u32 %v1657_v12, %v1653_v11  ;;  %565 = vst [vmem:[#allocation2 + $0x48] sm:$0x1] %v564_v18  ;;  %v7186_v25 = vunpack.c.h.bf16 %v8548_v14  ;;  %v735_v29 = vmul.f32 %v8506_v2, %v7185_v20 }
  0x83   : > { %v820_v27 = vmax.f32 %v788_v16, 0.0  ;;  %v7151_v28 = vpack.c.bf16 %v819_v38, %v819_v38  ;;  %v567_v30 = vsel %vm8194_vm3, 0, %v566_v61  ;;  %v623_v39 = vsel %vm8202_vm4, 0, %v622_v17 }
  0x84   : > { %v1654_v26 = vsel %vm8260_vm9, %v1649_v19, %v1653_v11  ;;  %v1659_v34 = vrot.slane %v1658_v24, 4  ;;  %v736_v36 = vmul.f32 %v8506_v2, %v7186_v25  ;;  %568 = vst [vmem:[#allocation2 + $0x54] sm:$0x1] %v567_v30  ;;  %v773_v20 = vadd.f32 %v8484_v37, %v735_v29  ;;  %624 = vst [vmem:[#allocation2 + $0x5c] sm:$0x1] %v623_v39 }
  0x85   : > { %v7152_v40 = vpack.c.bf16 %v820_v27, %v820_v27  ;;  %v1130_v42 = vshrl.u32 %v7151_v28, 16  ;;  %v1133_v44 = vshll.u32 %v7151_v28, 16  ;;  %v7189_v35 = vunpack.c.l.bf16 %v7232_v41  ;;  %v1336_v11 = vld [vmem:[#allocation2 + $0xa4] sm:$0x1]  ;;  %v587_v30 = vld [vmem:[#allocation2 + $0xa8] sm:$0x1] }
  0x86   : > { %v8595_v14 = vld [vmem:[#allocation2 + $0x90] sm:$0xf]  ;;  %v1664_v45 = vsel %vm8260_vm9, %v1659_v34, %v1663_v15  ;;  %v774_v47 = vadd.f32 %v8484_v37, %v736_v36  ;;  %v8603_v49 = vld [vmem:[#allocation2 + $0x94] sm:$0xf]  ;;  %v805_v38 = vmax.f32 %v773_v20, 0.0  ;;  %v7190_v28 = vunpack.c.h.bf16 %v7232_v41 }
  0x87   : > { %v1810_v43 = vshrl.u32 %v8595_v14, 16  ;;  %v1813_v46 = vshll.u32 %v8595_v14, 16  ;;  %v6748_v48 = vcombine.low %v1654_v26, %v1664_v45  ;;  %v8605_v51 = vld [vmem:[#allocation2 + $0x98] sm:$0x1]  ;;  %v1132_v52 = vrot.slane %v1130_v42, 7 }
  0x88   : > { %v1138_v53 = vshrl.u32 %v7152_v40, 16  ;;  %v1819_v4 = vshll.u32 %v8603_v49, 16  ;;  %v1823_v32 = vshrl.u32 %v8603_v49, 16  ;;  %v1829_v61 = vshll.u32 %v8605_v51, 16  ;;  %v643_v45 = vld [vmem:[#allocation2 + $0xb0] sm:$0x1] }
  0x89   : > { %v1812_v55 = vrot.slane %v1810_v43, 4  ;;  %v1815_v56 = vrot.slane %v1813_v46, 5  ;;  %7483 = vmatmul.mubr.bf16.gmra.mxu0 %v6748_v48  ;;  %v1135_v63 = vor.u32 %v1133_v44, %v1132_v52  ;;  %v1136_v0 = vrot.slane %v1132_v52, 4 }
  0x8a   : > { %v1140_v62 = vrot.slane %v1138_v53, 7  ;;  %v1821_v17 = vrot.slane %v1819_v4, 5  ;;  %v1825_v5 = vrot.slane %v1823_v32, 4  ;;  %v1141_v9 = vshll.u32 %v7152_v40, 16  ;;  %v8620_v40 = vld [vmem:[%s8190_s22 + $0x68] sm:$0xff]  }
  0x8b   : > { %v1816_v3 = vor.u32 %v1815_v56, %v1812_v55  ;;  %v1831_v12 = vrot.slane %v1829_v61, 5  ;;  %v1333_v16 = vsel %vm8272_vm10, %v1135_v63, %v1332_v57  ;;  %v806_v22 = vmax.f32 %v774_v47, 0.0  ;;  %v1283_v4 = vld [vmem:[#allocation2 + $0x48] sm:$0xf] }
  0x8c   : > { %v1145_v15 = vrot.slane %v1140_v62, 4  ;;  %v1826_v19 = vor.u32 %v1825_v5, %v1821_v17  ;;  %v1143_v24 = vor.u32 %v1141_v9, %v1140_v62  ;;  %1334 = vst [vmem:[#allocation2 + $0x9c] sm:$0xf] %v1333_v16  ;;  %v7137_v27 = vpack.c.bf16 %v805_v38, %v805_v38 }
  0x8d   : > { %v1817_v18 = vrot.slane %v1816_v3, 4  ;;  %v737_v29 = vmul.f32 %v8506_v2, %v7189_v35  ;;  %v7138_v39 = vpack.c.bf16 %v806_v22, %v806_v22  ;;  %v738_v20 = vmul.f32 %v8506_v2, %v7190_v28 }
  0x8e   : > { %v1337_v25 = vsel %vm8194_vm3, %v1145_v15, %v1336_v11  ;;  %v1827_v34 = vrot.slane %v1826_v19, 4  ;;  %v1144_v36 = vsel %vm8278_vm11, %v1136_v0, %v1143_v24  ;;  %v1011_v42 = vshrl.u32 %v7137_v27, 16  ;;  %v1287_v15 = vld [vmem:[#allocation2 + $0x50] sm:$0x1] }
  0x8f   : > { %v1822_v26 = vsel %vm8260_vm9, %v1817_v18, %v1821_v17  ;;  %1338 = vst [vmem:[#allocation2 + $0xa4] sm:$0x1] %v1337_v25  ;;  %1335 = vst [vmem:[#allocation2 + $0xa0] sm:$0xf] %v1144_v36  ;;  %v1014_v44 = vshll.u32 %v7137_v27, 16  ;;  %v775_v41 = vadd.f32 %v8484_v37, %v737_v29  ;;  %v1019_v46 = vshrl.u32 %v7138_v39, 16 }
  0x90   : > { %v1832_v43 = vsel %vm8260_vm9, %v1827_v34, %v1831_v12  ;;  %v1022_v47 = vshll.u32 %v7138_v39, 16  ;;  %v588_v48 = vsel %vm8194_vm3, 0, %v587_v30  ;;  %v1013_v53 = vrot.slane %v1011_v42, 7  ;;  %v590_v30 = vld [vmem:[#allocation2 + $0xb4] sm:$0x1] }
  0x91   : > { %v6755_v52 = vcombine.low %v1822_v26, %v1832_v43  ;;  %v776_v35 = vadd.f32 %v8484_v37, %v738_v20  ;;  %v807_v55 = vmax.f32 %v775_v41, 0.0  ;;  %589 = vst [vmem:[#allocation2 + $0xa8] sm:$0x1] %v588_v48  ;;  %v1021_v56 = vrot.slane %v1019_v46, 7 }
  0x92   : > { %v644_v32 = vsel %vm8202_vm4, 0, %v643_v45  ;;  %v7217_v57 = vunpack.c.l.bf16 %v8620_v40  ;;  %v7218_v61 = vunpack.c.h.bf16 %v8620_v40  ;;  %v1016_v0 = vor.u32 %v1014_v44, %v1013_v53  ;;  %v646_v40 = vld [vmem:[#allocation2 + $0xbc] sm:$0x1]  ;;  %v1290_v45 = vld [vmem:[#allocation2 + $0x54] sm:$0xf] }
  0x93   : > { %7498 = vmatprep.mubr.bf16.mxu1 %v6755_v52  ;;  %v8633_v63 = vld [vmem:[#allocation2 + $0x9c] sm:$0xf]  ;;  %v1017_v62 = vrot.slane %v1013_v53, 4  ;;  %v808_v3 = vmax.f32 %v776_v35, 0.0  ;;  %v7139_v17 = vpack.c.bf16 %v807_v55, %v807_v55  ;;  %645 = vst [vmem:[#allocation2 + $0xb0] sm:$0x1] %v644_v32  ;;  %v1024_v11 = vor.u32 %v1022_v47, %v1021_v56 }
  0x94   : > { %v1834_v5 = vshrl.u32 %v8633_v63, 16  ;;  %v1837_v9 = vshll.u32 %v8633_v63, 16  ;;  %v1026_v12 = vrot.slane %v1021_v56, 4  ;;  %v1284_v38 = vsel %vm8272_vm10, %v1016_v0, %v1283_v4  ;;  %v1294_v35 = vld [vmem:[#allocation2 + $0x5c] sm:$0x1]  ;;  %v7240_v4 = vld [vmem:[%s8190_s22 + $0x70] sm:$0xff]  }
  0x95   : > { %v7140_v18 = vpack.c.bf16 %v808_v3, %v808_v3  ;;  %v1028_v19 = vshrl.u32 %v7139_v17, 16  ;;  %v1031_v24 = vshll.u32 %v7139_v17, 16  ;;  %v1025_v29 = vsel %vm8278_vm11, %v1017_v62, %v1024_v11  ;;  %1285 = vst [vmem:[#allocation2 + $0x48] sm:$0xf] %v1284_v38 }
  0x96   : > { %v8637_v16 = vld [vmem:[#allocation2 + $0xa4] sm:$0x1]  ;;  %v8641_v22 = vld [vmem:[#allocation2 + $0xa0] sm:$0xf]  ;;  %v1836_v25 = vrot.slane %v1834_v5, 4  ;;  %v1839_v27 = vrot.slane %v1837_v9, 5  ;;  %v1288_v36 = vsel %vm8194_vm3, %v1026_v12, %v1287_v15  ;;  %v751_v55 = vmul.f32 %v8506_v2, %v7217_v57 }
  0x97   : > { %v1853_v28 = vshll.u32 %v8637_v16, 16  ;;  %v1843_v26 = vshll.u32 %v8641_v22, 16  ;;  %v1847_v34 = vshrl.u32 %v8641_v22, 16  ;;  %1286 = vst [vmem:[#allocation2 + $0x4c] sm:$0xf] %v1025_v29  ;;  %v1030_v39 = vrot.slane %v1028_v19, 7 }
  0x98   : > { %v1840_v42 = vor.u32 %v1839_v27, %v1836_v25  ;;  %1289 = vst [vmem:[#allocation2 + $0x50] sm:$0x1] %v1288_v36  ;;  %v1036_v20 = vshrl.u32 %v7140_v18, 16  ;;  %v1039_v41 = vshll.u32 %v7140_v18, 16  ;;  %v752_v56 = vmul.f32 %v8506_v2, %v7218_v61 }
  0x99   : > { %v1855_v44 = vrot.slane %v1853_v28, 5  ;;  %v1845_v43 = vrot.slane %v1843_v26, 5  ;;  %v1849_v46 = vrot.slane %v1847_v34, 4  ;;  %v1033_v47 = vor.u32 %v1031_v24, %v1030_v39 }
  0x9a   : > { %v1034_v48 = vrot.slane %v1030_v39, 4  ;;  %v1841_v52 = vrot.slane %v1840_v42, 4  ;;  %v1038_v53 = vrot.slane %v1036_v20, 7  ;;  %v591_v62 = vsel %vm8194_vm3, 0, %v590_v30 }
  0x9b   : > { %v1850_v32 = vor.u32 %v1849_v46, %v1845_v43  ;;  %v1291_v0 = vsel %vm8272_vm10, %v1033_v47, %v1290_v45  ;;  %v647_v3 = vsel %vm8202_vm4, 0, %v646_v40  ;;  %v789_v57 = vadd.f32 %v8484_v37, %v751_v55  ;;  %592 = vst [vmem:[#allocation2 + $0xb4] sm:$0x1] %v591_v62 }
  0x9c   : > { %v1846_v17 = vsel %vm8260_vm9, %v1841_v52, %v1845_v43  ;;  %v1041_v5 = vor.u32 %v1039_v41, %v1038_v53  ;;  %v1043_v9 = vrot.slane %v1038_v53, 4  ;;  %1292 = vst [vmem:[#allocation2 + $0x54] sm:$0xf] %v1291_v0  ;;  %648 = vst [vmem:[#allocation2 + $0xbc] sm:$0x1] %v647_v3  ;;  %v790_v12 = vadd.f32 %v8484_v37, %v752_v56 }
  0x9d   : > { %v1851_v61 = vrot.slane %v1850_v32, 4  ;;  %v8662_v11 = vld [vmem:[#allocation2 + $0x48] sm:$0xf]  ;;  %v7221_v15 = vunpack.c.l.bf16 %v7240_v4  ;;  %v7222_v38 = vunpack.c.h.bf16 %v7240_v4  ;;  %v821_v34 = vmax.f32 %v789_v57, 0.0 }
  0x9e   : > { %v8665_v18 = vld [vmem:[#allocation2 + $0x4c] sm:$0xf]  ;;  %v1666_v19 = vshrl.u32 %v8662_v11, 16  ;;  %v1669_v24 = vshll.u32 %v8662_v11, 16  ;;  %v1042_v25 = vsel %vm8278_vm11, %v1034_v48, %v1041_v5  ;;  %v1295_v27 = vsel %vm8194_vm3, %v1043_v9, %v1294_v35 }
  0x9f   : > { %v1856_v28 = vsel %vm8260_vm9, %v1851_v61, %v1855_v44  ;;  %v8675_v29 = vld [vmem:[#allocation2 + $0x50] sm:$0x1]  ;;  %v1675_v30 = vshll.u32 %v8665_v18, 16  ;;  %v1679_v26 = vshrl.u32 %v8665_v18, 16  ;;  %1293 = vst [vmem:[#allocation2 + $0x58] sm:$0xf] %v1042_v25  ;;  %v7153_v43 = vpack.c.bf16 %v821_v34, %v821_v34 }
  0xa0   : > { %1296 = vst [vmem:[#allocation2 + $0x5c] sm:$0x1] %v1295_v27  ;;  %v6756_v36 = vcombine.low %v1846_v17, %v1856_v28  ;;  %v1668_v39 = vrot.slane %v1666_v19, 4  ;;  %v1671_v40 = vrot.slane %v1669_v24, 5  ;;  %v1685_v42 = vshll.u32 %v8675_v29, 16 }
  0xa1   : > { %v1677_v20 = vrot.slane %v1675_v30, 5  ;;  %v1681_v41 = vrot.slane %v1679_v26, 4  ;;  %v822_v45 = vmax.f32 %v790_v12, 0.0  ;;  %v753_v47 = vmul.f32 %v8506_v2, %v7221_v15  ;;  %v1339_v28 = vld [vmem:[#allocation2 + $0xa8] sm:$0xf] }
  0xa2   : > { %7499 = vmatmul.mubr.bf16.gmra.mxu1 %v6756_v36  ;;  %v1672_v44 = vor.u32 %v1671_v40, %v1668_v39  ;;  %v1687_v46 = vrot.slane %v1685_v42, 5  ;;  %v754_v48 = vmul.f32 %v8506_v2, %v7222_v38  ;;  %v1147_v55 = vshrl.u32 %v7153_v43, 16  ;;  %v1343_v39 = vld [vmem:[#allocation2 + $0xb0] sm:$0x1]  ;;  %v2500_v40 = vld [vmem:[#allocation2] sm:$0xe] }
  0xa3   : > { %v1682_v52 = vor.u32 %v1681_v41, %v1677_v20  ;;  %v8682_v53 = vld [vmem:[#allocation2 + $0x54] sm:$0xf]  ;;  %v7154_v35 = vpack.c.bf16 %v822_v45, %v822_v45  ;;  %v1150_v56 = vshll.u32 %v7153_v43, 16  ;;  %v791_v62 = vadd.f32 %v8484_v37, %v753_v47 }
  0xa4   : > { %v1673_v4 = vrot.slane %v1672_v44, 4  ;;  %v1690_v32 = vshrl.u32 %v8682_v53, 16  ;;  %v1693_v0 = vshll.u32 %v8682_v53, 16  ;;  %v1149_v17 = vrot.slane %v1147_v55, 7  ;;  %v2507_v10 = vld [vmem:[#allocation2 + $0x54] sm:$0xe] }
  0xa5   : > { %v1683_v3 = vrot.slane %v1682_v52, 4  ;;  %v1155_v5 = vshrl.u32 %v7154_v35, 16  ;;  %v1158_v9 = vshll.u32 %v7154_v35, 16  ;;  %v792_v38 = vadd.f32 %v8484_v37, %v754_v48  ;;  %v2501_v35 = vld [vmem:[#allocation2 + $0xc] sm:$0xe] }
  0xa6   : > { %v1678_v2 = vsel %vm8260_vm9, %v1673_v4, %v1677_v20  ;;  %v8689_v57 = vld [vmem:[#allocation2 + $0x58] sm:$0xf]  ;;  %v1692_v12 = vrot.slane %v1690_v32, 4  ;;  %v1695_v15 = vrot.slane %v1693_v0, 5  ;;  %v1152_v34 = vor.u32 %v1150_v56, %v1149_v17 }
  0xa7   : > { %v8691_v61 = vld [vmem:[#allocation2 + $0x5c] sm:$0x1]  ;;  %v1688_v19 = vsel %vm8260_vm9, %v1683_v3, %v1687_v46  ;;  %v1699_v24 = vshll.u32 %v8689_v57, 16  ;;  %v1703_v25 = vshrl.u32 %v8689_v57, 16  ;;  %v1153_v36 = vrot.slane %v1149_v17, 4 }
  0xa8   : > { %v1709_v27 = vshll.u32 %v8691_v61, 16  ;;  %v6749_v30 = vcombine.low %v1678_v2, %v1688_v19  ;;  %v1696_v26 = vor.u32 %v1695_v15, %v1692_v12  ;;  %v1157_v37 = vrot.slane %v1155_v5, 7  ;;  %v8712_v15 = vld [vmem:[#allocation2 + $0x68] sm:$0x1] }
  0xa9   : > { %v1701_v42 = vrot.slane %v1699_v24, 5  ;;  %v1705_v20 = vrot.slane %v1703_v25, 4  ;;  %v1340_v43 = vsel %vm8272_vm10, %v1152_v34, %v1339_v28  ;;  %v823_v44 = vmax.f32 %v791_v62, 0.0  ;;  %v1346_v24 = vld [vmem:[#allocation2 + $0xb4] sm:$0xf] }
  0xaa   : > { %v1711_v41 = vrot.slane %v1709_v27, 5  ;;  %7486 = vmatprep.mubr.bf16.mxu0 %v6749_v30  ;;  %v1697_v45 = vrot.slane %v1696_v26, 4  ;;  %v824_v46 = vmax.f32 %v792_v38, 0.0  ;;  %v1160_v48 = vor.u32 %v1158_v9, %v1157_v37  ;;  %1341 = vst [vmem:[#allocation2 + $0xa8] sm:$0xf] %v1340_v43 }
  0xab   : > { %v1706_v47 = vor.u32 %v1705_v20, %v1701_v42  ;;  %v1162_v52 = vrot.slane %v1157_v37, 4  ;;  %v7155_v56 = vpack.c.bf16 %v823_v44, %v823_v44  ;;  %v6791_v3 = vrot.slane %v2500_v40, 9  ;;  %v8717_v25 = vld [vmem:[#allocation2 + $0x4] sm:$0xf]  ;;  %v8720_v28 = vld [vmem:[#allocation2] sm:$0xf] }
  0xac   : > { %v1702_v55 = vsel %vm8260_vm9, %v1697_v45, %v1701_v42  ;;  %v7156_v4 = vpack.c.bf16 %v824_v46, %v824_v46  ;;  %v1161_v0 = vsel %vm8278_vm11, %v1153_v36, %v1160_v48  ;;  %v11080_v12 = vmov 0  ;;  %v2502_v26 = vld [vmem:[#allocation2 + $0x18] sm:$0xe]  ;;  %v1350_v40 = vld [vmem:[#allocation2 + $0xbc] sm:$0x1] }
  0xad   : > { %v1707_v32 = vrot.slane %v1706_v47, 4  ;;  %v1344_v62 = vsel %vm8194_vm3, %v1162_v52, %v1343_v39  ;;  %1342 = vst [vmem:[#allocation2 + $0xac] sm:$0xf] %v1161_v0  ;;  %v1164_v17 = vshrl.u32 %v7155_v56, 16  ;;  %v1167_v5 = vshll.u32 %v7155_v56, 16 }
  0xae   : > { %1345 = vst [vmem:[#allocation2 + $0xb0] sm:$0x1] %v1344_v62  ;;  %v1172_v9 = vshrl.u32 %v7156_v4, 16  ;;  %v1175_v2 = vshll.u32 %v7156_v4, 16  ;;  %v11081_v12 = vsel %vm8708_vm14, 4294967295, %v11080_v12  ;;  %v2553_v27 = vrot.slane %v8717_v25, 5 }
  0xaf   : > { %11082 = vst [vmem:[#allocation7_spill] sm:$0xff] %v11081_v12  ;;  %v1712_v19 = vsel %vm8260_vm9, %v1707_v32, %v1711_v41  ;;  %v1166_v36 = vrot.slane %v1164_v17, 7  ;;  %v6792_v42 = vrot.slane %v2501_v35, 9  ;;  %v8726_v37 = vld [vmem:[#allocation2 + $0x10] sm:$0xf]  ;;  %v6793_v32 = vrot.slane %v2502_v26, 9 }
  0xb0   : > { %v6750_v34 = vcombine.low %v1702_v55, %v1712_v19  ;;  %v1174_v39 = vrot.slane %v1172_v9, 7  ;;  %v2554_v20 = vsel %vm8708_vm14, %v6791_v3, %v2553_v27  ;;  %v2555_v41 = vrot.slane %v2553_v27, 4  ;;  %v8729_v43 = vld [vmem:[#allocation2 + $0xc] sm:$0xf]  ;;  %v8753_v27 = vld [vmem:[#allocation2 + $0x18] sm:$0xf] }
  0xb1   : > { %v2560_v45 = vrot.slane %v8726_v37, 5  ;;  %v8733_v46 = vld [vmem:[#allocation2 + $0xa8] sm:$0xf]  ;;  %v1169_v47 = vor.u32 %v1167_v5, %v1166_v36  ;;  %v1170_v48 = vrot.slane %v1166_v36, 4  ;;  %v2503_v5 = vld [vmem:[#allocation2 + $0x24] sm:$0xe] }
  0xb2   : > { %7487 = vmatmul.mubr.bf16.gmra.mxu0 %v6750_v34  ;;  %v1177_v52 = vor.u32 %v1175_v2, %v1174_v39  ;;  %v1179_v35 = vrot.slane %v1174_v39, 4  ;;  %v1858_v55 = vshrl.u32 %v8733_v46, 16  ;;  %v1861_v56 = vshll.u32 %v8733_v46, 16  ;;  %v3380_v12 = vld [vmem:[#allocation2 + $0x30] sm:$0xf] }
  0xb3   : > { %v2557_v4 = vsel %vm8708_vm14, %v2555_v41, %v2556_v7  ;;  %v1347_v62 = vsel %vm8272_vm10, %v1169_v47, %v1346_v24  ;;  %v2561_v7 = vsel %vm8708_vm14, %v6792_v42, %v2560_v45  ;;  %v8755_v24 = vld [vmem:[#allocation2 + $0x1c] sm:$0xf]  ;;  %v8060_v47 = vld [vmem:[#allocation2 + $0x20] sm:$0x1] }
  0xb4   : > { %v1178_v0 = vsel %vm8278_vm11, %v1170_v48, %v1177_v52  ;;  %v1351_v3 = vsel %vm8194_vm3, %v1179_v35, %v1350_v40  ;;  %v6823_v17 = vcombine.low %v2554_v20, %v2557_v4  ;;  %v8747_v9 = vld [vmem:[#allocation2 + $0xac] sm:$0xf]  ;;  %v1860_v50 = vrot.slane %v1858_v55, 4  ;;  %1348 = vst [vmem:[#allocation2 + $0xb4] sm:$0xf] %v1347_v62 }
  0xb5   : > { %v8749_v2 = vld [vmem:[#allocation2 + $0xb0] sm:$0x1]  ;;  %v1863_v19 = vrot.slane %v1861_v56, 5  ;;  %1349 = vst [vmem:[#allocation2 + $0xb8] sm:$0xf] %v1178_v0  ;;  %v1867_v34 = vshll.u32 %v8747_v9, 16 }
  0xb6   : > { %1352 = vst [vmem:[#allocation2 + $0xbc] sm:$0x1] %v1351_v3  ;;  %v1871_v36 = vshrl.u32 %v8747_v9, 16  ;;  %v1877_v39 = vshll.u32 %v8749_v2, 16  ;;  %7570 = vmatprep.mubr.bf16.mxu0 %v6823_v17  ;;  %v2562_v40 = vrot.slane %v2560_v45, 4  ;;  %v2567_v41 = vrot.slane %v8755_v24, 5 }
  0xb7   : > { %v1864_v20 = vor.u32 %v1863_v19, %v1860_v50  ;;  %v2570_v42 = vrot.slane %v8060_v47, 5  ;;  %v8763_v48 = vld [vmem:[#allocation2 + $0x24] sm:$0xf]  ;;  %v8765_v52 = vld [vmem:[#allocation2 + $0x28] sm:$0xf]  ;;  %v1869_v56 = vrot.slane %v1867_v34, 5 }
  0xb8   : > { %v2504_v55 = vld [vmem:[#allocation2 + $0x30] sm:$0xe]  ;;  %v1873_v4 = vrot.slane %v1871_v36, 4  ;;  %v2564_v45 = vsel %vm8708_vm14, %v2562_v40, %v2563_v31  ;;  %v6794_v0 = vrot.slane %v2503_v5, 9  ;;  %v2568_v17 = vsel %vm8708_vm14, %v6793_v32, %v2567_v41  ;;  %v8063_v36 = vld [vmem:[#allocation2 + $0x2c] sm:$0x1] }
  0xb9   : > { %v1865_v62 = vrot.slane %v1864_v20, 4  ;;  %v6824_v3 = vcombine.low %v2561_v7, %v2564_v45  ;;  %v2569_v50 = vrot.slane %v2567_v41, 4  ;;  %v7962_v19 = vld [vmem:[%s11047_s3 + $0x130] sm:$0xff]   ;;  %v1879_v35 = vrot.slane %v1877_v39, 5  ;;  %v7966_v40 = vld [vmem:[%s11047_s3 + $0x128] sm:$0xff]  }
  0xba   : > { %v1874_v47 = vor.u32 %v1873_v4, %v1869_v56  ;;  %v2574_v34 = vrot.slane %v8765_v52, 5  ;;  %v2577_v23 = vrot.slane %v8063_v36, 5  ;;  %v6795_v7 = vrot.slane %v2504_v55, 9 }
  0xbb   : > { %v1870_v31 = vsel %vm8260_vm9, %v1865_v62, %v1869_v56  ;;  %7571 = vmatmul.mubr.bf16.vlgmr.msra.gmra.mxu0 %v6824_v3  ;;  %v2571_v5 = vsel %vm8708_vm14, %v2569_v50, %v2570_v42  ;;  %v2581_v32 = vrot.slane %v8538_v1, 5  ;;  %v8787_v39 = vld [vmem:[#allocation2 + $0xb4] sm:$0xf]  ;;  %v8064_v56 = vld [vmem:[%s11047_s3 + $0x138] sm:$0xff]  }
  0xbc   : > { %v1875_v20 = vrot.slane %v1874_v47, 4  ;;  %v8789_v41 = vld [vmem:[#allocation2 + $0xb8] sm:$0xf]  ;;  %7651 = vmatpush3.bf16.msra.mxu0 %v8064_v56  ;;  %v6825_v4 = vcombine.low %v2568_v17, %v2571_v5  ;;  %v2575_v42 = vsel %vm8708_vm14, %v6794_v0, %v2574_v34  ;;  %v2576_v55 = vrot.slane %v2574_v34, 4  ;;  %v2505_v5 = vld [vmem:[#allocation2 + $0x3c] sm:$0xe] }
  0xbd   : > { %v8796_v45 = vld [vmem:[#allocation2 + $0xbc] sm:$0x1]  ;;  %v1882_v62 = vshrl.u32 %v8787_v39, 16  ;;  %v1885_v3 = vshll.u32 %v8787_v39, 16  ;;  %v1891_v50 = vshll.u32 %v8789_v41, 16  ;;  %v1895_v47 = vshrl.u32 %v8789_v41, 16  ;;  %7652 = vmatprep.subr.bf16.mxu0 %v7962_v19 }
  0xbe   : > { %v1880_v36 = vsel %vm8260_vm9, %v1875_v20, %v1879_v35  ;;  %v1901_v17 = vshll.u32 %v8796_v45, 16  ;;  %7574 = vmatprep.mubr.bf16.mxu0 %v6825_v4  ;;  %v2578_v0 = vsel %vm8708_vm14, %v2576_v55, %v2577_v23  ;;  %v2584_v34 = vrot.slane %v8544_v8, 5  ;;  %v2506_v20 = vld [vmem:[#allocation2 + $0x48] sm:$0xe] }
  0xbf   : > { %v6757_v56 = vcombine.low %v1870_v31, %v1880_v36  ;;  %v1884_v26 = vrot.slane %v1882_v62, 4  ;;  %v1887_v44 = vrot.slane %v1885_v3, 5  ;;  %v1893_v38 = vrot.slane %v1891_v50, 5  ;;  %v7970_v31 = vld [vmem:[%s11047_s3 + $0x120] sm:$0xff]  }
  0xc0   : > { %v1897_v30 = vrot.slane %v1895_v47, 4  ;;  %v6826_v21 = vcombine.low %v2575_v42, %v2578_v0  ;;  %7653 = vmatpush3.bf16.msra.mxu0 %v7962_v19  ;;  %v2582_v13 = vsel %vm8708_vm14, %v6795_v7, %v2581_v32  ;;  %v2583_v35 = vrot.slane %v2581_v32, 4 }
  0xc1   : > { %7502 = vmatprep.mubr.bf16.mxu1 %v6757_v56  ;;  %v1888_v4 = vor.u32 %v1887_v44, %v1884_v26  ;;  %v1903_v6 = vrot.slane %v1901_v17, 5  ;;  %v6796_v23 = vrot.slane %v2505_v5, 9  ;;  %v2588_v8 = vrot.slane %v8563_v58, 5  ;;  %7654 = vmatprep.subr.bf16.mxu0 %v7966_v40  ;;  %v2508_v17 = vld [vmem:[#allocation2 + $0x60] sm:$0xe] }
  0xc2   : > { %v1898_v55 = vor.u32 %v1897_v30, %v1893_v38  ;;  %v2585_v19 = vsel %vm8708_vm14, %v2583_v35, %v2584_v34  ;;  %v6771_v7 = vcombine.low %v8530_v54, %v8538_v1  ;;  %v2591_v32 = vrot.slane %v8565_v60, 5  ;;  %v2509_v5 = vld [vmem:[#allocation2 + $0x6c] sm:$0xe] }
  0xc3   : > { %v1889_v42 = vrot.slane %v1888_v4, 4  ;;  %7575 = vmatmul.mubr.bf16.gmra.mxu0 %v6826_v21  ;;  %v6827_v44 = vcombine.low %v2582_v13, %v2585_v19  ;;  %v2589_v26 = vsel %vm8708_vm14, %v6796_v23, %v2588_v8  ;;  %v2590_v62 = vrot.slane %v2588_v8, 4  ;;  %v8844_v8 = vld [vmem:[#allocation2 + $0x64] sm:$0xf]  ;;  %v2510_v19 = vld [vmem:[#allocation2 + $0x78] sm:$0xe] }
  0xc4   : > { %v1899_v3 = vrot.slane %v1898_v55, 4  ;;  %7655 = vmatpush3.bf16.msra.mxu0 %v7966_v40  ;;  %v6797_v50 = vrot.slane %v2506_v20, 9  ;;  %v2595_v30 = vrot.slane %v8665_v18, 5  ;;  %v2598_v47 = vrot.slane %v8675_v29, 5  ;;  %v7974_v40 = vld [vmem:[%s11047_s3 + $0x118] sm:$0xff]  }
  0xc5   : > { %v1894_v36 = vsel %vm8260_vm9, %v1889_v42, %v1893_v38  ;;  %7578 = vmatprep.mubr.bf16.mxu0 %v6827_v44  ;;  %v2592_v60 = vsel %vm8708_vm14, %v2590_v62, %v2591_v32  ;;  %v6798_v21 = vrot.slane %v2507_v10, 9  ;;  %7656 = vmatprep.subr.bf16.mxu0 %v7970_v31  ;;  %v2602_v35 = vrot.slane %v8689_v57, 5  ;;  %v8850_v44 = vld [vmem:[#allocation2 + $0x60] sm:$0xf] }
  0xc6   : > { %v1904_v29 = vsel %vm8260_vm9, %v1899_v3, %v1903_v6  ;;  %v6828_v0 = vcombine.low %v2589_v26, %v2592_v60  ;;  %v2596_v38 = vsel %vm8708_vm14, %v6797_v50, %v2595_v30  ;;  %v2597_v34 = vrot.slane %v2595_v30, 4  ;;  %v8068_v60 = vld [vmem:[#allocation2 + $0x74] sm:$0x1] }
  0xc7   : > { %v6758_v56 = vcombine.low %v1894_v36, %v1904_v29  ;;  %v2605_v10 = vrot.slane %v8691_v61, 5  ;;  %v6799_v23 = vrot.slane %v2508_v17, 9  ;;  %v2609_v55 = vrot.slane %v8844_v8, 5  ;;  %v7978_v61 = vld [vmem:[%s11047_s3 + $0x110] sm:$0xff]  }
  0xc8   : > { %v2599_v6 = vsel %vm8708_vm14, %v2597_v34, %v2598_v47  ;;  %7657 = vmatpush3.bf16.msra.mxu0 %v7970_v31  ;;  %v2604_v42 = vrot.slane %v2602_v35, 4  ;;  %v6800_v62 = vrot.slane %v2509_v5, 9  ;;  %v2511_v31 = vld [vmem:[#allocation2 + $0x84] sm:$0xe]  ;;  %v11083_v3 = vcombine.low %v8720_v28, %v8717_v25  ;;  %v8861_v47 = vld [vmem:[#allocation2 + $0x70] sm:$0xf] }
  0xc9   : > { %7503 = vmatmul.mubr.bf16.gmra.mxu1 %v6758_v56  ;;  %v6829_v32 = vcombine.low %v2596_v38, %v2599_v6  ;;  %7658 = vmatprep.subr.bf16.mxu0 %v7974_v40  ;;  %v8859_v50 = vsel %vm8708_vm14, %v6798_v21, %v2602_v35  ;;  %v2611_v30 = vrot.slane %v2609_v55, 4  ;;  %v2616_v36 = vrot.slane %v8861_v47, 5  ;;  %v8868_v28 = vld [vmem:[#allocation2 + $0x7c] sm:$0xf]  ;;  %v8879_v35 = vld [vmem:[#allocation2 + $0x6c] sm:$0xf] }
  0xca   : > { %7522 = vmatprep.mubr.bf16.mxu1 %v11083_v3  ;;  %v2619_v17 = vrot.slane %v8068_v60, 5  ;;  %v2606_v29 = vsel %vm8708_vm14, %v2604_v42, %v2605_v10  ;;  %v2610_v38 = vsel %vm8708_vm14, %v6799_v23, %v2609_v55  ;;  %v6801_v25 = vrot.slane %v2510_v19, 9  ;;  %v7982_v6 = vld [vmem:[%s11047_s3 + $0x108] sm:$0xff]   ;;  %v8071_v19 = vld [vmem:[#allocation2 + $0x80] sm:$0x1]  ;;  %v7960_v60 = vld [vmem:[%s11047_s3 + $0xf0] sm:$0xff]  }
  0xcb   : > { %7579 = vmatmul.mubr.bf16.gmra.mxu0 %v6828_v0  ;;  %v2623_v21 = vrot.slane %v8868_v28, 5  ;;  %v11084_v34 = vrot.slane %v8712_v15, 5  ;;  %v8877_v0 = vsel %vm8708_vm14, %v6800_v62, %v2616_v36  ;;  %v2618_v56 = vrot.slane %v2616_v36, 4  ;;  %v2512_v42 = vld [vmem:[#allocation2 + $0x90] sm:$0xe] }
  0xcc   : > { %7582 = vmatprep.mubr.bf16.mxu0 %v6829_v32  ;;  %7659 = vmatpush3.bf16.msra.mxu0 %v7974_v40  ;;  %v6830_v15 = vcombine.low %v8859_v50, %v2606_v29  ;;  %v2626_v32 = vrot.slane %v8071_v19, 5  ;;  %v2513_v62 = vld [vmem:[#allocation2 + $0x9c] sm:$0xe]  ;;  %v8895_v36 = vld [vmem:[#allocation2 + $0x88] sm:$0xf]  ;;  %v11085_v26 = vcombine.low %v8729_v43, %v8726_v37  ;;  %v2637_v20 = vrot.slane %v8603_v49, 5 }
  0xcd   : > { %v2613_v5 = vsel %vm8708_vm14, %v2611_v30, %v11084_v34  ;;  %v8889_v23 = vsel %vm8708_vm14, %v6801_v25, %v2623_v21  ;;  %v2625_v55 = vrot.slane %v2623_v21, 4  ;;  %7660 = vmatprep.subr.bf16.mxu0 %v7978_v61  ;;  %v8893_v40 = vsel %vm8708_vm14, %v2618_v56, %v2619_v17  ;;  %v8074_v17 = vld [vmem:[#allocation2 + $0x8c] sm:$0x1]  ;;  %v2514_v34 = vld [vmem:[#allocation2 + $0xa8] sm:$0xe]  ;;  %v8076_v37 = vld [vmem:[%s11047_s3 + $0xf8] sm:$0xff]  }
  0xce   : > { %v6831_v3 = vcombine.low %v2610_v38, %v2613_v5  ;;  %v6802_v30 = vrot.slane %v2511_v31, 9  ;;  %v2630_v50 = vrot.slane %v8895_v36, 5  ;;  %v6832_v29 = vcombine.low %v8877_v0, %v8893_v40  ;;  %v8907_v38 = vld [vmem:[#allocation2 + $0x78] sm:$0xf]  ;;  %v8913_v19 = vld [vmem:[#allocation2 + $0x84] sm:$0xf] }
  0xcf   : > { %v8905_v25 = vsel %vm8708_vm14, %v2625_v55, %v2626_v32  ;;  %v2633_v21 = vrot.slane %v8074_v17, 5  ;;  %v6803_v55 = vrot.slane %v2512_v42, 9  ;;  %v2515_v32 = vld [vmem:[#allocation2 + $0xb4] sm:$0xe]  ;;  %v7964_v17 = vld [vmem:[%s11047_s3 + $0xe8] sm:$0xff]   ;;  %v2640_v13 = vrot.slane %v8605_v51, 5 }
  0xd0   : > { %v2632_v56 = vrot.slane %v2630_v50, 4  ;;  %7661 = vmatpush3.bf16.msra.mxu0 %v7978_v61  ;;  %v8925_v31 = vsel %vm8708_vm14, %v6802_v30, %v2630_v50  ;;  %v6804_v10 = vrot.slane %v2513_v62, 9  ;;  %v7986_v61 = vld [vmem:[%s11047_s3 + $0x100] sm:$0xff]   ;;  %v11086_v43 = vcombine.low %v8753_v27, %v8755_v24 }
  0xd1   : > { %7523 = vmatmul.mubr.bf16.vlgmr.msra.gmra.mxu1 %v11085_v26  ;;  %7662 = vmatprep.subr.bf16.mxu0 %v7982_v6  ;;  %v2644_v51 = vrot.slane %v8641_v22, 5  ;;  %v2647_v42 = vrot.slane %v8637_v16, 5  ;;  %v8950_v27 = vsel %vm8708_vm14, %v6803_v55, %v2637_v20  ;;  %v2639_v24 = vrot.slane %v2637_v20, 4  ;;  %v9011_v5 = vld [vmem:[#allocation2 + $0x20] sm:$0x1] }
  0xd2   : > { %7603 = vmatpush3.bf16.msra.mxu1 %v8076_v37  ;;  %7526 = vmatprep.mubr.bf16.mxu1 %v11086_v43  ;;  %v8946_v30 = vsel %vm8708_vm14, %v2632_v56, %v2633_v21  ;;  %v6805_v50 = vrot.slane %v2514_v34, 9  ;;  %v3371_v37 = vld [vmem:[#allocation2 + $0xc] sm:$0xf]  ;;  %v2654_v62 = vrot.slane %v8749_v2, 5  ;;  %v8958_v21 = vld [vmem:[#allocation2 + $0x10] sm:$0xf] }
  0xd3   : > { %7604 = vmatprep.subr.bf16.mxu1 %v7960_v60  ;;  %7583 = vmatmul.mubr.bf16.gmra.mxu0 %v6830_v15  ;;  %v8954_v16 = vsel %vm8708_vm14, %v6804_v10, %v2644_v51  ;;  %v2646_v43 = vrot.slane %v2644_v51, 4  ;;  %v2651_v15 = vrot.slane %v8747_v9, 5  ;;  %v8963_v56 = vld [vmem:[%s11047_s3 + $0x1b8] sm:$0xff]   ;;  %v8967_v20 = vsel %vm8708_vm14, %v2639_v24, %v2640_v13  ;;  %v7968_v2 = vld [vmem:[%s11047_s3 + $0xe0] sm:$0xff]   ;;  %v8990_v34 = vld [vmem:[#allocation2 + $0x14] sm:$0x1] }
  0xd4   : > { %7586 = vmatprep.mubr.bf16.mxu0 %v6831_v3  ;;  %7663 = vmatpush3.bf16.msra.mxu0 %v7982_v6  ;;  %v6806_v3 = vrot.slane %v2515_v32, 9  ;;  %v2658_v6 = vrot.slane %v8789_v41, 5  ;;  %v3374_v51 = vld [vmem:[#allocation2 + $0x18] sm:$0xf]  ;;  %v2661_v26 = vrot.slane %v8796_v45, 5  ;;  %11087 = vst [vmem:[#allocation8_spill] sm:$0xff] %v8990_v34  ;;  %v11088_v24 = vcombine.low %v8763_v48, %v8765_v52 }
  0xd5   : > { %7664 = vmatprep.subr.bf16.mxu0 %v7986_v61  ;;  %v8979_v55 = vsel %vm8708_vm14, %v2646_v43, %v2647_v42  ;;  %v8983_v13 = vsel %vm8708_vm14, %v6805_v50, %v2651_v15  ;;  %v2653_v32 = vrot.slane %v2651_v15, 4  ;;  %v8992_v42 = vld [vmem:[#allocation2 + $0x1c] sm:$0xf]  ;;  %v3420_v15 = vshrl.u32 %v3371_v37, 16 }
  0xd6   : > { %7605 = vmatpush3.bf16.msra.mxu1 %v7960_v60  ;;  %v2660_v10 = vrot.slane %v2658_v6, 4  ;;  %v3423_v60 = vshll.u32 %v3371_v37, 16  ;;  %v9007_v4 = vsel %vm8708_vm14, %v6806_v3, %v2658_v6  ;;  %v7972_v48 = vld [vmem:[%s11047_s3 + $0xd8] sm:$0xff]   ;;  %v3439_v3 = vshll.u32 %v8990_v34, 16  ;;  %v3377_v6 = vld [vmem:[#allocation2 + $0x24] sm:$0xf] }
  0xd7   : > { %7606 = vmatprep.subr.bf16.mxu1 %v7964_v17  ;;  %v8996_v50 = vsel %vm8708_vm14, %v2653_v32, %v2654_v62  ;;  %v3429_v62 = vshll.u32 %v8958_v21, 16  ;;  %v3433_v32 = vshrl.u32 %v8958_v21, 16  ;;  %v3457_v43 = vshrl.u32 %v8992_v42, 16 }
  0xd8   : > { %7665 = vmatpush3.bf16.msra.mxu0 %v7986_v61  ;;  %v9022_v52 = vsel %vm8708_vm14, %v2660_v10, %v2661_v26  ;;  %v3422_v61 = vrot.slane %v3420_v15, 4  ;;  %v3425_v37 = vrot.slane %v3423_v60, 5  ;;  %v11089_v26 = vcombine.low %v8889_v23, %v8905_v25  ;;  %v7976_v23 = vld [vmem:[%s11047_s3 + $0xd0] sm:$0xff]  }
  0xd9   : > { %7527 = vmatmul.mubr.bf16.gmra.mxu1 %v11088_v24  ;;  %7746 = vmatprep.subr.bf16.mxu0 %v8963_v56  ;;  %v3431_v54 = vrot.slane %v3429_v62, 5  ;;  %v3435_v1 = vrot.slane %v3433_v32, 4  ;;  %v9028_v24 = vld [vmem:[#allocation2 + $0x28] sm:$0xf]  ;;  %v3441_v60 = vrot.slane %v3439_v3, 5  ;;  %v3453_v15 = vshll.u32 %v8992_v42, 16 }
  0xda   : > { %7530 = vmatprep.mubr.bf16.mxu1 %v6771_v7  ;;  %7607 = vmatpush3.bf16.msra.mxu1 %v7964_v17  ;;  %v3444_v7 = vshrl.u32 %v3374_v51, 16  ;;  %v3447_v17 = vshll.u32 %v3374_v51, 16  ;;  %v3426_v10 = vor.u32 %v3425_v37, %v3422_v61  ;;  %v3463_v40 = vshll.u32 %v9011_v5, 16  ;;  %v9039_v3 = vld [vmem:[#allocation2 + $0x2c] sm:$0x1] }
  0xdb   : > { %7608 = vmatprep.subr.bf16.mxu1 %v7968_v2  ;;  %7587 = vmatmul.mubr.bf16.gmra.mxu0 %v6832_v29  ;;  %v3436_v45 = vor.u32 %v3435_v1, %v3431_v54  ;;  %v3455_v51 = vrot.slane %v3453_v15, 5  ;;  %v3459_v62 = vrot.slane %v3457_v43, 4  ;;  %v3468_v32 = vshrl.u32 %v3377_v6, 16 }
  0xdc   : > { %7590 = vmatprep.mubr.bf16.mxu0 %v11089_v26  ;;  %v3446_v34 = vrot.slane %v3444_v7, 4  ;;  %v3449_v0 = vrot.slane %v3447_v17, 5  ;;  %v3427_v29 = vrot.slane %v3426_v10, 4  ;;  %v3465_v37 = vrot.slane %v3463_v40, 5  ;;  %v9041_v7 = vld [vmem:[#allocation2 + $0x34] sm:$0xf] }
  0xdd   : > { %v3437_v25 = vrot.slane %v3436_v45, 4  ;;  %v3471_v1 = vshll.u32 %v3377_v6, 16  ;;  %v3460_v17 = vor.u32 %v3459_v62, %v3455_v51  ;;  %v3470_v43 = vrot.slane %v3468_v32, 4  ;;  %v7980_v62 = vld [vmem:[%s11047_s3 + $0xc8] sm:$0xff]   ;;  %v3383_v32 = vld [vmem:[#allocation2 + $0x3c] sm:$0xf] }
  0xde   : > { %7609 = vmatpush3.bf16.msra.mxu1 %v7968_v2  ;;  %v3450_v61 = vor.u32 %v3449_v0, %v3446_v34  ;;  %v6838_v2 = vcombine.low %v9007_v4, %v9022_v52  ;;  %v3477_v26 = vshll.u32 %v9028_v24, 16  ;;  %v11090_v10 = vcombine.low %v8553_v33, %v8563_v58  ;;  %v9052_v0 = vld [vmem:[#allocation2 + $0x38] sm:$0x1] }
  0xdf   : > { %7610 = vmatprep.subr.bf16.mxu1 %v7972_v48  ;;  %v3432_v34 = vsel %vm8260_vm9, %v3427_v29, %v3431_v54  ;;  %v3473_v15 = vrot.slane %v3471_v1, 5  ;;  %v3481_v6 = vshrl.u32 %v9028_v24, 16  ;;  %v11091_v40 = vcombine.low %v8662_v11, %v8665_v18 }
  0xe0   : > { %v3451_v45 = vrot.slane %v3450_v61, 4  ;;  %v3442_v33 = vsel %vm8260_vm9, %v3437_v25, %v3441_v60  ;;  %v3461_v58 = vrot.slane %v3460_v17, 4  ;;  %v9062_v54 = vrot.slane %v3477_v26, 5 }
  0xe1   : > { %7531 = vmatmul.mubr.bf16.gmra.mxu1 %v11090_v10  ;;  %v3487_v29 = vshll.u32 %v9039_v3, 16  ;;  %v11092_v61 = vcombine.low %v8925_v31, %v8946_v30  ;;  %v3474_v18 = vor.u32 %v3473_v15, %v3470_v43  ;;  %v3492_v1 = vshrl.u32 %v3380_v12, 16  ;;  %v9070_v10 = vld [vmem:[#allocation2 + $0x40] sm:$0xf] }
  0xe2   : > { %7534 = vmatprep.mubr.bf16.mxu1 %v11091_v40  ;;  %7611 = vmatpush3.bf16.msra.mxu1 %v7972_v48  ;;  %v3456_v11 = vsel %vm8260_vm9, %v3451_v45, %v3455_v51  ;;  %v3483_v48 = vrot.slane %v3481_v6, 4  ;;  %v11093_v60 = vcombine.low %v8950_v27, %v8967_v20  ;;  %v3466_v25 = vsel %vm8260_vm9, %v3461_v58, %v3465_v37  ;;  %v9083_v20 = vld [vmem:[#allocation2 + $0x44] sm:$0x1]  ;;  %v3386_v37 = vld [vmem:[#allocation2 + $0x48] sm:$0xf] }
  0xe3   : > { %7591 = vmatmul.mubr.bf16.gmra.mxu0 %v11092_v61  ;;  %7612 = vmatprep.subr.bf16.mxu1 %v7976_v23  ;;  %v3489_v17 = vrot.slane %v3487_v29, 5  ;;  %v3495_v26 = vshll.u32 %v3380_v12, 16  ;;  %v3501_v31 = vshll.u32 %v9041_v7, 16  ;;  %v9078_v30 = vcombine.low %v3432_v34, %v3442_v33  ;;  %v7984_v12 = vld [vmem:[%s11047_s3 + $0xc0] sm:$0xff]  }
  0xe4   : > { %7594 = vmatprep.mubr.bf16.mxu0 %v11093_v60  ;;  %v3475_v40 = vrot.slane %v3474_v18, 4  ;;  %v3484_v51 = vor.u32 %v3483_v48, %v9062_v54  ;;  %v3494_v43 = vrot.slane %v3492_v1, 4  ;;  %v3505_v6 = vshrl.u32 %v9041_v7, 16  ;;  %v9094_v1 = vld [vmem:[#allocation2 + $0x4c] sm:$0xf] }
  0xe5   : > { %v3497_v45 = vrot.slane %v3495_v26, 5  ;;  %v3503_v15 = vrot.slane %v3501_v31, 5  ;;  %v3511_v27 = vshll.u32 %v9052_v0, 16  ;;  %v9088_v34 = vcombine.low %v3456_v11, %v3466_v25 }
  0xe6   : > { %7613 = vmatpush3.bf16.msra.mxu1 %v7976_v23  ;;  %v3485_v33 = vrot.slane %v3484_v51, 4  ;;  %v3516_v58 = vshrl.u32 %v3383_v32, 16  ;;  %v3519_v29 = vshll.u32 %v3383_v32, 16  ;;  %v3480_v23 = vsel %vm8260_vm9, %v3475_v40, %v9062_v54 }
  0xe7   : > { %7614 = vmatprep.subr.bf16.mxu1 %v7980_v62  ;;  %v3498_v61 = vor.u32 %v3497_v45, %v3494_v43  ;;  %v3507_v18 = vrot.slane %v3505_v6, 4  ;;  %v3525_v48 = vshll.u32 %v9070_v10, 16  ;;  %v11094_v60 = vcombine.low %v8682_v53, %v8689_v57  ;;  %v9105_v45 = vld [vmem:[#allocation2 + $0x50] sm:$0x1]  ;;  %v9113_v57 = vld [vmem:[%s11047_s3 + $0x178] sm:$0xff]  }
  0xe8   : > { %v3513_v26 = vrot.slane %v3511_v27, 5  ;;  %v3518_v11 = vrot.slane %v3516_v58, 4  ;;  %v3521_v25 = vrot.slane %v3519_v29, 5  ;;  %v3529_v31 = vshrl.u32 %v9070_v10, 16  ;;  %v3389_v6 = vld [vmem:[#allocation2 + $0x54] sm:$0xf] }
  0xe9   : > { %7535 = vmatmul.mubr.bf16.gmra.mxu1 %v11094_v60  ;;  %v11095_v32 = vcombine.low %v8850_v44, %v8844_v8  ;;  %v3490_v54 = vsel %vm8260_vm9, %v3485_v33, %v3489_v17  ;;  %v3499_v40 = vrot.slane %v3498_v61, 4  ;;  %v3508_v51 = vor.u32 %v3507_v18, %v3503_v15  ;;  %v9122_v29 = vld [vmem:[#allocation2 + $0x58] sm:$0xf] }
  0xea   : > { %7615 = vmatpush3.bf16.msra.mxu1 %v7980_v62  ;;  %v3527_v43 = vrot.slane %v3525_v48, 5  ;;  %v11096_v53 = vcombine.low %v8954_v16, %v8979_v55  ;;  %v3522_v8 = vor.u32 %v3521_v25, %v3518_v11  ;;  %v3531_v44 = vrot.slane %v3529_v31, 4 }
  0xeb   : > { %7538 = vmatprep.mubr.bf16.mxu1 %v11095_v32  ;;  %7616 = vmatprep.subr.bf16.mxu1 %v7984_v12  ;;  %v3535_v62 = vshll.u32 %v9083_v20, 16  ;;  %v3540_v17 = vshrl.u32 %v3386_v37, 16  ;;  %v11097_v27 = vcombine.low %v8983_v13, %v8996_v50  ;;  %v3504_v16 = vsel %vm8260_vm9, %v3499_v40, %v3503_v15  ;;  %v9135_v40 = vld [vmem:[#allocation2 + $0x5c] sm:$0x1] }
  0xec   : > { %7595 = vmatmul.mubr.bf16.gmra.mxu0 %v11096_v53  ;;  %v3509_v55 = vrot.slane %v3508_v51, 4  ;;  %v3543_v33 = vshll.u32 %v3386_v37, 16  ;;  %v3549_v58 = vshll.u32 %v9094_v1, 16  ;;  %v3523_v61 = vrot.slane %v3522_v8, 4 }
  0xed   : > { %7598 = vmatprep.mubr.bf16.mxu0 %v11097_v27  ;;  %v3532_v18 = vor.u32 %v3531_v44, %v3527_v43  ;;  %v3537_v48 = vrot.slane %v3535_v62, 5  ;;  %v3542_v60 = vrot.slane %v3540_v17, 4  ;;  %v3553_v50 = vshrl.u32 %v9094_v1, 16  ;;  %v9146_v27 = vld [vmem:[#allocation2 + $0x64] sm:$0xf] }
  0xee   : > { %7617 = vmatpush3.bf16.msra.mxu1 %v7984_v12  ;;  %v3514_v11 = vsel %vm8260_vm9, %v3509_v55, %v3513_v26  ;;  %v3545_v25 = vrot.slane %v3543_v33, 5  ;;  %v9126_v13 = vrot.slane %v3549_v58, 5  ;;  %v9130_v15 = vcombine.low %v3480_v23, %v3490_v54  ;;  %v3392_v12 = vld [vmem:[#allocation2 + $0x60] sm:$0xf] }
  0xef   : > { %7698 = vmatprep.subr.bf16.mxu1 %v9113_v57  ;;  %v9132_v37 = vcombine.low %v3504_v16, %v3514_v11  ;;  %v3533_v31 = vrot.slane %v3532_v18, 4  ;;  %v3559_v32 = vshll.u32 %v9105_v45, 16  ;;  %v3555_v53 = vrot.slane %v3553_v50, 4  ;;  %v9156_v18 = vld [vmem:[#allocation2 + $0x68] sm:$0x1] }
  0xf0   : > { %v3546_v51 = vor.u32 %v3545_v25, %v3542_v60  ;;  %v3564_v26 = vshrl.u32 %v3389_v6, 16  ;;  %v3567_v8 = vshll.u32 %v3389_v6, 16  ;;  %v11098_v44 = vcombine.low %v8879_v35, %v8861_v47 }
  0xf1   : > { %v3528_v23 = vsel %vm8260_vm9, %v3523_v61, %v3527_v43  ;;  %v3538_v54 = vsel %vm8260_vm9, %v3533_v31, %v3537_v48  ;;  %v3573_v62 = vshll.u32 %v9122_v29, 16  ;;  %v3577_v17 = vshrl.u32 %v9122_v29, 16  ;;  %v3395_v48 = vld [vmem:[#allocation2 + $0x6c] sm:$0xf] }
  0xf2   : > { %7539 = vmatmul.mubr.bf16.gmra.mxu1 %v11098_v44  ;;  %v11099_v16 = vcombine.low %v8907_v38, %v8868_v28  ;;  %v3547_v6 = vrot.slane %v3546_v51, 4  ;;  %v3556_v47 = vor.u32 %v3555_v53, %v9126_v13  ;;  %v3561_v35 = vrot.slane %v3559_v32, 5  ;;  %v9166_v53 = vld [vmem:[#allocation2 + $0x70] sm:$0xf]  ;;  %v9172_v44 = vld [vmem:[#allocation2 + $0x74] sm:$0x1] }
  0xf3   : > { %v3566_v55 = vrot.slane %v3564_v26, 4  ;;  %v3569_v43 = vrot.slane %v3567_v8, 5  ;;  %v3575_v33 = vrot.slane %v3573_v62, 5  ;;  %v3579_v58 = vrot.slane %v3577_v17, 4 }
  0xf4   : > { %7542 = vmatprep.mubr.bf16.mxu1 %v11099_v16  ;;  %7599 = vmatmul.mubr.bf16.gmra.mxu0 %v6838_v2  ;;  %v3583_v61 = vshll.u32 %v9135_v40, 16  ;;  %v9159_v28 = vcombine.low %v3528_v23, %v3538_v54  ;;  %v3557_v38 = vrot.slane %v3556_v47, 4  ;;  %v3588_v60 = vshrl.u32 %v3392_v12, 16  ;;  %v3398_v23 = vld [vmem:[#allocation2 + $0x78] sm:$0xf] }
  0xf5   : > { %7666 = vmatprep.mubr.bf16.mxu0 %v9078_v30  ;;  %v3591_v11 = vshll.u32 %v3392_v12, 16  ;;  %v3570_v25 = vor.u32 %v3569_v43, %v3566_v55  ;;  %v3580_v50 = vor.u32 %v3579_v58, %v3575_v33  ;;  %v3597_v4 = vshll.u32 %v9146_v27, 16 }
  0xf6   : > { %v3585_v31 = vrot.slane %v3583_v61, 5  ;;  %v3552_v52 = vsel %vm8260_vm9, %v3547_v6, %v9126_v13  ;;  %v3590_v2 = vrot.slane %v3588_v60, 4  ;;  %v3601_v51 = vshrl.u32 %v9146_v27, 16  ;;  %v7994_v13 = vld [vmem:[%s11047_s3 + $0x1b0] sm:$0xff]  }
  0xf7   : > { %v3593_v32 = vrot.slane %v3591_v11, 5  ;;  %v3562_v30 = vsel %vm8260_vm9, %v3557_v38, %v3561_v35  ;;  %v3571_v26 = vrot.slane %v3570_v25, 4  ;;  %v3581_v12 = vrot.slane %v3580_v50, 4  ;;  %v9196_v50 = vld [vmem:[#allocation2 + $0x80] sm:$0x1] }
  0xf8   : > { %v9170_v8 = vrot.slane %v3597_v4, 5  ;;  %v3603_v62 = vrot.slane %v3601_v51, 4  ;;  %v3607_v17 = vshll.u32 %v9156_v18, 16  ;;  %v3612_v16 = vshrl.u32 %v3395_v48, 16 }
  0xf9   : > { %v3594_v54 = vor.u32 %v3593_v32, %v3590_v2  ;;  %v11100_v6 = vcombine.low %v8913_v19, %v8895_v36  ;;  %v3576_v47 = vsel %vm8260_vm9, %v3571_v26, %v3575_v33  ;;  %v3586_v35 = vsel %vm8260_vm9, %v3581_v12, %v3585_v31  ;;  %v9192_v19 = vld [vmem:[#allocation2 + $0x7c] sm:$0xf]  ;;  %v3401_v31 = vld [vmem:[#allocation2 + $0x84] sm:$0xf] }
  0xfa   : > { %v3615_v55 = vshll.u32 %v3395_v48, 16  ;;  %v3621_v43 = vshll.u32 %v9166_v53, 16  ;;  %v11101_v58 = vcombine.low %v8595_v14, %v8603_v49  ;;  %v9189_v61 = vcombine.low %v3552_v52, %v3562_v30 }
  0xfb   : > { %7543 = vmatmul.mubr.bf16.gmra.mxu1 %v11100_v6  ;;  %v3595_v38 = vrot.slane %v3594_v54, 4  ;;  %v3604_v60 = vor.u32 %v3603_v62, %v9170_v8  ;;  %v3609_v36 = vrot.slane %v3607_v17, 5  ;;  %v3614_v33 = vrot.slane %v3612_v16, 4  ;;  %v9211_v54 = vld [vmem:[#allocation2 + $0x88] sm:$0xf]  ;;  %v8002_v17 = vld [vmem:[%s11047_s3 + $0x1a0] sm:$0xff]  }
  0xfc   : > { %7546 = vmatprep.mubr.bf16.mxu1 %v11101_v58  ;;  %7667 = vmatmul.mubr.bf16.vlgmr.msra.gmra.mxu0 %v9088_v34  ;;  %v3617_v11 = vrot.slane %v3615_v55, 5  ;;  %v3623_v25 = vrot.slane %v3621_v43, 5  ;;  %v3625_v48 = vshrl.u32 %v9166_v53, 16  ;;  %v9200_v14 = vcombine.low %v3576_v47, %v3586_v35  ;;  %v7998_v34 = vld [vmem:[%s11047_s3 + $0x1a8] sm:$0xff]   ;;  %v3404_v58 = vld [vmem:[#allocation2 + $0x90] sm:$0xf] }
  0xfd   : > { %7747 = vmatpush3.bf16.msra.mxu0 %v8963_v56  ;;  %7670 = vmatprep.mubr.bf16.mxu0 %v9130_v15  ;;  %v3605_v49 = vrot.slane %v3604_v60, 4  ;;  %v3631_v4 = vshll.u32 %v9172_v44, 16  ;;  %v3636_v52 = vshrl.u32 %v3398_v23, 16  ;;  %v3639_v51 = vshll.u32 %v3398_v23, 16  ;;  %v9218_v47 = vld [vmem:[#allocation2 + $0x8c] sm:$0x1] }
  0xfe   : > { %7748 = vmatprep.subr.bf16.mxu0 %v7994_v13  ;;  %v3618_v2 = vor.u32 %v3617_v11, %v3614_v33  ;;  %v3627_v32 = vrot.slane %v3625_v48, 4  ;;  %v3645_v30 = vshll.u32 %v9192_v19, 16  ;;  %v3600_v56 = vsel %vm8260_vm9, %v3595_v38, %v9170_v8  ;;  %v9226_v48 = vld [vmem:[#allocation2 + $0x94] sm:$0xf] }
  0xff   : > { %v3633_v15 = vrot.slane %v3631_v4, 5  ;;  %v3638_v26 = vrot.slane %v3636_v52, 4  ;;  %v3649_v12 = vshrl.u32 %v9192_v19, 16  ;;  %v3610_v62 = vsel %vm8260_vm9, %v3605_v49, %v3609_v36 }
 0x100   : > { %v3619_v23 = vrot.slane %v3618_v2, 4  ;;  %v3628_v16 = vor.u32 %v3627_v32, %v3623_v25  ;;  %v3641_v6 = vrot.slane %v3639_v51, 5  ;;  %v3647_v8 = vrot.slane %v3645_v30, 5  ;;  %v9236_v32 = vld [vmem:[#allocation2 + $0x98] sm:$0x1]  ;;  %v7987_v51 = vld [vmem:[#allocation2 + $0xc] sm:$0xff]  }
 0x101   : > { %7749 = vmatpush3.bf16.msra.mxu0 %v7994_v13  ;;  %v3651_v35 = vrot.slane %v3649_v12, 4  ;;  %v3655_v55 = vshll.u32 %v9196_v50, 16  ;;  %v3660_v43 = vshrl.u32 %v3401_v31, 16  ;;  %v11102_v38 = vcombine.low %v8633_v63, %v8641_v22 }
 0x102   : > { %7750 = vmatprep.subr.bf16.mxu0 %v7998_v34  ;;  %v3624_v60 = vsel %vm8260_vm9, %v3619_v23, %v3623_v25  ;;  %v3629_v36 = vrot.slane %v3628_v16, 4  ;;  %v3642_v33 = vor.u32 %v3641_v6, %v3638_v26  ;;  %v3663_v11 = vshll.u32 %v3401_v31, 16  ;;  %v3407_v6 = vld [vmem:[#allocation2 + $0x9c] sm:$0xf] }
 0x103   : > { %7547 = vmatmul.mubr.bf16.gmra.mxu1 %v11102_v38  ;;  %v11103_v13 = vcombine.low %v8733_v46, %v8747_v9  ;;  %v3652_v49 = vor.u32 %v3651_v35, %v3647_v8  ;;  %v3657_v4 = vrot.slane %v3655_v55, 5  ;;  %v3662_v52 = vrot.slane %v3660_v43, 4  ;;  %v9254_v35 = vld [vmem:[#allocation2 + $0xa0] sm:$0xf] }
 0x104   : > { %v3669_v2 = vshll.u32 %v9211_v54, 16  ;;  %7671 = vmatmul.mubr.bf16.gmra.mxu0 %v9132_v37  ;;  %v3634_v63 = vsel %vm8260_vm9, %v3629_v36, %v3633_v15  ;;  %v3643_v22 = vrot.slane %v3642_v33, 4  ;;  %v3665_v25 = vrot.slane %v3663_v11, 5  ;;  %v8006_v37 = vld [vmem:[%s11047_s3 + $0x198] sm:$0xff]  }
 0x105   : > { %7550 = vmatprep.mubr.bf16.mxu1 %v11103_v13  ;;  %v3673_v31 = vshrl.u32 %v9211_v54, 16  ;;  %7674 = vmatprep.mubr.bf16.mxu0 %v9159_v28  ;;  %v9239_v46 = vcombine.low %v3600_v56, %v3610_v62  ;;  %v3653_v9 = vrot.slane %v3652_v49, 4  ;;  %v3679_v15 = vshll.u32 %v9218_v47, 16  ;;  %v9259_v13 = vld [vmem:[#allocation2 + $0xa4] sm:$0x1] }
 0x106   : > { %7751 = vmatpush3.bf16.msra.mxu0 %v7998_v34  ;;  %v9244_v30 = vrot.slane %v3669_v2, 5  ;;  %v9247_v26 = vcombine.low %v3624_v60, %v3634_v63  ;;  %v3666_v12 = vor.u32 %v3665_v25, %v3662_v52  ;;  %v3684_v16 = vshrl.u32 %v3404_v58, 16  ;;  %v3410_v49 = vld [vmem:[#allocation2 + $0xa8] sm:$0xf] }
 0x107   : > { %7752 = vmatprep.subr.bf16.mxu0 %v8002_v17  ;;  %v3675_v23 = vrot.slane %v3673_v31, 4  ;;  %v3648_v28 = vsel %vm8260_vm9, %v3643_v22, %v3647_v8  ;;  %v3658_v34 = vsel %vm8260_vm9, %v3653_v9, %v3657_v4  ;;  %v3687_v56 = vshll.u32 %v3404_v58, 16 }
 0x108   : > { %v3693_v62 = vshll.u32 %v9226_v48, 16  ;;  %v3667_v55 = vrot.slane %v3666_v12, 4  ;;  %v3681_v38 = vrot.slane %v3679_v15, 5  ;;  %v3686_v60 = vrot.slane %v3684_v16, 4 }
 0x109   : > { %v3676_v43 = vor.u32 %v3675_v23, %v9244_v30  ;;  %v3689_v36 = vrot.slane %v3687_v56, 5  ;;  %v3697_v11 = vshrl.u32 %v9226_v48, 16  ;;  %v3703_v8 = vshll.u32 %v9236_v32, 16 }
 0x10a   : > { %7753 = vmatpush3.bf16.msra.mxu0 %v8002_v17  ;;  %v3695_v33 = vrot.slane %v3693_v62, 5  ;;  %v11104_v58 = vcombine.low %v8787_v39, %v8789_v41  ;;  %v9264_v4 = vcombine.low %v3648_v28, %v3658_v34  ;;  %v8010_v17 = vld [vmem:[%s11047_s3 + $0x190] sm:$0xff]   ;;  %v3708_v2 = vshrl.u32 %v3407_v6, 16  ;;  %v9273_v41 = vld [vmem:[#allocation2 + $0xac] sm:$0xf]  ;;  %v7989_v28 = vld [vmem:[#allocation2 + $0x18] sm:$0xff]  }
 0x10b   : > { %7754 = vmatprep.subr.bf16.mxu0 %v8006_v37  ;;  %v3677_v52 = vrot.slane %v3676_v43, 4  ;;  %v3711_v63 = vshll.u32 %v3407_v6, 16  ;;  %v3672_v22 = vsel %vm8260_vm9, %v3667_v55, %v9244_v30  ;;  %v3690_v25 = vor.u32 %v3689_v36, %v3686_v60  ;;  %v8014_v55 = vld [vmem:[%s11047_s3 + $0x188] sm:$0xff]  }
 0x10c   : > { %7551 = vmatmul.mubr.bf16.gmra.mxu1 %v11104_v58  ;;  %v3699_v31 = vrot.slane %v3697_v11, 4  ;;  %v3717_v39 = vshll.u32 %v9254_v35, 16  ;;  %7675 = vmatmul.mubr.bf16.gmra.mxu0 %v9189_v61  ;;  %v3705_v9 = vrot.slane %v3703_v8, 5  ;;  %v3710_v15 = vrot.slane %v3708_v2, 4  ;;  %v7992_v11 = vld [vmem:[%s11047_s3 + $0x170] sm:$0xff]  }
 0x10d   : > { %7618 = vmatprep.mubr.bf16.mxu1 %v7987_v51  ;;  %v3713_v12 = vrot.slane %v3711_v63, 5  ;;  %v3721_v23 = vshrl.u32 %v9254_v35, 16  ;;  %7678 = vmatprep.mubr.bf16.mxu0 %v9200_v14  ;;  %v3682_v51 = vsel %vm8260_vm9, %v3677_v52, %v3681_v38  ;;  %v3691_v30 = vrot.slane %v3690_v25, 4  ;;  %v7991_v14 = vld [vmem:[#allocation2 + $0x24] sm:$0xff]   ;;  %v9288_v38 = vld [vmem:[#allocation2 + $0xb0] sm:$0x1] }
 0x10e   : > { %7755 = vmatpush3.bf16.msra.mxu0 %v8006_v37  ;;  %v3700_v16 = vor.u32 %v3699_v31, %v3695_v33  ;;  %v9280_v6 = vrot.slane %v3717_v39, 5  ;;  %v3727_v61 = vshll.u32 %v9259_v13, 16  ;;  %v3732_v62 = vshrl.u32 %v3410_v49, 16  ;;  %v3413_v63 = vld [vmem:[#allocation2 + $0xb4] sm:$0xf] }
 0x10f   : > { %7756 = vmatprep.subr.bf16.mxu0 %v8010_v17  ;;  %v3714_v34 = vor.u32 %v3713_v12, %v3710_v15  ;;  %v3723_v56 = vrot.slane %v3721_v23, 4  ;;  %v3696_v37 = vsel %vm8260_vm9, %v3691_v30, %v3695_v33  ;;  %v3735_v60 = vshll.u32 %v3410_v49, 16  ;;  %v9300_v39 = vld [vmem:[#allocation2 + $0xb8] sm:$0xf] }
 0x110   : > { %v3701_v43 = vrot.slane %v3700_v16, 4  ;;  %v3741_v36 = vshll.u32 %v9273_v41, 16  ;;  %v3729_v52 = vrot.slane %v3727_v61, 5  ;;  %v3734_v2 = vrot.slane %v3732_v62, 4 }
 0x111   : > { %v3715_v8 = vrot.slane %v3714_v34, 4  ;;  %v3724_v58 = vor.u32 %v3723_v56, %v9280_v6  ;;  %v3737_v33 = vrot.slane %v3735_v60, 5  ;;  %v3745_v49 = vshrl.u32 %v9273_v41, 16 }
 0x112   : > { %v3706_v25 = vsel %vm8260_vm9, %v3701_v43, %v3705_v9  ;;  %7757 = vmatpush3.bf16.msra.mxu0 %v8010_v17  ;;  %v9297_v31 = vrot.slane %v3741_v36, 5  ;;  %v9302_v15 = vcombine.low %v3672_v22, %v3682_v51  ;;  %v3751_v30 = vshll.u32 %v9288_v38, 16  ;;  %v8018_v17 = vld [vmem:[%s11047_s3 + $0x180] sm:$0xff]   ;;  %v7996_v9 = vld [vmem:[%s11047_s3 + $0x168] sm:$0xff]   ;;  %v9314_v51 = vld [vmem:[#allocation2 + $0xbc] sm:$0x1] }
 0x113   : > { %v9304_v12 = vcombine.low %v3696_v37, %v3706_v25  ;;  %v3725_v23 = vrot.slane %v3724_v58, 4  ;;  %7758 = vmatprep.subr.bf16.mxu0 %v8014_v55  ;;  %v3738_v16 = vor.u32 %v3737_v33, %v3734_v2  ;;  %v3747_v22 = vrot.slane %v3745_v49, 4  ;;  %v649_v37 = vld [vmem:[#allocation2 + $0xc8] sm:$0x1]  ;;  %v7241_v58 = vld [vmem:[%s8190_s22 + $0x78] sm:$0xff]  }
 0x114   : > { %7619 = vmatmul.mubr.bf16.vlgmr.msra.gmra.mxu1 %v7989_v28  ;;  %v3756_v28 = vshrl.u32 %v3413_v63, 16  ;;  %v3759_v34 = vshll.u32 %v3413_v63, 16  ;;  %7679 = vmatmul.mubr.bf16.gmra.mxu0 %v9239_v46  ;;  %v3720_v56 = vsel %vm8260_vm9, %v3715_v8, %v9280_v6  ;;  %v3765_v61 = vshll.u32 %v9300_v39, 16  ;;  %v4125_v2 = vld [vmem:[#allocation2 + $0xc] sm:$0xe]  ;;  %v7993_v6 = vld [vmem:[#allocation2 + $0x30] sm:$0xff]  }
 0x115   : > { %7699 = vmatpush3.bf16.msra.mxu1 %v9113_v57  ;;  %7622 = vmatprep.mubr.bf16.mxu1 %v7991_v14  ;;  %v3730_v57 = vsel %vm8260_vm9, %v3725_v23, %v3729_v52  ;;  %v3769_v62 = vshrl.u32 %v9300_v39, 16  ;;  %v593_v14 = vld [vmem:[#allocation2 + $0xc0] sm:$0x1]  ;;  %v3739_v43 = vrot.slane %v3738_v16, 4  ;;  %v3748_v60 = vor.u32 %v3747_v22, %v9297_v31  ;;  %v9331_v33 = vld [vmem:[%s11047_s3 + $0x238] sm:$0xff]  }
 0x116   : > { %7700 = vmatprep.subr.bf16.mxu1 %v7992_v11  ;;  %7682 = vmatprep.mubr.bf16.mxu0 %v9247_v26  ;;  %v3753_v36 = vrot.slane %v3751_v30, 5  ;;  %v3758_v46 = vrot.slane %v3756_v28, 4  ;;  %v3761_v8 = vrot.slane %v3759_v34, 5  ;;  %v3767_v63 = vrot.slane %v3765_v61, 5  ;;  %v7995_v26 = vld [vmem:[#allocation2 + $0x3c] sm:$0xff]  }
 0x117   : > { %7759 = vmatpush3.bf16.msra.mxu0 %v8014_v55  ;;  %v3771_v52 = vrot.slane %v3769_v62, 4  ;;  %v3775_v25 = vshll.u32 %v9314_v51, 16  ;;  %v9333_v49 = vcombine.low %v3720_v56, %v3730_v57  ;;  %v3749_v55 = vrot.slane %v3748_v60, 4  ;;  %v8000_v28 = vld [vmem:[%s11047_s3 + $0x160] sm:$0xff]   ;;  %v4126_v60 = vld [vmem:[#allocation2 + $0x18] sm:$0xe] }
 0x118   : > { %7760 = vmatprep.subr.bf16.mxu0 %v8018_v17  ;;  %v594_v30 = vsel %vm8194_vm3, 0, %v593_v14  ;;  %v650_v22 = vsel %vm8202_vm4, 0, %v649_v37  ;;  %v3762_v34 = vor.u32 %v3761_v8, %v3758_v46  ;;  %v3744_v56 = vsel %vm8260_vm9, %v3739_v43, %v9297_v31 }
 0x119   : > { %7701 = vmatpush3.bf16.msra.mxu1 %v7992_v11  ;;  %v3772_v61 = vor.u32 %v3771_v52, %v3767_v63  ;;  %v3777_v62 = vrot.slane %v3775_v25, 5  ;;  %595 = vst [vmem:[#allocation2 + $0xc0] sm:$0x1] %v594_v30  ;;  %651 = vst [vmem:[#allocation2 + $0xc8] sm:$0x1] %v650_v22  ;;  %v7225_v11 = vunpack.c.l.bf16 %v7241_v58  ;;  %v7226_v57 = vunpack.c.h.bf16 %v7241_v58  ;;  %v11108_v58 = vld [vmem:[#allocation8_spill] sm:$0xff] }
 0x11a   : > { %7702 = vmatprep.subr.bf16.mxu1 %v7996_v9  ;;  %v6927_v14 = vrot.slane %v4125_v2, 9  ;;  %v4191_v37 = vrot.slane %v8958_v21, 5  ;;  %v3754_v16 = vsel %vm8260_vm9, %v3749_v55, %v3753_v36  ;;  %v3763_v46 = vrot.slane %v3762_v34, 4  ;;  %v8077_v52 = vld [vmem:[%s11049_s5] ss:$0 sm:$0xff] }
 0x11b   : > { %7761 = vmatpush3.bf16.msra.mxu0 %v8018_v17  ;;  %v3773_v8 = vrot.slane %v3772_v61, 4  ;;  %v755_v25 = vmul.f32 %v8077_v52, %v7225_v11  ;;  %v756_v31 = vmul.f32 %v8077_v52, %v7226_v57  ;;  %v4194_v2 = vrot.slane %v11108_v58, 5  ;;  %v4127_v36 = vld [vmem:[#allocation2 + $0x24] sm:$0xe]  ;;  %v8078_v55 = vld [vmem:[%s11050_s6] ss:$0 sm:$0xff] }
 0x11c   : > { %7623 = vmatmul.mubr.bf16.gmra.mxu1 %v7993_v6  ;;  %7842 = vmatprep.subr.bf16.mxu0 %v9331_v33  ;;  %v9354_v21 = vsel %vm8708_vm14, %v6927_v14, %v4191_v37  ;;  %v4193_v43 = vrot.slane %v4191_v37, 4  ;;  %v8004_v6 = vld [vmem:[%s11047_s3 + $0x158] sm:$0xff]   ;;  %v6928_v22 = vrot.slane %v4126_v60, 9  ;;  %v9369_v34 = vcombine.low %v3744_v56, %v3754_v16  ;;  %v4128_v11 = vld [vmem:[#allocation2 + $0x30] sm:$0xe]  ;;  %v7997_v57 = vld [vmem:[#allocation2 + $0x48] sm:$0xff]  }
 0x11d   : > { %7626 = vmatprep.mubr.bf16.mxu1 %v7995_v26  ;;  %7703 = vmatpush3.bf16.msra.mxu1 %v7996_v9  ;;  %v3768_v26 = vsel %vm8260_vm9, %v3763_v46, %v3767_v63  ;;  %v3778_v9 = vsel %vm8260_vm9, %v3773_v8, %v3777_v62  ;;  %v793_v30 = vadd.f32 %v8078_v55, %v755_v25  ;;  %v4198_v63 = vrot.slane %v8992_v42, 5  ;;  %v7999_v46 = vld [vmem:[#allocation2 + $0x54] sm:$0xff]  }
 0x11e   : > { %7704 = vmatprep.subr.bf16.mxu1 %v8000_v28  ;;  %7683 = vmatmul.mubr.bf16.gmra.mxu0 %v9264_v4  ;;  %v794_v4 = vadd.f32 %v8078_v55, %v756_v31  ;;  %v9373_v61 = vsel %vm8708_vm14, %v4193_v43, %v4194_v2  ;;  %v4201_v37 = vrot.slane %v9011_v5, 5  ;;  %v6929_v60 = vrot.slane %v4127_v36, 9  ;;  %v8008_v42 = vld [vmem:[%s11047_s3 + $0x150] sm:$0xff]   ;;  %v4129_v36 = vld [vmem:[#allocation2 + $0x3c] sm:$0xe] }
 0x11f   : > { %7686 = vmatprep.mubr.bf16.mxu0 %v9302_v15  ;;  %v825_v62 = vmax.f32 %v793_v30, 0.0  ;;  %v6959_v14 = vcombine.low %v9354_v21, %v9373_v61  ;;  %v9379_v15 = vcombine.low %v3768_v26, %v3778_v9  ;;  %v9383_v56 = vsel %vm8708_vm14, %v6928_v22, %v4198_v63  ;;  %v8025_v21 = vld [vmem:[%s11047_s3 + $0x1f0] sm:$0xff]  }
 0x120   : > { %v826_v16 = vmax.f32 %v794_v4, 0.0  ;;  %v4200_v8 = vrot.slane %v4198_v63, 4  ;;  %v4205_v25 = vrot.slane %v9028_v24, 5  ;;  %v4208_v5 = vrot.slane %v9039_v3, 5  ;;  %v4130_v3 = vld [vmem:[#allocation2 + $0x48] sm:$0xe] }
 0x121   : > { %7705 = vmatpush3.bf16.msra.mxu1 %v8000_v28  ;;  %v7157_v52 = vpack.c.bf16 %v825_v62, %v825_v62  ;;  %v6930_v31 = vrot.slane %v4128_v11, 9  ;;  %v4212_v58 = vrot.slane %v9041_v7, 5  ;;  %v4215_v2 = vrot.slane %v9052_v0, 5  ;;  %v8012_v0 = vld [vmem:[%s11047_s3 + $0x148] sm:$0xff]  }
 0x122   : > { %7706 = vmatprep.subr.bf16.mxu1 %v8004_v6  ;;  %v7158_v28 = vpack.c.bf16 %v826_v16, %v826_v16  ;;  %v9392_v43 = vsel %vm8708_vm14, %v4200_v8, %v4201_v37  ;;  %v9400_v24 = vsel %vm8708_vm14, %v6929_v60, %v4205_v25  ;;  %v4207_v4 = vrot.slane %v4205_v25, 4  ;;  %v1353_v37 = vld [vmem:[#allocation2 + $0xc0] sm:$0xf]  ;;  %v1357_v25 = vld [vmem:[#allocation2 + $0xc8] sm:$0x1] }
 0x123   : > { %v1181_v26 = vshrl.u32 %v7157_v52, 16  ;;  %v1184_v9 = vshll.u32 %v7157_v52, 16  ;;  %v6960_v55 = vcombine.low %v9383_v56, %v9392_v43  ;;  %v9404_v7 = vsel %vm8708_vm14, %v6930_v31, %v4212_v58  ;;  %v8001_v16 = vld [vmem:[#allocation2 + $0x60] sm:$0xff]  }
 0x124   : > { %7627 = vmatmul.mubr.bf16.gmra.mxu1 %v7997_v57  ;;  %v1189_v30 = vshrl.u32 %v7158_v28, 16  ;;  %v1192_v22 = vshll.u32 %v7158_v28, 16  ;;  %v4214_v11 = vrot.slane %v4212_v58, 4  ;;  %v6931_v57 = vrot.slane %v4129_v36, 9  ;;  %v8003_v28 = vld [vmem:[#allocation2 + $0x6c] sm:$0xff]  }
 0x125   : > { %7630 = vmatprep.mubr.bf16.mxu1 %v7999_v46  ;;  %7707 = vmatpush3.bf16.msra.mxu1 %v8004_v6  ;;  %v1183_v63 = vrot.slane %v1181_v26, 7  ;;  %v4219_v62 = vrot.slane %v9070_v10, 5  ;;  %v9414_v60 = vsel %vm8708_vm14, %v4207_v4, %v4208_v5  ;;  %v6932_v46 = vrot.slane %v4130_v3, 9 }
 0x126   : > { %7687 = vmatmul.mubr.bf16.gmra.mxu0 %v9304_v12  ;;  %7708 = vmatprep.subr.bf16.mxu1 %v8008_v42  ;;  %v1191_v6 = vrot.slane %v1189_v30, 7  ;;  %v4222_v12 = vrot.slane %v9083_v20, 5  ;;  %v6961_v31 = vcombine.low %v9400_v24, %v9414_v60  ;;  %v9421_v10 = vsel %vm8708_vm14, %v4214_v11, %v4215_v2  ;;  %v8016_v2 = vld [vmem:[%s11047_s3 + $0x140] sm:$0xff]  }
 0x127   : > { %7690 = vmatprep.mubr.bf16.mxu0 %v9333_v49  ;;  %v1186_v8 = vor.u32 %v1184_v9, %v1183_v63  ;;  %v1187_v52 = vrot.slane %v1183_v63, 4  ;;  %v4131_v49 = vld [vmem:[#allocation2 + $0x54] sm:$0xe]  ;;  %v6962_v20 = vcombine.low %v9404_v7, %v9421_v10  ;;  %v9427_v36 = vsel %vm8708_vm14, %v6931_v57, %v4219_v62  ;;  %v8037_v7 = vld [vmem:[%s11047_s3 + $0x1d8] sm:$0xff]  }
 0x128   : > { %v1194_v58 = vor.u32 %v1192_v22, %v1191_v6  ;;  %v1196_v5 = vrot.slane %v1191_v6, 4  ;;  %v4221_v3 = vrot.slane %v4219_v62, 4  ;;  %v4229_v30 = vrot.slane %v9105_v45, 5  ;;  %v4132_v22 = vld [vmem:[#allocation2 + $0x60] sm:$0xe] }
 0x129   : > { %7709 = vmatpush3.bf16.msra.mxu1 %v8008_v42  ;;  %v1354_v9 = vsel %vm8272_vm10, %v1186_v8, %v1353_v37  ;;  %v4226_v42 = vrot.slane %v9094_v1, 5  ;;  %v6933_v57 = vrot.slane %v4131_v49, 9  ;;  %v4233_v6 = vrot.slane %v9122_v29, 5  ;;  %v4133_v37 = vld [vmem:[#allocation2 + $0x6c] sm:$0xe] }
 0x12a   : > { %7710 = vmatprep.subr.bf16.mxu1 %v8012_v0  ;;  %v1195_v63 = vsel %vm8278_vm11, %v1187_v52, %v1194_v58  ;;  %1355 = vst [vmem:[#allocation2 + $0xc0] sm:$0xf] %v1354_v9  ;;  %v1358_v11 = vsel %vm8194_vm3, %v1196_v5, %v1357_v25  ;;  %v9443_v1 = vsel %vm8708_vm14, %v4221_v3, %v4222_v12  ;;  %v4236_v8 = vrot.slane %v9135_v40, 5  ;;  %v4134_v12 = vld [vmem:[#allocation2 + $0x78] sm:$0xe] }
 0x12b   : > { %1356 = vst [vmem:[#allocation2 + $0xc4] sm:$0xf] %v1195_v63  ;;  %1359 = vst [vmem:[#allocation2 + $0xc8] sm:$0x1] %v1358_v11  ;;  %v9447_v45 = vsel %vm8708_vm14, %v6932_v46, %v4226_v42  ;;  %v4228_v62 = vrot.slane %v4226_v42, 4  ;;  %v4235_v52 = vrot.slane %v4233_v6, 4 }
 0x12c   : > { %7631 = vmatmul.mubr.bf16.gmra.mxu1 %v8001_v16  ;;  %v9454_v16 = vsel %vm8708_vm14, %v6933_v57, %v4233_v6  ;;  %v6934_v25 = vrot.slane %v4132_v22, 9  ;;  %v9460_v46 = vld [vmem:[%s11047_s3 + $0x1f8] sm:$0xff]   ;;  %v4243_v49 = vrot.slane %v9156_v18, 5  ;;  %v4247_v5 = vrot.slane %v9166_v53, 5  ;;  %v4135_v9 = vld [vmem:[#allocation2 + $0x84] sm:$0xe] }
 0x12d   : > { %7634 = vmatprep.mubr.bf16.mxu1 %v8003_v28  ;;  %7711 = vmatpush3.bf16.msra.mxu1 %v8012_v0  ;;  %v9464_v40 = vsel %vm8708_vm14, %v4228_v62, %v4229_v30  ;;  %v4240_v0 = vrot.slane %v9146_v27, 5  ;;  %v6935_v28 = vrot.slane %v4133_v37, 9  ;;  %v9473_v58 = vsel %vm8708_vm14, %v4235_v52, %v4236_v8  ;;  %v8005_v3 = vld [vmem:[#allocation2 + $0x78] sm:$0xff]   ;;  %v8007_v30 = vld [vmem:[#allocation2 + $0x84] sm:$0xff]   ;;  %v4136_v52 = vld [vmem:[#allocation2 + $0x90] sm:$0xe] }
 0x12e   : > { %7691 = vmatmul.mubr.bf16.gmra.mxu0 %v9369_v34  ;;  %7712 = vmatprep.subr.bf16.mxu1 %v8016_v2  ;;  %v4250_v26 = vrot.slane %v9172_v44, 5  ;;  %v6936_v42 = vrot.slane %v4134_v12, 9  ;;  %v4249_v53 = vrot.slane %v4247_v5, 4  ;;  %v4254_v44 = vrot.slane %v9192_v19, 5 }
 0x12f   : > { %7694 = vmatprep.mubr.bf16.mxu0 %v9379_v15  ;;  %v9481_v18 = vsel %vm8708_vm14, %v6934_v25, %v4240_v0  ;;  %v4242_v15 = vrot.slane %v4240_v0, 4  ;;  %v9485_v22 = vsel %vm8708_vm14, %v6935_v28, %v4247_v5  ;;  %v4257_v4 = vrot.slane %v9196_v50, 5 }
 0x130   : > { %v6937_v57 = vrot.slane %v4135_v9, 9  ;;  %v4261_v6 = vrot.slane %v9211_v54, 5  ;;  %v9503_v50 = vsel %vm8708_vm14, %v4249_v53, %v4250_v26  ;;  %v9512_v9 = vsel %vm8708_vm14, %v6936_v42, %v4254_v44  ;;  %v5765_v42 = vld [vmem:[#allocation2 + $0x24] sm:$0xe] }
 0x131   : > { %7713 = vmatpush3.bf16.msra.mxu1 %v8016_v2  ;;  %v3416_v63 = vld [vmem:[#allocation2 + $0xc0] sm:$0xf]  ;;  %v9492_v11 = vsel %vm8708_vm14, %v4242_v15, %v4243_v49  ;;  %v4137_v49 = vld [vmem:[#allocation2 + $0x9c] sm:$0xe]  ;;  %v4256_v26 = vrot.slane %v4254_v44, 4  ;;  %v6938_v44 = vrot.slane %v4136_v52, 9 }
 0x132   : > { %7794 = vmatprep.subr.bf16.mxu1 %v9460_v46  ;;  %v9495_v2 = vld [vmem:[#allocation2 + $0xc4] sm:$0xf]  ;;  %v9497_v37 = vld [vmem:[#allocation2 + $0xc8] sm:$0x1]  ;;  %v3780_v62 = vshrl.u32 %v3416_v63, 16  ;;  %v3783_v8 = vshll.u32 %v3416_v63, 16  ;;  %v9516_v63 = vsel %vm8708_vm14, %v6937_v57, %v4261_v6 }
 0x133   : > { %v3789_v25 = vshll.u32 %v9495_v2, 16  ;;  %v3793_v12 = vshrl.u32 %v9495_v2, 16  ;;  %v3799_v54 = vshll.u32 %v9497_v37, 16  ;;  %v9520_v0 = vsel %vm8708_vm14, %v4256_v26, %v4257_v4 }
 0x134   : > { %7635 = vmatmul.mubr.bf16.gmra.mxu1 %v8005_v3  ;;  %v3782_v28 = vrot.slane %v3780_v62, 4  ;;  %v3785_v5 = vrot.slane %v3783_v8, 5  ;;  %v4264_v62 = vrot.slane %v9218_v47, 5  ;;  %v8009_v8 = vld [vmem:[#allocation2 + $0x90] sm:$0xff]   ;;  %v4271_v4 = vrot.slane %v9236_v32, 5 }
 0x135   : > { %7638 = vmatprep.mubr.bf16.mxu1 %v8007_v30  ;;  %v3791_v15 = vrot.slane %v3789_v25, 5  ;;  %v3795_v3 = vrot.slane %v3793_v12, 4  ;;  %v3801_v53 = vrot.slane %v3799_v54, 5  ;;  %v4263_v30 = vrot.slane %v4261_v6, 4  ;;  %v4138_v12 = vld [vmem:[#allocation2 + $0xa8] sm:$0xe] }
 0x136   : > { %v3786_v19 = vor.u32 %v3785_v5, %v3782_v28  ;;  %v4268_v25 = vrot.slane %v9226_v48, 5  ;;  %v8011_v54 = vld [vmem:[#allocation2 + $0x9c] sm:$0xff]   ;;  %v6939_v6 = vrot.slane %v4137_v49, 9  ;;  %v4139_v32 = vld [vmem:[#allocation2 + $0xb4] sm:$0xe] }
 0x137   : > { %v3796_v27 = vor.u32 %v3795_v3, %v3791_v15  ;;  %v9528_v28 = vsel %vm8708_vm14, %v4263_v30, %v4264_v62  ;;  %v4275_v3 = vrot.slane %v9254_v35, 5  ;;  %v4278_v30 = vrot.slane %v9259_v13, 5  ;;  %v8042_v47 = vld [vmem:[%s11047_s3 + $0x210] sm:$0xff]  }
 0x138   : > { %v3787_v57 = vrot.slane %v3786_v19, 4  ;;  %v9535_v26 = vsel %vm8708_vm14, %v6938_v44, %v4268_v25  ;;  %v4270_v52 = vrot.slane %v4268_v25, 4  ;;  %v8019_v19 = vld [vmem:[#allocation2 + $0x18] sm:$0xff]   ;;  %v6940_v62 = vrot.slane %v4138_v12, 9 }
 0x139   : > { %v3797_v5 = vrot.slane %v3796_v27, 4  ;;  %v4282_v44 = vrot.slane %v9273_v41, 5  ;;  %v4285_v25 = vrot.slane %v9288_v38, 5  ;;  %v6941_v41 = vrot.slane %v4139_v32, 9 }
 0x13a   : > { %v3792_v48 = vsel %vm8260_vm9, %v3787_v57, %v3791_v15  ;;  %v9545_v49 = vsel %vm8708_vm14, %v4270_v52, %v4271_v4  ;;  %v596_v15 = vld [vmem:[#allocation2 + $0xcc] sm:$0x1]  ;;  %v4140_v57 = vld [vmem:[#allocation2 + $0xc0] sm:$0xe]  ;;  %v4289_v38 = vrot.slane %v9300_v39, 5  ;;  %v4296_v32 = vrot.slane %v9495_v2, 5 }
 0x13b   : > { %v3802_v27 = vsel %vm8260_vm9, %v3797_v5, %v3801_v53  ;;  %v4277_v53 = vrot.slane %v4275_v3, 4  ;;  %v9557_v12 = vsel %vm8708_vm14, %v6940_v62, %v4282_v44  ;;  %v4284_v4 = vrot.slane %v4282_v44, 4  ;;  %v8020_v44 = vld [vmem:[#allocation2 + $0x24] sm:$0xff]   ;;  %v8026_v2 = vld [vmem:[%s11047_s3 + $0x230] sm:$0xff]  }
 0x13c   : > { %7639 = vmatmul.mubr.bf16.gmra.mxu1 %v8009_v8  ;;  %v6918_v35 = vcombine.low %v3792_v48, %v3802_v27  ;;  %v9553_v8 = vsel %vm8708_vm14, %v6939_v6, %v4275_v3  ;;  %v4292_v5 = vrot.slane %v9314_v51, 5  ;;  %v597_v6 = vsel %vm8194_vm3, 0, %v596_v15  ;;  %v8013_v48 = vld [vmem:[#allocation2 + $0xa8] sm:$0xff]   ;;  %v8015_v51 = vld [vmem:[#allocation2 + $0xb4] sm:$0xff]  }
 0x13d   : > { %7642 = vmatprep.mubr.bf16.mxu1 %v8011_v54  ;;  %v9562_v54 = vsel %vm8708_vm14, %v4277_v53, %v4278_v30  ;;  %v6942_v52 = vrot.slane %v4140_v57, 9  ;;  %v9571_v62 = vsel %vm8708_vm14, %v4284_v4, %v4285_v25  ;;  %v9575_v39 = vsel %vm8708_vm14, %v6941_v41, %v4289_v38  ;;  %598 = vst [vmem:[#allocation2 + $0xcc] sm:$0x1] %v597_v6  ;;  %v8017_v41 = vld [vmem:[#allocation2 + $0xc0] sm:$0xff]  }
 0x13e   : > { %7695 = vmatmul.mubr.bf16.gmra.mxu0 %v6918_v35  ;;  %v4291_v30 = vrot.slane %v4289_v38, 4  ;;  %v4298_v57 = vrot.slane %v4296_v32, 4  ;;  %v8023_v35 = vld [vmem:[#allocation2 + $0x30] sm:$0xff]   ;;  %v8030_v38 = vld [vmem:[%s11047_s3 + $0x228] sm:$0xff]   ;;  %v8024_v6 = vld [vmem:[#allocation2 + $0x3c] sm:$0xff]  }
 0x13f   : > { %7762 = vmatprep.mubr.bf16.mxu0 %v8019_v19  ;;  %v4299_v19 = vrot.slane %v9497_v37, 5  ;;  %v9589_v15 = vsel %vm8708_vm14, %v6942_v52, %v4296_v32  ;;  %v9594_v37 = vpop.f32.mrf.mxu0  ;;  %v8027_v52 = vld [vmem:[#allocation2 + $0x48] sm:$0xff]  }
 0x140   : > { %v9583_v27 = vsel %vm8708_vm14, %v4291_v30, %v4292_v5  ;;  %11111 = vst [vmem:[#allocation3_spill] sm:$0xff] %v9594_v37  ;;  %v5010_v30 = vld [vmem:[#allocation2 + $0x18] sm:$0xf]  ;;  %v5030_v37 = vld [vmem:[#allocation2 + $0x68] sm:$0x1] }
 0x141   : > { %v9598_v53 = vsel %vm8708_vm14, %v4298_v57, %v4299_v19  ;;  %v9606_v5 = vpop.f32.mrf.mxu0  ;;  %v9616_v19 = vld [vmem:[#allocation2 + $0x20] sm:$0x1]  ;;  %v5059_v57 = vshrl.u32 %v5010_v30, 16 }
 0x142   : > { %11112 = vst [vmem:[#allocation7_spill] sm:$0xff] %v9606_v5  ;;  %v5833_v4 = vrot.slane %v9616_v19, 5 }
 0x143   : > { %v5061_v25 = vrot.slane %v5059_v57, 4 }
 0x144   : > { %7643 = vmatmul.mubr.bf16.gmra.mxu1 %v8013_v48  ;;  %v9614_v48 = vpop.f32.mrf.mxu0 }
 0x145   : > { %7646 = vmatprep.mubr.bf16.mxu1 %v8015_v51  ;;  %11113 = vst [vmem:[#allocation8_spill] sm:$0xff] %v9614_v48  ;;  %v5011_v51 = vld [vmem:[#allocation2 + $0x1c] sm:$0xf]  ;;  %v11118_v48 = vcombine.low %v9427_v36, %v9443_v1  ;;  %v9694_v36 = vld [vmem:[#allocation2 + $0x38] sm:$0x1] }
 0x146   : > { %7763 = vmatmul.mubr.bf16.vlgmr.msra.gmra.mxu0 %v8020_v44  ;;  %v5830_v32 = vrot.slane %v5011_v51, 5  ;;  %v5764_v44 = vld [vmem:[#allocation2 + $0x18] sm:$0xe]  ;;  %v9621_v61 = vpop.f32.mrf.mxu0  ;;  %v5068_v3 = vshll.u32 %v5011_v51, 16  ;;  %v5072_v13 = vshrl.u32 %v5011_v51, 16 }
 0x147   : > { %7843 = vmatpush3.bf16.msra.mxu0 %v9331_v33  ;;  %7766 = vmatprep.mubr.bf16.mxu0 %v8023_v35  ;;  %v8034_v33 = vld [vmem:[%s11047_s3 + $0x220] sm:$0xff]   ;;  %v5062_v35 = vshll.u32 %v5010_v30, 16  ;;  %11114 = vst [vmem:[#allocation5_spill] sm:$0xff] %v9621_v61  ;;  %v5016_v51 = vld [vmem:[#allocation2 + $0x30] sm:$0xf] }
 0x148   : > { %7844 = vmatprep.subr.bf16.mxu0 %v8026_v2  ;;  %v8031_v30 = vld [vmem:[#allocation2 + $0x60] sm:$0xff]   ;;  %v5019_v61 = vld [vmem:[#allocation2 + $0x3c] sm:$0xf] }
 0x149   : > { %v5064_v23 = vrot.slane %v5062_v35, 5  ;;  %v9656_v35 = vrot.slane %v5068_v3, 5  ;;  %v8033_v3 = vld [vmem:[%s11047_s3 + $0x1e0] sm:$0xff]  }
 0x14b   : > { %7845 = vmatpush3.bf16.msra.mxu0 %v8026_v2  ;;  %v9626_v2 = vld [vmem:[#allocation2 + $0x28] sm:$0xf]  ;;  %v5065_v57 = vor.u32 %v5064_v23, %v5061_v25  ;;  %v5107_v23 = vshrl.u32 %v5016_v51, 16  ;;  %v5110_v25 = vshll.u32 %v5016_v51, 16 }
 0x14c   : > { %7647 = vmatmul.mubr.bf16.gmra.mxu1 %v8017_v41  ;;  %7846 = vmatprep.subr.bf16.mxu0 %v8030_v38  ;;  %v5013_v41 = vld [vmem:[#allocation2 + $0x24] sm:$0xf] }
 0x14d   : > { %7714 = vmatprep.mubr.bf16.mxu1 %v6959_v14  ;;  %v8038_v14 = vld [vmem:[%s11047_s3 + $0x218] sm:$0xff]   ;;  %v5083_v56 = vshrl.u32 %v5013_v41, 16  ;;  %v5086_v43 = vshll.u32 %v5013_v41, 16  ;;  %v5074_v41 = vrot.slane %v5072_v13, 4  ;;  %v8046_v13 = vld [vmem:[%s11047_s3 + $0x208] sm:$0xff]   ;;  %v5109_v1 = vrot.slane %v5107_v23, 4 }
 0x14e   : > { %7767 = vmatmul.mubr.bf16.gmra.mxu0 %v8024_v6  ;;  %v7063_v6 = vrot.slane %v5764_v44, 9  ;;  %v9636_v44 = vpop.f32.mrf.mxu0 }
 0x14f   : > { %7770 = vmatprep.mubr.bf16.mxu0 %v8027_v52  ;;  %7847 = vmatpush3.bf16.msra.mxu0 %v8030_v38  ;;  %v8028_v38 = vld [vmem:[#allocation2 + $0x54] sm:$0xff]   ;;  %v5832_v52 = vrot.slane %v5830_v32, 4  ;;  %11115 = vst [vmem:[#allocation6_spill] sm:$0xff] %v9636_v44  ;;  %v5075_v51 = vor.u32 %v5074_v41, %v9656_v35 }
 0x150   : > { %7848 = vmatprep.subr.bf16.mxu0 %v8034_v33  ;;  %v9648_v24 = vsel %vm8708_vm14, %v7063_v6, %v5830_v32  ;;  %v9659_v34 = vpop.f32.mrf.mxu0  ;;  %v5015_v32 = vld [vmem:[#allocation2 + $0x2c] sm:$0x1]  ;;  %v5085_v6 = vrot.slane %v5083_v56, 4  ;;  %v7064_v56 = vrot.slane %v5765_v42, 9 }
 0x151   : > { %v9652_v60 = vsel %vm8708_vm14, %v5832_v52, %v5833_v4  ;;  %11116 = vst [vmem:[#allocation9_spill] sm:$0xff] %v9659_v34  ;;  %v5088_v4 = vrot.slane %v5086_v43, 5  ;;  %v8035_v43 = vld [vmem:[#allocation2 + $0x78] sm:$0xff]   ;;  %v5840_v44 = vrot.slane %v5015_v32, 5 }
 0x152   : > { %v9686_v10 = vpop.f32.mrf.mxu0 }
 0x153   : > { %7849 = vmatpush3.bf16.msra.mxu0 %v8034_v33  ;;  %v5096_v33 = vshrl.u32 %v9626_v2, 16  ;;  %11119 = vst [vmem:[#allocation11_spill] sm:$0xff] %v9686_v10 }
 0x154   : > { %7715 = vmatmul.mubr.bf16.vlgmr.msra.gmra.mxu1 %v6960_v55  ;;  %v5092_v55 = vshll.u32 %v9626_v2, 16  ;;  %7850 = vmatprep.subr.bf16.mxu0 %v8038_v14 }
 0x155   : > { %7795 = vmatpush3.bf16.msra.mxu1 %v9460_v46  ;;  %7718 = vmatprep.mubr.bf16.mxu1 %v6961_v31  ;;  %v8029_v46 = vld [vmem:[%s11047_s3 + $0x1e8] sm:$0xff]   ;;  %v9654_v31 = vld [vmem:[#allocation2 + $0x34] sm:$0xf]  ;;  %v5098_v29 = vrot.slane %v5096_v33, 4  ;;  %v9677_v33 = vrot.slane %v5065_v57, 4  ;;  %v5102_v57 = vshll.u32 %v5015_v32, 16 }
 0x156   : > { %7796 = vmatprep.subr.bf16.mxu1 %v8025_v21  ;;  %7771 = vmatmul.mubr.bf16.gmra.mxu0 %v8028_v38  ;;  %v5837_v38 = vrot.slane %v9626_v2, 5  ;;  %v9661_v52 = vrot.slane %v5092_v55, 5  ;;  %v8032_v2 = vld [vmem:[#allocation2 + $0x6c] sm:$0xff]   ;;  %v9675_v55 = vpop.f32.mrf.mxu1  ;;  %v5134_v32 = vshll.u32 %v5019_v61, 16 }
 0x157   : > { %7774 = vmatprep.mubr.bf16.mxu0 %v8031_v30  ;;  %7851 = vmatpush3.bf16.msra.mxu0 %v8038_v14  ;;  %v5120_v14 = vshrl.u32 %v9654_v31, 16  ;;  %v5078_v30 = vshll.u32 %v9616_v19, 16  ;;  %11117 = vst [vmem:[#allocation10_spill] sm:$0xff] %v9675_v55  ;;  %v5071_v23 = vsel %vm8260_vm9, %v9677_v33, %v9656_v35 }
 0x158   : > { %7852 = vmatprep.subr.bf16.mxu0 %v8042_v47  ;;  %v5839_v34 = vrot.slane %v5837_v38, 4  ;;  %v5099_v19 = vor.u32 %v5098_v29, %v9661_v52  ;;  %v9702_v10 = vsel %vm8708_vm14, %v7064_v56, %v5837_v38  ;;  %v5131_v29 = vshrl.u32 %v5019_v61, 16  ;;  %v9719_v61 = vpop.f32.mrf.mxu0 }
 0x159   : > { %7797 = vmatpush3.bf16.msra.mxu1 %v8025_v21  ;;  %v5116_v21 = vshll.u32 %v9654_v31, 16  ;;  %v5122_v41 = vrot.slane %v5120_v14, 4  ;;  %v9698_v55 = vrot.slane %v5078_v30, 5  ;;  %v5844_v38 = vrot.slane %v9654_v31, 5  ;;  %v9717_v14 = vld [vmem:[#allocation2 + $0x40] sm:$0xf] }
 0x15a   : > { %7798 = vmatprep.subr.bf16.mxu1 %v8029_v46  ;;  %11121 = vst [vmem:[#allocation13_spill] sm:$0xff] %v9719_v61  ;;  %v5104_v30 = vrot.slane %v5102_v57, 5  ;;  %v5126_v56 = vshll.u32 %v9694_v36, 16  ;;  %v5851_v33 = vrot.slane %v9717_v14, 5  ;;  %v5140_v57 = vshll.u32 %v9717_v14, 16 }
 0x15b   : > { %7853 = vmatpush3.bf16.msra.mxu0 %v8042_v47  ;;  %v5089_v47 = vor.u32 %v5088_v4, %v5085_v6  ;;  %v9704_v6 = vld [vmem:[#allocation2 + $0x30] sm:$0xe]  ;;  %v9706_v4 = vpop.f32.mrf.mxu1  ;;  %v5144_v42 = vshrl.u32 %v9717_v14, 16 }
 0x15c   : > { %7719 = vmatmul.mubr.bf16.gmra.mxu1 %v6962_v20  ;;  %v8050_v20 = vld [vmem:[%s11047_s3 + $0x200] sm:$0xff]   ;;  %7854 = vmatprep.subr.bf16.mxu0 %v8046_v13  ;;  %11120 = vst [vmem:[#allocation12_spill] sm:$0xff] %v9706_v4  ;;  %v11122_v4 = vcombine.low %v9447_v45, %v9464_v40  ;;  %v9746_v45 = vpop.f32.mrf.mxu0  ;;  %v8045_v40 = vld [vmem:[%s11047_s3 + $0x1c8] sm:$0xff]  }
 0x15d   : > { %7722 = vmatprep.mubr.bf16.mxu1 %v11118_v48  ;;  %7799 = vmatpush3.bf16.msra.mxu1 %v8029_v46  ;;  %v5112_v48 = vrot.slane %v5110_v25, 5  ;;  %v9696_v46 = vrot.slane %v5116_v21, 5  ;;  %v5076_v25 = vrot.slane %v5075_v51, 4  ;;  %v9714_v21 = vsel %vm8708_vm14, %v5839_v34, %v5840_v44  ;;  %v8041_v34 = vld [vmem:[%s11047_s3 + $0x1d0] sm:$0xff]   ;;  %v9728_v51 = vld [vmem:[#allocation2 + $0x44] sm:$0x1]  ;;  %v9735_v61 = vpop.f32.mrf.mxu1 }
 0x15e   : > { %7800 = vmatprep.subr.bf16.mxu1 %v8033_v3  ;;  %7775 = vmatmul.mubr.bf16.gmra.mxu0 %v8032_v2  ;;  %v5090_v2 = vrot.slane %v5089_v47, 4  ;;  %v7065_v44 = vrot.slane %v9704_v6, 9  ;;  %v5133_v47 = vrot.slane %v5131_v29, 4  ;;  %11123 = vst [vmem:[#allocation14_spill] sm:$0xff] %v9735_v61  ;;  %v5846_v6 = vrot.slane %v5844_v38, 4  ;;  %11125 = vst [vmem:[#allocation15_spill] sm:$0xff] %v9746_v45 }
 0x15f   : > { %7778 = vmatprep.mubr.bf16.mxu0 %v8035_v43  ;;  %7855 = vmatpush3.bf16.msra.mxu0 %v8046_v13  ;;  %v5100_v13 = vrot.slane %v5099_v19, 4  ;;  %v8036_v43 = vld [vmem:[#allocation2 + $0x84] sm:$0xff]   ;;  %v5113_v31 = vor.u32 %v5112_v48, %v5109_v1  ;;  %v5123_v35 = vor.u32 %v5122_v41, %v9696_v46  ;;  %v5136_v19 = vrot.slane %v5134_v32, 5  ;;  %v8039_v1 = vld [vmem:[#allocation2 + $0x90] sm:$0xff]  }
 0x160   : > { %7856 = vmatprep.subr.bf16.mxu0 %v8050_v20  ;;  %v5081_v48 = vsel %vm8260_vm9, %v5076_v25, %v9698_v55  ;;  %v5847_v29 = vrot.slane %v9694_v36, 5  ;;  %v11124_v32 = vcombine.low %v9454_v16, %v9473_v58  ;;  %v5095_v55 = vsel %vm8260_vm9, %v5090_v2, %v9661_v52  ;;  %v5022_v25 = vld [vmem:[#allocation2 + $0x48] sm:$0xf] }
 0x161   : > { %7801 = vmatpush3.bf16.msra.mxu1 %v8033_v3  ;;  %v5767_v3 = vld [vmem:[#allocation2 + $0x3c] sm:$0xe]  ;;  %v5114_v16 = vrot.slane %v5113_v31, 4  ;;  %v5124_v58 = vrot.slane %v5123_v35, 4  ;;  %v5854_v14 = vrot.slane %v9728_v51, 5  ;;  %v5137_v41 = vor.u32 %v5136_v19, %v5133_v47 }
 0x162   : > { %7802 = vmatprep.subr.bf16.mxu1 %v8037_v7  ;;  %v7066_v36 = vrot.slane %v5767_v3, 9  ;;  %v9759_v61 = vrot.slane %v5140_v57, 5  ;;  %v5146_v45 = vrot.slane %v5144_v42, 4  ;;  %v5768_v52 = vld [vmem:[#allocation2 + $0x48] sm:$0xe]  ;;  %v5155_v35 = vshrl.u32 %v5022_v25, 16  ;;  %v9772_v3 = vpop.f32.mrf.mxu0 }
 0x163   : > { %7857 = vmatpush3.bf16.msra.mxu0 %v8050_v20  ;;  %v5105_v20 = vsel %vm8260_vm9, %v5100_v13, %v5104_v30  ;;  %v9762_v13 = vpop.f32.mrf.mxu1  ;;  %v9764_v30 = vcombine.low %v5071_v23, %v5081_v48  ;;  %v9770_v31 = vld [vmem:[#allocation2 + $0x50] sm:$0x1]  ;;  %11127 = vst [vmem:[#allocation17_spill] sm:$0xff] %v9772_v3  ;;  %v9778_v47 = vsel %vm8708_vm14, %v5846_v6, %v5847_v29  ;;  %v9799_v48 = vrot.slane %v5137_v41, 4 }
 0x164   : > { %7723 = vmatmul.mubr.bf16.gmra.mxu1 %v11122_v4  ;;  %v5128_v4 = vrot.slane %v5126_v56, 5  ;;  %11126 = vst [vmem:[#allocation16_spill] sm:$0xff] %v9762_v13  ;;  %v9768_v56 = vsel %vm8708_vm14, %v7065_v44, %v5844_v38  ;;  %v9774_v42 = vcombine.low %v5095_v55, %v5105_v20  ;;  %v9782_v23 = vsel %vm8708_vm14, %v7066_v36, %v5851_v33  ;;  %v8049_v44 = vld [vmem:[%s11047_s3 + $0x1c0] sm:$0xff]   ;;  %v5025_v20 = vld [vmem:[#allocation2 + $0x54] sm:$0xf]  ;;  %v8043_v36 = vld [vmem:[#allocation2 + $0xa8] sm:$0xff]  }
 0x165   : > { %7726 = vmatprep.mubr.bf16.mxu1 %v11124_v32  ;;  %7803 = vmatpush3.bf16.msra.mxu1 %v8037_v7  ;;  %v5853_v7 = vrot.slane %v5851_v33, 4  ;;  %v9757_v32 = vld [vmem:[#allocation2 + $0x4c] sm:$0xf]  ;;  %v5150_v38 = vshll.u32 %v9728_v51, 16  ;;  %v7067_v33 = vrot.slane %v5768_v52, 9  ;;  %v8040_v51 = vld [vmem:[#allocation2 + $0x9c] sm:$0xff]   ;;  %v5147_v6 = vor.u32 %v5146_v45, %v9759_v61 }
 0x166   : > { %7804 = vmatprep.subr.bf16.mxu1 %v8041_v34  ;;  %7779 = vmatmul.mubr.bf16.gmra.mxu0 %v8036_v43  ;;  %v5858_v2 = vrot.slane %v9757_v32, 5  ;;  %v5158_v43 = vshll.u32 %v5022_v25, 16  ;;  %11128 = vst [vmem:[#allocation18_spill] sm:$0xff] %v9774_v42  ;;  %v5129_v19 = vsel %vm8260_vm9, %v5124_v58, %v5128_v4  ;;  %v5861_v55 = vrot.slane %v9770_v31, 5  ;;  %v9806_v4 = vpop.f32.mrf.mxu1 }
 0x167   : > { %7782 = vmatprep.mubr.bf16.mxu0 %v8039_v1  ;;  %v9795_v57 = vsel %vm8708_vm14, %v5853_v7, %v5854_v14  ;;  %v9797_v1 = vld [vmem:[#allocation2 + $0x58] sm:$0xf]  ;;  %11131 = vst [vmem:[#allocation20_spill] sm:$0xff] %v9806_v4  ;;  %v5157_v25 = vrot.slane %v5155_v35, 4  ;;  %v5164_v58 = vshll.u32 %v9757_v32, 16  ;;  %v5168_v41 = vshrl.u32 %v9757_v32, 16  ;;  %v9813_v7 = vpop.f32.mrf.mxu0 }
 0x168   : > { %11129 = vst [vmem:[#allocation19_spill] sm:$0xff] %v9795_v57  ;;  %v5860_v29 = vrot.slane %v5858_v2, 4  ;;  %v11132_v45 = vcombine.low %v9485_v22, %v9503_v50  ;;  %11133 = vst [vmem:[#allocation21_spill] sm:$0xff] %v9813_v7  ;;  %v9821_v52 = vrot.slane %v5150_v38, 5  ;;  %v9823_v35 = vld [vmem:[#allocation2 + $0x64] sm:$0xf]  ;;  %v9835_v38 = vsel %vm8708_vm14, %v7067_v33, %v5858_v2 }
 0x169   : > { %7805 = vmatpush3.bf16.msra.mxu1 %v8041_v34  ;;  %v5119_v34 = vsel %vm8260_vm9, %v5114_v16, %v9696_v46  ;;  %v11130_v46 = vcombine.low %v9481_v18, %v9492_v11  ;;  %v5160_v16 = vrot.slane %v5158_v43, 5  ;;  %v5179_v32 = vshrl.u32 %v5025_v20, 16  ;;  %11135 = vst [vmem:[#allocation23_spill] sm:$0xff] %v9835_v38  ;;  %v9848_v4 = vld [vmem:[#allocation2 + $0x5c] sm:$0x1] }
 0x16a   : > { %7806 = vmatprep.subr.bf16.mxu1 %v8045_v40  ;;  %v9817_v11 = vcombine.low %v5119_v34, %v5129_v19  ;;  %v5182_v43 = vshll.u32 %v5025_v20, 16  ;;  %v5188_v22 = vshll.u32 %v9797_v1, 16  ;;  %v5192_v50 = vshrl.u32 %v9797_v1, 16  ;;  %v9838_v20 = vpop.f32.mrf.mxu1  ;;  %v5769_v34 = vld [vmem:[#allocation2 + $0x54] sm:$0xe] }
 0x16b   : > { %v9831_v19 = vrot.slane %v5147_v6, 4  ;;  %11136 = vst [vmem:[#allocation24_spill] sm:$0xff] %v9838_v20  ;;  %v9844_v14 = vrot.slane %v5164_v58, 5  ;;  %v5170_v18 = vrot.slane %v5168_v41, 4  ;;  %v9846_v6 = vpop.f32.mrf.mxu0  ;;  %v5181_v20 = vrot.slane %v5179_v32, 4 }
 0x16c   : > { %7727 = vmatmul.mubr.bf16.gmra.mxu1 %v11130_v46  ;;  %11134 = vst [vmem:[#allocation22_spill] sm:$0xff] %v9817_v11  ;;  %v5174_v46 = vshll.u32 %v9770_v31, 16  ;;  %11138 = vst [vmem:[#allocation26_spill] sm:$0xff] %v9846_v6  ;;  %v5212_v31 = vshll.u32 %v9823_v35, 16  ;;  %v5184_v13 = vrot.slane %v5182_v43, 5  ;;  %v7068_v41 = vrot.slane %v5769_v34, 9  ;;  %v9867_v43 = vpop.f32.mrf.mxu1 }
 0x16d   : > { %7730 = vmatprep.mubr.bf16.mxu1 %v11132_v45  ;;  %7807 = vmatpush3.bf16.msra.mxu1 %v8045_v40  ;;  %v5028_v40 = vld [vmem:[#allocation2 + $0x60] sm:$0xf]  ;;  %v9842_v45 = vsel %vm8708_vm14, %v5860_v29, %v5861_v55  ;;  %v9852_v29 = vrot.slane %v5188_v22, 5  ;;  %v5194_v55 = vrot.slane %v5192_v50, 4  ;;  %v11139_v32 = vcombine.low %v9512_v9, %v9520_v0  ;;  %11140 = vst [vmem:[#allocation27_spill] sm:$0xff] %v9867_v43 }
 0x16e   : > { %7808 = vmatprep.subr.bf16.mxu1 %v8049_v44  ;;  %7783 = vmatmul.mubr.bf16.gmra.mxu0 %v8040_v51  ;;  %11137 = vst [vmem:[#allocation25_spill] sm:$0xff] %v9842_v45  ;;  %v5161_v51 = vor.u32 %v5160_v16, %v5157_v25  ;;  %v5203_v2 = vshrl.u32 %v5028_v40, 16  ;;  %v5206_v33 = vshll.u32 %v5028_v40, 16  ;;  %v8044_v25 = vld [vmem:[#allocation2 + $0xb4] sm:$0xff]   ;;  %v9860_v58 = vrot.slane %v5174_v46, 5  ;;  %v8047_v22 = vld [vmem:[#allocation2 + $0xc0] sm:$0xff]  }
 0x16f   : > { %7786 = vmatprep.mubr.bf16.mxu0 %v8043_v36  ;;  %v5216_v36 = vshrl.u32 %v9823_v35, 16  ;;  %v9862_v40 = vld [vmem:[#allocation2 + $0x70] sm:$0xf]  ;;  %v5171_v50 = vor.u32 %v5170_v18, %v9844_v14  ;;  %v5865_v6 = vrot.slane %v9797_v1, 5  ;;  %v5868_v16 = vrot.slane %v9848_v4, 5 }
 0x170   : > { %v5031_v46 = vld [vmem:[#allocation2 + $0x6c] sm:$0xf]  ;;  %v11141_v34 = vcombine.low %v9516_v63, %v9528_v28  ;;  %v5770_v0 = vld [vmem:[#allocation2 + $0x60] sm:$0xe]  ;;  %v5205_v9 = vrot.slane %v5203_v2, 4  ;;  %v9878_v43 = vrot.slane %v5212_v31, 5  ;;  %v5185_v5 = vor.u32 %v5184_v13, %v5181_v20 }
 0x171   : > { %7809 = vmatpush3.bf16.msra.mxu1 %v8049_v44  ;;  %v5198_v44 = vshll.u32 %v9848_v4, 16  ;;  %v5218_v3 = vrot.slane %v5216_v36, 4  ;;  %v5162_v18 = vrot.slane %v5161_v51, 4  ;;  %v5195_v1 = vor.u32 %v5194_v55, %v9852_v29 }
 0x172   : > { %v9876_v7 = vpop.f32.mrf.mxu0  ;;  %v5872_v4 = vrot.slane %v9823_v35, 5  ;;  %v5227_v63 = vshrl.u32 %v5031_v46, 16  ;;  %v5230_v28 = vshll.u32 %v5031_v46, 16  ;;  %v5240_v2 = vshrl.u32 %v9862_v40, 16 }
 0x173   : > { %11142 = vst [vmem:[#allocation28_spill] sm:$0xff] %v9876_v7  ;;  %v5172_v31 = vrot.slane %v5171_v50, 4  ;;  %v9890_v13 = vsel %vm8708_vm14, %v7068_v41, %v5865_v6  ;;  %v5867_v20 = vrot.slane %v5865_v6, 4  ;;  %v7069_v51 = vrot.slane %v5770_v0, 9 }
 0x174   : > { %7731 = vmatmul.mubr.bf16.gmra.mxu1 %v11139_v32  ;;  %v5208_v32 = vrot.slane %v5206_v33, 5  ;;  %v9882_v11 = vpop.f32.mrf.mxu0  ;;  %v9886_v33 = vpop.f32.mrf.mxu1  ;;  %v5200_v36 = vrot.slane %v5198_v44, 5  ;;  %v5222_v46 = vshll.u32 %v5030_v37, 16  ;;  %v5196_v7 = vrot.slane %v5195_v1, 4  ;;  %v5771_v1 = vld [vmem:[#allocation2 + $0x6c] sm:$0xe] }
 0x175   : > { %7734 = vmatprep.mubr.bf16.mxu1 %v11141_v34  ;;  %11143 = vst [vmem:[#allocation29_spill] sm:$0xff] %v9882_v11  ;;  %v5236_v34 = vshll.u32 %v9862_v40, 16  ;;  %11144 = vst [vmem:[#allocation30_spill] sm:$0xff] %v9886_v33  ;;  %v5186_v11 = vrot.slane %v5185_v5, 4  ;;  %v5874_v42 = vrot.slane %v5872_v4, 4  ;;  %v5875_v45 = vrot.slane %v5030_v37, 5 }
 0x176   : > { %7787 = vmatmul.mubr.bf16.gmra.mxu0 %v8044_v25  ;;  %v9892_v35 = vpop.f32.mrf.mxu0  ;;  %v5209_v55 = vor.u32 %v5208_v32, %v5205_v9  ;;  %v5219_v25 = vor.u32 %v5218_v3, %v9878_v43  ;;  %v5033_v33 = vld [vmem:[#allocation2 + $0x74] sm:$0x1]  ;;  %v5229_v38 = vrot.slane %v5227_v63, 4  ;;  %v5232_v41 = vrot.slane %v5230_v28, 5  ;;  %v9902_v0 = vpop.f32.mrf.mxu1 }
 0x177   : > { %7790 = vmatprep.mubr.bf16.mxu0 %v8047_v22  ;;  %11145 = vst [vmem:[#allocation31_spill] sm:$0xff] %v9892_v35  ;;  %v8048_v22 = vld [vmem:[#allocation2 + $0xcc] sm:$0xff]   ;;  %v9897_v57 = vrot.slane %v5236_v34, 5  ;;  %v5242_v6 = vrot.slane %v5240_v2, 4  ;;  %v11147_v44 = vcombine.low %v9535_v26, %v9545_v49  ;;  %11148 = vst [vmem:[#allocation33_spill] sm:$0xff] %v9902_v0  ;;  %v5167_v5 = vsel %vm8260_vm9, %v5162_v18, %v9844_v14 }
 0x178   : > { %v9895_v50 = vpop.f32.mrf.mxu0  ;;  %v5177_v37 = vsel %vm8260_vm9, %v5172_v31, %v9860_v58  ;;  %v9912_v3 = vsel %vm8708_vm14, %v5867_v20, %v5868_v16  ;;  %v5879_v9 = vrot.slane %v9862_v40, 5  ;;  %v11149_v26 = vcombine.low %v9553_v8, %v9562_v54  ;;  %v9948_v28 = vpop.f32.mrf.mxu1  ;;  %v5035_v31 = vld [vmem:[#allocation2 + $0x7c] sm:$0xf] }
 0x179   : > { %11146 = vst [vmem:[#allocation32_spill] sm:$0xff] %v9895_v50  ;;  %v9920_v49 = vsel %vm8708_vm14, %v7069_v51, %v5872_v4  ;;  %v5210_v32 = vrot.slane %v5209_v55, 4  ;;  %v5220_v14 = vrot.slane %v5219_v25, 4  ;;  %v5224_v18 = vrot.slane %v5222_v46, 5  ;;  %11152 = vst [vmem:[#allocation34_spill] sm:$0xff] %v9948_v28  ;;  %v11170_v28 = vld [vmem:[#allocation18_spill] sm:$0xff] }
 0x17a   : > { %v5191_v16 = vsel %vm8260_vm9, %v5186_v11, %v9852_v29  ;;  %v5201_v58 = vsel %vm8260_vm9, %v5196_v7, %v5200_v36  ;;  %v9931_v8 = vsel %vm8708_vm14, %v5874_v42, %v5875_v45  ;;  %v5246_v54 = vshll.u32 %v5033_v33, 16  ;;  %v5034_v45 = vld [vmem:[#allocation2 + $0x78] sm:$0xf]  ;;  %v9966_v36 = vld [vmem:[#allocation2 + $0x88] sm:$0xf]  ;;  %v11171_v50 = vld [vmem:[#allocation22_spill] sm:$0xff] }
 0x17b   : > { %v9922_v63 = vpop.f32.mrf.mxu0  ;;  %v11150_v40 = vsel %vm8260_vm9, %v9831_v19, %v9821_v52  ;;  %v11151_v4 = vsel %vm8260_vm9, %v9799_v48, %v9759_v61  ;;  %v9945_v29 = vcombine.low %v5167_v5, %v5177_v37  ;;  %v5233_v7 = vor.u32 %v5232_v41, %v5229_v38  ;;  %v5037_v41 = vld [vmem:[#allocation2 + $0x84] sm:$0xf]  ;;  %v9970_v5 = vld [vmem:[#allocation2 + $0x80] sm:$0x1] }
 0x17c   : > { %7735 = vmatmul.mubr.bf16.gmra.mxu1 %v11147_v44  ;;  %v9943_v11 = vcombine.low %v11151_v4, %v11150_v40  ;;  %v5243_v42 = vor.u32 %v5242_v6, %v9897_v57  ;;  %v11153_v34 = vcombine.low %v9648_v24, %v9652_v60  ;;  %v7070_v61 = vrot.slane %v5771_v1, 9  ;;  %v5772_v60 = vld [vmem:[#allocation2 + $0x78] sm:$0xe] }
 0x17d   : > { %7738 = vmatprep.mubr.bf16.mxu1 %v11149_v26  ;;  %v9953_v52 = vpop.f32.mrf.mxu0  ;;  %v5881_v48 = vrot.slane %v5879_v9, 4  ;;  %v5882_v2 = vrot.slane %v5033_v33, 5  ;;  %v9957_v20 = vcombine.low %v5191_v16, %v5201_v58  ;;  %v5215_v51 = vsel %vm8260_vm9, %v5210_v32, %v9878_v43  ;;  %v9975_v32 = vpop.f32.mrf.mxu1 }
 0x17e   : > { %7791 = vmatmul.mubr.bf16.gmra.mxu0 %v8048_v22  ;;  %v5225_v24 = vsel %vm8260_vm9, %v5220_v14, %v5224_v18  ;;  %v5248_v25 = vrot.slane %v5246_v54, 5  ;;  %v5886_v33 = vrot.slane %v5035_v31, 5  ;;  %v5251_v46 = vshrl.u32 %v5034_v45, 16  ;;  %11155 = vst [vmem:[#allocation35_spill] sm:$0xff] %v9975_v32  ;;  %v9989_v54 = vld [vmem:[#allocation2 + $0x94] sm:$0xf] }
 0x17f   : > { %7858 = vmatprep.mubr.bf16.mxu0 %v11153_v34  ;;  %v9968_v55 = vpop.f32.mrf.mxu0  ;;  %v5254_v22 = vshll.u32 %v5034_v45, 16  ;;  %v5234_v6 = vrot.slane %v5233_v7, 4  ;;  %v5244_v44 = vrot.slane %v5243_v42, 4  ;;  %v5260_v37 = vshll.u32 %v5035_v31, 16  ;;  %v5040_v42 = vld [vmem:[#allocation2 + $0x90] sm:$0xf] }
 0x180   : > { %v5264_v26 = vshrl.u32 %v5035_v31, 16  ;;  %v11154_v43 = vcombine.low %v9557_v12, %v9571_v62  ;;  %v9979_v18 = vcombine.low %v5215_v51, %v5225_v24  ;;  %v9983_v1 = vsel %vm8708_vm14, %v7070_v61, %v5879_v9  ;;  %v10009_v24 = vpop.f32.mrf.mxu1 }
 0x181   : > { %v9977_v14 = vpop.f32.mrf.mxu0  ;;  %v9987_v16 = vsel %vm8708_vm14, %v5881_v48, %v5882_v2  ;;  %v7071_v58 = vrot.slane %v5772_v60, 9  ;;  %v11156_v12 = vcombine.low %v9575_v39, %v9583_v27  ;;  %v5275_v62 = vshrl.u32 %v5037_v41, 16  ;;  %11158 = vst [vmem:[#allocation36_spill] sm:$0xff] %v10009_v24 }
 0x182   : > { %v5278_v40 = vshll.u32 %v5037_v41, 16  ;;  %v5284_v4 = vshll.u32 %v9966_v36, 16  ;;  %v5288_v7 = vshrl.u32 %v9966_v36, 16  ;;  %v5888_v45 = vrot.slane %v5886_v33, 4 }
 0x183   : > { %v9996_v9 = vpop.f32.mrf.mxu0  ;;  %v5889_v34 = vrot.slane %v9970_v5, 5  ;;  %v5253_v61 = vrot.slane %v5251_v46, 4  ;;  %v5256_v48 = vrot.slane %v5254_v22, 5  ;;  %v11157_v2 = vcombine.low %v9702_v10, %v9714_v21  ;;  %v10016_v10 = vld [vmem:[#allocation2 + $0x8c] sm:$0x1] }
 0x184   : > { %7739 = vmatmul.mubr.bf16.gmra.mxu1 %v11154_v43  ;;  %v5239_v39 = vsel %vm8260_vm9, %v5234_v6, %v9897_v57  ;;  %v5249_v27 = vsel %vm8260_vm9, %v5244_v44, %v5248_v25  ;;  %v10007_v31 = vrot.slane %v5260_v37, 5  ;;  %v5266_v51 = vrot.slane %v5264_v26, 4 }
 0x185   : > { %7742 = vmatprep.mubr.bf16.mxu1 %v11156_v12  ;;  %v11159_v60 = vcombine.low %v9768_v56, %v9778_v47  ;;  %v10014_v46 = vpop.f32.mrf.mxu0  ;;  %v5299_v21 = vshrl.u32 %v5040_v42, 16  ;;  %v5302_v22 = vshll.u32 %v5040_v42, 16  ;;  %v5308_v57 = vshll.u32 %v9989_v54, 16  ;;  %v5773_v42 = vld [vmem:[#allocation2 + $0x84] sm:$0xe] }
 0x186   : > { %7859 = vmatmul.mubr.bf16.vlgmr.msra.gmra.mxu0 %v11157_v2  ;;  %v5312_v41 = vshrl.u32 %v9989_v54, 16  ;;  %v5277_v25 = vrot.slane %v5275_v62, 4  ;;  %v5280_v6 = vrot.slane %v5278_v40, 5  ;;  %v10020_v44 = vrot.slane %v5284_v4, 5 }
 0x187   : > { %7862 = vmatprep.mubr.bf16.mxu0 %v11159_v60  ;;  %v5290_v37 = vrot.slane %v5288_v7, 4  ;;  %v10022_v26 = vpop.f32.mrf.mxu0  ;;  %v10028_v47 = vsel %vm8708_vm14, %v7071_v58, %v5886_v33  ;;  %v5257_v43 = vor.u32 %v5256_v48, %v5253_v61  ;;  %v5270_v12 = vshll.u32 %v9970_v5, 16 }
 0x188   : > { %v10031_v2 = vcombine.low %v5239_v39, %v5249_v27  ;;  %v5267_v62 = vor.u32 %v5266_v51, %v10007_v31  ;;  %v5893_v40 = vrot.slane %v9966_v36, 5  ;;  %v5294_v4 = vshll.u32 %v10016_v10, 16  ;;  %v5043_v39 = vld [vmem:[#allocation2 + $0x9c] sm:$0xf] }
 0x189   : > { %v10036_v7 = vpop.f32.mrf.mxu1  ;;  %v11161_v60 = vcombine.low %v9589_v15, %v9598_v53  ;;  %v10041_v33 = vpop.f32.mrf.mxu0  ;;  %v5301_v58 = vrot.slane %v5299_v21, 4  ;;  %v5304_v61 = vrot.slane %v5302_v22, 5  ;;  %v10043_v5 = vrot.slane %v5308_v57, 5  ;;  %v5042_v15 = vld [vmem:[#allocation2 + $0x98] sm:$0x1] }
 0x18a   : > { %11160 = vst [vmem:[#allocation37_spill] sm:$0xff] %v10036_v7  ;;  %v5314_v48 = vrot.slane %v5312_v41, 4  ;;  %v10048_v36 = vsel %vm8708_vm14, %v5888_v45, %v5889_v34  ;;  %v7072_v27 = vrot.slane %v5773_v42, 9  ;;  %v5281_v51 = vor.u32 %v5280_v6, %v5277_v25  ;;  %v11163_v45 = vld [vmem:[#allocation19_spill] sm:$0xff] }
 0x18b   : > { %v5291_v56 = vor.u32 %v5290_v37, %v10020_v44  ;;  %v10051_v53 = vpop.f32.mrf.mxu1  ;;  %v5258_v21 = vrot.slane %v5257_v43, 4  ;;  %v5272_v22 = vrot.slane %v5270_v12, 5  ;;  %v5896_v57 = vrot.slane %v10016_v10, 5  ;;  %v5774_v37 = vld [vmem:[#allocation2 + $0x90] sm:$0xe]  ;;  %v11167_v43 = vld [vmem:[#allocation25_spill] sm:$0xff] }
 0x18c   : > { %7743 = vmatmul.mubr.bf16.gmra.mxu1 %v11161_v60  ;;  %11162 = vst [vmem:[#allocation38_spill] sm:$0xff] %v10051_v53  ;;  %v10053_v60 = vpop.f32.mrf.mxu0  ;;  %v5900_v41 = vrot.slane %v9989_v54, 5  ;;  %v11164_v34 = vcombine.low %v9782_v23, %v11163_v45  ;;  %v5268_v25 = vrot.slane %v5267_v62, 4  ;;  %v5895_v6 = vrot.slane %v5893_v40, 4  ;;  %v11166_v53 = vld [vmem:[#allocation23_spill] sm:$0xff] }
 0x18d   : > { %7810 = vmatprep.mubr.bf16.mxu1 %v9764_v30  ;;  %v10057_v30 = vld [vmem:[#allocation2 + $0xa0] sm:$0xf]  ;;  %v5323_v42 = vshrl.u32 %v5043_v39, 16  ;;  %v5326_v38 = vshll.u32 %v5043_v39, 16  ;;  %v10062_v19 = vpop.f32.mrf.mxu1  ;;  %v11168_v12 = vcombine.low %v11166_v53, %v11167_v43  ;;  %v5296_v54 = vrot.slane %v5294_v4, 5 }
 0x18e   : > { %7863 = vmatmul.mubr.bf16.gmra.mxu0 %v11164_v34  ;;  %11165 = vst [vmem:[#allocation19_spill] sm:$0xff] %v10062_v19  ;;  %v10067_v10 = vpop.f32.mrf.mxu0  ;;  %v5305_v7 = vor.u32 %v5304_v61, %v5301_v58  ;;  %v5315_v24 = vor.u32 %v5314_v48, %v10043_v5  ;;  %v5318_v32 = vshll.u32 %v5042_v15, 16  ;;  %v5282_v23 = vrot.slane %v5281_v51, 4  ;;  %v5775_v48 = vld [vmem:[#allocation2 + $0x9c] sm:$0xe] }
 0x18f   : > { %7866 = vmatprep.mubr.bf16.mxu0 %v11168_v12  ;;  %v5292_v45 = vrot.slane %v5291_v56, 4  ;;  %v5332_v62 = vshll.u32 %v10057_v30, 16  ;;  %v5336_v34 = vshrl.u32 %v10057_v30, 16  ;;  %v10072_v39 = vpop.f32.mrf.mxu1  ;;  %v10078_v53 = vsel %vm8708_vm14, %v7072_v27, %v5893_v40 }
 0x190   : > { %11169 = vst [vmem:[#allocation23_spill] sm:$0xff] %v10072_v39  ;;  %v10074_v19 = vpop.f32.mrf.mxu0  ;;  %v7073_v43 = vrot.slane %v5774_v37, 9  ;;  %v5902_v4 = vrot.slane %v5900_v41, 4  ;;  %v5903_v58 = vrot.slane %v5042_v15, 5  ;;  %v5263_v61 = vsel %vm8260_vm9, %v5258_v21, %v10007_v31 }
 0x191   : > { %v10085_v56 = vsel %vm8708_vm14, %v5895_v6, %v5896_v57  ;;  %v5325_v51 = vrot.slane %v5323_v42, 4  ;;  %v5328_v12 = vrot.slane %v5326_v38, 5  ;;  %v7524_v39 = vpop.f32.mrf.mxu1  ;;  %v5273_v40 = vsel %vm8260_vm9, %v5268_v25, %v5272_v22 }
 0x192   : > { %v10088_v0 = vpop.f32.mrf.mxu0  ;;  %v5306_v27 = vrot.slane %v5305_v7, 4  ;;  %v5316_v15 = vrot.slane %v5315_v24, 4  ;;  %v5320_v37 = vrot.slane %v5318_v32, 5  ;;  %v5287_v31 = vsel %vm8260_vm9, %v5282_v23, %v10020_v44  ;;  %v5045_v32 = vld [vmem:[#allocation2 + $0xa4] sm:$0x1] }
 0x193   : > { %v5297_v38 = vsel %vm8260_vm9, %v5292_v45, %v5296_v54  ;;  %v10098_v21 = vrot.slane %v5332_v62, 5  ;;  %v2373_v57 = vpop.f32.mrf.mxu1  ;;  %v10104_v7 = vsel %vm8708_vm14, %v7073_v43, %v5900_v41  ;;  %v7074_v24 = vrot.slane %v5775_v48, 9  ;;  %v5047_v23 = vld [vmem:[#allocation2 + $0xac] sm:$0xf]  ;;  %v5046_v45 = vld [vmem:[#allocation2 + $0xa8] sm:$0xf] }
 0x194   : > { %7811 = vmatmul.mubr.bf16.vlgmr.msra.gmra.mxu1 %v11170_v28  ;;  %v5338_v28 = vrot.slane %v5336_v34, 4  ;;  %v10100_v6 = vpop.f32.mrf.mxu0  ;;  %v5907_v44 = vrot.slane %v10057_v30, 5  ;;  %v11173_v22 = vcombine.low %v9890_v13, %v9912_v3  ;;  %v7103_v25 = vcombine.low %v10028_v47, %v10048_v36  ;;  %v10132_v36 = vld [vmem:[#allocation2 + $0xb0] sm:$0x1]  ;;  %v5776_v43 = vld [vmem:[#allocation2 + $0xa8] sm:$0xe] }
 0x195   : > { %7814 = vmatprep.mubr.bf16.mxu1 %v11171_v50  ;;  %11172 = vst [vmem:[#allocation25_spill] sm:$0xff] %v10100_v6  ;;  %v10108_v50 = vsel %vm8708_vm14, %v5902_v4, %v5903_v58  ;;  %v10116_v42 = vcombine.low %v5263_v61, %v5273_v40  ;;  %v5329_v54 = vor.u32 %v5328_v12, %v5325_v51  ;;  %v7525_v62 = vpop.f32.mrf.mxu1  ;;  %v5914_v4 = vrot.slane %v5047_v23, 5  ;;  %v652_v48 = vld [vmem:[#allocation2 + $0xd4] sm:$0x1] }
 0x196   : > { %7867 = vmatmul.mubr.bf16.gmra.mxu0 %v11173_v22  ;;  %v11174_v34 = vcombine.low %v9920_v49, %v9931_v8  ;;  %v10123_v30 = vpop.f32.mrf.mxu0  ;;  %v10125_v13 = vcombine.low %v5287_v31, %v5297_v38  ;;  %v5311_v3 = vsel %vm8260_vm9, %v5306_v27, %v10043_v5  ;;  %v5321_v47 = vsel %vm8260_vm9, %v5316_v15, %v5320_v37 }
 0x197   : > { %11175 = vst [vmem:[#allocation18_spill] sm:$0xff] %v10123_v30  ;;  %v5910_v49 = vrot.slane %v5045_v32, 5  ;;  %v5339_v8 = vor.u32 %v5338_v28, %v10098_v21  ;;  %v5342_v61 = vshll.u32 %v5045_v32, 16  ;;  %v2376_v51 = vpop.f32.mrf.mxu1  ;;  %v10141_v5 = vsel %vm8708_vm14, %v7074_v24, %v5907_v44 }
 0x198   : > { %7870 = vmatprep.mubr.bf16.mxu0 %v11174_v34  ;;  %11176 = vst [vmem:[#allocation22_spill] sm:$0xff] %v10125_v13  ;;  %v10137_v12 = vpop.f32.mrf.mxu0  ;;  %v5909_v40 = vrot.slane %v5907_v44, 4  ;;  %v5347_v27 = vshrl.u32 %v5046_v45, 16  ;;  %v5350_v15 = vshll.u32 %v5046_v45, 16  ;;  %v10143_v37 = vcombine.low %v5311_v3, %v5321_v47  ;;  %v11181_v44 = vld [vmem:[#allocation3_spill] sm:$0xff]  ;;  %v11185_v13 = vld [vmem:[#allocation6_spill] sm:$0xff] }
 0x199   : > { %11177 = vst [vmem:[#allocation39_spill] sm:$0xff] %v10137_v12  ;;  %v5330_v31 = vrot.slane %v5329_v54, 4  ;;  %v7075_v38 = vrot.slane %v5776_v43, 9  ;;  %v5917_v22 = vrot.slane %v10132_v36, 5  ;;  %v7528_v34 = vpop.f32.mrf.mxu1  ;;  %v5916_v32 = vrot.slane %v5914_v4, 4  ;;  %v11182_v45 = vld [vmem:[#allocation7_spill] sm:$0xff] }
 0x19a   : > { %11178 = vst [vmem:[#allocation40_spill] sm:$0xff] %v10143_v37  ;;  %v10147_v28 = vpop.f32.mrf.mxu0  ;;  %v5356_v58 = vshll.u32 %v5047_v23, 16  ;;  %v5360_v41 = vshrl.u32 %v5047_v23, 16  ;;  %v653_v24 = vsel %vm8202_vm4, 0, %v652_v48  ;;  %v2382_v12 = vadd.f32 %v7524_v39, %v11181_v44  ;;  %v11183_v43 = vld [vmem:[#allocation8_spill] sm:$0xff] }
 0x19b   : > { %11179 = vst [vmem:[#allocation41_spill] sm:$0xff] %v10147_v28  ;;  %v2374_v3 = vadd.f32 %v2373_v57, %v11182_v45  ;;  %v5340_v54 = vrot.slane %v5339_v8, 4  ;;  %v5344_v47 = vrot.slane %v5342_v61, 5  ;;  %654 = vst [vmem:[#allocation2 + $0xd4] sm:$0x1] %v653_v24  ;;  %v2385_v37 = vadd.f32 %v7525_v62, %v11183_v43  ;;  %v2389_v28 = vpop.f32.mrf.mxu1  ;;  %v11187_v8 = vld [vmem:[#allocation9_spill] sm:$0xff] }
 0x19c   : > { %7815 = vmatmul.mubr.bf16.gmra.mxu1 %v9943_v11  ;;  %v11184_v11 = vld [vmem:[#allocation5_spill] sm:$0xff]  ;;  %v10156_v35 = vpop.f32.mrf.mxu0  ;;  %v5349_v23 = vrot.slane %v5347_v27, 4  ;;  %v5352_v6 = vrot.slane %v5350_v15, 5  ;;  %v2398_v48 = vadd.f32 %v7528_v34, %v11185_v13  ;;  %v11186_v39 = vcombine.low %v9983_v1, %v9987_v16  ;;  %v10205_v24 = vld [vmem:[#allocation2 + $0xbc] sm:$0x1] }
 0x19d   : > { %7818 = vmatprep.mubr.bf16.mxu1 %v9945_v29  ;;  %v2377_v30 = vadd.f32 %v2376_v51, %v11184_v11  ;;  %v10164_v29 = vsel %vm8708_vm14, %v5909_v40, %v5910_v49  ;;  %v5335_v57 = vsel %vm8260_vm9, %v5330_v31, %v10098_v21  ;;  %v10171_v62 = vsel %vm8708_vm14, %v7075_v38, %v5914_v4  ;;  %v7529_v51 = vpop.f32.mrf.mxu1  ;;  %v11188_v40 = vld [vmem:[#allocation11_spill] sm:$0xff]  ;;  %v5777_v31 = vld [vmem:[#allocation2 + $0xb4] sm:$0xe]  ;;  %v10224_v11 = vld [vmem:[#allocation2 + $0xc4] sm:$0xf] }
 0x19e   : > { %7871 = vmatmul.mubr.bf16.gmra.mxu0 %v11186_v39  ;;  %v2390_v61 = vadd.f32 %v2389_v28, %v11187_v8  ;;  %v10174_v27 = vpop.f32.mrf.mxu0  ;;  %v10178_v1 = vsel %vm8708_vm14, %v5916_v32, %v5917_v22  ;;  %v10180_v16 = vrot.slane %v5356_v58, 5  ;;  %v5362_v49 = vrot.slane %v5360_v41, 4  ;;  %v5049_v28 = vld [vmem:[#allocation2 + $0xb4] sm:$0xf]  ;;  %v11189_v32 = vld [vmem:[#allocation13_spill] sm:$0xff] }
 0x19f   : > { %7874 = vmatprep.mubr.bf16.mxu0 %v7103_v25  ;;  %v2401_v15 = vadd.f32 %v7529_v51, %v11188_v40  ;;  %v5366_v21 = vshll.u32 %v10132_v36, 16  ;;  %v10185_v4 = vadd.f32 %v9922_v63, %v2382_v12  ;;  %v10188_v38 = vadd.f32 %v9953_v52, %v2374_v3  ;;  %v2392_v25 = vpop.f32.mrf.mxu1  ;;  %v5052_v8 = vld [vmem:[#allocation2 + $0xc0] sm:$0xf] }
 0x1a0   : > { %v10190_v34 = vpop.f32.mrf.mxu0  ;;  %v5345_v22 = vsel %vm8260_vm9, %v5340_v54, %v5344_v47  ;;  %v5353_v58 = vor.u32 %v5352_v6, %v5349_v23  ;;  %v10195_v41 = vadd.f32 %v9968_v55, %v2385_v37  ;;  %v10198_v36 = vadd.f32 %v9977_v14, %v2377_v30  ;;  %v5050_v30 = vld [vmem:[#allocation2 + $0xb8] sm:$0xf]  ;;  %v5778_v40 = vld [vmem:[#allocation2 + $0xc0] sm:$0xe] }
 0x1a1   : > { %v2393_v63 = vadd.f32 %v2392_v25, %v11189_v32  ;;  %v7106_v52 = vcombine.low %v10141_v5, %v10164_v29  ;;  %v7107_v12 = vcombine.low %v10171_v62, %v10178_v1  ;;  %v10208_v44 = vadd.f32 %v9996_v9, %v2398_v48  ;;  %v7532_v6 = vpop.f32.mrf.mxu1  ;;  %v11190_v54 = vld [vmem:[#allocation15_spill] sm:$0xff] }
 0x1a2   : > { %v10211_v55 = vpop.f32.mrf.mxu0  ;;  %v5363_v14 = vor.u32 %v5362_v49, %v10180_v16  ;;  %v7076_v37 = vrot.slane %v5777_v31, 9  ;;  %v10215_v45 = vadd.f32 %v10014_v46, %v2390_v61  ;;  %v10218_v3 = vadd.f32 %v10022_v26, %v2401_v15  ;;  %v11191_v61 = vld [vmem:[#allocation17_spill] sm:$0xff] }
 0x1a3   : > { %v2414_v47 = vadd.f32 %v7532_v6, %v11190_v54  ;;  %v10222_v9 = vcombine.low %v5335_v57, %v5345_v22  ;;  %v5921_v43 = vrot.slane %v5050_v30, 5  ;;  %v2405_v23 = vpop.f32.mrf.mxu1  ;;  %v5354_v48 = vrot.slane %v5353_v58, 4 }
 0x1a4   : > { %7819 = vmatmul.mubr.bf16.gmra.mxu1 %v9957_v20  ;;  %v5371_v20 = vshrl.u32 %v5049_v28, 16  ;;  %v10226_v13 = vpop.f32.mrf.mxu0  ;;  %v5368_v39 = vrot.slane %v5366_v21, 5  ;;  %v5924_v46 = vrot.slane %v10205_v24, 5  ;;  %v10230_v26 = vadd.f32 %v10041_v33, %v2393_v63 }
 0x1a5   : > { %7822 = vmatprep.mubr.bf16.mxu1 %v9979_v18  ;;  %v2406_v51 = vadd.f32 %v2405_v23, %v11191_v61  ;;  %v11192_v18 = vcombine.low %v10078_v53, %v10085_v56  ;;  %v5374_v57 = vshll.u32 %v5049_v28, 16  ;;  %v5380_v49 = vshll.u32 %v5050_v30, 16  ;;  %v7533_v31 = vpop.f32.mrf.mxu1  ;;  %v10246_v53 = vld [vmem:[#allocation2 + $0xc8] sm:$0x1] }
 0x1a6   : > { %v5928_v15 = vrot.slane %v10224_v11, 5  ;;  %v11193_v21 = vcombine.low %v10104_v7, %v10108_v50  ;;  %v10240_v25 = vpop.f32.mrf.mxu0  ;;  %v5364_v33 = vrot.slane %v5363_v14, 4  ;;  %v10244_v22 = vsel %vm8708_vm14, %v7076_v37, %v5921_v43  ;;  %v11194_v28 = vld [vmem:[#allocation21_spill] sm:$0xff] }
 0x1a7   : > { %7875 = vmatmul.mubr.bf16.gmra.mxu0 %v11192_v18  ;;  %v5384_v58 = vshrl.u32 %v5050_v30, 16  ;;  %v10249_v56 = vadd.f32 %v10053_v60, %v2414_v47  ;;  %v2417_v32 = vadd.f32 %v7533_v31, %v11194_v28  ;;  %v5923_v63 = vrot.slane %v5921_v43, 4  ;;  %v2408_v50 = vpop.f32.mrf.mxu1  ;;  %v11195_v60 = vld [vmem:[#allocation26_spill] sm:$0xff] }
 0x1a8   : > { %7878 = vmatprep.mubr.bf16.mxu0 %v11193_v21  ;;  %v10252_v6 = vrot.slane %v5371_v20, 4  ;;  %v10255_v7 = vadd.f32 %v10067_v10, %v2406_v51  ;;  %v10257_v14 = vpop.f32.mrf.mxu0  ;;  %v5359_v30 = vsel %vm8260_vm9, %v5354_v48, %v10180_v16  ;;  %v7077_v37 = vrot.slane %v5778_v40, 9 }
 0x1a9   : > { %v5395_v54 = vshrl.u32 %v5052_v8, 16  ;;  %v5398_v23 = vshll.u32 %v5052_v8, 16  ;;  %v2409_v47 = vadd.f32 %v2408_v50, %v11195_v60  ;;  %v5930_v61 = vrot.slane %v5928_v15, 4  ;;  %v7536_v10 = vpop.f32.mrf.mxu1  ;;  %v11196_v8 = vld [vmem:[#allocation28_spill] sm:$0xff]  ;;  %v11197_v60 = vld [vmem:[#allocation29_spill] sm:$0xff] }
 0x1aa   : > { %v5931_v43 = vrot.slane %v10246_v53, 5  ;;  %v10265_v20 = vadd.f32 %v10074_v19, %v2417_v32  ;;  %v10268_v51 = vpop.f32.mrf.mxu0  ;;  %v5376_v18 = vrot.slane %v5374_v57, 5  ;;  %v10270_v31 = vrot.slane %v5380_v49, 5 }
 0x1ab   : > { %v5404_v16 = vshll.u32 %v10224_v11, 16  ;;  %v5408_v48 = vshrl.u32 %v10224_v11, 16  ;;  %v2430_v40 = vadd.f32 %v7536_v10, %v11196_v8  ;;  %v5369_v19 = vsel %vm8260_vm9, %v5364_v33, %v5368_v39  ;;  %v5056_v39 = vld [vmem:[#allocation2 + $0xd0] sm:$0xf]  ;;  %v5779_v33 = vld [vmem:[#allocation2 + $0xcc] sm:$0xe] }
 0x1ac   : > { %7823 = vmatmul.mubr.bf16.gmra.mxu1 %v10031_v2  ;;  %v5386_v21 = vrot.slane %v5384_v58, 4  ;;  %v10279_v28 = vadd.f32 %v10088_v0, %v2409_v47  ;;  %v2421_v2 = vpop.f32.mrf.mxu1  ;;  %v10281_v32 = vpop.f32.mrf.mxu0  ;;  %v5925_v57 = vsel %vm8708_vm14, %v5923_v63, %v5924_v46  ;;  %v5390_v49 = vshll.u32 %v10205_v24, 16  ;;  %v11198_v58 = vld [vmem:[#allocation25_spill] sm:$0xff]  ;;  %v11201_v8 = vld [vmem:[#allocation18_spill] sm:$0xff] }
 0x1ad   : > { %7826 = vmatprep.mubr.bf16.mxu1 %v10116_v42  ;;  %v5397_v11 = vrot.slane %v5395_v54, 4  ;;  %v5400_v50 = vrot.slane %v5398_v23, 5  ;;  %v2422_v10 = vadd.f32 %v2421_v2, %v11197_v60  ;;  %v5929_v0 = vsel %vm8708_vm14, %v7077_v37, %v5928_v15  ;;  %v5055_v37 = vld [vmem:[#allocation2 + $0xcc] sm:$0xf]  ;;  %v11200_v54 = vld [vmem:[#allocation31_spill] sm:$0xff] }
 0x1ae   : > { %v5932_v42 = vsel %vm8708_vm14, %v5930_v61, %v5931_v43  ;;  %v10295_v46 = vadd.f32 %v11198_v58, %v2430_v40  ;;  %v7537_v24 = vpop.f32.mrf.mxu1  ;;  %v10300_v63 = vcombine.low %v5359_v30, %v5369_v19  ;;  %v10302_v5 = vpop.f32.mrf.mxu0  ;;  %v10304_v29 = vrot.slane %v5404_v16, 5  ;;  %v10309_v43 = vld [vmem:[#allocation2 + $0xd4] sm:$0x1]  ;;  %v11203_v19 = vld [vmem:[#allocation32_spill] sm:$0xff] }
 0x1af   : > { %7879 = vmatmul.mubr.bf16.gmra.mxu0 %v7106_v52  ;;  %v5410_v52 = vrot.slane %v5408_v48, 4  ;;  %v5935_v15 = vrot.slane %v5056_v39, 5  ;;  %v2433_v23 = vadd.f32 %v7537_v24, %v11200_v54  ;;  %v7108_v47 = vcombine.low %v10244_v22, %v5925_v57  ;;  %v11204_v57 = vld [vmem:[#allocation39_spill] sm:$0xff]  ;;  %v11206_v58 = vld [vmem:[#allocation22_spill] sm:$0xff] }
 0x1b0   : > { %11199 = vst [vmem:[#allocation4_spill] sm:$0xff] %v10295_v46  ;;  %7882 = vmatprep.mubr.bf16.mxu0 %v7107_v12  ;;  %v5377_v61 = vor.u32 %v5376_v18, %v10252_v6  ;;  %v10312_v62 = vadd.f32 %v11201_v8, %v2422_v10  ;;  %v2424_v1 = vpop.f32.mrf.mxu1  ;;  %v5387_v12 = vor.u32 %v5386_v21, %v10270_v31  ;;  %v10315_v30 = vpop.f32.mrf.mxu0  ;;  %v5414_v40 = vshll.u32 %v10246_v53, 16  ;;  %v11209_v8 = vld [vmem:[#allocation41_spill] sm:$0xff] }
 0x1b1   : > { %v7109_v16 = vcombine.low %v5929_v0, %v5932_v42  ;;  %v5401_v48 = vor.u32 %v5400_v50, %v5397_v11  ;;  %v2425_v2 = vadd.f32 %v2424_v1, %v11203_v19  ;;  %v7078_v60 = vrot.slane %v5779_v33, 9  ;;  %v11207_v50 = vld [vmem:[#allocation10_spill] sm:$0xff]  ;;  %v11208_v42 = vld [vmem:[#allocation40_spill] sm:$0xff] }
 0x1b2   : > { %11202 = vst [vmem:[#allocation3_spill] sm:$0xff] %v10312_v62  ;;  %v5419_v22 = vshrl.u32 %v5055_v37, 16  ;;  %v10320_v6 = vadd.f32 %v11204_v57, %v2433_v23  ;;  %v7540_v18 = vpop.f32.mrf.mxu1  ;;  %v10323_v10 = vpop.f32.mrf.mxu0  ;;  %v5411_v21 = vor.u32 %v5410_v52, %v10304_v29  ;;  %v5937_v24 = vrot.slane %v5935_v15, 4  ;;  %v11210_v62 = vld [vmem:[#allocation12_spill] sm:$0xff] }
 0x1b3   : > { %v5938_v0 = vrot.slane %v10309_v43, 5  ;;  %v5422_v11 = vshll.u32 %v5055_v37, 16  ;;  %v2446_v53 = vadd.f32 %v7540_v18, %v11207_v50  ;;  %v5428_v33 = vshll.u32 %v5056_v39, 16 }
 0x1b4   : > { %11205 = vst [vmem:[#allocation7_spill] sm:$0xff] %v10320_v6  ;;  %7827 = vmatmul.mubr.bf16.gmra.mxu1 %v11206_v58  ;;  %v5432_v54 = vshrl.u32 %v5056_v39, 16  ;;  %v10330_v23 = vadd.f32 %v11209_v8, %v2425_v2  ;;  %v2437_v1 = vpop.f32.mrf.mxu1  ;;  %v5378_v19 = vrot.slane %v5377_v61, 4  ;;  %v5388_v57 = vrot.slane %v5387_v12, 4  ;;  %v10332_v6 = vpop.f32.mrf.mxu0 }
 0x1b5   : > { %7830 = vmatprep.mubr.bf16.mxu1 %v11208_v42  ;;  %v5392_v58 = vrot.slane %v5390_v49, 5  ;;  %v5402_v52 = vrot.slane %v5401_v48, 4  ;;  %v2438_v46 = vadd.f32 %v2437_v1, %v11210_v62  ;;  %v5416_v37 = vrot.slane %v5414_v40, 5  ;;  %v11211_v48 = vld [vmem:[#allocation14_spill] sm:$0xff] }
 0x1b6   : > { %v5936_v18 = vsel %vm8708_vm14, %v7078_v60, %v5935_v15  ;;  %v10338_v50 = vadd.f32 %v10156_v35, %v2446_v53  ;;  %v7541_v39 = vpop.f32.mrf.mxu1  ;;  %v5412_v2 = vrot.slane %v5411_v21, 4  ;;  %v5939_v61 = vsel %vm8708_vm14, %v5937_v24, %v5938_v0  ;;  %v10342_v42 = vpop.f32.mrf.mxu0  ;;  %v11212_v60 = vld [vmem:[#allocation16_spill] sm:$0xff] }
 0x1b7   : > { %7883 = vmatmul.mubr.bf16.gmra.mxu0 %v7108_v47  ;;  %v5421_v49 = vrot.slane %v5419_v22, 4  ;;  %v5424_v12 = vrot.slane %v5422_v11, 5  ;;  %v2449_v62 = vadd.f32 %v7541_v39, %v11211_v48  ;;  %v5430_v47 = vrot.slane %v5428_v33, 5 }
 0x1b8   : > { %7886 = vmatprep.mubr.bf16.mxu0 %v7109_v16  ;;  %v5434_v40 = vrot.slane %v5432_v54, 4  ;;  %v10346_v8 = vadd.f32 %v10174_v27, %v2438_v46  ;;  %v2440_v15 = vpop.f32.mrf.mxu1  ;;  %v10348_v35 = vpop.f32.mrf.mxu0  ;;  %v5383_v17 = vsel %vm8260_vm9, %v5378_v19, %v10270_v31  ;;  %v7110_v22 = vcombine.low %v5936_v18, %v5939_v61  ;;  %v11213_v31 = vld [vmem:[#allocation20_spill] sm:$0xff] }
 0x1b9   : > { %v2441_v16 = vadd.f32 %v2440_v15, %v11212_v60  ;;  %v10355_v21 = vadd.f32 %v10190_v34, %v2449_v62  ;;  %v5393_v27 = vsel %vm8260_vm9, %v5388_v57, %v5392_v58  ;;  %v5407_v46 = vsel %vm8260_vm9, %v5402_v52, %v10304_v29  ;;  %v11214_v57 = vld [vmem:[#allocation24_spill] sm:$0xff]  ;;  %v11216_v62 = vld [vmem:[#allocation30_spill] sm:$0xff] }
 0x1ba   : > { %v5417_v0 = vsel %vm8260_vm9, %v5412_v2, %v5416_v37  ;;  %v5425_v11 = vor.u32 %v5424_v12, %v5421_v49  ;;  %v10365_v53 = vpop.f32.mrf.mxu0  ;;  %v5435_v34 = vor.u32 %v5434_v40, %v5430_v47  ;;  %v7052_v37 = vcombine.low %v5383_v17, %v5393_v27 }
 0x1bb   : > { %v7544_v24 = vpop.f32.mrf.mxu1  ;;  %v10371_v54 = vadd.f32 %v10211_v55, %v2441_v16  ;;  %v7053_v18 = vcombine.low %v5407_v46, %v5417_v0  ;;  %v11217_v16 = vld [vmem:[#allocation33_spill] sm:$0xff]  ;;  %v11218_v0 = vld [vmem:[#allocation34_spill] sm:$0xff] }
 0x1bc   : > { %7831 = vmatmul.mubr.bf16.gmra.mxu1 %v10222_v9  ;;  %v2462_v33 = vadd.f32 %v7544_v24, %v11213_v31  ;;  %v5438_v9 = vshll.u32 %v10309_v43, 16  ;;  %v7668_v19 = vpop.f32.mrf.mxu0  ;;  %v5426_v39 = vrot.slane %v5425_v11, 4  ;;  %v5436_v49 = vrot.slane %v5435_v34, 4 }
 0x1bd   : > { %7834 = vmatprep.mubr.bf16.mxu1 %v10300_v63  ;;  %v2453_v1 = vpop.f32.mrf.mxu1  ;;  %v11215_v63 = vld [vmem:[#allocation27_spill] sm:$0xff] }
 0x1be   : > { %v2454_v29 = vadd.f32 %v2453_v1, %v11214_v57  ;;  %v10375_v58 = vadd.f32 %v10226_v13, %v2462_v33  ;;  %v3966_v2 = vpop.f32.mrf.mxu0  ;;  %v5440_v43 = vrot.slane %v5438_v9, 5  ;;  %v11219_v9 = vld [vmem:[#allocation35_spill] sm:$0xff] }
 0x1bf   : > { %7887 = vmatmul.mubr.bf16.gmra.mxu0 %v7110_v22  ;;  %v7545_v52 = vpop.f32.mrf.mxu1  ;;  %v5431_v22 = vsel %vm8260_vm9, %v5426_v39, %v5430_v47 }
 0x1c0   : > { %v2465_v61 = vadd.f32 %v7545_v52, %v11215_v63  ;;  %v10379_v55 = vadd.f32 %v10240_v25, %v2454_v29  ;;  %v7669_v48 = vpop.f32.mrf.mxu0  ;;  %v5441_v25 = vsel %vm8260_vm9, %v5436_v49, %v5440_v43  ;;  %v11220_v29 = vld [vmem:[#allocation36_spill] sm:$0xff]  ;;  %v11222_v43 = vld [vmem:[#allocation38_spill] sm:$0xff] }
 0x1c1   : > { %v2456_v12 = vpop.f32.mrf.mxu1  ;;  %v7054_v33 = vcombine.low %v5431_v22, %v5441_v25  ;;  %v11224_v25 = vld [vmem:[#allocation23_spill] sm:$0xff] }
 0x1c2   : > { %v2457_v40 = vadd.f32 %v2456_v12, %v11216_v62  ;;  %v10383_v15 = vadd.f32 %v10257_v14, %v2465_v61  ;;  %v3969_v60 = vpop.f32.mrf.mxu0 }
 0x1c3   : > { %v7548_v13 = vpop.f32.mrf.mxu1 }
 0x1c4   : > { %7835 = vmatmul.mubr.bf16.gmra.mxu1 %v7052_v37  ;;  %v2478_v17 = vadd.f32 %v7548_v13, %v11217_v16  ;;  %v10391_v24 = vadd.f32 %v10268_v51, %v2457_v40  ;;  %v7672_v46 = vpop.f32.mrf.mxu0  ;;  %v11223_v13 = vld [vmem:[#allocation19_spill] sm:$0xff] }
 0x1c5   : > { %7838 = vmatprep.mubr.bf16.mxu1 %v7053_v18  ;;  %v2469_v27 = vpop.f32.mrf.mxu1 }
 0x1c6   : > { %v2470_v14 = vadd.f32 %v2469_v27, %v11218_v0  ;;  %v10395_v11 = vadd.f32 %v10281_v32, %v2478_v17  ;;  %v3982_v34 = vpop.f32.mrf.mxu0  ;;  %v11221_v32 = vld [vmem:[#allocation37_spill] sm:$0xff] }
 0x1c7   : > { %v7549_v31 = vpop.f32.mrf.mxu1 }
 0x1c8   : > { %v2481_v1 = vadd.f32 %v7549_v31, %v11219_v9  ;;  %v10399_v47 = vadd.f32 %v10302_v5, %v2470_v14  ;;  %v7673_v57 = vpop.f32.mrf.mxu0 }
 0x1c9   : > { %v2472_v59 = vpop.f32.mrf.mxu1 }
 0x1ca   : > { %v2473_v51 = vadd.f32 %v2472_v59, %v11220_v29  ;;  %v10403_v52 = vadd.f32 %v10315_v30, %v2481_v1  ;;  %v3985_v18 = vpop.f32.mrf.mxu0 }
 0x1cc   : > { %v7552_v37 = vpop.f32.mrf.mxu1  ;;  %7839 = vmatmul.mubr.bf16.gmra.mxu1 %v7054_v33  ;;  %v10407_v63 = vadd.f32 %v10323_v10, %v2473_v51  ;;  %v7676_v49 = vpop.f32.mrf.mxu0 }
 0x1cd   : > { %v2494_v39 = vadd.f32 %v7552_v37, %v11221_v32 }
 0x1ce   : > { %v2485_v61 = vpop.f32.mrf.mxu1  ;;  %v3998_v40 = vpop.f32.mrf.mxu0 }
 0x1cf   : > { %v2486_v5 = vadd.f32 %v2485_v61, %v11222_v43  ;;  %v10411_v12 = vadd.f32 %v10332_v6, %v2494_v39 }
 0x1d0   : > { %v7553_v62 = vpop.f32.mrf.mxu1  ;;  %v7677_v22 = vpop.f32.mrf.mxu0 }
 0x1d1   : > { %v2497_v30 = vadd.f32 %v7553_v62, %v11223_v13  ;;  %v10415_v16 = vadd.f32 %v10342_v42, %v2486_v5 }
 0x1d2   : > { %v2488_v17 = vpop.f32.mrf.mxu1  ;;  %v4001_v14 = vpop.f32.mrf.mxu0 }
 0x1d3   : > { %v2489_v27 = vadd.f32 %v2488_v17, %v11224_v25  ;;  %v10419_v10 = vadd.f32 %v10348_v35, %v2497_v30 }
 0x1d4   : > { %v7620_v0 = vpop.f32.mrf.mxu1  ;;  %v7680_v9 = vpop.f32.mrf.mxu0 }
 0x1d5   : > { %v3341_v31 = vadd.f32 %v7620_v0, %v10185_v4  ;;  %v10423_v6 = vadd.f32 %v10365_v53, %v2489_v27 }
 0x1d6   : > { %v3212_v33 = vpop.f32.mrf.mxu1  ;;  %v4014_v29 = vpop.f32.mrf.mxu0 }
 0x1d7   : > { %v3339_v1 = vadd.f32 %v3212_v33, %v10188_v38  ;;  %v10426_v42 = vadd.f32 %v7668_v19, %v3341_v31 }
 0x1d8   : > { %v7621_v59 = vpop.f32.mrf.mxu1  ;;  %v7681_v32 = vpop.f32.mrf.mxu0 }
 0x1d9   : > { %v3342_v51 = vadd.f32 %v7621_v59, %v10195_v41  ;;  %v10429_v37 = vadd.f32 %v3966_v2, %v3339_v1 }
 0x1da   : > { %v3215_v35 = vpop.f32.mrf.mxu1  ;;  %v4017_v61 = vpop.f32.mrf.mxu0 }
 0x1db   : > { %v3340_v39 = vadd.f32 %v3215_v35, %v10198_v36  ;;  %v10432_v4 = vadd.f32 %v7669_v48, %v3342_v51 }
 0x1dc   : > { %v7624_v53 = vpop.f32.mrf.mxu1 }
 0x1dd   : > { %v3345_v43 = vadd.f32 %v7624_v53, %v10208_v44  ;;  %v10435_v5 = vadd.f32 %v3969_v60, %v3340_v39  ;;  %v11225_v53 = vld [vmem:[#allocation4_spill] sm:$0xff] }
 0x1de   : > { %v3228_v38 = vpop.f32.mrf.mxu1  ;;  %v7684_v19 = vpop.f32.mrf.mxu0 }
 0x1df   : > { %v3343_v62 = vadd.f32 %v3228_v38, %v10215_v45  ;;  %v10438_v13 = vadd.f32 %v7672_v46, %v3345_v43 }
 0x1e0   : > { %v7625_v41 = vpop.f32.mrf.mxu1  ;;  %v4030_v2 = vpop.f32.mrf.mxu0 }
 0x1e1   : > { %v3346_v30 = vadd.f32 %v7625_v41, %v10218_v3  ;;  %v10441_v17 = vadd.f32 %v3982_v34, %v3343_v62 }
 0x1e2   : > { %v3231_v36 = vpop.f32.mrf.mxu1  ;;  %v7685_v48 = vpop.f32.mrf.mxu0 }
 0x1e3   : > { %v3344_v25 = vadd.f32 %v3231_v36, %v10230_v26  ;;  %v10444_v27 = vadd.f32 %v7673_v57, %v3346_v30 }
 0x1e4   : > { %v7628_v44 = vpop.f32.mrf.mxu1  ;;  %v4033_v60 = vpop.f32.mrf.mxu0 }
 0x1e5   : > { %v3349_v0 = vadd.f32 %v7628_v44, %v10249_v56  ;;  %v10447_v31 = vadd.f32 %v3985_v18, %v3344_v25 }
 0x1e6   : > { %v3244_v45 = vpop.f32.mrf.mxu1  ;;  %v7688_v46 = vpop.f32.mrf.mxu0 }
 0x1e7   : > { %v3347_v33 = vadd.f32 %v3244_v45, %v10255_v7  ;;  %v10450_v1 = vadd.f32 %v7676_v49, %v3349_v0  ;;  %v11226_v49 = vld [vmem:[#allocation3_spill] sm:$0xff] }
 0x1e8   : > { %v7629_v3 = vpop.f32.mrf.mxu1  ;;  %v4046_v34 = vpop.f32.mrf.mxu0 }
 0x1e9   : > { %v3350_v59 = vadd.f32 %v7629_v3, %v10265_v20  ;;  %v10453_v51 = vadd.f32 %v3998_v40, %v3347_v33  ;;  %v11227_v40 = vld [vmem:[#allocation7_spill] sm:$0xff] }
 0x1ea   : > { %v3247_v26 = vpop.f32.mrf.mxu1  ;;  %v7689_v57 = vpop.f32.mrf.mxu0 }
 0x1eb   : > { %v3348_v35 = vadd.f32 %v3247_v26, %v10279_v28  ;;  %v10456_v39 = vadd.f32 %v7677_v22, %v3350_v59 }
 0x1ec   : > { %v7632_v56 = vpop.f32.mrf.mxu1  ;;  %v4049_v18 = vpop.f32.mrf.mxu0 }
 0x1ed   : > { %v3353_v43 = vadd.f32 %v7632_v56, %v11225_v53  ;;  %v10459_v38 = vadd.f32 %v4001_v14, %v3348_v35 }
 0x1ee   : > { %v3260_v7 = vpop.f32.mrf.mxu1  ;;  %v7692_v41 = vpop.f32.mrf.mxu0 }
 0x1ef   : > { %v3351_v62 = vadd.f32 %v3260_v7, %v11226_v49  ;;  %v10462_v30 = vadd.f32 %v7680_v9, %v3353_v43 }
 0x1f0   : > { %v7633_v20 = vpop.f32.mrf.mxu1  ;;  %v4062_v44 = vpop.f32.mrf.mxu0 }
 0x1f1   : > { %v3354_v36 = vadd.f32 %v7633_v20, %v11227_v40  ;;  %v10465_v25 = vadd.f32 %v4014_v29, %v3351_v62 }
 0x1f2   : > { %v3263_v28 = vpop.f32.mrf.mxu1  ;;  %v7693_v59 = vpop.f32.mrf.mxu0 }
 0x1f3   : > { %v3352_v22 = vadd.f32 %v3263_v28, %v10330_v23  ;;  %v10468_v0 = vadd.f32 %v7681_v32, %v3354_v36 }
 0x1f4   : > { %v7636_v45 = vpop.f32.mrf.mxu1  ;;  %v4065_v53 = vpop.f32.mrf.mxu0 }
 0x1f5   : > { %v3357_v14 = vadd.f32 %v7636_v45, %v10338_v50  ;;  %v10471_v33 = vadd.f32 %v4017_v61, %v3352_v22 }
 0x1f6   : > { %v3276_v3 = vpop.f32.mrf.mxu1 }
 0x1f7   : > { %v3355_v9 = vadd.f32 %v3276_v3, %v10346_v8  ;;  %v10474_v26 = vadd.f32 %v7684_v19, %v3357_v14 }
 0x1f8   : > { %v7637_v35 = vpop.f32.mrf.mxu1 }
 0x1f9   : > { %v3358_v29 = vadd.f32 %v7637_v35, %v10355_v21  ;;  %v10477_v56 = vadd.f32 %v4030_v2, %v3355_v9 }
 0x1fa   : > { %v3279_v23 = vpop.f32.mrf.mxu1 }
 0x1fb   : > { %11228 = vst [vmem:[#allocation8_spill] sm:$0xff] %v10477_v56  ;;  %v3356_v32 = vadd.f32 %v3279_v23, %v10371_v54  ;;  %v10480_v43 = vadd.f32 %v7685_v48, %v3358_v29 }
 0x1fc   : > { %v7640_v50 = vpop.f32.mrf.mxu1 }
 0x1fd   : > { %11229 = vst [vmem:[#allocation5_spill] sm:$0xff] %v10480_v43  ;;  %v3361_v61 = vadd.f32 %v7640_v50, %v10375_v58  ;;  %v10483_v7 = vadd.f32 %v4033_v60, %v3356_v32 }
 0x1fe   : > { %v3292_v8 = vpop.f32.mrf.mxu1  ;;  %v7696_v49 = vpop.f32.mrf.mxu0 }
 0x1ff   : > { %11230 = vst [vmem:[#allocation6_spill] sm:$0xff] %v10483_v7  ;;  %v3359_v19 = vadd.f32 %v3292_v8, %v10379_v55  ;;  %v10486_v62 = vadd.f32 %v7688_v46, %v3361_v61 }
 0x200   : > { %v7641_v21 = vpop.f32.mrf.mxu1  ;;  %v4078_v20 = vpop.f32.mrf.mxu0 }
 0x201   : > { %11231 = vst [vmem:[#allocation9_spill] sm:$0xff] %v10486_v62  ;;  %v3362_v2 = vadd.f32 %v7641_v21, %v10383_v15  ;;  %v10489_v40 = vadd.f32 %v4046_v34, %v3359_v19 }
 0x202   : > { %v3295_v54 = vpop.f32.mrf.mxu1  ;;  %v7697_v36 = vpop.f32.mrf.mxu0 }
 0x203   : > { %11232 = vst [vmem:[#allocation11_spill] sm:$0xff] %v10489_v40  ;;  %v3360_v48 = vadd.f32 %v3295_v54, %v10391_v24  ;;  %v10492_v28 = vadd.f32 %v7689_v57, %v3362_v2 }
 0x204   : > { %v7644_v58 = vpop.f32.mrf.mxu1  ;;  %v4081_v22 = vpop.f32.mrf.mxu0 }
 0x205   : > { %11233 = vst [vmem:[#allocation13_spill] sm:$0xff] %v10492_v28  ;;  %v3365_v60 = vadd.f32 %v7644_v58, %v10395_v11  ;;  %v10495_v55 = vadd.f32 %v4049_v18, %v3360_v48 }
 0x206   : > { %v3308_v46 = vpop.f32.mrf.mxu1  ;;  %v10498_v14 = vpop.f32.mrf.mxu0 }
 0x207   : > { %11234 = vst [vmem:[#allocation15_spill] sm:$0xff] %v10495_v55  ;;  %v3363_v45 = vadd.f32 %v3308_v46, %v10399_v47  ;;  %v10500_v15 = vadd.f32 %v7692_v41, %v3365_v60 }
 0x208   : > { %v7645_v34 = vpop.f32.mrf.mxu1  ;;  %v10503_v24 = vpop.f32.mrf.mxu0 }
 0x209   : > { %11235 = vst [vmem:[#allocation17_spill] sm:$0xff] %v10500_v15  ;;  %v3366_v3 = vadd.f32 %v7645_v34, %v10403_v52  ;;  %v10505_v57 = vadd.f32 %v4062_v44, %v3363_v45 }
 0x20a   : > { %v3311_v9 = vpop.f32.mrf.mxu1  ;;  %v10508_v35 = vpop.f32.mrf.mxu0 }
 0x20b   : > { %11236 = vst [vmem:[#allocation21_spill] sm:$0xff] %v10505_v57  ;;  %v3364_v11 = vadd.f32 %v3311_v9, %v10407_v63  ;;  %v10510_v18 = vadd.f32 %v7693_v59, %v3366_v3 }
 0x20c   : > { %v7648_v29 = vpop.f32.mrf.mxu1  ;;  %v10513_v23 = vpop.f32.mrf.mxu0 }
 0x20d   : > { %11237 = vst [vmem:[#allocation26_spill] sm:$0xff] %v10510_v18  ;;  %v3369_v47 = vadd.f32 %v7648_v29, %v10411_v12  ;;  %v10515_v41 = vadd.f32 %v4065_v53, %v3364_v11 }
 0x20e   : > { %v3324_v32 = vpop.f32.mrf.mxu1  ;;  %v10518_v50 = vpop.f32.mrf.mxu0 }
 0x20f   : > { %11238 = vst [vmem:[#allocation28_spill] sm:$0xff] %v10515_v41  ;;  %v3367_v52 = vadd.f32 %v3324_v32, %v10415_v16  ;;  %v10520_v44 = vadd.f32 %v7696_v49, %v3369_v47 }
 0x210   : > { %v7649_v61 = vpop.f32.mrf.mxu1  ;;  %v10523_v8 = vpop.f32.mrf.mxu0 }
 0x211   : > { %11239 = vst [vmem:[#allocation29_spill] sm:$0xff] %v10520_v44  ;;  %v3370_v63 = vadd.f32 %v7649_v61, %v10419_v10  ;;  %v10525_v59 = vadd.f32 %v4078_v20, %v3367_v52 }
 0x212   : > { %v3327_v19 = vpop.f32.mrf.mxu1  ;;  %v10528_v21 = vpop.f32.mrf.mxu0 }
 0x213   : > { %11240 = vst [vmem:[#allocation25_spill] sm:$0xff] %v10525_v59  ;;  %v3368_v12 = vadd.f32 %v3327_v19, %v10423_v6  ;;  %v10530_v53 = vadd.f32 %v7697_v36, %v3370_v63 }
 0x214   : > { %v7716_v2 = vpop.f32.mrf.mxu1  ;;  %v10532_v16 = vpop.f32.mrf.mxu0 }
 0x215   : > { %11241 = vst [vmem:[#allocation31_spill] sm:$0xff] %v10530_v53  ;;  %v10534_v54 = vadd.f32 %v4081_v22, %v3368_v12 }
 0x216   : > { %v4464_v49 = vpop.f32.mrf.mxu1  ;;  %v10536_v48 = vpop.f32.mrf.mxu0 }
 0x217   : > { %11242 = vst [vmem:[#allocation18_spill] sm:$0xff] %v10534_v54 }
 0x218   : > { %v7717_v10 = vpop.f32.mrf.mxu1  ;;  %v10538_v58 = vpop.f32.mrf.mxu0 }
 0x21a   : > { %v4467_v20 = vpop.f32.mrf.mxu1  ;;  %v10540_v60 = vpop.f32.mrf.mxu0 }
 0x21c   : > { %v10542_v46 = vpop.f32.mrf.mxu1  ;;  %v10544_v6 = vpop.f32.mrf.mxu0 }
 0x21e   : > { %v10546_v36 = vpop.f32.mrf.mxu1  ;;  %v10548_v45 = vpop.f32.mrf.mxu0 }
 0x220   : > { %v10550_v34 = vpop.f32.mrf.mxu1  ;;  %v10552_v22 = vpop.f32.mrf.mxu0 }
 0x222   : > { %v10554_v3 = vpop.f32.mrf.mxu1  ;;  %v10556_v9 = vpop.f32.mrf.mxu0 }
 0x223   : > { %11243 = vst [vmem:[#allocation32_spill] sm:$0xff] %v10556_v9 }
 0x224   : > { %v10558_v11 = vpop.f32.mrf.mxu1  ;;  %v10560_v29 = vpop.f32.mrf.mxu0 }
 0x225   : > { %11244 = vst [vmem:[#allocation39_spill] sm:$0xff] %v10560_v29 }
 0x226   : > { %v10562_v47 = vpop.f32.mrf.mxu1  ;;  %v10564_v32 = vpop.f32.mrf.mxu0 }
 0x227   : > { %11245 = vst [vmem:[#allocation22_spill] sm:$0xff] %v10564_v32 }
 0x228   : > { %v10566_v52 = vpop.f32.mrf.mxu1  ;;  %v10568_v61 = vpop.f32.mrf.mxu0 }
 0x229   : > { %11246 = vst [vmem:[#allocation10_spill] sm:$0xff] %v10568_v61 }
 0x22a   : > { %v10570_v63 = vpop.f32.mrf.mxu1  ;;  %v10572_v19 = vpop.f32.mrf.mxu0 }
 0x22b   : > { %11247 = vst [vmem:[#allocation40_spill] sm:$0xff] %v10572_v19 }
 0x22c   : > { %v10574_v12 = vpop.f32.mrf.mxu1  ;;  %v10576_v54 = vpop.f32.mrf.mxu0 }
 0x22d   : > { %11248 = vst [vmem:[#allocation41_spill] sm:$0xff] %v10576_v54 }
 0x22e   : > { %v10578_v53 = vpop.f32.mrf.mxu1  ;;  %v10580_v59 = vpop.f32.mrf.mxu0 }
 0x22f   : > { %11249 = vst [vmem:[#allocation12_spill] sm:$0xff] %v10580_v59 }
 0x230   : > { %v10582_v44 = vpop.f32.mrf.mxu1  ;;  %v10584_v41 = vpop.f32.mrf.mxu0 }
 0x231   : > { %11250 = vst [vmem:[#allocation14_spill] sm:$0xff] %v10584_v41 }
 0x232   : > { %v10586_v18 = vpop.f32.mrf.mxu1  ;;  %v10588_v57 = vpop.f32.mrf.mxu0 }
 0x233   : > { %11251 = vst [vmem:[#allocation16_spill] sm:$0xff] %v10588_v57 }
 0x234   : > { %v10590_v15 = vpop.f32.mrf.mxu1  ;;  %v10592_v55 = vpop.f32.mrf.mxu0 }
 0x235   : > { %11252 = vst [vmem:[#allocation20_spill] sm:$0xff] %v10592_v55 }
 0x236   : > { %v10594_v28 = vpop.f32.mrf.mxu1  ;;  %v10596_v40 = vpop.f32.mrf.mxu0 }
 0x237   : > { %11253 = vst [vmem:[#allocation24_spill] sm:$0xff] %v10594_v28  ;;  %11254 = vst [vmem:[#allocation27_spill] sm:$0xff] %v10596_v40 }
 0x238   : > { %v10598_v54 = vpop.f32.mrf.mxu1  ;;  %v10600_v19 = vpop.f32.mrf.mxu0 }
 0x239   : > { %11255 = vst [vmem:[#allocation30_spill] sm:$0xff] %v10598_v54  ;;  %11256 = vst [vmem:[#allocation33_spill] sm:$0xff] %v10600_v19 }
 0x23a   : > { %v10602_v59 = vpop.f32.mrf.mxu1  ;;  %v10604_v62 = vpop.f32.mrf.mxu0 }
 0x23b   : > { %11257 = vst [vmem:[#allocation34_spill] sm:$0xff] %v10602_v59  ;;  %11258 = vst [vmem:[#allocation35_spill] sm:$0xff] %v10604_v62 }
 0x23c   : > { %v10606_v41 = vpop.f32.mrf.mxu1  ;;  %v10608_v61 = vpop.f32.mrf.mxu0 }
 0x23d   : > { %11259 = vst [vmem:[#allocation36_spill] sm:$0xff] %v10606_v41  ;;  %11260 = vst [vmem:[#allocation37_spill] sm:$0xff] %v10608_v61 }
 0x23e   : > { %v10610_v57 = vpop.f32.mrf.mxu1  ;;  %v10612_v7 = vpop.f32.mrf.mxu0 }
 0x23f   : > { %11261 = vst [vmem:[#allocation38_spill] sm:$0xff] %v10610_v57  ;;  %11262 = vst [vmem:[#allocation19_spill] sm:$0xff] %v10612_v7 }
 0x240   : > { %v10614_v55 = vpop.f32.mrf.mxu1  ;;  %v10616_v32 = vpop.f32.mrf.mxu0 }
 0x241   : > { %11263 = vst [vmem:[#allocation23_spill] sm:$0xff] %v10614_v55  ;;  %11264 = vst [vmem:[#allocation4_spill] sm:$0xff] %v10616_v32 }
 0x242   : > { %v10618_v40 = vpop.f32.mrf.mxu1  ;;  %v10620_v54 = vpop.f32.mrf.mxu0 }
 0x243   : > { %11265 = vst [vmem:[#allocation3_spill] sm:$0xff] %v10618_v40  ;;  %11266 = vst [vmem:[#allocation7_spill] sm:$0xff] %v10620_v54  ;;  %v4593_v54 = vadd.f32 %v7716_v2, %v10426_v42 }
 0x244   : > { %v10622_v19 = vpop.f32.mrf.mxu1  ;;  %v10624_v59 = vpop.f32.mrf.mxu0 }
 0x245   : > { %11267 = vst [vmem:[#allocation42_spill] sm:$0xff] %v10622_v19  ;;  %11268 = vst [vmem:[#allocation43_spill] sm:$0xff] %v10624_v59  ;;  %v4591_v59 = vadd.f32 %v4464_v49, %v10429_v37  ;;  %v4597_v37 = vadd.f32 %v10542_v46, %v10438_v13  ;;  %v10654_v49 = vld [vmem:[%s11048_s4] ss:$0 sm:$0xff] }
 0x246   : > { %v10626_v62 = vpop.f32.mrf.mxu1  ;;  %v7860_v41 = vpop.f32.mrf.mxu0 }
 0x247   : > { %11269 = vst [vmem:[#allocation44_spill] sm:$0xff] %v10626_v62  ;;  %v4978_v42 = vadd.f32 %v10503_v24, %v4591_v59  ;;  %v4595_v24 = vadd.f32 %v10546_v36, %v10441_v17  ;;  %v4984_v46 = vadd.f32 %v10518_v50, %v4597_v37 }
 0x248   : > { %v10628_v61 = vpop.f32.mrf.mxu1  ;;  %v6103_v57 = vpop.f32.mrf.mxu0 }
 0x249   : > { %11270 = vst [vmem:[#allocation45_spill] sm:$0xff] %v10628_v61  ;;  %v4594_v61 = vadd.f32 %v7717_v10, %v10432_v4 }
 0x24a   : > { %v10630_v43 = vpop.f32.mrf.mxu1  ;;  %v7861_v7 = vpop.f32.mrf.mxu0 }
 0x24b   : > { %11271 = vst [vmem:[#allocation46_spill] sm:$0xff] %v10630_v43  ;;  %v4980_v43 = vadd.f32 %v10498_v14, %v4593_v54 }
 0x24c   : > { %v10632_v55 = vpop.f32.mrf.mxu1  ;;  %v6106_v32 = vpop.f32.mrf.mxu0 }
 0x24d   : > { %11272 = vst [vmem:[#allocation47_spill] sm:$0xff] %v10632_v55  ;;  %v4592_v55 = vadd.f32 %v4467_v20, %v10435_v5  ;;  %v4981_v5 = vadd.f32 %v10508_v35, %v4594_v61 }
 0x24e   : > { %v10634_v40 = vpop.f32.mrf.mxu1  ;;  %v7864_v19 = vpop.f32.mrf.mxu0 }
 0x24f   : > { %11273 = vst [vmem:[#allocation48_spill] sm:$0xff] %v10634_v40  ;;  %v4979_v13 = vadd.f32 %v10513_v23, %v4592_v55 }
 0x250   : > { %v10637_v29 = vpop.f32.mrf.mxu1  ;;  %v6119_v62 = vpop.f32.mrf.mxu0 }
 0x252   : > { %v10640_v28 = vpop.f32.mrf.mxu1  ;;  %v7865_v56 = vpop.f32.mrf.mxu0 }
 0x254   : > { %v7812_v9 = vpop.f32.mrf.mxu1  ;;  %v10647_v2 = vpop.f32.mrf.mxu0 }
 0x255   : > { %v5734_v40 = vadd.f32 %v7812_v9, %v4980_v43  ;;  %v4598_v9 = vadd.f32 %v10550_v34, %v10444_v27 }
 0x256   : > { %v5605_v4 = vpop.f32.mrf.mxu1  ;;  %v10657_v10 = vpop.f32.mrf.mxu0 }
 0x257   : > { %v6232_v14 = vadd.f32 %v7860_v41, %v5734_v40  ;;  %v5732_v54 = vadd.f32 %v5605_v4, %v4978_v42  ;;  %v4982_v42 = vadd.f32 %v10523_v8, %v4595_v24  ;;  %v4599_v8 = vadd.f32 %v10562_v47, %v10453_v51 }
 0x258   : > { %v7813_v43 = vpop.f32.mrf.mxu1  ;;  %v10670_v59 = vpop.f32.mrf.mxu0  ;;  %v4602_v24 = vadd.f32 %v10566_v52, %v10456_v39 }
 0x259   : > { %v10668_v40 = vadd.f32 %v10654_v49, %v6232_v14  ;;  %v6230_v41 = vadd.f32 %v6103_v57, %v5732_v54  ;;  %v5735_v35 = vadd.f32 %v7813_v43, %v4981_v5  ;;  %v4596_v57 = vadd.f32 %v10554_v3, %v10447_v31 }
 0x25a   : > { %v5608_v20 = vpop.f32.mrf.mxu1  ;;  %v10680_v36 = vpop.f32.mrf.mxu0  ;;  %v4985_v54 = vadd.f32 %v10528_v21, %v4598_v9  ;;  %v4986_v39 = vadd.f32 %v10538_v58, %v4599_v8 }
 0x25b   : > { %6303 = vst [vmem:[%s10662_s14 + $0x10] sm:$0xff] %v10668_v40  ;;  %v10678_v55 = vadd.f32 %v10654_v49, %v6230_v41  ;;  %v6233_v17 = vadd.f32 %v7861_v7, %v5735_v35  ;;  %v5733_v23 = vadd.f32 %v5608_v20, %v4979_v13  ;;  %v4601_v7 = vadd.f32 %v10558_v11, %v10450_v1 }
 0x25c   : > { %v7816_v61 = vpop.f32.mrf.mxu1  ;;  %v10690_v37 = vpop.f32.mrf.mxu0  ;;  %v4983_v43 = vadd.f32 %v10532_v16, %v4596_v57  ;;  %v4605_v57 = vadd.f32 %v10574_v12, %v10462_v30 }
 0x25d   : > { %6301 = vst [vmem:[%s10662_s14] sm:$0xff] %v10678_v55  ;;  %v10687_v50 = vadd.f32 %v10654_v49, %v6233_v17  ;;  %v6231_v27 = vadd.f32 %v6106_v32, %v5733_v23  ;;  %v5738_v34 = vadd.f32 %v7816_v61, %v4984_v46  ;;  %v4988_v47 = vadd.f32 %v10536_v48, %v4601_v7 }
 0x25e   : > { %v5621_v4 = vpop.f32.mrf.mxu1  ;;  %v10700_v32 = vpop.f32.mrf.mxu0  ;;  %v4600_v46 = vadd.f32 %v10570_v63, %v10459_v38  ;;  %v4989_v63 = vadd.f32 %v10540_v60, %v4602_v24  ;;  %v4609_v24 = vadd.f32 %v10590_v15, %v10474_v26  ;;  %v11277_v15 = vld [vmem:[#allocation39_spill] sm:$0xff] }
 0x25f   : > { %6304 = vst [vmem:[%s10662_s14 + $0x18] sm:$0xff] %v10687_v50  ;;  %v10697_v31 = vadd.f32 %v10654_v49, %v6231_v27  ;;  %v6236_v3 = vadd.f32 %v7864_v19, %v5738_v34  ;;  %v5736_v14 = vadd.f32 %v5621_v4, %v4982_v42  ;;  %v4603_v42 = vadd.f32 %v10578_v53, %v10465_v25 }
 0x260   : > { %v7817_v5 = vpop.f32.mrf.mxu1  ;;  %v10712_v21 = vpop.f32.mrf.mxu0  ;;  %v4987_v12 = vadd.f32 %v10544_v6, %v4600_v46  ;;  %v4992_v53 = vadd.f32 %v10548_v45, %v4605_v57  ;;  %v11276_v46 = vld [vmem:[#allocation24_spill] sm:$0xff] }
 0x261   : > { %6302 = vst [vmem:[%s10662_s14 + $0x8] sm:$0xff] %v10697_v31  ;;  %v6333_v1 = vadd.f32 %v10697_v31, %v10678_v55  ;;  %v10710_v11 = vadd.f32 %v10654_v49, %v6236_v3  ;;  %v6234_v19 = vadd.f32 %v6119_v62, %v5736_v14  ;;  %v5739_v13 = vadd.f32 %v7817_v5, %v4985_v54 }
 0x262   : > { %v5624_v51 = vpop.f32.mrf.mxu1  ;;  %v10723_v62 = vpop.f32.mrf.mxu0  ;;  %v4606_v14 = vadd.f32 %v10582_v44, %v10468_v0  ;;  %v4990_v44 = vadd.f32 %v10552_v22, %v4603_v42 }
 0x263   : > { %v6334_v16 = vadd.f32 %v6333_v1, %v10668_v40  ;;  %6307 = vst [vmem:[%s10662_s14 + $0x30] sm:$0xff] %v10710_v11  ;;  %v10721_v41 = vadd.f32 %v10654_v49, %v6234_v19  ;;  %v6237_v35 = vadd.f32 %v7865_v56, %v5739_v13  ;;  %v5737_v20 = vadd.f32 %v5624_v51, %v4983_v43 }
 0x264   : > { %v7820_v9 = vpop.f32.mrf.mxu1  ;;  %v10735_v23 = vpop.f32.mrf.mxu0  ;;  %v4604_v43 = vadd.f32 %v10586_v18, %v10471_v33  ;;  %v11274_v18 = vld [vmem:[#allocation32_spill] sm:$0xff] }
 0x265   : > { %6305 = vst [vmem:[%s10662_s14 + $0x20] sm:$0xff] %v10721_v41  ;;  %v6335_v48 = vadd.f32 %v6334_v16, %v10687_v50  ;;  %v10732_v52 = vadd.f32 %v10654_v49, %v6237_v35  ;;  %v6235_v56 = vadd.f32 %v10647_v2, %v5737_v20  ;;  %v5742_v17 = vadd.f32 %v7820_v9, %v4988_v47  ;;  %v11275_v20 = vld [vmem:[#allocation8_spill] sm:$0xff] }
 0x266   : > { %v5637_v38 = vpop.f32.mrf.mxu1  ;;  %v4993_v51 = vadd.f32 %v11274_v18, %v4606_v14  ;;  %v4607_v9 = vadd.f32 %v11276_v46, %v11275_v20  ;;  %v11282_v14 = vld [vmem:[#allocation34_spill] sm:$0xff] }
 0x267   : > { %v6336_v58 = vadd.f32 %v6335_v48, %v10721_v41  ;;  %6308 = vst [vmem:[%s10662_s14 + $0x38] sm:$0xff] %v10732_v52  ;;  %v10744_v61 = vadd.f32 %v10654_v49, %v6235_v56  ;;  %v6240_v27 = vadd.f32 %v10657_v10, %v5742_v17  ;;  %v5740_v2 = vadd.f32 %v5637_v38, %v4986_v39  ;;  %v10747_v34 = vpop.f32.mrf.mxu0  ;;  %v11278_v38 = vld [vmem:[#allocation5_spill] sm:$0xff]  ;;  %v11288_v20 = vld [vmem:[#allocation38_spill] sm:$0xff] }
 0x268   : > { %v7821_v30 = vpop.f32.mrf.mxu1  ;;  %v4991_v39 = vadd.f32 %v11277_v15, %v4604_v43 }
 0x269   : > { %6306 = vst [vmem:[%s10662_s14 + $0x28] sm:$0xff] %v10744_v61  ;;  %v6337_v60 = vadd.f32 %v6336_v58, %v10744_v61  ;;  %v10756_v7 = vadd.f32 %v10654_v49, %v6240_v27  ;;  %v6238_v10 = vadd.f32 %v10670_v59, %v5740_v2  ;;  %v5743_v4 = vadd.f32 %v7821_v30, %v4989_v63  ;;  %v10759_v3 = vpop.f32.mrf.mxu0  ;;  %v11279_v63 = vld [vmem:[#allocation30_spill] sm:$0xff] }
 0x26a   : > { %v5640_v25 = vpop.f32.mrf.mxu1  ;;  %v4610_v58 = vadd.f32 %v11279_v63, %v11278_v38  ;;  %v11280_v2 = vld [vmem:[#allocation22_spill] sm:$0xff]  ;;  %v11290_v38 = vld [vmem:[#allocation13_spill] sm:$0xff]  ;;  %v11291_v63 = vld [vmem:[#allocation23_spill] sm:$0xff] }
 0x26b   : > { %v6338_v6 = vadd.f32 %v6337_v60, %v10710_v11  ;;  %6311 = vst [vmem:[%s10662_s14 + $0x50] sm:$0xff] %v10756_v7  ;;  %v10768_v54 = vadd.f32 %v10654_v49, %v6238_v10  ;;  %v6241_v8 = vadd.f32 %v10680_v36, %v5743_v4  ;;  %v5741_v59 = vadd.f32 %v5640_v25, %v4987_v12  ;;  %v10771_v5 = vpop.f32.mrf.mxu0  ;;  %v11281_v4 = vld [vmem:[#allocation6_spill] sm:$0xff] }
 0x26c   : > { %v7824_v0 = vpop.f32.mrf.mxu1  ;;  %v4996_v42 = vadd.f32 %v11280_v2, %v4609_v24  ;;  %v4608_v25 = vadd.f32 %v11282_v14, %v11281_v4  ;;  %v11292_v2 = vld [vmem:[#allocation12_spill] sm:$0xff]  ;;  %v11293_v14 = vld [vmem:[#allocation15_spill] sm:$0xff] }
 0x26d   : > { %6309 = vst [vmem:[%s10662_s14 + $0x40] sm:$0xff] %v10768_v54  ;;  %v6339_v45 = vadd.f32 %v6338_v6, %v10732_v52  ;;  %v10780_v1 = vadd.f32 %v10654_v49, %v6241_v8  ;;  %v6239_v36 = vadd.f32 %v10690_v37, %v5741_v59  ;;  %v5746_v19 = vadd.f32 %v7824_v0, %v4992_v53  ;;  %v10783_v13 = vpop.f32.mrf.mxu0  ;;  %v11283_v6 = vld [vmem:[#allocation10_spill] sm:$0xff] }
 0x26e   : > { %v5653_v33 = vpop.f32.mrf.mxu1  ;;  %v4994_v8 = vadd.f32 %v11283_v6, %v4607_v9  ;;  %v11295_v6 = vld [vmem:[#allocation14_spill] sm:$0xff] }
 0x26f   : > { %v6340_v22 = vadd.f32 %v6339_v45, %v10768_v54  ;;  %6312 = vst [vmem:[%s10662_s14 + $0x58] sm:$0xff] %v10780_v1  ;;  %v10792_v47 = vadd.f32 %v10654_v49, %v6239_v36  ;;  %v6244_v16 = vadd.f32 %v10700_v32, %v5746_v19  ;;  %v5744_v37 = vadd.f32 %v5653_v33, %v4990_v44  ;;  %v10795_v35 = vpop.f32.mrf.mxu0  ;;  %v11284_v45 = vld [vmem:[#allocation9_spill] sm:$0xff]  ;;  %v11285_v36 = vld [vmem:[#allocation36_spill] sm:$0xff] }
 0x270   : > { %v7825_v26 = vpop.f32.mrf.mxu1  ;;  %v4613_v19 = vadd.f32 %v11285_v36, %v11284_v45  ;;  %v11286_v33 = vld [vmem:[#allocation40_spill] sm:$0xff] }
 0x271   : > { %6310 = vst [vmem:[%s10662_s14 + $0x48] sm:$0xff] %v10792_v47  ;;  %v6341_v48 = vadd.f32 %v6340_v22, %v10792_v47  ;;  %v10804_v56 = vadd.f32 %v10654_v49, %v6244_v16  ;;  %v6242_v32 = vadd.f32 %v10712_v21, %v5744_v37  ;;  %v5747_v17 = vadd.f32 %v7825_v26, %v4993_v51  ;;  %v10807_v57 = vpop.f32.mrf.mxu0  ;;  %v11287_v37 = vld [vmem:[#allocation11_spill] sm:$0xff]  ;;  %v11289_v26 = vld [vmem:[#allocation41_spill] sm:$0xff] }
 0x272   : > { %v5656_v27 = vpop.f32.mrf.mxu1  ;;  %v4997_v18 = vadd.f32 %v11286_v33, %v4610_v58  ;;  %v4611_v46 = vadd.f32 %v11288_v20, %v11287_v37  ;;  %v4995_v15 = vadd.f32 %v11289_v26, %v4608_v25  ;;  %v4614_v58 = vadd.f32 %v11291_v63, %v11290_v38 }
 0x273   : > { %v6342_v30 = vadd.f32 %v6341_v48, %v10756_v7  ;;  %6315 = vst [vmem:[%s10662_s14 + $0x70] sm:$0xff] %v10804_v56  ;;  %v10816_v12 = vadd.f32 %v10654_v49, %v6242_v32  ;;  %v6245_v60 = vadd.f32 %v10723_v62, %v5747_v17  ;;  %v5745_v21 = vadd.f32 %v5656_v27, %v4991_v39  ;;  %v10819_v10 = vpop.f32.mrf.mxu0 }
 0x274   : > { %v7828_v53 = vpop.f32.mrf.mxu1 }
 0x275   : > { %6313 = vst [vmem:[%s10662_s14 + $0x60] sm:$0xff] %v10816_v12  ;;  %v6343_v59 = vadd.f32 %v6342_v30, %v10780_v1  ;;  %v10828_v43 = vadd.f32 %v10654_v49, %v6245_v60  ;;  %v6243_v62 = vadd.f32 %v10735_v23, %v5745_v21  ;;  %v5750_v0 = vadd.f32 %v7828_v53, %v4996_v42  ;;  %v10831_v44 = vpop.f32.mrf.mxu0 }
 0x276   : > { %v5669_v24 = vpop.f32.mrf.mxu1  ;;  %v5000_v42 = vadd.f32 %v11292_v2, %v4613_v19  ;;  %v11297_v19 = vld [vmem:[#allocation42_spill] sm:$0xff] }
 0x277   : > { %v6344_v51 = vadd.f32 %v6343_v59, %v10816_v12  ;;  %6316 = vst [vmem:[%s10662_s14 + $0x78] sm:$0xff] %v10828_v43  ;;  %v10840_v22 = vadd.f32 %v10654_v49, %v6243_v62  ;;  %v6248_v16 = vadd.f32 %v10747_v34, %v5750_v0  ;;  %v5748_v23 = vadd.f32 %v5669_v24, %v4994_v8  ;;  %v10846_v39 = vpop.f32.mrf.mxu0 }
 0x278   : > { %v7829_v9 = vpop.f32.mrf.mxu1  ;;  %v4998_v8 = vadd.f32 %v11295_v6, %v4611_v46  ;;  %v11299_v46 = vld [vmem:[#allocation21_spill] sm:$0xff] }
 0x279   : > { %6314 = vst [vmem:[%s10662_s14 + $0x68] sm:$0xff] %v10840_v22  ;;  %v6345_v48 = vadd.f32 %v6344_v51, %v10840_v22  ;;  %v10852_v32 = vadd.f32 %v10654_v49, %v6248_v16  ;;  %v6246_v17 = vadd.f32 %v10759_v3, %v5748_v23  ;;  %v5751_v34 = vadd.f32 %v7829_v9, %v4997_v18  ;;  %v11294_v3 = vld [vmem:[#allocation3_spill] sm:$0xff]  ;;  %v6199_v59 = vpop.f32.mrf.mxu0  ;;  %v11298_v18 = vld [vmem:[#allocation16_spill] sm:$0xff] }
 0x27a   : > { %v5672_v27 = vpop.f32.mrf.mxu1  ;;  %v4612_v25 = vadd.f32 %v11294_v3, %v11293_v14  ;;  %v5001_v51 = vadd.f32 %v11298_v18, %v4614_v58  ;;  %v11309_v18 = vld [vmem:[#allocation47_spill] sm:$0xff] }
 0x27b   : > { %v6346_v30 = vadd.f32 %v6345_v48, %v10804_v56  ;;  %6319 = vst [vmem:[%s10662_s14 + $0x90] sm:$0xff] %v10852_v32  ;;  %v10862_v60 = vadd.f32 %v10654_v49, %v6246_v17  ;;  %v6249_v21 = vadd.f32 %v10771_v5, %v5751_v34  ;;  %v5749_v4 = vadd.f32 %v5672_v27, %v4995_v15  ;;  %v11296_v5 = vld [vmem:[#allocation17_spill] sm:$0xff]  ;;  %v11301_v15 = vld [vmem:[#allocation20_spill] sm:$0xff]  ;;  %v7885_v17 = vpop.f32.mrf.mxu0 }
 0x27c   : > { %v7832_v53 = vpop.f32.mrf.mxu1  ;;  %v4617_v24 = vadd.f32 %v11297_v19, %v11296_v5  ;;  %v4999_v48 = vadd.f32 %v11301_v15, %v4612_v25  ;;  %v11303_v27 = vld [vmem:[#allocation45_spill] sm:$0xff] }
 0x27d   : > { %6317 = vst [vmem:[%s10662_s14 + $0x80] sm:$0xff] %v10862_v60  ;;  %v6347_v62 = vadd.f32 %v6346_v30, %v10828_v43  ;;  %v10872_v0 = vadd.f32 %v10654_v49, %v6249_v21  ;;  %v6247_v45 = vadd.f32 %v10783_v13, %v5749_v4  ;;  %v5754_v36 = vadd.f32 %v7832_v53, %v5000_v42  ;;  %v11300_v13 = vld [vmem:[#allocation44_spill] sm:$0xff]  ;;  %v11304_v30 = vld [vmem:[#allocation27_spill] sm:$0xff]  ;;  %v11311_v15 = vld [vmem:[#allocation25_spill] sm:$0xff] }
 0x27e   : > { %v5685_v33 = vpop.f32.mrf.mxu1  ;;  %v4615_v9 = vadd.f32 %v11300_v13, %v11299_v46  ;;  %v5004_v21 = vadd.f32 %v11304_v30, %v4617_v24  ;;  %v11305_v53 = vld [vmem:[#allocation28_spill] sm:$0xff] }
 0x27f   : > { %v6348_v16 = vadd.f32 %v6347_v62, %v10862_v60  ;;  %6320 = vst [vmem:[%s10662_s14 + $0x98] sm:$0xff] %v10872_v0  ;;  %v10882_v23 = vadd.f32 %v10654_v49, %v6247_v45  ;;  %v6252_v37 = vadd.f32 %v10795_v35, %v5754_v36  ;;  %v5752_v20 = vadd.f32 %v5685_v33, %v4998_v8  ;;  %v11302_v35 = vld [vmem:[#allocation26_spill] sm:$0xff]  ;;  %v11307_v62 = vld [vmem:[#allocation33_spill] sm:$0xff]  ;;  %v6202_v36 = vpop.f32.mrf.mxu0 }
 0x280   : > { %v7833_v26 = vpop.f32.mrf.mxu1  ;;  %v4618_v2 = vadd.f32 %v11303_v27, %v11302_v35  ;;  %v5002_v45 = vadd.f32 %v11307_v62, %v4615_v9  ;;  %v11316_v62 = vld [vmem:[#allocation18_spill] sm:$0xff] }
 0x281   : > { %6318 = vst [vmem:[%s10662_s14 + $0x88] sm:$0xff] %v10882_v23  ;;  %v6349_v34 = vadd.f32 %v6348_v16, %v10882_v23  ;;  %v10892_v38 = vadd.f32 %v10654_v49, %v6252_v37  ;;  %v6250_v63 = vadd.f32 %v10807_v57, %v5752_v20  ;;  %v5755_v58 = vadd.f32 %v7833_v26, %v5001_v51  ;;  %v11306_v57 = vld [vmem:[#allocation46_spill] sm:$0xff]  ;;  %v11310_v37 = vld [vmem:[#allocation35_spill] sm:$0xff]  ;;  %v7888_v35 = vpop.f32.mrf.mxu0 }
 0x282   : > { %v5688_v42 = vpop.f32.mrf.mxu1  ;;  %v4616_v6 = vadd.f32 %v11306_v57, %v11305_v53  ;;  %v5005_v20 = vadd.f32 %v11310_v37, %v4618_v2  ;;  %v11318_v37 = vld [vmem:[#allocation7_spill] sm:$0xff] }
 0x283   : > { %v6350_v4 = vadd.f32 %v6349_v34, %v10852_v32  ;;  %6323 = vst [vmem:[%s10662_s14 + $0xb0] sm:$0xff] %v10892_v38  ;;  %v10902_v14 = vadd.f32 %v10654_v49, %v6250_v63  ;;  %v6253_v3 = vadd.f32 %v10819_v10, %v5755_v58  ;;  %v5753_v25 = vadd.f32 %v5688_v42, %v4999_v48  ;;  %v11308_v10 = vld [vmem:[#allocation29_spill] sm:$0xff] }
 0x284   : > { %v7836_v8 = vpop.f32.mrf.mxu1  ;;  %v4621_v51 = vadd.f32 %v11309_v18, %v11308_v10  ;;  %v11313_v63 = vld [vmem:[#allocation37_spill] sm:$0xff] }
 0x285   : > { %6321 = vst [vmem:[%s10662_s14 + $0xa0] sm:$0xff] %v10902_v14  ;;  %v6351_v5 = vadd.f32 %v6350_v4, %v10872_v0  ;;  %v10912_v19 = vadd.f32 %v10654_v49, %v6253_v3  ;;  %v6251_v24 = vadd.f32 %v10831_v44, %v5753_v25  ;;  %v5758_v33 = vadd.f32 %v7836_v8, %v5004_v21  ;;  %v11312_v44 = vld [vmem:[#allocation48_spill] sm:$0xff]  ;;  %v11314_v21 = vld [vmem:[#allocation31_spill] sm:$0xff] }
 0x286   : > { %v5701_v16 = vpop.f32.mrf.mxu1  ;;  %v4619_v48 = vadd.f32 %v11312_v44, %v11311_v15  ;;  %v5003_v58 = vadd.f32 %v11313_v63, %v4616_v6  ;;  %v11315_v3 = vld [vmem:[#allocation19_spill] sm:$0xff] }
 0x287   : > { %v6352_v46 = vadd.f32 %v6351_v5, %v10902_v14  ;;  %6324 = vst [vmem:[%s10662_s14 + $0xb8] sm:$0xff] %v10912_v19  ;;  %v10922_v13 = vadd.f32 %v10654_v49, %v6251_v24  ;;  %v6256_v9 = vadd.f32 %v10846_v39, %v5758_v33  ;;  %v5756_v26 = vadd.f32 %v5701_v16, %v5002_v45  ;;  %v6215_v5 = vpop.f32.mrf.mxu0  ;;  %v11317_v24 = vld [vmem:[#allocation4_spill] sm:$0xff]  ;;  %v11319_v44 = vld [vmem:[#allocation43_spill] sm:$0xff] }
 0x288   : > { %v7837_v34 = vpop.f32.mrf.mxu1  ;;  %v4622_v39 = vadd.f32 %v10637_v29, %v11314_v21  ;;  %v5008_v25 = vadd.f32 %v11315_v3, %v4621_v51  ;;  %v5006_v29 = vadd.f32 %v11317_v24, %v4619_v48 }
 0x289   : > { %6322 = vst [vmem:[%s10662_s14 + $0xa8] sm:$0xff] %v10922_v13  ;;  %v6353_v27 = vadd.f32 %v6352_v46, %v10922_v13  ;;  %v10932_v2 = vadd.f32 %v10654_v49, %v6256_v9  ;;  %v6254_v42 = vadd.f32 %v6199_v59, %v5756_v26  ;;  %v5759_v30 = vadd.f32 %v7837_v34, %v5005_v20  ;;  %v7889_v26 = vpop.f32.mrf.mxu0 }
 0x28a   : > { %v5704_v4 = vpop.f32.mrf.mxu1  ;;  %v4620_v59 = vadd.f32 %v10640_v28, %v11316_v62 }
 0x28b   : > { %v6354_v53 = vadd.f32 %v6353_v27, %v10892_v38  ;;  %6327 = vst [vmem:[%s10662_s14 + $0xd0] sm:$0xff] %v10932_v2  ;;  %v10941_v57 = vadd.f32 %v10654_v49, %v6254_v42  ;;  %v6257_v6 = vadd.f32 %v7885_v17, %v5759_v30  ;;  %v5757_v8 = vadd.f32 %v5704_v4, %v5003_v58 }
 0x28c   : > { %v7840_v45 = vpop.f32.mrf.mxu1  ;;  %v5009_v17 = vadd.f32 %v11318_v37, %v4622_v39  ;;  %v5007_v48 = vadd.f32 %v11319_v44, %v4620_v59  ;;  %v6218_v39 = vpop.f32.mrf.mxu0 }
 0x28d   : > { %6325 = vst [vmem:[%s10662_s14 + $0xc0] sm:$0xff] %v10941_v57  ;;  %v6355_v33 = vadd.f32 %v6354_v53, %v10912_v19  ;;  %v6296_v10 = vadd.f32 %v10654_v49, %v6257_v6  ;;  %v6255_v18 = vadd.f32 %v6202_v36, %v5757_v8  ;;  %v5762_v51 = vadd.f32 %v7840_v45, %v5008_v25 }
 0x28e   : > { %v5717_v16 = vpop.f32.mrf.mxu1 }
 0x28f   : > { %v6356_v20 = vadd.f32 %v6355_v33, %v10941_v57  ;;  %6328 = vst [vmem:[%s10662_s14 + $0xd8] sm:$0xff] %v6296_v10  ;;  %v6294_v28 = vadd.f32 %v10654_v49, %v6255_v18  ;;  %v6260_v46 = vadd.f32 %v7888_v35, %v5762_v51  ;;  %v5760_v9 = vadd.f32 %v5717_v16, %v5006_v29 }
 0x290   : > { %v7841_v15 = vpop.f32.mrf.mxu1 }
 0x291   : > { %6326 = vst [vmem:[%s10662_s14 + $0xc8] sm:$0xff] %v6294_v28  ;;  %v6357_v34 = vadd.f32 %v6356_v20, %v6294_v28  ;;  %v6299_v36 = vadd.f32 %v10654_v49, %v6260_v46  ;;  %v6258_v63 = vadd.f32 %v6215_v5, %v5760_v9  ;;  %v5763_v58 = vadd.f32 %v7841_v15, %v5009_v17 }
 0x292   : > { %v5720_v27 = vpop.f32.mrf.mxu1 }
 0x293   : > { %v6358_v42 = vadd.f32 %v6357_v34, %v10932_v2  ;;  %6331 = vst [vmem:[%s10662_s14 + $0xf0] sm:$0xff] %v6299_v36  ;;  %v6297_v35 = vadd.f32 %v10654_v49, %v6258_v63  ;;  %v6261_v30 = vadd.f32 %v7889_v26, %v5763_v58  ;;  %v5761_v21 = vadd.f32 %v5720_v27, %v5007_v48 }
 0x295   : > { %6329 = vst [vmem:[%s10662_s14 + $0xe0] sm:$0xff] %v6297_v35  ;;  %v6359_v4 = vadd.f32 %v6358_v42, %v6296_v10  ;;  %v6300_v3 = vadd.f32 %v10654_v49, %v6261_v30  ;;  %v6259_v25 = vadd.f32 %v6218_v39, %v5761_v21 }
 0x297   : > { %v6360_v53 = vadd.f32 %v6359_v4, %v6297_v35  ;;  %6332 = vst [vmem:[%s10662_s14 + $0xf8] sm:$0xff] %v6300_v3  ;;  %v6298_v6 = vadd.f32 %v10654_v49, %v6259_v25 }
 0x299   : > { %6330 = vst [vmem:[%s10662_s14 + $0xe8] sm:$0xff] %v6298_v6  ;;  %v6361_v8 = vadd.f32 %v6360_v53, %v6298_v6 }
 0x29b   : > { %v6362_v62 = vadd.f32 %v6361_v8, %v6299_v36 }
 0x29d   : > { %v6363_v59 = vadd.f32 %v6362_v62, %v6300_v3 }
 0x29f   : > { %v6364_v45 = vrot.slane %v6363_v59, 4 }
 0x2a1   : > { %v6365_v5 = vadd.f32 %v6364_v45, %v6363_v59 }
 0x2a3   : > { %v6366_v24 = vrot.slane %v6365_v5, 2 }
 0x2a5   : > { %v6367_v29 = vadd.f32 %v6366_v24, %v6365_v5 }
 0x2a7   : > { %v6368_v33 = vrot.slane %v6367_v29, 1 }
 0x2a9   : > { %v6369_v18 = vadd.f32 %v6368_v33, %v6367_v29 }
 0x2ab   : > { %v6370_v51 = vmul.f32 0.00390625, %v6369_v18  ;;  %6403 = vst [vmem:[%s525_s17] sm:$0x1] %v6369_v18 }
 0x2ad   : > { %v6380_v16 = vsub.f32 %v10792_v47, %v6370_v51  ;;  %v6382_v49 = vsub.f32 %v10780_v1, %v6370_v51  ;;  %v6383_v37 = vsub.f32 %v10816_v12, %v6370_v51  ;;  %v6384_v17 = vsub.f32 %v10840_v22, %v6370_v51 }
 0x2ae   : > { %v6385_v20 = vsub.f32 %v10804_v56, %v6370_v51  ;;  %v6386_v46 = vsub.f32 %v10828_v43, %v6370_v51  ;;  %v6387_v9 = vsub.f32 %v10862_v60, %v6370_v51  ;;  %v6388_v26 = vsub.f32 %v10882_v23, %v6370_v51 }
 0x2af   : > { %v6389_v15 = vsub.f32 %v10852_v32, %v6370_v51  ;;  %v6390_v44 = vsub.f32 %v10872_v0, %v6370_v51  ;;  %v6391_v47 = vsub.f32 %v10902_v14, %v6370_v51  ;;  %v6392_v1 = vsub.f32 %v10922_v13, %v6370_v51 }
 0x2b0   : > { %v6393_v12 = vsub.f32 %v10892_v38, %v6370_v51  ;;  %v10983_v22 = vsub.f32 %v10912_v19, %v6370_v51  ;;  %v10986_v56 = vsub.f32 %v10941_v57, %v6370_v51  ;;  %v10988_v43 = vsub.f32 %v6294_v28, %v6370_v51 }
 0x2b1   : > { %v10991_v60 = vsub.f32 %v10932_v2, %v6370_v51  ;;  %v10993_v32 = vsub.f32 %v6296_v10, %v6370_v51  ;;  %v10995_v0 = vsub.f32 %v6297_v35, %v6370_v51  ;;  %v10997_v23 = vsub.f32 %v6298_v6, %v6370_v51 }
 0x2b2   : > { %v10999_v14 = vsub.f32 %v6299_v36, %v6370_v51  ;;  %v11001_v38 = vsub.f32 %v6300_v3, %v6370_v51  ;;  %v6371_v19 = vsub.f32 %v10678_v55, %v6370_v51  ;;  %v6372_v13 = vsub.f32 %v10697_v31, %v6370_v51 }
 0x2b3   : > { %v6373_v57 = vsub.f32 %v10668_v40, %v6370_v51  ;;  %v6374_v2 = vsub.f32 %v10687_v50, %v6370_v51  ;;  %v6375_v10 = vsub.f32 %v10721_v41, %v6370_v51  ;;  %v6376_v58 = vsub.f32 %v10744_v61, %v6370_v51 }
 0x2b4   : > { %v6404_v28 = vmul.f32 %v6371_v19, %v6371_v19  ;;  %v6405_v48 = vmul.f32 %v6372_v13, %v6372_v13  ;;  %v6377_v42 = vsub.f32 %v10710_v11, %v6370_v51  ;;  %v6378_v31 = vsub.f32 %v10732_v52, %v6370_v51 }
 0x2b5   : > { %v6406_v34 = vmul.f32 %v6373_v57, %v6373_v57  ;;  %v6407_v36 = vmul.f32 %v6374_v2, %v6374_v2  ;;  %v6408_v35 = vmul.f32 %v6375_v10, %v6375_v10  ;;  %v6409_v30 = vmul.f32 %v6376_v58, %v6376_v58 }
 0x2b6   : > { %v6436_v63 = vadd.f32 %v6405_v48, %v6404_v28  ;;  %v6379_v21 = vsub.f32 %v10768_v54, %v6370_v51  ;;  %v6410_v39 = vmul.f32 %v6377_v42, %v6377_v42  ;;  %v6411_v4 = vmul.f32 %v6378_v31, %v6378_v31 }
 0x2b7   : > { %v6381_v3 = vsub.f32 %v10756_v7, %v6370_v51  ;;  %v6413_v53 = vmul.f32 %v6380_v16, %v6380_v16  ;;  %v6415_v62 = vmul.f32 %v6382_v49, %v6382_v49  ;;  %v6416_v45 = vmul.f32 %v6383_v37, %v6383_v37 }
 0x2b8   : > { %v6437_v27 = vadd.f32 %v6436_v63, %v6406_v34  ;;  %v6412_v25 = vmul.f32 %v6379_v21, %v6379_v21  ;;  %v6417_v5 = vmul.f32 %v6384_v17, %v6384_v17  ;;  %v6418_v29 = vmul.f32 %v6385_v20, %v6385_v20 }
 0x2b9   : > { %v6414_v8 = vmul.f32 %v6381_v3, %v6381_v3  ;;  %v6419_v33 = vmul.f32 %v6386_v46, %v6386_v46  ;;  %v6420_v19 = vmul.f32 %v6387_v9, %v6387_v9  ;;  %v6421_v57 = vmul.f32 %v6388_v26, %v6388_v26 }
 0x2ba   : > { %v6438_v55 = vadd.f32 %v6437_v27, %v6407_v36  ;;  %v6422_v51 = vmul.f32 %v6389_v15, %v6389_v15  ;;  %v6423_v16 = vmul.f32 %v6390_v44, %v6390_v44  ;;  %v6424_v2 = vmul.f32 %v6391_v47, %v6391_v47 }
 0x2bb   : > { %v6425_v49 = vmul.f32 %v6392_v1, %v6392_v1  ;;  %v6426_v37 = vmul.f32 %v6393_v12, %v6393_v12  ;;  %v6427_v17 = vmul.f32 %v10983_v22, %v10983_v22  ;;  %v6428_v46 = vmul.f32 %v10986_v56, %v10986_v56 }
 0x2bc   : > { %v6439_v40 = vadd.f32 %v6438_v55, %v6408_v35  ;;  %v6429_v26 = vmul.f32 %v10988_v43, %v10988_v43  ;;  %v6430_v44 = vmul.f32 %v10991_v60, %v10991_v60  ;;  %v6431_v1 = vmul.f32 %v10993_v32, %v10993_v32 }
 0x2bd   : > { %v6432_v22 = vmul.f32 %v10995_v0, %v10995_v0  ;;  %v6433_v56 = vmul.f32 %v10997_v23, %v10997_v23  ;;  %v6434_v43 = vmul.f32 %v10999_v14, %v10999_v14  ;;  %v6435_v60 = vmul.f32 %v11001_v38, %v11001_v38 }
 0x2be   : > { %v6440_v50 = vadd.f32 %v6439_v40, %v6409_v30 }
 0x2c0   : > { %v6441_v41 = vadd.f32 %v6440_v50, %v6410_v39 }
 0x2c2   : > { %v6442_v61 = vadd.f32 %v6441_v41, %v6411_v4 }
 0x2c4   : > { %v6443_v6 = vadd.f32 %v6442_v61, %v6412_v25 }
 0x2c6   : > { %v6444_v11 = vadd.f32 %v6443_v6, %v6413_v53 }
 0x2c8   : > { %v6445_v59 = vadd.f32 %v6444_v11, %v6414_v8 }
 0x2ca   : > { %v6446_v52 = vadd.f32 %v6445_v59, %v6415_v62 }
 0x2cc   : > { %v6447_v24 = vadd.f32 %v6446_v52, %v6416_v45 }
 0x2ce   : > { %v6448_v54 = vadd.f32 %v6447_v24, %v6417_v5 }
 0x2d0   : > { %v6449_v18 = vadd.f32 %v6448_v54, %v6418_v29 }
 0x2d2   : > { %v6450_v13 = vadd.f32 %v6449_v18, %v6419_v33 }
 0x2d4   : > { %v6451_v7 = vadd.f32 %v6450_v13, %v6420_v19 }
 0x2d6   : > { %v6452_v28 = vadd.f32 %v6451_v7, %v6421_v57 }
 0x2d8   : > { %v6453_v48 = vadd.f32 %v6452_v28, %v6422_v51 }
 0x2da   : > { %v6454_v10 = vadd.f32 %v6453_v48, %v6423_v16 }
 0x2dc   : > { %v6455_v34 = vadd.f32 %v6454_v10, %v6424_v2 }
 0x2de   : > { %v6456_v63 = vadd.f32 %v6455_v34, %v6425_v49 }
 0x2e0   : > { %v6457_v20 = vadd.f32 %v6456_v63, %v6426_v37 }
 0x2e2   : > { %v6458_v9 = vadd.f32 %v6457_v20, %v6427_v17 }
 0x2e4   : > { %v6459_v15 = vadd.f32 %v6458_v9, %v6428_v46 }
 0x2e6   : > { %v6460_v47 = vadd.f32 %v6459_v15, %v6429_v26 }
 0x2e8   : > { %v6461_v12 = vadd.f32 %v6460_v47, %v6430_v44 }
 0x2ea   : > { %v6462_v58 = vadd.f32 %v6461_v12, %v6431_v1 }
 0x2ec   : > { %v6463_v36 = vadd.f32 %v6462_v58, %v6432_v22 }
 0x2ee   : > { %v6464_v27 = vadd.f32 %v6463_v36, %v6433_v56 }
 0x2f0   : > { %v6465_v42 = vadd.f32 %v6464_v27, %v6434_v43 }
 0x2f2   : > { %v6466_v35 = vadd.f32 %v6465_v42, %v6435_v60 }
 0x2f4   : > { %v6467_v32 = vrot.slane %v6466_v35, 4 }
 0x2f6   : > { %v6468_v55 = vadd.f32 %v6467_v32, %v6466_v35 }
 0x2f8   : > { %v6469_v31 = vrot.slane %v6468_v55, 2 }
 0x2fa   : > { %v6470_v30 = vadd.f32 %v6469_v31, %v6468_v55 }
 0x2fc   : > { %v6471_v40 = vrot.slane %v6470_v30, 1 }
 0x2fe   : > { %v6472_v0 = vadd.f32 %v6471_v40, %v6470_v30 }
 0x300   : > { %6473 = vst [vmem:[%s531_s20] sm:$0x1] %v6472_v0 }
 0x301 PF: > { %s20_s30 = sadd.s32 1, %s8101_s30   ;;  %s11320_s28 = smov %s8097_s29 }
 0x302   : > { %p17_p5 = scmp.ge.s32.totalorder %s20_s30, 4   ;;  %s11321_s29 = smov %s11323_s10 }
 0x304   :  { %19 = sbr.rel (!%p17_p5) target bundleno = 2 (0x2), region = 127 }

// kernel: vgg_block_forward.3
= control target key start
LH: loop header
LB: loop body
LE: loop exit
PB: predicated region body
PF: predicated region fallthrough
CT: control target
= control target key end

     0   :  { %s7747_s28 = smov 0   ;;  %s7749_s29 = smov 0   ;;  %s10682_s0 = inlined_call_operand.vmem [shape: f32[2,16,16,4], index: 0, kind: input, shape index: {}, may-alias: {0,1,2}]   ;;  %s10683_s1 = inlined_call_operand.vmem [shape: f32[2,16,16,4], index: 1, kind: input, shape index: {}, may-alias: {0,1,2}]   ;;  %s10684_s2 = inlined_call_operand.vmem [shape: f32[2,16,16,4], index: 2, kind: input, shape index: {}, may-alias: {0,1,2}]   ;;  %s10685_s3 = inlined_call_operand.vmem [shape: bf16[9,8,128], index: 3, kind: input, shape index: {}]   ;;  %s10686_s4 = inlined_call_operand.vmem [shape: f32[1,128], index: 4, kind: input, shape index: {}]   ;;  %s10687_s5 = inlined_call_operand.vmem [shape: f32[1,4], index: 5, kind: input, shape index: {}]   ;;  %s10688_s6 = inlined_call_operand.vmem [shape: f32[1,4], index: 6, kind: input, shape index: {}]   ;;  %s10689_s7 = inlined_call_operand.vmem [shape: bf16[2,256,128], index: 7, kind: output, shape index: {0}]   ;;  %s10690_s8 = inlined_call_operand.vmem [shape: f32[2,1,1,128], index: 8, kind: output, shape index: {1}]   ;;  %s10691_s9 = inlined_call_operand.vmem [shape: f32[2,1,1,128], index: 9, kind: output, shape index: {2}]  }
   0x1   :  { %s7751_s30 = smov 0  }
   0x2 LB: > { %s32_s5 = sadd.s32 1, %s7690_s29  ;;  %p6522_p0 = scmp.ge.s32.totalorder %s7694_s30, 1  ;;  %s7694_s30 = sphi %s7751_s30, %s20_s30   ;;  %s7690_s29 = sphi %s7749_s29, %s10925_s29   ;;  %s7686_s28 = sphi %s7747_s28, %s10924_s28  }
   0x3   : > { %p34_p1 = scmp.ge.s32.totalorder %s32_s5, 2  ;;  %p382_p2 = scmp.lt.s32.totalorder %s7694_s30, 3 }
   0x5   : > { %s10927_s5 = smov (%p34_p1, %s32_s5), 0  ;;  %p383_p3 = pnand %p6522_p0, %p382_p2 }
   0x7   : > { %386 = sbr.rel (%p383_p3) target bundleno = 769 (0x301), region = 48 }
   0xc   : > { %v6567_v0 = vld [vmem:[%s10685_s3 + $0x4] sm:$0xf]  ;;  %vm1953_vm0 = vcmask 1043456   ;;  %vm533_vm1 = vcmask 60416   ;;  %vm536_vm2 = vcmask 57344   ;;  %v10692_v2 = vmov 0  }
   0xd   : > { %7575 = vmatprep.subr.msk.bf16.mxu0 %vm1953_vm0, %v6567_v0  ;;  %7576 = vmatprep.subr.msk.bf16.mxu1 %vm1953_vm0, %v6567_v0  ;;  %v1955_v1 = vsel %vm1953_vm0, %v6567_v0, 0  ;;  %534 = vst.msk [vmem:[#allocation2] sm:$0xf] %vm533_vm1, %v10692_v2  ;;  %535 = vst.msk [vmem:[#allocation2 + $0x4] sm:$0xf] %vm533_vm1, %v10692_v2  ;;  %v10707_v3 = vmov 0 }
   0xe   : > { %537 = vst.msk [vmem:[#allocation2 + $0x8] sm:$0x1] %vm536_vm2, %v10692_v2  ;;  %541 = vst.msk [vmem:[#allocation2 + $0xd4] sm:$0x1] %vm536_vm2, %v10692_v2  ;;  %vm543_vm3 = vsmask.f32 256  ;;  %7268 = vmatpush3.bf16.msra.mxu0 %v1955_v1  ;;  %7574 = vmatpush3.bf16.msra.mxu1 %v1955_v1 }
   0xf   : > { %vm599_vm4 = vsmask.f32 7938  ;;  %539 = vst.msk [vmem:[#allocation2 + $0xcc] sm:$0xf] %vm533_vm1, %v10692_v2  ;;  %540 = vst.msk [vmem:[#allocation2 + $0xd0] sm:$0xf] %vm533_vm1, %v10692_v2 }
  0x10   : > { %vm7783_vm5 = vmand %vm536_vm2, %vm543_vm3  ;;  %p466_p4 = scmp.lt.s32.totalorder %s7686_s28, 1  ;;  %v10710_v4 = vmov 0  ;;  %v548_v5 = vld [vmem:[#allocation2 + $0xc] sm:$0x1]  ;;  %v604_v6 = vld [vmem:[#allocation2 + $0x14] sm:$0x1] }
  0x11   : > { %v10708_v3 = vsel %vm7783_vm5, 4294967295, %v10707_v3  ;;  %vm7790_vm6 = vmand %vm536_vm2, %vm599_vm4  ;;  %v549_v7 = vsel %vm7783_vm5, 0, %v548_v5  ;;  %v569_v9 = vld [vmem:[#allocation2 + $0x60] sm:$0x1]  ;;  %v625_v10 = vld [vmem:[#allocation2 + $0x68] sm:$0x1] }
  0x12   : > { %10709 = vst [vmem:[#allocation3_spill] sm:$0xff] %v10708_v3  ;;  %v10711_v4 = vsel %vm7790_vm6, 4294967295, %v10710_v4  ;;  %s10929_s28 = smov (!%p466_p4, %s7686_s28), 1  ;;  %v605_v8 = vsel %vm7790_vm6, 0, %v604_v6  ;;  %550 = vst [vmem:[#allocation2 + $0xc] sm:$0x1] %v549_v7 }
  0x13   : > { %10712 = vst [vmem:[#allocation4_spill] sm:$0xff] %v10711_v4  ;;  %s6946_s11 = sshll.u32 %s10929_s28, 8  ;;  %606 = vst [vmem:[#allocation2 + $0x14] sm:$0x1] %v605_v8  ;;  %v570_v11 = vsel %vm7783_vm5, 0, %v569_v9  ;;  %v626_v12 = vsel %vm7790_vm6, 0, %v625_v10  ;;  %s525_s22 = scalar_lea.vmem %s10690_s8, %s10929_s28 }
  0x14   : > { %v1450_v13 = vld [vmem:[%s10685_s3] sm:$0xf]  ;;  %vm783_vm7 = vsmask.f32 4368  ;;  %s7812_s16 = scalar_lea.vmem %s10682_s0, %s6946_s11  ;;  %571 = vst [vmem:[#allocation2 + $0x60] sm:$0x1] %v570_v11  ;;  %s531_s25 = scalar_lea.vmem %s10691_s9, %s10929_s28 }
  0x15   : > { %627 = vst [vmem:[#allocation2 + $0x68] sm:$0x1] %v626_v12  ;;  %7577 = vmatprep.subr.msk.bf16.mxu1 %vm1953_vm0, %v1450_v13  ;;  %v572_v14 = vld [vmem:[#allocation2 + $0x6c] sm:$0x1]  ;;  %v628_v15 = vld [vmem:[#allocation2 + $0x74] sm:$0x1]  ;;  %vm7844_vm13 = vmor %vm543_vm3, %vm783_vm7 }
  0x16   : > { %v545_v16 = vld [vmem:[#allocation2] sm:$0x1]  ;;  %v601_v17 = vld [vmem:[#allocation2 + $0x8] sm:$0x1]  ;;  %v573_v18 = vsel %vm7783_vm5, 0, %v572_v14  ;;  %v629_v19 = vsel %vm7790_vm6, 0, %v628_v15 }
  0x17   : > { %v546_v20 = vsel %vm7783_vm5, 0, %v545_v16  ;;  %v602_v21 = vsel %vm7790_vm6, 0, %v601_v17  ;;  %vm1106_vm8 = vcmask 27648   ;;  %v1419_v22 = vld [vmem:[#allocation2 + $0x4] sm:$0xf]  ;;  %vm1113_vm10 = vcmask 24576  }
  0x18   : > { %vm1467_vm9 = vsmask.f32 3328  ;;  %v655_v23 = vld [vmem:[%s7812_s16] sm:$0xff]  ;;  %574 = vst [vmem:[#allocation2 + $0x6c] sm:$0x1] %v573_v18  ;;  %v1480_v24 = vshll.u32 %v1419_v22, 16  ;;  %vm7852_vm15 = vmand %vm1106_vm8, %vm599_vm4 }
  0x19   : > { %630 = vst [vmem:[#allocation2 + $0x74] sm:$0x1] %v629_v19  ;;  %547 = vst [vmem:[#allocation2] sm:$0x1] %v546_v20  ;;  %v1484_v25 = vshrl.u32 %v1419_v22, 16  ;;  %v656_v26 = vld [vmem:[%s7812_s16 + $0x8] sm:$0xff]  ;;  %v6951_v27 = vpack.c.bf16 %v655_v23, %v655_v23 }
  0x1a   : > { %603 = vst [vmem:[#allocation2 + $0x8] sm:$0x1] %v602_v21  ;;  %v669_v28 = vld [vmem:[%s7812_s16 + $0x70] sm:$0xff]  ;;  %v670_v29 = vld [vmem:[%s7812_s16 + $0x78] sm:$0xff]  ;;  %vm1468_vm11 = vsmask.f32 7440  ;;  %v6952_v30 = vpack.c.bf16 %v656_v26, %v656_v26  ;;  %vm7860_vm1 = vmand %vm1113_vm10, %vm543_vm3 }
  0x1b   : > { %v6965_v31 = vpack.c.bf16 %v669_v28, %v669_v28  ;;  %v6966_v32 = vpack.c.bf16 %v670_v29, %v670_v29  ;;  %v671_v33 = vld [vmem:[%s7812_s16 + $0x80] sm:$0xff]  ;;  %v7831_v34 = vld [vmem:[%s10685_s3 + $0x8] sm:$0xf]  ;;  %vm1223_vm12 = vcmask 60448   ;;  %v7833_v35 = vrot.slane %v1480_v24, 5  ;;  %v657_v55 = vld [vmem:[%s7812_s16 + $0x10] sm:$0xff] }
  0x1c   : > { %v1486_v36 = vrot.slane %v1484_v25, 4  ;;  %v786_v37 = vshrl.u32 %v6951_v27, 16  ;;  %v789_v38 = vshll.u32 %v6951_v27, 16  ;;  %7578 = vmatprep.subr.msk.bf16.mxu0 %vm1953_vm0, %v7831_v34  ;;  %v794_v39 = vshrl.u32 %v6952_v30, 16  ;;  %v1108_v46 = vld [vmem:[#allocation2 + $0xc] sm:$0xf]  ;;  %vm7879_vm7 = vmor %vm1467_vm9, %vm1468_vm11 }
  0x1d   : > { %v797_v40 = vshll.u32 %v6952_v30, 16  ;;  %v7837_v41 = vpack.c.bf16 %v671_v33, %v671_v33  ;;  %v7840_v42 = vsel %vm1953_vm0, %v1450_v13, 0  ;;  %v10713_v43 = vmov 0  ;;  %v672_v49 = vld [vmem:[%s7812_s16 + $0x88] sm:$0xff]  ;;  %v1115_v60 = vld [vmem:[#allocation2 + $0x14] sm:$0x1]  ;;  %vm7900_vm9 = vmand %vm1223_vm12, %vm599_vm4 }
  0x1e   : > { %v10714_v43 = vsel %vm7844_vm13, 4294967295, %v10713_v43  ;;  %vm1230_vm14 = vcmask 57376   ;;  %v1487_v44 = vor.u32 %v1486_v36, %v7833_v35  ;;  %v788_v45 = vrot.slane %v786_v37, 7  ;;  %v1160_v10 = vld [vmem:[#allocation2 + $0x60] sm:$0xf] }
  0x1f   : > { %10715 = vst [vmem:[#allocation5_spill] sm:$0xff] %v10714_v43  ;;  %v905_v47 = vshrl.u32 %v6965_v31, 16  ;;  %v908_v48 = vshll.u32 %v6965_v31, 16  ;;  %v10716_v50 = vmov 0  ;;  %v796_v51 = vrot.slane %v794_v39, 7  ;;  %vm7908_vm10 = vmand %vm1230_vm14, %vm543_vm3 }
  0x20   : > { %v10717_v50 = vsel %vm7852_vm15, 4294967295, %v10716_v50  ;;  %v913_v52 = vshrl.u32 %v6966_v32, 16  ;;  %v916_v53 = vshll.u32 %v6966_v32, 16  ;;  %v922_v54 = vshrl.u32 %v7837_v41, 16  ;;  %v1418_v62 = vld [vmem:[#allocation2] sm:$0xf] }
  0x21   : > { %10718 = vst [vmem:[#allocation6_spill] sm:$0xff] %v10717_v50  ;;  %v10719_v56 = vmov 0  ;;  %v7864_v57 = vrot.slane %v1487_v44, 4  ;;  %v791_v58 = vor.u32 %v789_v38, %v788_v45  ;;  %v792_v59 = vrot.slane %v788_v45, 4  ;;  %v7866_v63 = vld [vmem:[#allocation2 + $0x8] sm:$0x1] }
  0x22   : > { %v10720_v56 = vsel %vm7860_vm1, 4294967295, %v10719_v56  ;;  %v907_v61 = vrot.slane %v905_v47, 7  ;;  %v799_v0 = vor.u32 %v797_v40, %v796_v51  ;;  %v801_v1 = vrot.slane %v796_v51, 4  ;;  %v1164_v21 = vld [vmem:[#allocation2 + $0x68] sm:$0x1]  ;;  %v658_v32 = vld [vmem:[%s7812_s16 + $0x18] sm:$0xff] }
  0x23   : > { %10721 = vst [vmem:[#allocation7_spill] sm:$0xff] %v10720_v56  ;;  %v915_v5 = vrot.slane %v913_v52, 7  ;;  %v6968_v6 = vpack.c.bf16 %v672_v49, %v672_v49  ;;  %v1471_v7 = vshrl.u32 %v1418_v62, 16  ;;  %v1474_v8 = vshll.u32 %v1418_v62, 16  ;;  %v551_v26 = vld [vmem:[#allocation2 + $0x18] sm:$0x1] }
  0x24   : > { %v1490_v9 = vshll.u32 %v7866_v63, 16  ;;  %vm1904_vm2 = vcmask 64512   ;;  %v7869_v11 = vpack.c.bf16 %v657_v55, %v657_v55  ;;  %v800_v12 = vsel %vm7844_vm13, %v792_v59, %v799_v0  ;;  %v607_v31 = vld [vmem:[#allocation2 + $0x20] sm:$0x1]  ;;  %v1167_v39 = vld [vmem:[#allocation2 + $0x6c] sm:$0xf] }
  0x25   : > { %v1109_v13 = vsel %vm7852_vm15, %v791_v58, %v1108_v46  ;;  %v1116_v14 = vsel %vm7860_vm1, %v801_v1, %v1115_v60  ;;  %v910_v15 = vor.u32 %v908_v48, %v907_v61  ;;  %v1473_v17 = vrot.slane %v1471_v7, 4  ;;  %1112 = vst.msk [vmem:[#allocation2 + $0x10] sm:$0xf] %vm1106_vm8, %v800_v12  ;;  %v659_v47 = vld [vmem:[%s7812_s16 + $0x20] sm:$0xff]  ;;  %v1171_v49 = vld [vmem:[#allocation2 + $0x74] sm:$0x1] }
  0x26   : > { %v1476_v18 = vrot.slane %v1474_v8, 5  ;;  %v1492_v19 = vrot.slane %v1490_v9, 5  ;;  %1110 = vst [vmem:[#allocation2 + $0xc] sm:$0xf] %v1109_v13  ;;  %1117 = vst [vmem:[#allocation2 + $0x14] sm:$0x1] %v1116_v14  ;;  %v918_v22 = vor.u32 %v916_v53, %v915_v5  ;;  %v6954_v53 = vpack.c.bf16 %v658_v32, %v658_v32 }
  0x27   : > { %v911_v20 = vrot.slane %v907_v61, 4  ;;  %1229 = vst.msk [vmem:[#allocation2 + $0x10] sm:$0xf] %vm1223_vm12, %v10692_v2  ;;  %v920_v23 = vrot.slane %v915_v5, 4  ;;  %v1161_v24 = vsel %vm7852_vm15, %v910_v15, %v1160_v10  ;;  %v924_v25 = vrot.slane %v922_v54, 7 }
  0x28   : > { %v1477_v27 = vor.u32 %v1476_v18, %v1473_v17  ;;  %v2466_v28 = vrot.slane %v7866_v63, 5  ;;  %1162 = vst [vmem:[#allocation2 + $0x60] sm:$0xf] %v1161_v24  ;;  %v925_v29 = vshll.u32 %v7837_v41, 16  ;;  %v930_v30 = vshrl.u32 %v6968_v6, 16 }
  0x29   : > { %v1493_v33 = vsel %vm7879_vm7, %v7864_v57, %v1492_v19  ;;  %v919_v36 = vsel %vm7844_vm13, %v911_v20, %v918_v22  ;;  %v1165_v37 = vsel %vm7860_vm1, %v920_v23, %v1164_v21  ;;  %v933_v38 = vshll.u32 %v6968_v6, 16  ;;  %v554_v60 = vld [vmem:[#allocation2 + $0x24] sm:$0x1]  ;;  %v610_v12 = vld [vmem:[#allocation2 + $0x2c] sm:$0x1] }
  0x2a   : > { %v10724_v40 = vmov 0  ;;  %v1478_v41 = vrot.slane %v1477_v27, 4  ;;  %1163 = vst.msk [vmem:[#allocation2 + $0x64] sm:$0xf] %vm1106_vm8, %v919_v36  ;;  %1166 = vst [vmem:[#allocation2 + $0x68] sm:$0x1] %v1165_v37  ;;  %v927_v44 = vor.u32 %v925_v29, %v924_v25  ;;  %v7925_v6 = vpack.c.bf16 %v659_v47, %v659_v47 }
  0x2b   : > { %v10725_v40 = vsel %vm7900_vm9, 4294967295, %v10724_v40  ;;  %v928_v45 = vrot.slane %v924_v25, 4  ;;  %v932_v46 = vrot.slane %v930_v30, 7  ;;  %v10727_v48 = vmov 0  ;;  %1280 = vst.msk [vmem:[#allocation2 + $0x64] sm:$0xf] %vm1223_vm12, %v10692_v2 }
  0x2c   : > { %10726 = vst [vmem:[#allocation8_spill] sm:$0xff] %v10725_v40  ;;  %v10728_v48 = vsel %vm7908_vm10, 4294967295, %v10727_v48  ;;  %v552_v51 = vsel %vm7783_vm5, 0, %v551_v26  ;;  %v608_v52 = vsel %vm7790_vm6, 0, %v607_v31  ;;  %v803_v54 = vshrl.u32 %v7869_v11, 16  ;;  %v660_v26 = vld [vmem:[%s7812_s16 + $0x28] sm:$0xff] }
  0x2d   : > { %10729 = vst [vmem:[#allocation9_spill] sm:$0xff] %v10728_v48  ;;  %v1483_v55 = vsel %vm7879_vm7, %v1478_v41, %v7833_v35  ;;  %v935_v57 = vor.u32 %v933_v38, %v932_v46  ;;  %v937_v58 = vrot.slane %v932_v46, 4  ;;  %v1168_v59 = vsel %vm7852_vm15, %v927_v44, %v1167_v39  ;;  %553 = vst [vmem:[#allocation2 + $0x18] sm:$0x1] %v552_v51  ;;  %v1225_v62 = vld [vmem:[#allocation2 + $0xc] sm:$0xf] }
  0x2e   : > { %609 = vst [vmem:[#allocation2 + $0x20] sm:$0x1] %v608_v52  ;;  %v6568_v61 = vcombine.low %v1483_v55, %v1493_v33  ;;  %v1232_v0 = vld [vmem:[#allocation2 + $0x14] sm:$0x1]  ;;  %1169 = vst [vmem:[#allocation2 + $0x6c] sm:$0xf] %v1168_v59 }
  0x2f   : > { %v805_v1 = vrot.slane %v803_v54, 7  ;;  %v806_v5 = vshll.u32 %v7869_v11, 16  ;;  %v1226_v35 = vsel %vm7900_vm9, 0, %v1225_v62  ;;  %v1233_v7 = vsel %vm7908_vm10, 0, %v1232_v0  ;;  %v7931_v8 = vld [vmem:[#allocation2 + $0x10] sm:$0xf] }
  0x30   : > { %v936_v9 = vsel %vm7844_vm13, %v928_v45, %v935_v57  ;;  %v1172_v10 = vsel %vm7860_vm1, %v937_v58, %v1171_v49  ;;  %7269 = vmatprep.mubr.msk.bf16.mxu0 %vm1904_vm2, %v6568_v61  ;;  %1227 = vst [vmem:[#allocation2 + $0xc] sm:$0xf] %v1226_v35  ;;  %1234 = vst [vmem:[#allocation2 + $0x14] sm:$0x1] %v1233_v7  ;;  %v1504_v11 = vshll.u32 %v7931_v8, 16  ;;  %v1508_v13 = vshrl.u32 %v7931_v8, 16 }
  0x31   : > { %v2470_v14 = vrot.slane %v7931_v8, 5  ;;  %v1277_v15 = vld [vmem:[#allocation2 + $0x60] sm:$0xf]  ;;  %1170 = vst.msk [vmem:[#allocation2 + $0x70] sm:$0xf] %vm1106_vm8, %v936_v9  ;;  %v7944_v17 = vsel %vm1953_vm0, %v7831_v34, 0  ;;  %v808_v19 = vor.u32 %v806_v5, %v805_v1  ;;  %v7977_v62 = vpack.c.bf16 %v660_v26, %v660_v26 }
  0x32   : > { %1173 = vst [vmem:[#allocation2 + $0x74] sm:$0x1] %v1172_v10  ;;  %v1278_v18 = vsel %vm7900_vm9, 0, %v1277_v15  ;;  %1287 = vst.msk [vmem:[#allocation2 + $0x70] sm:$0xf] %vm1223_vm12, %v10692_v2  ;;  %v811_v20 = vshrl.u32 %v6954_v53, 16 }
  0x33   : > { %v814_v21 = vshll.u32 %v6954_v53, 16  ;;  %v7950_v22 = vrot.slane %v1504_v11, 5  ;;  %v1510_v23 = vrot.slane %v1508_v13, 4  ;;  %1279 = vst [vmem:[#allocation2 + $0x60] sm:$0xf] %v1278_v18  ;;  %v555_v25 = vsel %vm7783_vm5, 0, %v554_v60 }
  0x34   : > { %v1281_v24 = vld [vmem:[#allocation2 + $0x68] sm:$0x1]  ;;  %v611_v34 = vsel %vm7790_vm6, 0, %v610_v12  ;;  %v673_v27 = vld [vmem:[%s7812_s16 + $0x90] sm:$0xff]  ;;  %v1435_v30 = vld [vmem:[#allocation2 + $0x64] sm:$0xf] }
  0x35   : > { %v1282_v29 = vsel %vm7908_vm10, 0, %v1281_v24  ;;  %v809_v31 = vrot.slane %v805_v1, 4  ;;  %v813_v32 = vrot.slane %v811_v20, 7  ;;  %556 = vst [vmem:[#allocation2 + $0x24] sm:$0x1] %v555_v25  ;;  %v820_v33 = vshrl.u32 %v7925_v6, 16 }
  0x36   : > { %612 = vst [vmem:[#allocation2 + $0x2c] sm:$0x1] %v611_v34  ;;  %v1511_v36 = vor.u32 %v1510_v23, %v7950_v22  ;;  %1283 = vst [vmem:[#allocation2 + $0x68] sm:$0x1] %v1282_v29  ;;  %v1672_v37 = vshll.u32 %v1435_v30, 16  ;;  %v1676_v38 = vshrl.u32 %v1435_v30, 16  ;;  %v7979_v0 = vpack.c.bf16 %v673_v27, %v673_v27 }
  0x37   : > { %v1118_v39 = vld [vmem:[#allocation2 + $0x18] sm:$0xf]  ;;  %v1122_v41 = vld [vmem:[#allocation2 + $0x20] sm:$0x1]  ;;  %v1284_v44 = vld [vmem:[#allocation2 + $0x6c] sm:$0xf]  ;;  %v816_v45 = vor.u32 %v814_v21, %v813_v32 }
  0x38   : > { %v818_v46 = vrot.slane %v813_v32, 4  ;;  %v1119_v47 = vsel %vm7852_vm15, %v808_v19, %v1118_v39  ;;  %v7964_v49 = vrot.slane %v820_v33, 7  ;;  %v674_v51 = vld [vmem:[%s7812_s16 + $0x98] sm:$0xff]  ;;  %v7967_v52 = vrot.slane %v1511_v36, 4  ;;  %v1420_v57 = vld [vmem:[#allocation2 + $0xc] sm:$0xf] }
  0x39   : > { %v7969_v53 = vrot.slane %v1672_v37, 5  ;;  %v1678_v54 = vrot.slane %v1676_v38, 4  ;;  %v1285_v55 = vsel %vm7900_vm9, 0, %v1284_v44  ;;  %1120 = vst [vmem:[#allocation2 + $0x18] sm:$0xf] %v1119_v47  ;;  %v817_v60 = vsel %vm7844_vm13, %v809_v31, %v816_v45  ;;  %v675_v10 = vld [vmem:[%s7812_s16 + $0xa0] sm:$0xff] }
  0x3a   : > { %v1452_v58 = vld [vmem:[#allocation2 + $0x14] sm:$0x1]  ;;  %1286 = vst [vmem:[#allocation2 + $0x6c] sm:$0xf] %v1285_v55  ;;  %v1123_v61 = vsel %vm7860_vm1, %v818_v46, %v1122_v41  ;;  %v1495_v1 = vshrl.u32 %v1420_v57, 16  ;;  %v1498_v5 = vshll.u32 %v1420_v57, 16  ;;  %v7982_v9 = vpack.c.bf16 %v674_v51, %v674_v51 }
  0x3b   : > { %v1288_v59 = vld [vmem:[#allocation2 + $0x74] sm:$0x1]  ;;  %v1514_v35 = vshll.u32 %v1452_v58, 16  ;;  %v1437_v7 = vld [vmem:[#allocation2 + $0x70] sm:$0xf]  ;;  %v1679_v11 = vor.u32 %v1678_v54, %v7969_v53  ;;  %v7992_v27 = vpack.c.bf16 %v675_v10, %v675_v10  ;;  %v823_v39 = vshll.u32 %v7925_v6, 16 }
  0x3c   : > { %1121 = vst.msk [vmem:[#allocation2 + $0x1c] sm:$0xf] %vm1106_vm8, %v817_v60  ;;  %1124 = vst [vmem:[#allocation2 + $0x20] sm:$0x1] %v1123_v61  ;;  %v1434_v12 = vld [vmem:[#allocation2 + $0x60] sm:$0xf] }
  0x3d   : > { %v1289_v13 = vsel %vm7908_vm10, 0, %v1288_v59  ;;  %v1696_v15 = vshll.u32 %v1437_v7, 16  ;;  %v1700_v18 = vshrl.u32 %v1437_v7, 16  ;;  %1238 = vst.msk [vmem:[#allocation2 + $0x1c] sm:$0xf] %vm1223_vm12, %v10692_v2  ;;  %v1497_v19 = vrot.slane %v1495_v1, 4 }
  0x3e   : > { %v1500_v20 = vrot.slane %v1498_v5, 5  ;;  %v1516_v21 = vrot.slane %v1514_v35, 5  ;;  %v1663_v23 = vshrl.u32 %v1434_v12, 16  ;;  %1290 = vst [vmem:[#allocation2 + $0x74] sm:$0x1] %v1289_v13  ;;  %v1666_v25 = vshll.u32 %v1434_v12, 16 }
  0x3f   : > { %v1459_v24 = vld [vmem:[#allocation2 + $0x68] sm:$0x1]  ;;  %v7990_v34 = vrot.slane %v1696_v15, 5  ;;  %v1702_v26 = vrot.slane %v1700_v18, 4  ;;  %v1680_v31 = vrot.slane %v1679_v11, 4  ;;  %v826_v47 = vrot.slane %v7964_v49, 4 }
  0x40   : > { %v1501_v29 = vor.u32 %v1500_v20, %v1497_v19  ;;  %v1665_v30 = vrot.slane %v1663_v23, 4  ;;  %v1682_v32 = vshll.u32 %v1459_v24, 16  ;;  %v1517_v33 = vsel %vm7879_vm7, %v7967_v52, %v1516_v21  ;;  %v1235_v38 = vld [vmem:[#allocation2 + $0x18] sm:$0xf]  ;;  %v1125_v1 = vld [vmem:[#allocation2 + $0x24] sm:$0xf] }
  0x41   : > { %v1668_v36 = vrot.slane %v1666_v25, 5  ;;  %v1703_v37 = vor.u32 %v1702_v26, %v7990_v34  ;;  %v1436_v45 = vld [vmem:[#allocation2 + $0x6c] sm:$0xf]  ;;  %v1236_v46 = vsel %vm7900_vm9, 0, %v1235_v38  ;;  %v825_v61 = vor.u32 %v823_v39, %v7964_v49  ;;  %v575_v5 = vld [vmem:[#allocation2 + $0x78] sm:$0x1] }
  0x42   : > { %v1502_v41 = vrot.slane %v1501_v29, 4  ;;  %v1684_v44 = vrot.slane %v1682_v32, 5  ;;  %v1687_v54 = vshrl.u32 %v1436_v45, 16  ;;  %v1690_v55 = vshll.u32 %v1436_v45, 16  ;;  %1237 = vst [vmem:[#allocation2 + $0x18] sm:$0xf] %v1236_v46 }
  0x43   : > { %v1669_v51 = vor.u32 %v1668_v36, %v1665_v30  ;;  %v1704_v57 = vrot.slane %v1703_v37, 4  ;;  %v1239_v52 = vld [vmem:[#allocation2 + $0x20] sm:$0x1]  ;;  %v828_v18 = vshrl.u32 %v7977_v62, 16  ;;  %v831_v23 = vshll.u32 %v7977_v62, 16 }
  0x44   : > { %v1507_v58 = vsel %vm7879_vm7, %v1502_v41, %v7950_v22  ;;  %v1685_v6 = vsel %vm7879_vm7, %v1680_v31, %v1684_v44  ;;  %v1240_v59 = vsel %vm7908_vm10, 0, %v1239_v52  ;;  %v1423_v60 = vld [vmem:[#allocation2 + $0x1c] sm:$0xf]  ;;  %v1689_v12 = vrot.slane %v1687_v54, 4  ;;  %v631_v19 = vld [vmem:[#allocation2 + $0x80] sm:$0x1] }
  0x45   : > { %v6569_v35 = vcombine.low %v1507_v58, %v1517_v33  ;;  %v1670_v7 = vrot.slane %v1669_v51, 4  ;;  %v1460_v10 = vld [vmem:[#allocation2 + $0x74] sm:$0x1]  ;;  %v1692_v11 = vrot.slane %v1690_v55, 5  ;;  %1241 = vst [vmem:[#allocation2 + $0x20] sm:$0x1] %v1240_v59  ;;  %v1126_v24 = vsel %vm7852_vm15, %v825_v61, %v1125_v1 }
  0x46   : > { %v1706_v13 = vshll.u32 %v1460_v10, 16  ;;  %v1528_v15 = vshll.u32 %v1423_v60, 16  ;;  %v1532_v22 = vshrl.u32 %v1423_v60, 16  ;;  %1127 = vst [vmem:[#allocation2 + $0x24] sm:$0xf] %v1126_v24  ;;  %v830_v32 = vrot.slane %v828_v18, 7 }
  0x47   : > { %7270 = vmatmul.mubr.msk.bf16.vlgmr.msra.gmra.mxu0 %vm1904_vm2, %v6569_v35  ;;  %v1675_v20 = vsel %vm7879_vm7, %v1670_v7, %v7969_v53  ;;  %v1693_v21 = vor.u32 %v1692_v11, %v1689_v12  ;;  %v576_v33 = vsel %vm7783_vm5, 0, %v575_v5  ;;  %v632_v53 = vsel %vm7790_vm6, 0, %v631_v19  ;;  %v1129_v46 = vld [vmem:[#allocation2 + $0x2c] sm:$0x1]  ;;  %v578_v51 = vld [vmem:[#allocation2 + $0x84] sm:$0x1] }
  0x48   : > { %v6576_v25 = vcombine.low %v1675_v20, %v1685_v6  ;;  %v1708_v26 = vrot.slane %v1706_v13, 5  ;;  %7336 = vmatpush3.bf16.msra.mxu0 %v7944_v17  ;;  %v8019_v29 = vrot.slane %v1528_v15, 5  ;;  %v1534_v30 = vrot.slane %v1532_v22, 4  ;;  %577 = vst [vmem:[#allocation2 + $0x78] sm:$0x1] %v576_v33  ;;  %v676_v61 = vld [vmem:[%s7812_s16 + $0xa8] sm:$0xff] }
  0x49   : > { %v1694_v31 = vrot.slane %v1693_v21, 4  ;;  %v1422_v36 = vld [vmem:[#allocation2 + $0x18] sm:$0xf]  ;;  %633 = vst [vmem:[#allocation2 + $0x80] sm:$0x1] %v632_v53  ;;  %v939_v37 = vshrl.u32 %v7979_v0, 16  ;;  %v833_v45 = vor.u32 %v831_v23, %v830_v32  ;;  %v6972_v20 = vpack.c.bf16 %v676_v61, %v676_v61 }
  0x4a   : > { %7285 = vmatprep.mubr.msk.bf16.mxu1 %vm1904_vm2, %v6576_v25  ;;  %v1709_v62 = vsel %vm7879_vm7, %v1704_v57, %v1708_v26  ;;  %v1535_v17 = vor.u32 %v1534_v30, %v8019_v29  ;;  %v942_v38 = vshll.u32 %v7979_v0, 16  ;;  %v1519_v41 = vshrl.u32 %v1422_v36, 16  ;;  %v661_v10 = vld [vmem:[%s7812_s16 + $0x30] sm:$0xff]  ;;  %v6681_v49 = vld [vmem:[%s10685_s3 + $0xc] sm:$0xf] }
  0x4b   : > { %v1699_v39 = vsel %vm7879_vm7, %v1694_v31, %v7990_v34  ;;  %v1522_v44 = vshll.u32 %v1422_v36, 16  ;;  %v835_v52 = vrot.slane %v830_v32, 4  ;;  %v941_v58 = vrot.slane %v939_v37, 7  ;;  %v634_v34 = vld [vmem:[#allocation2 + $0x8c] sm:$0x1]  ;;  %v662_v36 = vld [vmem:[%s7812_s16 + $0x38] sm:$0xff] }
  0x4c   : > { %v6577_v54 = vcombine.low %v1699_v39, %v1709_v62  ;;  %v1453_v55 = vld [vmem:[#allocation2 + $0x20] sm:$0x1]  ;;  %v1536_v57 = vrot.slane %v1535_v17, 4  ;;  %v1521_v6 = vrot.slane %v1519_v41, 4  ;;  %v834_v0 = vsel %vm7844_vm13, %v826_v47, %v833_v45  ;;  %v557_v22 = vld [vmem:[#allocation2 + $0x30] sm:$0x1] }
  0x4d   : > { %v1524_v59 = vrot.slane %v1522_v44, 5  ;;  %v1538_v60 = vshll.u32 %v1453_v55, 16  ;;  %1128 = vst.msk [vmem:[#allocation2 + $0x28] sm:$0xf] %vm1106_vm8, %v834_v0  ;;  %v1130_v1 = vsel %vm7860_vm1, %v835_v52, %v1129_v46  ;;  %v944_v5 = vor.u32 %v942_v38, %v941_v58  ;;  %v1242_v11 = vld [vmem:[#allocation2 + $0x24] sm:$0xf] }
  0x4e   : > { %7286 = vmatmul.mubr.msk.bf16.vlgmr.msra.gmra.mxu1 %vm1904_vm2, %v6577_v54  ;;  %v945_v35 = vrot.slane %v941_v58, 4  ;;  %v947_v7 = vshrl.u32 %v7982_v9, 16  ;;  %1131 = vst [vmem:[#allocation2 + $0x2c] sm:$0x1] %v1130_v1  ;;  %1245 = vst.msk [vmem:[#allocation2 + $0x28] sm:$0xf] %vm1223_vm12, %v10692_v2  ;;  %v6957_v31 = vpack.c.bf16 %v661_v10, %v661_v10 }
  0x4f   : > { %7302 = vmatpush3.bf16.msra.mxu1 %v7840_v42  ;;  %v1525_v47 = vor.u32 %v1524_v59, %v1521_v6  ;;  %v1540_v12 = vrot.slane %v1538_v60, 5  ;;  %v950_v13 = vshll.u32 %v7982_v9, 16  ;;  %v579_v15 = vsel %vm7783_vm5, 0, %v578_v51  ;;  %v613_v21 = vld [vmem:[#allocation2 + $0x38] sm:$0x1]  ;;  %v663_v41 = vld [vmem:[%s7812_s16 + $0x40] sm:$0xff] }
  0x50   : > { %v1243_v18 = vsel %vm7900_vm9, 0, %v1242_v11  ;;  %v949_v19 = vrot.slane %v947_v7, 7  ;;  %580 = vst [vmem:[#allocation2 + $0x84] sm:$0x1] %v579_v15  ;;  %v635_v42 = vsel %vm7790_vm6, 0, %v634_v34  ;;  %7579 = vmatprep.subr.msk.bf16.mxu1 %vm1953_vm0, %v6681_v49  ;;  %v956_v30 = vshrl.u32 %v7992_v27, 16 }
  0x51   : > { %v6714_v9 = vld [vmem:[%s10685_s3 + $0x10] sm:$0xf]  ;;  %v1526_v23 = vrot.slane %v1525_v47, 4  ;;  %v1541_v24 = vsel %vm7879_vm7, %v1536_v57, %v1540_v12  ;;  %1244 = vst [vmem:[#allocation2 + $0x24] sm:$0xf] %v1243_v18  ;;  %v959_v62 = vshll.u32 %v7992_v27, 16  ;;  %v8087_v6 = vpack.c.bf16 %v662_v36, %v662_v36 }
  0x52   : > { %v1174_v25 = vld [vmem:[#allocation2 + $0x78] sm:$0xf]  ;;  %v1178_v26 = vld [vmem:[#allocation2 + $0x80] sm:$0x1]  ;;  %636 = vst [vmem:[#allocation2 + $0x8c] sm:$0x1] %v635_v42  ;;  %7580 = vmatprep.subr.msk.bf16.mxu0 %vm1953_vm0, %v6714_v9  ;;  %v952_v32 = vor.u32 %v950_v13, %v949_v19  ;;  %v8089_v0 = vpack.c.bf16 %v663_v41, %v663_v41 }
  0x53   : > { %v954_v33 = vrot.slane %v949_v19, 4  ;;  %v1175_v53 = vsel %vm7852_vm15, %v944_v5, %v1174_v25  ;;  %v1531_v17 = vsel %vm7879_vm7, %v1526_v23, %v8019_v29  ;;  %v958_v37 = vrot.slane %v956_v30, 7  ;;  %v664_v57 = vld [vmem:[%s7812_s16 + $0x48] sm:$0xff]  ;;  %v560_v19 = vld [vmem:[#allocation2 + $0x3c] sm:$0x1]  ;;  %v677_v42 = vld [vmem:[%s7812_s16 + $0xb0] sm:$0xff] }
  0x54   : > { %1176 = vst [vmem:[#allocation2 + $0x78] sm:$0xf] %v1175_v53  ;;  %v964_v38 = vshrl.u32 %v6972_v20, 16  ;;  %v967_v39 = vshll.u32 %v6972_v20, 16  ;;  %v6570_v44 = vcombine.low %v1531_v17, %v1541_v24  ;;  %v953_v45 = vsel %vm7844_vm13, %v945_v35, %v952_v32  ;;  %v678_v20 = vld [vmem:[%s7812_s16 + $0xb8] sm:$0xff] }
  0x55   : > { %v1179_v46 = vsel %vm7860_vm1, %v954_v33, %v1178_v26  ;;  %v558_v27 = vsel %vm7783_vm5, 0, %v557_v22  ;;  %1177 = vst.msk [vmem:[#allocation2 + $0x7c] sm:$0xf] %vm1106_vm8, %v953_v45  ;;  %v961_v29 = vor.u32 %v959_v62, %v958_v37  ;;  %v962_v51 = vrot.slane %v958_v37, 4  ;;  %v1246_v52 = vld [vmem:[#allocation2 + $0x2c] sm:$0x1] }
  0x56   : > { %1180 = vst [vmem:[#allocation2 + $0x80] sm:$0x1] %v1179_v46  ;;  %v966_v54 = vrot.slane %v964_v38, 7  ;;  %559 = vst [vmem:[#allocation2 + $0x30] sm:$0x1] %v558_v27  ;;  %v614_v55 = vsel %vm7790_vm6, 0, %v613_v21  ;;  %7273 = vmatprep.mubr.msk.bf16.mxu0 %vm1904_vm2, %v6570_v44  ;;  %v8097_v11 = vpack.c.bf16 %v664_v57, %v664_v57  ;;  %v8117_v37 = vpack.c.bf16 %v677_v42, %v677_v42 }
  0x57   : > { %v1425_v58 = vld [vmem:[#allocation2 + $0x28] sm:$0xf]  ;;  %1294 = vst.msk [vmem:[#allocation2 + $0x7c] sm:$0xf] %vm1223_vm12, %v10692_v2  ;;  %615 = vst [vmem:[#allocation2 + $0x38] sm:$0x1] %v614_v55  ;;  %v8119_v38 = vpack.c.bf16 %v678_v20, %v678_v20 }
  0x58   : > { %v837_v59 = vshrl.u32 %v6957_v31, 16  ;;  %v840_v60 = vshll.u32 %v6957_v31, 16  ;;  %v1247_v34 = vsel %vm7908_vm10, 0, %v1246_v52  ;;  %v1552_v61 = vshll.u32 %v1425_v58, 16  ;;  %v1181_v35 = vld [vmem:[#allocation2 + $0x84] sm:$0xf] }
  0x59   : > { %v1556_v1 = vshrl.u32 %v1425_v58, 16  ;;  %v969_v5 = vor.u32 %v967_v39, %v966_v54  ;;  %1248 = vst [vmem:[#allocation2 + $0x2c] sm:$0x1] %v1247_v34  ;;  %v1424_v7 = vld [vmem:[#allocation2 + $0x24] sm:$0xf]  ;;  %v971_v10 = vrot.slane %v966_v54, 4  ;;  %v1182_v49 = vsel %vm7852_vm15, %v961_v29, %v1181_v35 }
  0x5a   : > { %v1185_v47 = vld [vmem:[#allocation2 + $0x8c] sm:$0x1]  ;;  %v8095_v12 = vrot.slane %v837_v59, 7  ;;  %v1543_v13 = vshrl.u32 %v1424_v7, 16  ;;  %v1546_v15 = vshll.u32 %v1424_v7, 16  ;;  %v8099_v22 = vrot.slane %v1552_v61, 5 }
  0x5b   : > { %v1558_v18 = vrot.slane %v1556_v1, 4  ;;  %1183 = vst [vmem:[#allocation2 + $0x84] sm:$0xf] %v1182_v49  ;;  %v1291_v21 = vld [vmem:[#allocation2 + $0x78] sm:$0xf]  ;;  %v970_v9 = vsel %vm7844_vm13, %v962_v51, %v969_v5  ;;  %v1186_v23 = vsel %vm7860_vm1, %v971_v10, %v1185_v47  ;;  %v845_v62 = vshrl.u32 %v8087_v6, 16 }
  0x5c   : > { %v842_v24 = vor.u32 %v840_v60, %v8095_v12  ;;  %v843_v25 = vrot.slane %v8095_v12, 4  ;;  %v616_v26 = vld [vmem:[#allocation2 + $0x44] sm:$0x1]  ;;  %v1545_v30 = vrot.slane %v1543_v13, 4  ;;  %v1548_v31 = vrot.slane %v1546_v15, 5 }
  0x5d   : > { %v1559_v32 = vor.u32 %v1558_v18, %v8099_v22  ;;  %v1292_v33 = vsel %vm7900_vm9, 0, %v1291_v21  ;;  %1184 = vst.msk [vmem:[#allocation2 + $0x88] sm:$0xf] %vm1106_vm8, %v970_v9  ;;  %1187 = vst [vmem:[#allocation2 + $0x8c] sm:$0x1] %v1186_v23  ;;  %v848_v36 = vshll.u32 %v8087_v6, 16 }
  0x5e   : > { %1293 = vst [vmem:[#allocation2 + $0x78] sm:$0xf] %v1292_v33  ;;  %v1295_v53 = vld [vmem:[#allocation2 + $0x80] sm:$0x1]  ;;  %1301 = vst.msk [vmem:[#allocation2 + $0x88] sm:$0xf] %vm1223_vm12, %v10692_v2  ;;  %v1549_v39 = vor.u32 %v1548_v31, %v1545_v30 }
  0x5f   : > { %v1132_v17 = vld [vmem:[#allocation2 + $0x30] sm:$0xf]  ;;  %v1560_v41 = vrot.slane %v1559_v32, 4  ;;  %v1296_v44 = vsel %vm7908_vm10, 0, %v1295_v53  ;;  %v1439_v45 = vld [vmem:[#allocation2 + $0x7c] sm:$0xf] }
  0x60   : > { %v1133_v46 = vsel %vm7852_vm15, %v842_v24, %v1132_v17  ;;  %1297 = vst [vmem:[#allocation2 + $0x80] sm:$0x1] %v1296_v44  ;;  %v1720_v27 = vshll.u32 %v1439_v45, 16  ;;  %v1724_v29 = vshrl.u32 %v1439_v45, 16  ;;  %v847_v51 = vrot.slane %v845_v62, 7  ;;  %v679_v47 = vld [vmem:[%s7812_s16 + $0xc0] sm:$0xff] }
  0x61   : > { %1134 = vst [vmem:[#allocation2 + $0x30] sm:$0xf] %v1133_v46  ;;  %v1136_v54 = vld [vmem:[#allocation2 + $0x38] sm:$0x1]  ;;  %v561_v55 = vsel %vm7783_vm5, 0, %v560_v19  ;;  %v1550_v52 = vrot.slane %v1549_v39, 4  ;;  %v8159_v17 = vpack.c.bf16 %v679_v47, %v679_v47 }
  0x62   : > { %v8127_v57 = vld [vmem:[#allocation2 + $0x2c] sm:$0x1]  ;;  %562 = vst [vmem:[#allocation2 + $0x3c] sm:$0x1] %v561_v55  ;;  %v617_v58 = vsel %vm7790_vm6, 0, %v616_v26  ;;  %v854_v6 = vshrl.u32 %v8089_v0, 16  ;;  %v850_v5 = vor.u32 %v848_v36, %v847_v51 }
  0x63   : > { %v857_v59 = vshll.u32 %v8089_v0, 16  ;;  %v1562_v60 = vshll.u32 %v8127_v57, 16  ;;  %v8134_v34 = vrot.slane %v1720_v27, 5  ;;  %v1726_v61 = vrot.slane %v1724_v29, 4  ;;  %v1298_v1 = vld [vmem:[#allocation2 + $0x84] sm:$0xf] }
  0x64   : > { %618 = vst [vmem:[#allocation2 + $0x44] sm:$0x1] %v617_v58  ;;  %v1555_v35 = vsel %vm7879_vm7, %v1550_v52, %v8099_v22  ;;  %v1299_v7 = vsel %vm7900_vm9, 0, %v1298_v1  ;;  %v852_v10 = vrot.slane %v847_v51, 4  ;;  %v8141_v49 = vrot.slane %v854_v6, 7 }
  0x65   : > { %v1564_v0 = vrot.slane %v1562_v60, 5  ;;  %v1727_v12 = vor.u32 %v1726_v61, %v8134_v34  ;;  %1300 = vst [vmem:[#allocation2 + $0x84] sm:$0xf] %v1299_v7  ;;  %v1302_v13 = vld [vmem:[#allocation2 + $0x8c] sm:$0x1]  ;;  %v851_v15 = vsel %vm7844_vm13, %v843_v25, %v850_v5  ;;  %v862_v18 = vshrl.u32 %v8097_v11, 16 }
  0x66   : > { %v1438_v19 = vld [vmem:[#allocation2 + $0x78] sm:$0xf]  ;;  %v1303_v22 = vsel %vm7908_vm10, 0, %v1302_v13  ;;  %v1441_v42 = vld [vmem:[#allocation2 + $0x88] sm:$0xf]  ;;  %v1137_v20 = vsel %vm7860_vm1, %v852_v10, %v1136_v54  ;;  %v859_v21 = vor.u32 %v857_v59, %v8141_v49  ;;  %v860_v9 = vrot.slane %v8141_v49, 4 }
  0x67   : > { %1135 = vst.msk [vmem:[#allocation2 + $0x34] sm:$0xf] %vm1106_vm8, %v851_v15  ;;  %v581_v23 = vld [vmem:[#allocation2 + $0x90] sm:$0x1]  ;;  %v1565_v24 = vsel %vm7879_vm7, %v1560_v41, %v1564_v0  ;;  %v1711_v25 = vshrl.u32 %v1438_v19, 16  ;;  %v1714_v26 = vshll.u32 %v1438_v19, 16 }
  0x68   : > { %v1728_v30 = vrot.slane %v1727_v12, 4  ;;  %1304 = vst [vmem:[#allocation2 + $0x8c] sm:$0x1] %v1303_v22  ;;  %1138 = vst [vmem:[#allocation2 + $0x38] sm:$0x1] %v1137_v20  ;;  %v6571_v32 = vcombine.low %v1555_v35, %v1565_v24  ;;  %v1744_v53 = vshll.u32 %v1441_v42, 16 }
  0x69   : > { %1252 = vst.msk [vmem:[#allocation2 + $0x34] sm:$0xf] %vm1223_vm12, %v10692_v2  ;;  %v637_v31 = vld [vmem:[#allocation2 + $0x98] sm:$0x1]  ;;  %v1461_v33 = vld [vmem:[#allocation2 + $0x80] sm:$0x1] }
  0x6a   : > { %v1748_v62 = vshrl.u32 %v1441_v42, 16  ;;  %v1249_v36 = vld [vmem:[#allocation2 + $0x30] sm:$0xf]  ;;  %v1713_v39 = vrot.slane %v1711_v25, 4  ;;  %v1716_v44 = vrot.slane %v1714_v26, 5  ;;  %v1730_v45 = vshll.u32 %v1461_v33, 16  ;;  %7274 = vmatmul.mubr.msk.bf16.gmra.mxu0 %vm1904_vm2, %v6571_v32 }
  0x6b   : > { %v1250_v41 = vsel %vm7900_vm9, 0, %v1249_v36  ;;  %v1139_v46 = vld [vmem:[#allocation2 + $0x3c] sm:$0xf]  ;;  %v8164_v27 = vrot.slane %v1744_v53, 5  ;;  %v864_v51 = vrot.slane %v862_v18, 7  ;;  %v865_v54 = vshll.u32 %v8097_v11, 16 }
  0x6c   : > { %v1750_v29 = vrot.slane %v1748_v62, 4  ;;  %1251 = vst [vmem:[#allocation2 + $0x30] sm:$0xf] %v1250_v41  ;;  %v1717_v55 = vor.u32 %v1716_v44, %v1713_v39  ;;  %v1732_v52 = vrot.slane %v1730_v45, 5  ;;  %v1140_v58 = vsel %vm7852_vm15, %v859_v21, %v1139_v46  ;;  %v1143_v6 = vld [vmem:[#allocation2 + $0x44] sm:$0x1] }
  0x6d   : > { %v582_v59 = vsel %vm7783_vm5, 0, %v581_v23  ;;  %v1440_v60 = vld [vmem:[#allocation2 + $0x84] sm:$0xf]  ;;  %v867_v1 = vor.u32 %v865_v54, %v864_v51  ;;  %v869_v5 = vrot.slane %v864_v51, 4  ;;  %1141 = vst [vmem:[#allocation2 + $0x3c] sm:$0xf] %v1140_v58 }
  0x6e   : > { %v1751_v61 = vor.u32 %v1750_v29, %v8164_v27  ;;  %583 = vst [vmem:[#allocation2 + $0x90] sm:$0x1] %v582_v59  ;;  %v638_v35 = vsel %vm7790_vm6, 0, %v637_v31  ;;  %v1718_v11 = vrot.slane %v1717_v55, 4  ;;  %v1733_v7 = vsel %vm7879_vm7, %v1728_v30, %v1732_v52  ;;  %v584_v39 = vld [vmem:[#allocation2 + $0x9c] sm:$0x1] }
  0x6f   : > { %v1735_v10 = vshrl.u32 %v1440_v60, 16  ;;  %v1738_v49 = vshll.u32 %v1440_v60, 16  ;;  %639 = vst [vmem:[#allocation2 + $0x98] sm:$0x1] %v638_v35  ;;  %v1462_v47 = vld [vmem:[#allocation2 + $0x8c] sm:$0x1]  ;;  %v868_v13 = vsel %vm7844_vm13, %v860_v9, %v867_v1  ;;  %v1144_v15 = vsel %vm7860_vm1, %v869_v5, %v1143_v6 }
  0x70   : > { %v1752_v0 = vrot.slane %v1751_v61, 4  ;;  %v1253_v12 = vld [vmem:[#allocation2 + $0x38] sm:$0x1]  ;;  %v973_v18 = vshrl.u32 %v8117_v37, 16  ;;  %v1723_v19 = vsel %vm7879_vm7, %v1718_v11, %v8134_v34  ;;  %v1754_v20 = vshll.u32 %v1462_v47, 16  ;;  %v680_v6 = vld [vmem:[%s7812_s16 + $0xc8] sm:$0xff] }
  0x71   : > { %v1737_v22 = vrot.slane %v1735_v10, 4  ;;  %v1740_v42 = vrot.slane %v1738_v49, 5  ;;  %v8184_v21 = vld [vmem:[#allocation2 + $0x34] sm:$0xf]  ;;  %1142 = vst.msk [vmem:[#allocation2 + $0x40] sm:$0xf] %vm1106_vm8, %v868_v13  ;;  %v6578_v23 = vcombine.low %v1723_v19, %v1733_v7 }
  0x72   : > { %1145 = vst [vmem:[#allocation2 + $0x44] sm:$0x1] %v1144_v15  ;;  %v1254_v9 = vsel %vm7908_vm10, 0, %v1253_v12  ;;  %v1576_v24 = vshll.u32 %v8184_v21, 16  ;;  %v1580_v25 = vshrl.u32 %v8184_v21, 16  ;;  %v1756_v26 = vrot.slane %v1754_v20, 5 }
  0x73   : > { %1259 = vst.msk [vmem:[#allocation2 + $0x40] sm:$0xf] %vm1223_vm12, %v10692_v2  ;;  %v1741_v34 = vor.u32 %v1740_v42, %v1737_v22  ;;  %1255 = vst [vmem:[#allocation2 + $0x38] sm:$0x1] %v1254_v9  ;;  %v8193_v30 = vld [vmem:[#allocation2 + $0x30] sm:$0xf]  ;;  %7289 = vmatprep.mubr.msk.bf16.mxu1 %vm1904_vm2, %v6578_v23  ;;  %v6976_v12 = vpack.c.bf16 %v680_v6, %v680_v6 }
  0x74   : > { %v975_v31 = vrot.slane %v973_v18, 7  ;;  %v976_v32 = vshll.u32 %v8117_v37, 16  ;;  %v1567_v33 = vshrl.u32 %v8193_v30, 16  ;;  %v1570_v53 = vshll.u32 %v8193_v30, 16  ;;  %v1256_v41 = vld [vmem:[#allocation2 + $0x3c] sm:$0xf] }
  0x75   : > { %v8199_v62 = vrot.slane %v1576_v24, 5  ;;  %v1582_v36 = vrot.slane %v1580_v25, 4  ;;  %v1742_v44 = vrot.slane %v1741_v34, 4  ;;  %v1757_v45 = vsel %vm7879_vm7, %v1752_v0, %v1756_v26  ;;  %v1188_v51 = vld [vmem:[#allocation2 + $0x90] sm:$0xf] }
  0x76   : > { %v978_v46 = vor.u32 %v976_v32, %v975_v31  ;;  %v979_v29 = vrot.slane %v975_v31, 4  ;;  %v1569_v37 = vrot.slane %v1567_v33, 4  ;;  %v1572_v54 = vrot.slane %v1570_v53, 5  ;;  %v640_v58 = vld [vmem:[#allocation2 + $0xa4] sm:$0x1] }
  0x77   : > { %v1583_v55 = vor.u32 %v1582_v36, %v8199_v62  ;;  %v1257_v52 = vsel %vm7900_vm9, 0, %v1256_v41  ;;  %v1747_v59 = vsel %vm7879_vm7, %v1742_v44, %v8164_v27  ;;  %v981_v60 = vshrl.u32 %v8119_v38, 16  ;;  %v1192_v10 = vld [vmem:[#allocation2 + $0x98] sm:$0x1]  ;;  %v563_v36 = vld [vmem:[#allocation2 + $0x48] sm:$0x1] }
  0x78   : > { %1258 = vst [vmem:[#allocation2 + $0x3c] sm:$0xf] %v1257_v52  ;;  %v984_v61 = vshll.u32 %v8119_v38, 16  ;;  %v1189_v1 = vsel %vm7852_vm15, %v978_v46, %v1188_v51  ;;  %v6579_v5 = vcombine.low %v1747_v59, %v1757_v45  ;;  %v1573_v35 = vor.u32 %v1572_v54, %v1569_v37  ;;  %v619_v41 = vld [vmem:[#allocation2 + $0x50] sm:$0x1] }
  0x79   : > { %v1584_v11 = vrot.slane %v1583_v55, 4  ;;  %v1260_v7 = vld [vmem:[#allocation2 + $0x44] sm:$0x1]  ;;  %1190 = vst [vmem:[#allocation2 + $0x90] sm:$0xf] %v1189_v1  ;;  %v585_v49 = vsel %vm7783_vm5, 0, %v584_v39 }
  0x7a   : > { %v1261_v27 = vsel %vm7908_vm10, 0, %v1260_v7  ;;  %v8218_v47 = vld [vmem:[#allocation2 + $0x40] sm:$0xf]  ;;  %v983_v0 = vrot.slane %v981_v60, 7  ;;  %586 = vst [vmem:[#allocation2 + $0x9c] sm:$0x1] %v585_v49  ;;  %7290 = vmatmul.mubr.msk.bf16.gmra.mxu1 %vm1904_vm2, %v6579_v5 }
  0x7b   : > { %v641_v38 = vsel %vm7790_vm6, 0, %v640_v58  ;;  %v8223_v13 = vld [vmem:[#allocation2 + $0x38] sm:$0x1]  ;;  %v1574_v15 = vrot.slane %v1573_v35, 4  ;;  %1262 = vst [vmem:[#allocation2 + $0x44] sm:$0x1] %v1261_v27 }
  0x7c   : > { %v1600_v18 = vshll.u32 %v8218_v47, 16  ;;  %v1604_v19 = vshrl.u32 %v8218_v47, 16  ;;  %642 = vst [vmem:[#allocation2 + $0xa4] sm:$0x1] %v641_v38  ;;  %v990_v22 = vshrl.u32 %v8159_v17, 16  ;;  %v1586_v42 = vshll.u32 %v8223_v13, 16 }
  0x7d   : > { %v986_v20 = vor.u32 %v984_v61, %v983_v0  ;;  %v988_v23 = vrot.slane %v983_v0, 4  ;;  %v993_v9 = vshll.u32 %v8159_v17, 16  ;;  %v1579_v24 = vsel %vm7879_vm7, %v1574_v15, %v8199_v62  ;;  %v665_v55 = vld [vmem:[%s7812_s16 + $0x50] sm:$0xff]  ;;  %v666_v1 = vld [vmem:[%s7812_s16 + $0x58] sm:$0xff] }
  0x7e   : > { %v8233_v25 = vrot.slane %v1600_v18, 5  ;;  %v1606_v34 = vrot.slane %v1604_v19, 4  ;;  %v992_v26 = vrot.slane %v990_v22, 7  ;;  %v1588_v31 = vrot.slane %v1586_v42, 5  ;;  %v566_v52 = vld [vmem:[#allocation2 + $0x54] sm:$0x1] }
  0x7f   : > { %v987_v32 = vsel %vm7844_vm13, %v979_v29, %v986_v20  ;;  %v1193_v33 = vsel %vm7860_vm1, %v988_v23, %v1192_v10  ;;  %v998_v53 = vshrl.u32 %v6976_v12, 16  ;;  %v8239_v39 = vld [vmem:[#allocation2 + $0x3c] sm:$0xf]  ;;  %v1001_v45 = vshll.u32 %v6976_v12, 16  ;;  %v667_v20 = vld [vmem:[%s7812_s16 + $0x60] sm:$0xff] }
  0x80   : > { %v1607_v17 = vor.u32 %v1606_v34, %v8233_v25  ;;  %1191 = vst.msk [vmem:[#allocation2 + $0x94] sm:$0xf] %vm1106_vm8, %v987_v32  ;;  %1194 = vst [vmem:[#allocation2 + $0x98] sm:$0x1] %v1193_v33  ;;  %v995_v62 = vor.u32 %v993_v9, %v992_v26  ;;  %v996_v44 = vrot.slane %v992_v26, 4  ;;  %v1589_v46 = vsel %vm7879_vm7, %v1584_v11, %v1588_v31  ;;  %v668_v26 = vld [vmem:[%s7812_s16 + $0x68] sm:$0xff] }
  0x81   : > { %v1591_v29 = vshrl.u32 %v8239_v39, 16  ;;  %v1594_v51 = vshll.u32 %v8239_v39, 16  ;;  %v1305_v37 = vld [vmem:[#allocation2 + $0x90] sm:$0xf]  ;;  %1308 = vst.msk [vmem:[#allocation2 + $0x94] sm:$0xf] %vm1223_vm12, %v10692_v2  ;;  %v6572_v58 = vcombine.low %v1579_v24, %v1589_v46  ;;  %v6961_v12 = vpack.c.bf16 %v665_v55, %v665_v55 }
  0x82   : > { %v1000_v54 = vrot.slane %v998_v53, 7  ;;  %v1608_v6 = vrot.slane %v1607_v17, 4  ;;  %v1306_v59 = vsel %vm7900_vm9, 0, %v1305_v37  ;;  %v1195_v60 = vld [vmem:[#allocation2 + $0x9c] sm:$0xf]  ;;  %v564_v61 = vsel %vm7783_vm5, 0, %v563_v36 }
  0x83   : > { %v8255_v5 = vld [vmem:[#allocation2 + $0x44] sm:$0x1]  ;;  %v1593_v35 = vrot.slane %v1591_v29, 4  ;;  %v1596_v11 = vrot.slane %v1594_v51, 5  ;;  %1307 = vst [vmem:[#allocation2 + $0x90] sm:$0xf] %v1306_v59  ;;  %7277 = vmatprep.mubr.msk.bf16.mxu0 %vm1904_vm2, %v6572_v58  ;;  %v1196_v27 = vsel %vm7852_vm15, %v995_v62, %v1195_v60  ;;  %v6962_v42 = vpack.c.bf16 %v666_v1, %v666_v1 }
  0x84   : > { %v1003_v7 = vor.u32 %v1001_v45, %v1000_v54  ;;  %v1005_v10 = vrot.slane %v1000_v54, 4  ;;  %565 = vst [vmem:[#allocation2 + $0x48] sm:$0x1] %v564_v61  ;;  %v1610_v49 = vshll.u32 %v8255_v5, 16  ;;  %v1199_v0 = vld [vmem:[#allocation2 + $0xa4] sm:$0x1]  ;;  %v6964_v59 = vpack.c.bf16 %v668_v26, %v668_v26 }
  0x85   : > { %v620_v38 = vsel %vm7790_vm6, 0, %v619_v41  ;;  %v622_v15 = vld [vmem:[#allocation2 + $0x5c] sm:$0x1]  ;;  %v1597_v18 = vor.u32 %v1596_v11, %v1593_v35  ;;  %1197 = vst [vmem:[#allocation2 + $0x9c] sm:$0xf] %v1196_v27  ;;  %v871_v9 = vshrl.u32 %v6961_v12, 16  ;;  %v6963_v41 = vpack.c.bf16 %v667_v20, %v667_v20 }
  0x86   : > { %v1004_v19 = vsel %vm7844_vm13, %v996_v44, %v1003_v7  ;;  %v1200_v22 = vsel %vm7860_vm1, %v1005_v10, %v1199_v0  ;;  %621 = vst [vmem:[#allocation2 + $0x50] sm:$0x1] %v620_v38  ;;  %v1612_v23 = vrot.slane %v1610_v49, 5  ;;  %v874_v24 = vshll.u32 %v6961_v12, 16 }
  0x87   : > { %1198 = vst.msk [vmem:[#allocation2 + $0xa0] sm:$0xf] %vm1106_vm8, %v1004_v19  ;;  %1201 = vst [vmem:[#allocation2 + $0xa4] sm:$0x1] %v1200_v22  ;;  %v567_v34 = vsel %vm7783_vm5, 0, %v566_v52  ;;  %v1598_v31 = vrot.slane %v1597_v18, 4 }
  0x88   : > { %v1309_v32 = vld [vmem:[#allocation2 + $0x98] sm:$0x1]  ;;  %1315 = vst.msk [vmem:[#allocation2 + $0xa0] sm:$0xf] %vm1223_vm12, %v10692_v2  ;;  %v879_v33 = vshrl.u32 %v6962_v42, 16  ;;  %v882_v53 = vshll.u32 %v6962_v42, 16  ;;  %v1613_v17 = vsel %vm7879_vm7, %v1608_v6, %v1612_v23 }
  0x89   : > { %568 = vst [vmem:[#allocation2 + $0x54] sm:$0x1] %v567_v34  ;;  %v623_v36 = vsel %vm7790_vm6, 0, %v622_v15  ;;  %v1310_v62 = vsel %vm7908_vm10, 0, %v1309_v32  ;;  %v8280_v44 = vld [vmem:[#allocation2 + $0x94] sm:$0xf]  ;;  %v1603_v46 = vsel %vm7879_vm7, %v1598_v31, %v8233_v25 }
  0x8a   : > { %v873_v45 = vrot.slane %v871_v9, 7  ;;  %624 = vst [vmem:[#allocation2 + $0x5c] sm:$0x1] %v623_v36  ;;  %1311 = vst [vmem:[#allocation2 + $0x98] sm:$0x1] %v1310_v62  ;;  %v1768_v29 = vshll.u32 %v8280_v44, 16  ;;  %v6573_v54 = vcombine.low %v1603_v46, %v1613_v17 }
  0x8b   : > { %v1772_v51 = vshrl.u32 %v8280_v44, 16  ;;  %v881_v37 = vrot.slane %v879_v33, 7  ;;  %v8287_v55 = vld [vmem:[#allocation2 + $0x90] sm:$0xf]  ;;  %v1146_v6 = vld [vmem:[#allocation2 + $0x48] sm:$0xf] }
  0x8c   : > { %v876_v52 = vor.u32 %v874_v24, %v873_v45  ;;  %v877_v58 = vrot.slane %v873_v45, 4  ;;  %v1759_v60 = vshrl.u32 %v8287_v55, 16  ;;  %v1762_v61 = vshll.u32 %v8287_v55, 16  ;;  %7278 = vmatmul.mubr.msk.bf16.gmra.mxu0 %vm1904_vm2, %v6573_v54  ;;  %v1312_v35 = vld [vmem:[#allocation2 + $0x9c] sm:$0xf]  ;;  %v681_v24 = vld [vmem:[%s7812_s16 + $0xd0] sm:$0xff] }
  0x8d   : > { %v8291_v1 = vrot.slane %v1768_v29, 5  ;;  %v1774_v25 = vrot.slane %v1772_v51, 4  ;;  %v884_v11 = vor.u32 %v882_v53, %v881_v37  ;;  %v886_v7 = vrot.slane %v881_v37, 4  ;;  %v1150_v49 = vld [vmem:[#allocation2 + $0x50] sm:$0x1]  ;;  %v682_v53 = vld [vmem:[%s7812_s16 + $0xd8] sm:$0xff] }
  0x8e   : > { %v1147_v10 = vsel %vm7852_vm15, %v876_v52, %v1146_v6  ;;  %v888_v27 = vshrl.u32 %v6963_v41, 16  ;;  %v1761_v0 = vrot.slane %v1759_v60, 4  ;;  %v1764_v38 = vrot.slane %v1762_v61, 5  ;;  %v1316_v18 = vld [vmem:[#allocation2 + $0xa4] sm:$0x1] }
  0x8f   : > { %v1775_v12 = vor.u32 %v1774_v25, %v8291_v1  ;;  %v1313_v15 = vsel %vm7900_vm9, 0, %v1312_v35  ;;  %1148 = vst [vmem:[#allocation2 + $0x48] sm:$0xf] %v1147_v10  ;;  %v1317_v19 = vsel %vm7908_vm10, 0, %v1316_v18  ;;  %v8301_v22 = vld [vmem:[#allocation2 + $0xa0] sm:$0xf]  ;;  %v885_v42 = vsel %vm7844_vm13, %v877_v58, %v884_v11 }
  0x90   : > { %1314 = vst [vmem:[#allocation2 + $0x9c] sm:$0xf] %v1313_v15  ;;  %v1151_v20 = vsel %vm7860_vm1, %v886_v7, %v1150_v49  ;;  %v890_v23 = vrot.slane %v888_v27, 7  ;;  %v587_v9 = vld [vmem:[#allocation2 + $0xa8] sm:$0x1]  ;;  %v1765_v34 = vor.u32 %v1764_v38, %v1761_v0  ;;  %v1792_v31 = vshll.u32 %v8301_v22, 16 }
  0x91   : > { %v1776_v26 = vrot.slane %v1775_v12, 4  ;;  %1318 = vst [vmem:[#allocation2 + $0xa4] sm:$0x1] %v1317_v19  ;;  %v1796_v32 = vshrl.u32 %v8301_v22, 16  ;;  %1149 = vst.msk [vmem:[#allocation2 + $0x4c] sm:$0xf] %vm1106_vm8, %v885_v42  ;;  %v6977_v35 = vpack.c.bf16 %v681_v24, %v681_v24  ;;  %v6978_v0 = vpack.c.bf16 %v682_v53, %v682_v53 }
  0x92   : > { %1152 = vst [vmem:[#allocation2 + $0x50] sm:$0x1] %v1151_v20  ;;  %v643_v33 = vld [vmem:[#allocation2 + $0xb0] sm:$0x1]  ;;  %v8312_v36 = vld [vmem:[#allocation2 + $0x98] sm:$0x1] }
  0x93   : > { %1266 = vst.msk [vmem:[#allocation2 + $0x4c] sm:$0xf] %vm1223_vm12, %v10692_v2  ;;  %v891_v17 = vshll.u32 %v6963_v41, 16  ;;  %v894_v62 = vrot.slane %v890_v23, 4  ;;  %v896_v45 = vshrl.u32 %v6964_v59, 16  ;;  %v899_v46 = vshll.u32 %v6964_v59, 16 }
  0x94   : > { %v1766_v29 = vrot.slane %v1765_v34, 4  ;;  %v1778_v51 = vshll.u32 %v8312_v36, 16  ;;  %v8317_v37 = vrot.slane %v1792_v31, 5  ;;  %v1798_v54 = vrot.slane %v1796_v32, 4  ;;  %v1153_v52 = vld [vmem:[#allocation2 + $0x54] sm:$0xf] }
  0x95   : > { %v893_v58 = vor.u32 %v891_v17, %v890_v23  ;;  %v898_v6 = vrot.slane %v896_v45, 7  ;;  %v588_v60 = vsel %vm7783_vm5, 0, %v587_v9  ;;  %v644_v61 = vsel %vm7790_vm6, 0, %v643_v33  ;;  %v1157_v27 = vld [vmem:[#allocation2 + $0x5c] sm:$0x1] }
  0x96   : > { %v1771_v41 = vsel %vm7879_vm7, %v1766_v29, %v8291_v1  ;;  %v1780_v59 = vrot.slane %v1778_v51, 5  ;;  %v1799_v25 = vor.u32 %v1798_v54, %v8317_v37  ;;  %589 = vst [vmem:[#allocation2 + $0xa8] sm:$0x1] %v588_v60  ;;  %645 = vst [vmem:[#allocation2 + $0xb0] sm:$0x1] %v644_v61  ;;  %v1007_v18 = vshrl.u32 %v6977_v35, 16 }
  0x97   : > { %v1263_v11 = vld [vmem:[#allocation2 + $0x48] sm:$0xf]  ;;  %v901_v7 = vor.u32 %v899_v46, %v898_v6  ;;  %v903_v10 = vrot.slane %v898_v6, 4  ;;  %v1154_v49 = vsel %vm7852_vm15, %v893_v58, %v1153_v52  ;;  %v8331_v12 = vld [vmem:[#allocation2 + $0x9c] sm:$0xf]  ;;  %v1010_v54 = vshll.u32 %v6977_v35, 16 }
  0x98   : > { %v1781_v38 = vsel %vm7879_vm7, %v1776_v26, %v1780_v59  ;;  %v1800_v1 = vrot.slane %v1799_v25, 4  ;;  %v1264_v15 = vsel %vm7900_vm9, 0, %v1263_v11  ;;  %1155 = vst [vmem:[#allocation2 + $0x54] sm:$0xf] %v1154_v49  ;;  %v8335_v42 = vld [vmem:[#allocation2 + $0xa4] sm:$0x1] }
  0x99   : > { %v6580_v19 = vcombine.low %v1771_v41, %v1781_v38  ;;  %v1783_v20 = vshrl.u32 %v8331_v12, 16  ;;  %v1786_v23 = vshll.u32 %v8331_v12, 16  ;;  %1265 = vst [vmem:[#allocation2 + $0x48] sm:$0xf] %v1264_v15  ;;  %v1267_v9 = vld [vmem:[#allocation2 + $0x50] sm:$0x1]  ;;  %v902_v24 = vsel %vm7844_vm13, %v894_v62, %v901_v7 }
  0x9a   : > { %v590_v34 = vld [vmem:[#allocation2 + $0xb4] sm:$0x1]  ;;  %v1802_v26 = vshll.u32 %v8335_v42, 16  ;;  %v1268_v31 = vsel %vm7908_vm10, 0, %v1267_v9  ;;  %v8344_v32 = vld [vmem:[#allocation2 + $0x4c] sm:$0xf]  ;;  %v1158_v33 = vsel %vm7860_vm1, %v903_v10, %v1157_v27 }
  0x9b   : > { %1156 = vst.msk [vmem:[#allocation2 + $0x58] sm:$0xf] %vm1106_vm8, %v902_v24  ;;  %v1009_v53 = vrot.slane %v1007_v18, 7  ;;  %7293 = vmatprep.mubr.msk.bf16.mxu1 %vm1904_vm2, %v6580_v19  ;;  %v1785_v17 = vrot.slane %v1783_v20, 4  ;;  %v1788_v45 = vrot.slane %v1786_v23, 5  ;;  %v1624_v62 = vshll.u32 %v8344_v32, 16 }
  0x9c   : > { %1269 = vst [vmem:[#allocation2 + $0x50] sm:$0x1] %v1268_v31  ;;  %v1628_v46 = vshrl.u32 %v8344_v32, 16  ;;  %1159 = vst [vmem:[#allocation2 + $0x5c] sm:$0x1] %v1158_v33  ;;  %v1804_v51 = vrot.slane %v1802_v26, 5 }
  0x9d   : > { %1273 = vst.msk [vmem:[#allocation2 + $0x58] sm:$0xf] %vm1223_vm12, %v10692_v2  ;;  %v646_v29 = vld [vmem:[#allocation2 + $0xbc] sm:$0x1]  ;;  %v1013_v52 = vrot.slane %v1009_v53, 4  ;;  %v1015_v58 = vshrl.u32 %v6978_v0, 16  ;;  %v1789_v60 = vor.u32 %v1788_v45, %v1785_v17  ;;  %v1012_v7 = vor.u32 %v1010_v54, %v1009_v53 }
  0x9e   : > { %v683_v6 = vld [vmem:[%s7812_s16 + $0xe0] sm:$0xff]  ;;  %v8355_v61 = vrot.slane %v1624_v62, 5  ;;  %v1630_v41 = vrot.slane %v1628_v46, 4  ;;  %v1018_v59 = vshll.u32 %v6978_v0, 16  ;;  %v1202_v25 = vld [vmem:[#allocation2 + $0xa8] sm:$0xf]  ;;  %v1805_v11 = vsel %vm7879_vm7, %v1800_v1, %v1804_v51 }
  0x9f   : > { %v1017_v10 = vrot.slane %v1015_v58, 7  ;;  %v591_v49 = vsel %vm7783_vm5, 0, %v590_v34  ;;  %v684_v27 = vld [vmem:[%s7812_s16 + $0xe8] sm:$0xff]  ;;  %v1790_v38 = vrot.slane %v1789_v60, 4  ;;  %v1270_v15 = vld [vmem:[#allocation2 + $0x54] sm:$0xf]  ;;  %v6979_v0 = vpack.c.bf16 %v683_v6, %v683_v6 }
  0xa0   : > { %v1631_v35 = vor.u32 %v1630_v41, %v8355_v61  ;;  %v1206_v18 = vld [vmem:[#allocation2 + $0xb0] sm:$0x1]  ;;  %592 = vst [vmem:[#allocation2 + $0xb4] sm:$0x1] %v591_v49  ;;  %v647_v19 = vsel %vm7790_vm6, 0, %v646_v29  ;;  %v1271_v1 = vsel %vm7900_vm9, 0, %v1270_v15  ;;  %v1203_v24 = vsel %vm7852_vm15, %v1012_v7, %v1202_v25 }
  0xa1   : > { %v8365_v20 = vld [vmem:[#allocation2 + $0x48] sm:$0xf]  ;;  %v1020_v23 = vor.u32 %v1018_v59, %v1017_v10  ;;  %v1022_v9 = vrot.slane %v1017_v10, 4  ;;  %648 = vst [vmem:[#allocation2 + $0xbc] sm:$0x1] %v647_v19  ;;  %v1795_v34 = vsel %vm7879_vm7, %v1790_v38, %v8317_v37  ;;  %v6980_v37 = vpack.c.bf16 %v684_v27, %v684_v27 }
  0xa2   : > { %v1615_v26 = vshrl.u32 %v8365_v20, 16  ;;  %v1618_v31 = vshll.u32 %v8365_v20, 16  ;;  %v1632_v33 = vrot.slane %v1631_v35, 4  ;;  %1272 = vst [vmem:[#allocation2 + $0x54] sm:$0xf] %v1271_v1  ;;  %v6581_v53 = vcombine.low %v1795_v34, %v1805_v11 }
  0xa3   : > { %1204 = vst [vmem:[#allocation2 + $0xa8] sm:$0xf] %v1203_v24  ;;  %v8376_v17 = vld [vmem:[#allocation2 + $0x50] sm:$0x1]  ;;  %v1274_v45 = vld [vmem:[#allocation2 + $0x5c] sm:$0x1]  ;;  %v1021_v46 = vsel %vm7844_vm13, %v1013_v52, %v1020_v23  ;;  %v1207_v29 = vsel %vm7860_vm1, %v1022_v9, %v1206_v18 }
  0xa4   : > { %v8378_v62 = vld [vmem:[#allocation2 + $0x58] sm:$0xf]  ;;  %v1617_v51 = vrot.slane %v1615_v26, 4  ;;  %v1620_v54 = vrot.slane %v1618_v31, 5  ;;  %v1634_v58 = vshll.u32 %v8376_v17, 16  ;;  %v1275_v6 = vsel %vm7908_vm10, 0, %v1274_v45  ;;  %7294 = vmatmul.mubr.msk.bf16.gmra.mxu1 %vm1904_vm2, %v6581_v53 }
  0xa5   : > { %1205 = vst.msk [vmem:[#allocation2 + $0xac] sm:$0xf] %vm1106_vm8, %v1021_v46  ;;  %1208 = vst [vmem:[#allocation2 + $0xb0] sm:$0x1] %v1207_v29  ;;  %v1648_v60 = vshll.u32 %v8378_v62, 16  ;;  %v1652_v52 = vshrl.u32 %v8378_v62, 16 }
  0xa6   : > { %1276 = vst [vmem:[#allocation2 + $0x5c] sm:$0x1] %v1275_v6  ;;  %1322 = vst.msk [vmem:[#allocation2 + $0xac] sm:$0xf] %vm1223_vm12, %v10692_v2  ;;  %v1024_v41 = vshrl.u32 %v6979_v0, 16  ;;  %v1027_v59 = vshll.u32 %v6979_v0, 16  ;;  %v1621_v25 = vor.u32 %v1620_v54, %v1617_v51 }
  0xa7   : > { %v1636_v11 = vrot.slane %v1634_v58, 5  ;;  %v1032_v7 = vshrl.u32 %v6980_v37, 16  ;;  %v1035_v10 = vshll.u32 %v6980_v37, 16  ;;  %v2410_v49 = vld [vmem:[#allocation2] sm:$0xe]  ;;  %v8393_v27 = vrot.slane %v1648_v60, 5 }
  0xa8   : > { %v1654_v38 = vrot.slane %v1652_v52, 4  ;;  %v1026_v35 = vrot.slane %v1024_v41, 7  ;;  %vm2458_vm3 = vcmask 1042432   ;;  %v1622_v15 = vrot.slane %v1621_v25, 4  ;;  %v1209_v1 = vld [vmem:[#allocation2 + $0xb4] sm:$0xf] }
  0xa9   : > { %v1637_v18 = vsel %vm7879_vm7, %v1632_v33, %v1636_v11  ;;  %v1034_v19 = vrot.slane %v1032_v7, 7  ;;  %vm2459_vm4 = vcmask 1046532   ;;  %v8397_v23 = vld [vmem:[#allocation2 + $0x54] sm:$0xf]  ;;  %v6632_v26 = vrot.slane %v2410_v49, 9 }
  0xaa   : > { %v1655_v0 = vor.u32 %v1654_v38, %v8393_v27  ;;  %v1319_v9 = vld [vmem:[#allocation2 + $0xa8] sm:$0xf]  ;;  %v1029_v24 = vor.u32 %v1027_v59, %v1026_v35  ;;  %v1030_v34 = vrot.slane %v1026_v35, 4  ;;  %v1627_v31 = vsel %vm7879_vm7, %v1622_v15, %v8355_v61  ;;  %v1213_v46 = vld [vmem:[#allocation2 + $0xbc] sm:$0x1]  ;;  %vm8415_vm11 = vmor %vm2458_vm3, %vm2459_vm4 }
  0xab   : > { %v1639_v53 = vshrl.u32 %v8397_v23, 16  ;;  %v1642_v45 = vshll.u32 %v8397_v23, 16  ;;  %v1320_v33 = vsel %vm7900_vm9, 0, %v1319_v9  ;;  %v6574_v29 = vcombine.low %v1627_v31, %v1637_v18  ;;  %v2411_v6 = vld [vmem:[#allocation2 + $0xc] sm:$0xe] }
  0xac   : > { %v1656_v37 = vrot.slane %v1655_v0, 4  ;;  %1321 = vst [vmem:[#allocation2 + $0xa8] sm:$0xf] %v1320_v33  ;;  %v1323_v51 = vld [vmem:[#allocation2 + $0xb0] sm:$0x1]  ;;  %v1037_v54 = vor.u32 %v1035_v10, %v1034_v19  ;;  %v1039_v58 = vrot.slane %v1034_v19, 4  ;;  %v1210_v59 = vsel %vm7852_vm15, %v1029_v24, %v1209_v1 }
  0xad   : > { %v8407_v60 = vld [vmem:[#allocation2 + $0x5c] sm:$0x1]  ;;  %v1641_v52 = vrot.slane %v1639_v53, 4  ;;  %v1644_v41 = vrot.slane %v1642_v45, 5  ;;  %v1324_v61 = vsel %vm7908_vm10, 0, %v1323_v51  ;;  %7281 = vmatprep.mubr.msk.bf16.mxu0 %vm1904_vm2, %v6574_v29  ;;  %v6633_v31 = vrot.slane %v2411_v6, 9 }
  0xae   : > { %v1658_v11 = vshll.u32 %v8407_v60, 16  ;;  %1325 = vst [vmem:[#allocation2 + $0xb0] sm:$0x1] %v1324_v61  ;;  %v8421_v7 = vld [vmem:[#allocation2 + $0xac] sm:$0xf]  ;;  %v1038_v10 = vsel %vm7844_vm13, %v1030_v34, %v1037_v54  ;;  %v1214_v49 = vsel %vm7860_vm1, %v1039_v58, %v1213_v46  ;;  %v2472_v46 = vrot.slane %v2470_v14, 4 }
  0xaf   : > { %1211 = vst [vmem:[#allocation2 + $0xb4] sm:$0xf] %v1210_v59  ;;  %v8427_v38 = vld [vmem:[#allocation2 + $0x4] sm:$0xf]  ;;  %v7644_v15 = vld [vmem:[#allocation2 + $0x14] sm:$0x1]  ;;  %v1645_v19 = vor.u32 %v1644_v41, %v1641_v52  ;;  %v2471_v52 = vsel %vm8415_vm11, %v6633_v31, %v2470_v14 }
  0xb0   : > { %v2463_v35 = vrot.slane %v8427_v38, 5  ;;  %v2473_v18 = vrot.slane %v7644_v15, 5  ;;  %v1816_v1 = vshll.u32 %v8421_v7, 16  ;;  %v1820_v0 = vshrl.u32 %v8421_v7, 16  ;;  %1212 = vst.msk [vmem:[#allocation2 + $0xb8] sm:$0xf] %vm1106_vm8, %v1038_v10 }
  0xb1   : > { %1215 = vst [vmem:[#allocation2 + $0xbc] sm:$0x1] %v1214_v49  ;;  %v1660_v9 = vrot.slane %v1658_v11, 5  ;;  %1329 = vst.msk [vmem:[#allocation2 + $0xb8] sm:$0xf] %vm1223_vm12, %v10692_v2  ;;  %v1646_v53 = vrot.slane %v1645_v19, 4 }
  0xb2   : > { %v2464_v24 = vsel %vm8415_vm11, %v6632_v26, %v2463_v35  ;;  %v2465_v34 = vrot.slane %v2463_v35, 4  ;;  %v1818_v45 = vrot.slane %v1816_v1, 5  ;;  %v1822_v33 = vrot.slane %v1820_v0, 4  ;;  %v2412_v61 = vld [vmem:[#allocation2 + $0x18] sm:$0xe] }
  0xb3   : > { %v1661_v29 = vsel %vm7879_vm7, %v1656_v37, %v1660_v9  ;;  %v1651_v26 = vsel %vm7879_vm7, %v1646_v53, %v8393_v27  ;;  %v8448_v54 = vld [vmem:[#allocation2 + $0xa8] sm:$0xf]  ;;  %v2413_v59 = vld [vmem:[#allocation2 + $0x24] sm:$0xe]  ;;  %v6634_v0 = vrot.slane %v2412_v61, 9  ;;  %v2547_v40 = vrot.slane %v8280_v44, 5 }
  0xb4   : > { %v2467_v51 = vsel %vm8415_vm11, %v2465_v34, %v2466_v28  ;;  %v1823_v58 = vor.u32 %v1822_v33, %v1818_v45  ;;  %v6575_v41 = vcombine.low %v1651_v26, %v1661_v29  ;;  %v1807_v37 = vshrl.u32 %v8448_v54, 16  ;;  %v8469_v9 = vld [vmem:[#allocation2 + $0x1c] sm:$0xf]  ;;  %v7646_v26 = vld [vmem:[#allocation2 + $0x20] sm:$0x1] }
  0xb5   : > { %v6649_v6 = vcombine.low %v2464_v24, %v2467_v51  ;;  %v1810_v63 = vshll.u32 %v8448_v54, 16  ;;  %v2474_v28 = vsel %vm8415_vm11, %v2472_v46, %v2473_v18  ;;  %v8458_v27 = vld [vmem:[#allocation2 + $0xb0] sm:$0x1]  ;;  %v2477_v24 = vrot.slane %v8469_v9, 5  ;;  %v2414_v46 = vld [vmem:[#allocation2 + $0x30] sm:$0xe] }
  0xb6   : > { %v1824_v11 = vrot.slane %v1823_v58, 4  ;;  %v1326_v10 = vld [vmem:[#allocation2 + $0xb4] sm:$0xf]  ;;  %7282 = vmatmul.mubr.msk.bf16.gmra.mxu0 %vm1904_vm2, %v6575_v41  ;;  %v1809_v8 = vrot.slane %v1807_v37, 4  ;;  %v1826_v14 = vshll.u32 %v8458_v27, 16  ;;  %v6650_v1 = vcombine.low %v2471_v52, %v2474_v28 }
  0xb7   : > { %v1812_v49 = vrot.slane %v1810_v63, 5  ;;  %v1327_v35 = vsel %vm7900_vm9, 0, %v1326_v10  ;;  %7337 = vmatprep.mubr.msk.bf16.mxu0 %vm1904_vm2, %v6649_v6  ;;  %v2478_v29 = vsel %vm8415_vm11, %v6634_v0, %v2477_v24  ;;  %v2479_v51 = vrot.slane %v2477_v24, 4  ;;  %v8482_v61 = vld [vmem:[#allocation2 + $0x28] sm:$0xf] }
  0xb8   : > { %v1330_v15 = vld [vmem:[#allocation2 + $0xbc] sm:$0x1]  ;;  %1328 = vst [vmem:[#allocation2 + $0xb4] sm:$0xf] %v1327_v35  ;;  %v8466_v19 = vld [vmem:[#allocation2 + $0xb8] sm:$0xf] }
  0xb9   : > { %v1331_v18 = vsel %vm7908_vm10, 0, %v1330_v15  ;;  %10732 = vst [vmem:[#allocation10_spill] sm:$0xff] %v8466_v19  ;;  %v1813_v34 = vor.u32 %v1812_v49, %v1809_v8  ;;  %v1828_v31 = vrot.slane %v1826_v14, 5  ;;  %v1840_v53 = vshll.u32 %v8466_v19, 16 }
  0xba   : > { %1332 = vst [vmem:[#allocation2 + $0xbc] sm:$0x1] %v1331_v18  ;;  %v1844_v33 = vshrl.u32 %v8466_v19, 16  ;;  %v2480_v58 = vrot.slane %v7646_v26, 5  ;;  %v6635_v6 = vrot.slane %v2413_v59, 9  ;;  %v2484_v10 = vrot.slane %v8482_v61, 5 }
  0xbb   : > { %v1814_v52 = vrot.slane %v1813_v34, 4  ;;  %v1829_v41 = vsel %vm7879_vm7, %v1824_v11, %v1828_v31  ;;  %v8478_v37 = vrot.slane %v1840_v53, 5  ;;  %v2487_v8 = vrot.slane %v8127_v57, 5  ;;  %v7648_v11 = vld [vmem:[%s10685_s3 + $0x10] sm:$0xf] }
  0xbc   : > { %v1846_v63 = vrot.slane %v1844_v33, 4  ;;  %v2481_v28 = vsel %vm8415_vm11, %v2479_v51, %v2480_v58  ;;  %v6636_v49 = vrot.slane %v2414_v46, 9  ;;  %v3756_v14 = vsel %vm1953_vm0, %v7648_v11, 0  ;;  %v8498_v57 = vld [vmem:[%s10685_s3 + $0x18] sm:$0xf] }
  0xbd   : > { %v1819_v59 = vsel %vm7879_vm7, %v1814_v52, %v1818_v45  ;;  %v6651_v35 = vcombine.low %v2478_v29, %v2481_v28  ;;  %v2491_v15 = vrot.slane %v8184_v21, 5  ;;  %v2486_v24 = vrot.slane %v2484_v10, 4  ;;  %v2416_v28 = vld [vmem:[#allocation2 + $0x48] sm:$0xe] }
  0xbe   : > { %v6582_v18 = vcombine.low %v1819_v59, %v1829_v41  ;;  %v1847_v0 = vor.u32 %v1846_v63, %v8478_v37  ;;  %v2494_v34 = vrot.slane %v8223_v13, 5  ;;  %7338 = vmatmul.mubr.msk.bf16.vlgmr.msra.gmra.mxu0 %vm1904_vm2, %v6650_v1  ;;  %v2485_v31 = vsel %vm8415_vm11, %v6635_v6, %v2484_v10  ;;  %v2415_v1 = vld [vmem:[#allocation2 + $0x3c] sm:$0xe] }
  0xbf   : > { %v8500_v45 = vld [vmem:[#allocation2 + $0xb4] sm:$0xf]  ;;  %v2493_v53 = vrot.slane %v2491_v15, 4  ;;  %7404 = vmatpush3.bf16.msra.mxu0 %v3756_v14  ;;  %v2488_v29 = vsel %vm8415_vm11, %v2486_v24, %v2487_v8  ;;  %v2492_v51 = vsel %vm8415_vm11, %v6636_v49, %v2491_v15  ;;  %7341 = vmatprep.mubr.msk.bf16.mxu0 %vm1904_vm2, %v6651_v35  ;;  %v2498_v6 = vrot.slane %v8218_v47, 5 }
  0xc0   : > { %7297 = vmatprep.mubr.msk.bf16.mxu1 %vm1904_vm2, %v6582_v18  ;;  %v1831_v46 = vshrl.u32 %v8500_v45, 16  ;;  %v1834_v13 = vshll.u32 %v8500_v45, 16  ;;  %7582 = vmatprep.subr.msk.bf16.mxu0 %vm1953_vm0, %v8498_v57  ;;  %v1848_v63 = vrot.slane %v1847_v0, 4  ;;  %v6652_v8 = vcombine.low %v2485_v31, %v2488_v29  ;;  %v7649_v0 = vld [vmem:[#allocation2] sm:$0xf] }
  0xc1   : > { %v8506_v33 = vld [vmem:[#allocation2 + $0xbc] sm:$0x1]  ;;  %v2495_v58 = vsel %vm8415_vm11, %v2493_v53, %v2494_v34  ;;  %v6637_v59 = vrot.slane %v2415_v1, 9  ;;  %v2500_v14 = vrot.slane %v2498_v6, 4  ;;  %v2501_v35 = vrot.slane %v8255_v5, 5 }
  0xc2   : > { %v1850_v26 = vshll.u32 %v8506_v33, 16  ;;  %v1833_v52 = vrot.slane %v1831_v46, 4  ;;  %v1836_v41 = vrot.slane %v1834_v13, 5  ;;  %v6653_v49 = vcombine.low %v2492_v51, %v2495_v58  ;;  %v2417_v31 = vld [vmem:[#allocation2 + $0x54] sm:$0xe] }
  0xc3   : > { %v2505_v15 = vrot.slane %v8344_v32, 5  ;;  %v6638_v18 = vrot.slane %v2416_v28, 9  ;;  %v2508_v24 = vrot.slane %v8376_v17, 5  ;;  %v6600_v13 = vcombine.low %v7649_v0, %v8427_v38  ;;  %v2418_v1 = vld [vmem:[#allocation2 + $0x60] sm:$0xe] }
  0xc4   : > { %v1852_v10 = vrot.slane %v1850_v26, 5  ;;  %v1837_v11 = vor.u32 %v1836_v41, %v1833_v52  ;;  %v2512_v29 = vrot.slane %v8378_v62, 5  ;;  %v2499_v17 = vsel %vm8415_vm11, %v6637_v59, %v2498_v6  ;;  %v8537_v26 = vld [vmem:[#allocation2 + $0x64] sm:$0xf]  ;;  %v7651_v58 = vld [vmem:[#allocation2 + $0x68] sm:$0x1] }
  0xc5   : > { %v2507_v46 = vrot.slane %v2505_v15, 4  ;;  %v2502_v51 = vsel %vm8415_vm11, %v2500_v14, %v2501_v35  ;;  %v2519_v38 = vrot.slane %v8537_v26, 5  ;;  %v2522_v52 = vrot.slane %v7651_v58, 5  ;;  %v7652_v28 = vld [vmem:[#allocation2 + $0x10] sm:$0xf] }
  0xc6   : > { %v1838_v34 = vrot.slane %v1837_v11, 4  ;;  %v1853_v53 = vsel %vm7879_vm7, %v1848_v63, %v1852_v10  ;;  %7342 = vmatmul.mubr.msk.bf16.gmra.mxu0 %vm1904_vm2, %v6652_v8  ;;  %v2506_v63 = vsel %vm8415_vm11, %v6638_v18, %v2505_v15  ;;  %v7653_v10 = vld [vmem:[#allocation2 + $0xc] sm:$0xf]  ;;  %v6639_v8 = vrot.slane %v2417_v31, 9  ;;  %v8555_v0 = vld [vmem:[#allocation2 + $0x24] sm:$0xf] }
  0xc7   : > { %7345 = vmatprep.mubr.msk.bf16.mxu0 %vm1904_vm2, %v6653_v49  ;;  %v6601_v6 = vcombine.low %v7653_v10, %v7652_v28  ;;  %v2514_v49 = vrot.slane %v2512_v29, 4  ;;  %v2515_v59 = vrot.slane %v8407_v60, 5  ;;  %v6654_v11 = vcombine.low %v2499_v17, %v2502_v51  ;;  %v7655_v18 = vld [vmem:[%s10685_s3 + $0xc] sm:$0xf]  ;;  %v8565_v58 = vld [vmem:[#allocation2 + $0x7c] sm:$0xf] }
  0xc8   : > { %v1843_v5 = vsel %vm7879_vm7, %v1838_v34, %v8478_v37  ;;  %v2509_v37 = vsel %vm8415_vm11, %v2507_v46, %v2508_v24  ;;  %v6640_v14 = vrot.slane %v2418_v1, 9  ;;  %v2521_v35 = vrot.slane %v2519_v38, 4  ;;  %v2419_v34 = vld [vmem:[#allocation2 + $0x6c] sm:$0xe]  ;;  %v7656_v46 = vld [vmem:[#allocation2 + $0x18] sm:$0xf] }
  0xc9   : > { %v6583_v41 = vcombine.low %v1843_v5, %v1853_v53  ;;  %v8546_v53 = vld [vmem:[#allocation2 + $0x70] sm:$0xf]  ;;  %v3030_v24 = vsel %vm1953_vm0, %v7655_v18, 0  ;;  %v6602_v60 = vcombine.low %v7656_v46, %v8469_v9  ;;  %v6655_v5 = vcombine.low %v2506_v63, %v2509_v37  ;;  %v2420_v1 = vld [vmem:[#allocation2 + $0x78] sm:$0xe] }
  0xca   : > { %v2526_v15 = vrot.slane %v8546_v53, 5  ;;  %v2533_v9 = vrot.slane %v8565_v58, 5  ;;  %v2516_v63 = vsel %vm8415_vm11, %v2514_v49, %v2515_v59  ;;  %v6641_v28 = vrot.slane %v2419_v34, 9  ;;  %v2423_v10 = vld [vmem:[#allocation2 + $0x9c] sm:$0xe] }
  0xcb   : > { %7298 = vmatmul.mubr.msk.bf16.gmra.mxu1 %vm1904_vm2, %v6583_v41  ;;  %v2513_v41 = vsel %vm8415_vm11, %v6639_v8, %v2512_v29  ;;  %v2520_v18 = vsel %vm8415_vm11, %v6640_v14, %v2519_v38  ;;  %v2523_v46 = vsel %vm8415_vm11, %v2521_v35, %v2522_v52  ;;  %v7659_v51 = vld [vmem:[#allocation2 + $0x74] sm:$0x1]  ;;  %v2421_v29 = vld [vmem:[#allocation2 + $0x84] sm:$0xe]  ;;  %v8580_v8 = vld [vmem:[#allocation2 + $0x60] sm:$0xf] }
  0xcc   : > { %7303 = vmatprep.mubr.msk.bf16.mxu1 %vm1904_vm2, %v6600_v13  ;;  %v2528_v2 = vrot.slane %v2526_v15, 4  ;;  %v2529_v13 = vrot.slane %v7659_v51, 5  ;;  %v8584_v59 = vld [vmem:[#allocation2 + $0x6c] sm:$0xf]  ;;  %v6642_v38 = vrot.slane %v2420_v1, 9  ;;  %v6656_v34 = vcombine.low %v2513_v41, %v2516_v63 }
  0xcd   : > { %v8588_v14 = vld [vmem:[#allocation2 + $0x88] sm:$0xf]  ;;  %v2422_v35 = vld [vmem:[#allocation2 + $0x90] sm:$0xe]  ;;  %v2535_v51 = vrot.slane %v2533_v9, 4  ;;  %v6645_v17 = vrot.slane %v2423_v10, 9  ;;  %v6657_v31 = vcombine.low %v2520_v18, %v2523_v46  ;;  %v8593_v49 = vsel %vm8415_vm11, %v6641_v28, %v2526_v15 }
  0xce   : > { %7346 = vmatmul.mubr.msk.bf16.gmra.mxu0 %vm1904_vm2, %v6654_v11  ;;  %v2540_v52 = vrot.slane %v8588_v14, 5  ;;  %v7663_v37 = vld [vmem:[#allocation2 + $0x80] sm:$0x1]  ;;  %v6643_v48 = vrot.slane %v2421_v29, 9  ;;  %v8599_v1 = vld [vmem:[%s10685_s3 + $0x14] sm:$0xf]  ;;  %v8604_v41 = vsel %vm8415_vm11, %v2528_v2, %v2529_v13  ;;  %v8613_v28 = vsel %vm8415_vm11, %v6642_v38, %v2533_v9 }
  0xcf   : > { %7349 = vmatprep.mubr.msk.bf16.mxu0 %vm1904_vm2, %v6655_v5  ;;  %v2536_v5 = vrot.slane %v7663_v37, 5  ;;  %v2554_v63 = vrot.slane %v8301_v22, 5  ;;  %v2557_v37 = vrot.slane %v8335_v42, 5  ;;  %v6644_v46 = vrot.slane %v2422_v35, 9  ;;  %v3225_v2 = vld [vmem:[#allocation2 + $0xc] sm:$0xf] }
  0xd0   : > { %v2542_v10 = vrot.slane %v2540_v52, 4  ;;  %v6658_v9 = vcombine.low %v8593_v49, %v8604_v41  ;;  %v8629_v29 = vld [vmem:[#allocation2 + $0x78] sm:$0xf]  ;;  %v2549_v35 = vrot.slane %v2547_v40, 4  ;;  %v3229_v15 = vld [vmem:[#allocation2 + $0x1c] sm:$0xf] }
  0xd1   : > { %v8617_v13 = vsel %vm8415_vm11, %v2535_v51, %v2536_v5  ;;  %v8621_v42 = vsel %vm8415_vm11, %v6645_v17, %v2554_v63  ;;  %v2550_v51 = vrot.slane %v8312_v36, 5  ;;  %v8634_v17 = vld [vmem:[#allocation2 + $0x10] sm:$0xf]  ;;  %v3228_v5 = vld [vmem:[#allocation2 + $0x18] sm:$0xf]  ;;  %v8662_v41 = vsel %vm8415_vm11, %v6644_v46, %v2547_v40 }
  0xd2   : > { %10733 = vst [vmem:[#allocation11_spill] sm:$0xff] %v8634_v17  ;;  %v6659_v36 = vcombine.low %v8613_v28, %v8617_v13  ;;  %v3277_v38 = vshll.u32 %v3225_v2, 16  ;;  %v3283_v28 = vshll.u32 %v8634_v17, 16  ;;  %v10734_v13 = vcombine.low %v8555_v0, %v8482_v61  ;;  %v2425_v46 = vld [vmem:[#allocation2 + $0xb4] sm:$0xe] }
  0xd3   : > { %7304 = vmatmul.mubr.msk.bf16.vlgmr.msra.gmra.mxu1 %vm1904_vm2, %v6601_v6  ;;  %v7664_v6 = vld [vmem:[#allocation2 + $0x8c] sm:$0x1]  ;;  %v3301_v56 = vshll.u32 %v3228_v5, 16  ;;  %v3307_v61 = vshll.u32 %v3229_v15, 16  ;;  %v3231_v0 = vld [vmem:[#allocation2 + $0x24] sm:$0xf] }
  0xd4   : > { %7370 = vmatpush3.bf16.msra.mxu1 %v3030_v24  ;;  %7307 = vmatprep.mubr.msk.bf16.mxu1 %vm1904_vm2, %v6602_v60  ;;  %v2543_v18 = vrot.slane %v7664_v6, 5  ;;  %v2556_v24 = vrot.slane %v2554_v63, 4  ;;  %v8637_v63 = vld [vmem:[#allocation2 + $0x84] sm:$0xf]  ;;  %v3274_v60 = vshrl.u32 %v3225_v2, 16  ;;  %v3279_v11 = vrot.slane %v3277_v38, 5 }
  0xd5   : > { %7581 = vmatprep.subr.msk.bf16.mxu1 %vm1953_vm0, %v8599_v1  ;;  %v3227_v2 = vld [vmem:[#allocation2 + $0x14] sm:$0x1]  ;;  %v2564_v43 = vrot.slane %v8458_v27, 5  ;;  %v3230_v38 = vld [vmem:[#allocation2 + $0x20] sm:$0x1]  ;;  %v3311_v50 = vshrl.u32 %v3229_v15, 16 }
  0xd6   : > { %7350 = vmatmul.mubr.msk.bf16.gmra.mxu0 %vm1904_vm2, %v6656_v34  ;;  %v8643_v49 = vsel %vm8415_vm11, %v2556_v24, %v2557_v37  ;;  %v8652_v34 = vsel %vm8415_vm11, %v6643_v48, %v2540_v52  ;;  %v8656_v6 = vsel %vm8415_vm11, %v2542_v10, %v2543_v18  ;;  %v2424_v24 = vld [vmem:[#allocation2 + $0xa8] sm:$0xe]  ;;  %v8668_v48 = vsel %vm8415_vm11, %v2549_v35, %v2550_v51 }
  0xd7   : > { %7353 = vmatprep.mubr.msk.bf16.mxu0 %vm1904_vm2, %v6657_v31  ;;  %v2561_v31 = vrot.slane %v8421_v7, 5  ;;  %v2568_v52 = vrot.slane %v8466_v19, 5  ;;  %v3276_v10 = vrot.slane %v3274_v60, 4  ;;  %v3287_v18 = vshrl.u32 %v8634_v17, 16  ;;  %v3234_v19 = vld [vmem:[#allocation2 + $0x30] sm:$0xf] }
  0xd8   : > { %v3298_v37 = vshrl.u32 %v3228_v5, 16  ;;  %v10735_v35 = vcombine.low %v8193_v30, %v8184_v21  ;;  %v6646_v60 = vrot.slane %v2424_v24, 9  ;;  %v8682_v51 = vrot.slane %v3283_v28, 5  ;;  %v3232_v5 = vld [vmem:[#allocation2 + $0x28] sm:$0xf] }
  0xd9   : > { %v3289_v17 = vrot.slane %v3287_v18, 4  ;;  %v2563_v40 = vrot.slane %v2561_v31, 4  ;;  %v6647_v4 = vrot.slane %v2425_v46, 9  ;;  %v2570_v3 = vrot.slane %v2568_v52, 4 }
  0xda   : > { %v2571_v21 = vrot.slane %v8506_v33, 5  ;;  %v3280_v30 = vor.u32 %v3279_v11, %v3276_v10  ;;  %v3300_v24 = vrot.slane %v3298_v37, 4  ;;  %v3303_v28 = vrot.slane %v3301_v56, 5 }
  0xdb   : > { %7308 = vmatmul.mubr.msk.bf16.gmra.mxu1 %vm1904_vm2, %v10734_v13  ;;  %v6661_v13 = vcombine.low %v8662_v41, %v8668_v48  ;;  %v8689_v18 = vrot.slane %v3307_v61, 5  ;;  %v3290_v27 = vor.u32 %v3289_v17, %v8682_v51  ;;  %v3293_v41 = vshll.u32 %v3227_v2, 16  ;;  %v8716_v2 = vld [vmem:[#allocation2 + $0x34] sm:$0xf]  ;;  %v3233_v61 = vld [vmem:[#allocation2 + $0x2c] sm:$0x1] }
  0xdc   : > { %7311 = vmatprep.mubr.msk.bf16.mxu1 %vm1904_vm2, %v10735_v35  ;;  %v3313_v35 = vrot.slane %v3311_v50, 4  ;;  %v3322_v15 = vshrl.u32 %v3231_v0, 16  ;;  %v3325_v48 = vshll.u32 %v3231_v0, 16  ;;  %v8695_v46 = vsel %vm8415_vm11, %v6646_v60, %v2561_v31 }
  0xdd   : > { %v8699_v33 = vsel %vm8415_vm11, %v2563_v40, %v2564_v43  ;;  %v3331_v56 = vshll.u32 %v3232_v5, 16  ;;  %v3335_v11 = vshrl.u32 %v3232_v5, 16  ;;  %v8703_v50 = vsel %vm8415_vm11, %v6647_v4, %v2568_v52  ;;  %v3237_v4 = vld [vmem:[#allocation2 + $0x3c] sm:$0xf] }
  0xde   : > { %7354 = vmatmul.mubr.msk.bf16.gmra.mxu0 %vm1904_vm2, %v6658_v9  ;;  %v8707_v9 = vsel %vm8415_vm11, %v2570_v3, %v2571_v21  ;;  %v8709_v17 = vrot.slane %v3280_v30, 4  ;;  %v10736_v37 = vcombine.low %v8239_v39, %v8218_v47  ;;  %v3304_v43 = vor.u32 %v3303_v28, %v3300_v24  ;;  %v8722_v39 = vld [vmem:[#allocation2 + $0x40] sm:$0xf] }
  0xdf   : > { %7357 = vmatprep.mubr.msk.bf16.mxu0 %vm1904_vm2, %v6659_v36  ;;  %v3317_v36 = vshll.u32 %v3230_v38, 16  ;;  %v3314_v31 = vor.u32 %v3313_v35, %v8689_v18  ;;  %v3324_v10 = vrot.slane %v3322_v15, 4  ;;  %v3327_v40 = vrot.slane %v3325_v48, 5  ;;  %v3240_v48 = vld [vmem:[#allocation2 + $0x48] sm:$0xf] }
  0xe0   : > { %v10737_v3 = vcombine.low %v8365_v20, %v8344_v32  ;;  %v3291_v52 = vrot.slane %v3290_v27, 4  ;;  %v3295_v60 = vrot.slane %v3293_v41, 5  ;;  %v3346_v0 = vshrl.u32 %v3234_v19, 16 }
  0xe1   : > { %v3349_v47 = vshll.u32 %v3234_v19, 16  ;;  %v6612_v38 = vcombine.low %v8287_v55, %v8280_v44  ;;  %v6663_v5 = vcombine.low %v8695_v46, %v8699_v33  ;;  %v8728_v21 = vrot.slane %v3331_v56, 5  ;;  %v8743_v46 = vld [vmem:[#allocation2 + $0x38] sm:$0x1] }
  0xe2   : > { %v3337_v30 = vrot.slane %v3335_v11, 4  ;;  %v6664_v32 = vcombine.low %v8703_v50, %v8707_v9  ;;  %v3319_v20 = vrot.slane %v3317_v36, 5  ;;  %v3355_v24 = vshll.u32 %v8716_v2, 16  ;;  %v8838_v50 = vld [vmem:[#allocation2 + $0x70] sm:$0xf] }
  0xe3   : > { %7312 = vmatmul.mubr.msk.bf16.gmra.mxu1 %vm1904_vm2, %v10736_v37  ;;  %v3359_v28 = vshrl.u32 %v8716_v2, 16  ;;  %v10738_v19 = vcombine.low %v8652_v34, %v8656_v6  ;;  %v3286_v35 = vsel %vm7879_vm7, %v8709_v17, %v8682_v51  ;;  %v3305_v27 = vrot.slane %v3304_v43, 4 }
  0xe4   : > { %7315 = vmatprep.mubr.msk.bf16.mxu1 %vm1904_vm2, %v10737_v3  ;;  %v3315_v41 = vrot.slane %v3314_v31, 4  ;;  %v3328_v15 = vor.u32 %v3327_v40, %v3324_v10  ;;  %v3348_v33 = vrot.slane %v3346_v0, 4  ;;  %v3351_v56 = vrot.slane %v3349_v47, 5  ;;  %v8760_v3 = vld [vmem:[#allocation2 + $0x44] sm:$0x1] }
  0xe5   : > { %v3370_v11 = vshrl.u32 %v3237_v4, 16  ;;  %v3373_v36 = vshll.u32 %v3237_v4, 16  ;;  %v3296_v6 = vsel %vm7879_vm7, %v3291_v52, %v3295_v60  ;;  %v3338_v34 = vor.u32 %v3337_v30, %v8728_v21 }
  0xe6   : > { %7358 = vmatmul.mubr.msk.bf16.gmra.mxu0 %vm1904_vm2, %v10738_v19  ;;  %v3341_v37 = vshll.u32 %v3233_v61, 16  ;;  %v3379_v51 = vshll.u32 %v8722_v39, 16  ;;  %v8749_v17 = vrot.slane %v3355_v24, 5  ;;  %v3361_v43 = vrot.slane %v3359_v28, 4  ;;  %v8765_v61 = vld [vmem:[#allocation2 + $0x4c] sm:$0xf] }
  0xe7   : > { %7361 = vmatprep.mubr.msk.bf16.mxu0 %vm1904_vm2, %v6661_v13  ;;  %v3372_v31 = vrot.slane %v3370_v11, 4  ;;  %v3375_v10 = vrot.slane %v3373_v36, 5  ;;  %v10739_v13 = vcombine.low %v8397_v23, %v8378_v62  ;;  %v3310_v40 = vsel %vm7879_vm7, %v3305_v27, %v8689_v18  ;;  %v3243_v36 = vld [vmem:[#allocation2 + $0x54] sm:$0xf] }
  0xe8   : > { %v3320_v4 = vsel %vm7879_vm7, %v3315_v41, %v3319_v20  ;;  %v8762_v52 = vrot.slane %v3379_v51, 5  ;;  %v3383_v60 = vshrl.u32 %v8722_v39, 16  ;;  %v10740_v62 = vcombine.low %v8580_v8, %v8537_v26 }
  0xe9   : > { %v3329_v23 = vrot.slane %v3328_v15, 4  ;;  %v3352_v0 = vor.u32 %v3351_v56, %v3348_v33  ;;  %v3394_v47 = vshrl.u32 %v3240_v48, 16  ;;  %v3397_v18 = vshll.u32 %v3240_v48, 16 }
  0xea   : > { %v3339_v30 = vrot.slane %v3338_v34, 4  ;;  %v3343_v24 = vrot.slane %v3341_v37, 5  ;;  %v3365_v20 = vshll.u32 %v8743_v46, 16  ;;  %v3385_v28 = vrot.slane %v3383_v60, 4 }
  0xeb   : > { %7316 = vmatmul.mubr.msk.bf16.gmra.mxu1 %vm1904_vm2, %v10739_v13  ;;  %v3362_v19 = vor.u32 %v3361_v43, %v8749_v17  ;;  %v3376_v27 = vor.u32 %v3375_v10, %v3372_v31  ;;  %v3389_v41 = vshll.u32 %v8760_v3, 16  ;;  %v3403_v11 = vshll.u32 %v8765_v61, 16  ;;  %v8793_v43 = vld [vmem:[#allocation2 + $0x50] sm:$0x1]  ;;  %v8795_v31 = vld [vmem:[#allocation2 + $0x58] sm:$0xf] }
  0xec   : > { %7319 = vmatprep.mubr.msk.bf16.mxu1 %vm1904_vm2, %v10740_v62  ;;  %v10741_v26 = vcombine.low %v8621_v42, %v8643_v49  ;;  %v3386_v8 = vor.u32 %v3385_v28, %v8762_v52  ;;  %v3396_v15 = vrot.slane %v3394_v47, 4  ;;  %v3399_v48 = vrot.slane %v3397_v18, 5 }
  0xed   : > { %v3407_v33 = vshrl.u32 %v8765_v61, 16  ;;  %v6715_v56 = vcombine.low %v3286_v35, %v3296_v6  ;;  %v8782_v34 = vcombine.low %v3310_v40, %v3320_v4  ;;  %v8786_v37 = vsel %vm1953_vm0, %v8498_v57, 0  ;;  %v3246_v57 = vld [vmem:[#allocation2 + $0x60] sm:$0xf] }
  0xee   : > { %7362 = vmatmul.mubr.msk.bf16.gmra.mxu0 %vm1904_vm2, %v10741_v26  ;;  %v3353_v51 = vrot.slane %v3352_v0, 4  ;;  %v3334_v42 = vsel %vm7879_vm7, %v3329_v23, %v8728_v21  ;;  %v3344_v49 = vsel %vm7879_vm7, %v3339_v30, %v3343_v24  ;;  %v3421_v35 = vshll.u32 %v3243_v36, 16  ;;  %v8803_v0 = vld [vmem:[#allocation2 + $0x64] sm:$0xf] }
  0xef   : > { %7365 = vmatprep.mubr.msk.bf16.mxu0 %vm1904_vm2, %v6663_v5  ;;  %v3418_v5 = vshrl.u32 %v3243_v36, 16  ;;  %v3363_v6 = vrot.slane %v3362_v19, 4  ;;  %v3367_v10 = vrot.slane %v3365_v20, 5  ;;  %v3377_v13 = vrot.slane %v3376_v27, 4 }
  0xf0   : > { %v3391_v40 = vrot.slane %v3389_v41, 5  ;;  %v10742_v4 = vcombine.low %v8584_v59, %v8546_v53  ;;  %v3387_v21 = vrot.slane %v3386_v8, 4  ;;  %v3400_v60 = vor.u32 %v3399_v48, %v3396_v15  ;;  %v8822_v41 = vld [vmem:[#allocation2 + $0x5c] sm:$0x1]  ;;  %v3249_v8 = vld [vmem:[#allocation2 + $0x6c] sm:$0xf] }
  0xf1   : > { %v8801_v62 = vrot.slane %v3403_v11, 5  ;;  %v3409_v23 = vrot.slane %v3407_v33, 4  ;;  %v10743_v47 = vcombine.low %v8629_v29, %v8565_v58  ;;  %v8809_v18 = vcombine.low %v3334_v42, %v3344_v49  ;;  %v8841_v42 = vld [vmem:[#allocation2 + $0x68] sm:$0x1] }
  0xf2   : > { %v3358_v53 = vsel %vm7879_vm7, %v3353_v51, %v8749_v17  ;;  %v3427_v59 = vshll.u32 %v8795_v31, 16  ;;  %v3431_v30 = vshrl.u32 %v8795_v31, 16  ;;  %v3420_v24 = vrot.slane %v3418_v5, 4 }
  0xf3   : > { %7320 = vmatmul.mubr.msk.bf16.gmra.mxu1 %vm1904_vm2, %v10742_v4  ;;  %v3423_v20 = vrot.slane %v3421_v35, 5  ;;  %v3442_v28 = vshrl.u32 %v3246_v57, 16  ;;  %v3445_v19 = vshll.u32 %v3246_v57, 16  ;;  %v3368_v27 = vsel %vm7879_vm7, %v3363_v6, %v3367_v10 }
  0xf4   : > { %7323 = vmatprep.mubr.msk.bf16.mxu1 %vm1904_vm2, %v10743_v47  ;;  %v3382_v58 = vsel %vm7879_vm7, %v3377_v13, %v8762_v52  ;;  %v3413_v29 = vshll.u32 %v8793_v43, 16  ;;  %v3451_v17 = vshll.u32 %v8803_v0, 16  ;;  %v3392_v11 = vsel %vm7879_vm7, %v3387_v21, %v3391_v40  ;;  %v3252_v13 = vld [vmem:[#allocation2 + $0x78] sm:$0xf] }
  0xf5   : > { %v8831_v36 = vrot.slane %v3400_v60, 4  ;;  %v3410_v26 = vor.u32 %v3409_v23, %v8801_v62  ;;  %v3455_v52 = vshrl.u32 %v8803_v0, 16  ;;  %v8836_v15 = vrot.slane %v3427_v59, 5  ;;  %v8861_v23 = vld [vmem:[#allocation2 + $0x7c] sm:$0xf] }
  0xf6   : > { %7366 = vmatmul.mubr.msk.bf16.gmra.mxu0 %vm1904_vm2, %v6664_v32  ;;  %v3433_v48 = vrot.slane %v3431_v30, 4  ;;  %v3444_v33 = vrot.slane %v3442_v28, 4  ;;  %v3447_v51 = vrot.slane %v3445_v19, 5  ;;  %v3424_v9 = vor.u32 %v3423_v20, %v3420_v24  ;;  %v3255_v28 = vld [vmem:[#allocation2 + $0x84] sm:$0xf] }
  0xf7   : > { %7405 = vmatprep.mubr.msk.bf16.mxu0 %vm1904_vm2, %v6715_v56  ;;  %v3437_v32 = vshll.u32 %v8822_v41, 16  ;;  %v8843_v49 = vrot.slane %v3451_v17, 5  ;;  %v3457_v5 = vrot.slane %v3455_v52, 4  ;;  %v8845_v35 = vcombine.low %v3358_v53, %v3368_v27 }
  0xf8   : > { %v8847_v6 = vrot.slane %v3413_v29, 5  ;;  %v3466_v56 = vshrl.u32 %v3249_v8, 16  ;;  %v3469_v10 = vshll.u32 %v3249_v8, 16  ;;  %v10744_v40 = vcombine.low %v8637_v63, %v8588_v14 }
  0xf9   : > { %v8853_v57 = vcombine.low %v3382_v58, %v3392_v11  ;;  %v3406_v4 = vsel %vm7879_vm7, %v8831_v36, %v8801_v62  ;;  %v3475_v21 = vshll.u32 %v8838_v50, 16  ;;  %v3479_v60 = vshrl.u32 %v8838_v50, 16  ;;  %v8884_v58 = vld [vmem:[#allocation2 + $0x74] sm:$0x1] }
  0xfa   : > { %v8867_v14 = vrot.slane %v3410_v26, 4  ;;  %v3434_v63 = vor.u32 %v3433_v48, %v8836_v15  ;;  %v3448_v47 = vor.u32 %v3447_v51, %v3444_v33  ;;  %v3461_v53 = vshll.u32 %v8841_v42, 16  ;;  %v8892_v33 = vld [vmem:[#allocation2 + $0x80] sm:$0x1] }
  0xfb   : > { %7324 = vmatmul.mubr.msk.bf16.gmra.mxu1 %vm1904_vm2, %v10744_v40  ;;  %v8871_v59 = vrot.slane %v3424_v9, 4  ;;  %v8873_v30 = vrot.slane %v3437_v32, 5  ;;  %v3458_v24 = vor.u32 %v3457_v5, %v8843_v49  ;;  %v3490_v20 = vshrl.u32 %v3252_v13, 16  ;;  %v8896_v5 = vld [vmem:[#allocation2 + $0x88] sm:$0xf] }
  0xfc   : > { %7327 = vmatprep.mubr.msk.bf16.mxu1 %vm1904_vm2, %v6612_v38  ;;  %v3468_v19 = vrot.slane %v3466_v56, 4  ;;  %v3471_v27 = vrot.slane %v3469_v10, 5  ;;  %v3493_v44 = vshll.u32 %v3252_v13, 16  ;;  %v3499_v55 = vshll.u32 %v8861_v23, 16  ;;  %v8880_v38 = vld [vmem:[%s10685_s3 + $0x20] sm:$0xf] }
  0xfd   : > { %10745 = vst [vmem:[#allocation12_spill] sm:$0xff] %v8880_v38  ;;  %v8886_v29 = vrot.slane %v3475_v21, 5  ;;  %v3481_v17 = vrot.slane %v3479_v60, 4  ;;  %v3492_v11 = vrot.slane %v3490_v20, 4  ;;  %v3503_v26 = vshrl.u32 %v8861_v23, 16 }
  0xfe   : > { %7406 = vmatmul.mubr.msk.bf16.vlgmr.msra.gmra.mxu0 %vm1904_vm2, %v8782_v34  ;;  %v3435_v52 = vrot.slane %v3434_v63, 4  ;;  %v3449_v8 = vrot.slane %v3448_v47, 4  ;;  %v3463_v48 = vrot.slane %v3461_v53, 5  ;;  %v3495_v51 = vrot.slane %v3493_v44, 5  ;;  %v3258_v53 = vld [vmem:[#allocation2 + $0x90] sm:$0xf] }
  0xff   : > { %7472 = vmatpush3.bf16.msra.mxu0 %v8786_v37  ;;  %7409 = vmatprep.mubr.msk.bf16.mxu0 %vm1904_vm2, %v8809_v18  ;;  %v3459_v34 = vrot.slane %v3458_v24, 4  ;;  %v8894_v9 = vrot.slane %v3499_v55, 5  ;;  %v3505_v32 = vrot.slane %v3503_v26, 4  ;;  %v3514_v56 = vshrl.u32 %v3255_v28, 16  ;;  %v7611_v26 = vld [vmem:[#allocation2 + $0xc] sm:$0xff]  }
 0x100   : > { %7584 = vmatprep.subr.msk.bf16.mxu0 %vm1953_vm0, %v8880_v38  ;;  %v3416_v37 = vsel %vm7879_vm7, %v8867_v14, %v8847_v6  ;;  %v3472_v18 = vor.u32 %v3471_v27, %v3468_v19  ;;  %v3485_v10 = vshll.u32 %v8884_v58, 16  ;;  %v3517_v13 = vshll.u32 %v3255_v28, 16  ;;  %v8930_v19 = vld [vmem:[#allocation2 + $0x8c] sm:$0x1] }
 0x101   : > { %v10746_v40 = vcombine.low %v8331_v12, %v8301_v22  ;;  %v3482_v21 = vor.u32 %v3481_v17, %v8886_v29  ;;  %v3496_v60 = vor.u32 %v3495_v51, %v3492_v11  ;;  %v3506_v63 = vor.u32 %v3505_v32, %v8894_v9  ;;  %v8947_v32 = vld [vmem:[#allocation2 + $0x94] sm:$0xf] }
 0x102   : > { %v3509_v47 = vshll.u32 %v8892_v33, 16  ;;  %v10747_v6 = vcombine.low %v8448_v54, %v8421_v7  ;;  %v3516_v14 = vrot.slane %v3514_v56, 4  ;;  %v3519_v24 = vrot.slane %v3517_v13, 5 }
 0x103   : > { %7328 = vmatmul.mubr.msk.bf16.gmra.mxu1 %vm1904_vm2, %v10746_v40  ;;  %v3523_v20 = vshll.u32 %v8896_v5, 16  ;;  %v3527_v22 = vshrl.u32 %v8896_v5, 16  ;;  %v3430_v12 = vsel %vm7879_vm7, %v8871_v59, %v8836_v15  ;;  %v3440_v28 = vsel %vm7879_vm7, %v3435_v52, %v8873_v30 }
 0x104   : > { %7331 = vmatprep.mubr.msk.bf16.mxu1 %vm1904_vm2, %v10747_v6  ;;  %v3454_v7 = vsel %vm7879_vm7, %v3449_v8, %v8843_v49  ;;  %v3464_v54 = vsel %vm7879_vm7, %v3459_v34, %v3463_v48  ;;  %v3538_v55 = vshrl.u32 %v3258_v53, 16  ;;  %v3541_v17 = vshll.u32 %v3258_v53, 16 }
 0x105   : > { %v8932_v27 = vrot.slane %v3523_v20, 5  ;;  %v3529_v44 = vrot.slane %v3527_v22, 4  ;;  %v3473_v15 = vrot.slane %v3472_v18, 4  ;;  %v3483_v59 = vrot.slane %v3482_v21, 4  ;;  %v3261_v18 = vld [vmem:[#allocation2 + $0x9c] sm:$0xf] }
 0x106   : > { %7410 = vmatmul.mubr.msk.bf16.gmra.mxu0 %vm1904_vm2, %v8845_v35  ;;  %v3487_v30 = vrot.slane %v3485_v10, 5  ;;  %v3511_v11 = vrot.slane %v3509_v47, 5  ;;  %v3497_v49 = vrot.slane %v3496_v60, 4  ;;  %v3507_v52 = vrot.slane %v3506_v63, 4  ;;  %v10748_v10 = vld [vmem:[#allocation10_spill] sm:$0xff] }
 0x107   : > { %7413 = vmatprep.mubr.msk.bf16.mxu0 %vm1904_vm2, %v8853_v57  ;;  %v3520_v8 = vor.u32 %v3519_v24, %v3516_v14  ;;  %v3533_v48 = vshll.u32 %v8930_v19, 16  ;;  %v4226_v51 = vsel %vm1953_vm0, %v8599_v1, 0  ;;  %v6720_v35 = vcombine.low %v3406_v4, %v3416_v37  ;;  %v8960_v4 = vld [vmem:[#allocation2 + $0xa0] sm:$0xf]  ;;  %v8968_v63 = vld [vmem:[#allocation2 + $0x98] sm:$0x1] }
 0x108   : > { %v3530_v34 = vor.u32 %v3529_v44, %v8932_v27  ;;  %v3540_v56 = vrot.slane %v3538_v55, 4  ;;  %v3543_v57 = vrot.slane %v3541_v17, 5  ;;  %v10749_v13 = vcombine.low %v8500_v45, %v10748_v10  ;;  %v3264_v47 = vld [vmem:[#allocation2 + $0xa8] sm:$0xf]  ;;  %v8972_v24 = vld [vmem:[#allocation2 + $0xac] sm:$0xf] }
 0x109   : > { %v6721_v40 = vcombine.low %v3430_v12, %v3440_v28  ;;  %v8953_v1 = vcombine.low %v3454_v7, %v3464_v54  ;;  %v3478_v62 = vsel %vm7879_vm7, %v3473_v15, %v8886_v29  ;;  %v3488_v36 = vsel %vm7879_vm7, %v3483_v59, %v3487_v30  ;;  %v7612_v28 = vld [vmem:[#allocation2 + $0x18] sm:$0xff]   ;;  %v7613_v17 = vld [vmem:[#allocation2 + $0x24] sm:$0xff]  }
 0x10a   : > { %v3502_v45 = vsel %vm7879_vm7, %v3497_v49, %v8894_v9  ;;  %v3512_v37 = vsel %vm7879_vm7, %v3507_v52, %v3511_v11  ;;  %v3521_v21 = vrot.slane %v3520_v8, 4  ;;  %v3535_v60 = vrot.slane %v3533_v48, 5  ;;  %v8984_v30 = vld [vmem:[#allocation2 + $0xa4] sm:$0x1]  ;;  %v3267_v49 = vld [vmem:[#allocation2 + $0xb4] sm:$0xf] }
 0x10b   : > { %7332 = vmatmul.mubr.msk.bf16.gmra.mxu1 %vm1904_vm2, %v10749_v13  ;;  %v3547_v29 = vshll.u32 %v8947_v32, 16  ;;  %v3551_v53 = vshrl.u32 %v8947_v32, 16  ;;  %v3562_v6 = vshrl.u32 %v3261_v18, 16  ;;  %v3565_v14 = vshll.u32 %v3261_v18, 16  ;;  %v9001_v10 = vld [vmem:[%s10685_s3 + $0x1c] sm:$0xf] }
 0x10c   : > { %7371 = vmatprep.mubr.msk.bf16.mxu1 %vm1904_vm2, %v7611_v26  ;;  %v3531_v20 = vrot.slane %v3530_v34, 4  ;;  %v3544_v22 = vor.u32 %v3543_v57, %v3540_v56  ;;  %v3571_v9 = vshll.u32 %v8960_v4, 16  ;;  %v3575_v12 = vshrl.u32 %v8960_v4, 16  ;;  %v8990_v34 = vld [vmem:[#allocation2 + $0xb8] sm:$0xf]  ;;  %10750 = vst [vmem:[#allocation10_spill] sm:$0xff] %v9001_v10 }
 0x10d   : > { %v6723_v7 = vcombine.low %v3478_v62, %v3488_v36  ;;  %v8977_v54 = vcombine.low %v3502_v45, %v3512_v37  ;;  %v3586_v44 = vshrl.u32 %v3264_v47, 16  ;;  %v3589_v55 = vshll.u32 %v3264_v47, 16  ;;  %v593_v45 = vld [vmem:[#allocation2 + $0xc0] sm:$0x1] }
 0x10e   : > { %7414 = vmatmul.mubr.msk.bf16.gmra.mxu0 %vm1904_vm2, %v6720_v35  ;;  %v3526_v15 = vsel %vm7879_vm7, %v3521_v21, %v8932_v27  ;;  %v3557_v59 = vshll.u32 %v8968_v63, 16  ;;  %v3595_v11 = vshll.u32 %v8972_v24, 16  ;;  %v3599_v26 = vshrl.u32 %v8972_v24, 16 }
 0x10f   : > { %7417 = vmatprep.mubr.msk.bf16.mxu0 %vm1904_vm2, %v6721_v40  ;;  %v8988_v52 = vrot.slane %v3547_v29, 5  ;;  %v3553_v8 = vrot.slane %v3551_v53, 4  ;;  %v3564_v48 = vrot.slane %v3562_v6, 4  ;;  %v3567_v35 = vrot.slane %v3565_v14, 5  ;;  %v649_v29 = vld [vmem:[#allocation2 + $0xc8] sm:$0x1] }
 0x110   : > { %v3536_v56 = vsel %vm7879_vm7, %v3531_v20, %v3535_v60  ;;  %v8994_v27 = vrot.slane %v3544_v22, 4  ;;  %v8996_v57 = vrot.slane %v3571_v9, 5  ;;  %v3577_v18 = vrot.slane %v3575_v12, 4  ;;  %v9013_v22 = vld [vmem:[#allocation2 + $0xb0] sm:$0x1] }
 0x111   : > { %v3588_v13 = vrot.slane %v3586_v44, 4  ;;  %v3591_v40 = vrot.slane %v3589_v55, 5  ;;  %v3610_v62 = vshrl.u32 %v3267_v49, 16  ;;  %v3613_v36 = vshll.u32 %v3267_v49, 16  ;;  %v7614_v9 = vld [vmem:[#allocation2 + $0x30] sm:$0xff]  }
 0x112   : > { %v9005_v37 = vrot.slane %v3595_v11, 5  ;;  %v3601_v21 = vrot.slane %v3599_v26, 4  ;;  %v3619_v60 = vshll.u32 %v8990_v34, 16  ;;  %v3623_v47 = vshrl.u32 %v8990_v34, 16 }
 0x113   : > { %7372 = vmatmul.mubr.msk.bf16.vlgmr.msra.gmra.mxu1 %vm1904_vm2, %v7612_v28  ;;  %v3554_v53 = vor.u32 %v3553_v8, %v8988_v52  ;;  %v9010_v6 = vrot.slane %v3557_v59, 5  ;;  %v3568_v14 = vor.u32 %v3567_v35, %v3564_v48  ;;  %v3581_v20 = vshll.u32 %v8984_v30, 16  ;;  %v9022_v59 = vld [vmem:[#allocation2 + $0xbc] sm:$0x1] }
 0x114   : > { %7438 = vmatpush3.bf16.msra.mxu1 %v4226_v51  ;;  %7375 = vmatprep.mubr.msk.bf16.mxu1 %vm1904_vm2, %v7613_v17  ;;  %v685_v51 = vld [vmem:[%s7812_s16 + $0xf0] sm:$0xff]  ;;  %v6725_v12 = vcombine.low %v3526_v15, %v3536_v56  ;;  %v3578_v28 = vor.u32 %v3577_v18, %v8996_v57  ;;  %v3612_v44 = vrot.slane %v3610_v62, 4  ;;  %v3615_v55 = vrot.slane %v3613_v36, 5  ;;  %v686_v17 = vld [vmem:[%s7812_s16 + $0xf8] sm:$0xff]  ;;  %s6950_s16 = sshll.u32 %s10929_s28, 7 }
 0x115   : > { %7583 = vmatprep.subr.msk.bf16.mxu1 %vm1953_vm0, %v9001_v10  ;;  %v9024_v11 = vrot.slane %v3619_v60, 5  ;;  %v3625_v26 = vrot.slane %v3623_v47, 4  ;;  %v594_v8 = vsel %vm7783_vm5, 0, %v593_v45  ;;  %v650_v35 = vsel %vm7790_vm6, 0, %v649_v29  ;;  %v7615_v15 = vld [vmem:[#allocation2 + $0x3c] sm:$0xff]   ;;  %s10352_s19 = scalar_lea.vmem %s10689_s7, %s6950_s16 }
 0x116   : > { %7418 = vmatmul.mubr.msk.bf16.gmra.mxu0 %vm1904_vm2, %v8953_v1  ;;  %v3592_v56 = vor.u32 %v3591_v40, %v3588_v13  ;;  %v3602_v18 = vor.u32 %v3601_v21, %v9005_v37  ;;  %v3605_v62 = vshll.u32 %v9013_v22, 16  ;;  %595 = vst [vmem:[#allocation2 + $0xc0] sm:$0x1] %v594_v8  ;;  %651 = vst [vmem:[#allocation2 + $0xc8] sm:$0x1] %v650_v35  ;;  %v3555_v36 = vrot.slane %v3554_v53, 4 }
 0x117   : > { %7421 = vmatprep.mubr.msk.bf16.mxu0 %vm1904_vm2, %v6723_v7  ;;  %v6981_v1 = vpack.c.bf16 %v685_v51, %v685_v51  ;;  %v3569_v60 = vrot.slane %v3568_v14, 4  ;;  %v3583_v47 = vrot.slane %v3581_v20, 5  ;;  %v6982_v10 = vpack.c.bf16 %v686_v17, %v686_v17 }
 0x118   : > { %v3616_v38 = vor.u32 %v3615_v55, %v3612_v44  ;;  %v3629_v45 = vshll.u32 %v9022_v59, 16  ;;  %v3579_v7 = vrot.slane %v3578_v28, 4  ;;  %v3626_v13 = vor.u32 %v3625_v26, %v9024_v11  ;;  %v7616_v44 = vld [vmem:[#allocation2 + $0x48] sm:$0xff]  }
 0x119   : > { %v1041_v48 = vshrl.u32 %v6981_v1, 16  ;;  %v1044_v29 = vshll.u32 %v6981_v1, 16  ;;  %v1049_v40 = vshrl.u32 %v6982_v10, 16  ;;  %v1052_v21 = vshll.u32 %v6982_v10, 16 }
 0x11a   : > { %v3593_v8 = vrot.slane %v3592_v56, 4  ;;  %v3603_v51 = vrot.slane %v3602_v18, 4  ;;  %v3607_v53 = vrot.slane %v3605_v62, 5  ;;  %v3550_v20 = vsel %vm7879_vm7, %v8994_v27, %v8988_v52  ;;  %v7617_v62 = vld [vmem:[#allocation2 + $0x54] sm:$0xff]  }
 0x11b   : > { %7376 = vmatmul.mubr.msk.bf16.gmra.mxu1 %vm1904_vm2, %v7614_v9  ;;  %v1043_v14 = vrot.slane %v1041_v48, 7  ;;  %v3560_v9 = vsel %vm7879_vm7, %v3555_v36, %v9010_v6  ;;  %v3574_v28 = vsel %vm7879_vm7, %v3569_v60, %v8996_v57  ;;  %v1051_v10 = vrot.slane %v1049_v40, 7  ;;  %v3954_v48 = vld [vmem:[#allocation2 + $0x30] sm:$0xe]  ;;  %v3956_v40 = vld [vmem:[#allocation2 + $0x48] sm:$0xe] }
 0x11c   : > { %7379 = vmatprep.mubr.msk.bf16.mxu1 %vm1904_vm2, %v7615_v15  ;;  %v3617_v55 = vrot.slane %v3616_v38, 4  ;;  %v3631_v17 = vrot.slane %v3629_v45, 5  ;;  %v3584_v52 = vsel %vm7879_vm7, %v3579_v7, %v3583_v47  ;;  %v3627_v27 = vrot.slane %v3626_v13, 4  ;;  %v3962_v36 = vld [vmem:[#allocation2 + $0x90] sm:$0xe] }
 0x11d   : > { %v1046_v26 = vor.u32 %v1044_v29, %v1043_v14  ;;  %v1047_v35 = vrot.slane %v1043_v14, 4  ;;  %v1054_v15 = vor.u32 %v1052_v21, %v1051_v10  ;;  %v1056_v6 = vrot.slane %v1051_v10, 4  ;;  %v1216_v56 = vld [vmem:[#allocation2 + $0xc0] sm:$0xf]  ;;  %v1220_v18 = vld [vmem:[#allocation2 + $0xc8] sm:$0x1] }
 0x11e   : > { %7422 = vmatmul.mubr.msk.bf16.gmra.mxu0 %vm1904_vm2, %v8977_v54  ;;  %v3598_v38 = vsel %vm7879_vm7, %v3593_v8, %v9005_v37  ;;  %v3608_v57 = vsel %vm7879_vm7, %v3603_v51, %v3607_v53  ;;  %v3955_v29 = vld [vmem:[#allocation2 + $0x3c] sm:$0xe]  ;;  %v6726_v7 = vcombine.low %v3550_v20, %v3560_v9  ;;  %v6750_v37 = vrot.slane %v3954_v48, 9 }
 0x11f   : > { %7425 = vmatprep.mubr.msk.bf16.mxu0 %vm1904_vm2, %v6725_v12  ;;  %v1217_v54 = vsel %vm7852_vm15, %v1046_v26, %v1216_v56  ;;  %v1055_v60 = vsel %vm7844_vm13, %v1047_v35, %v1054_v15  ;;  %v1221_v45 = vsel %vm7860_vm1, %v1056_v6, %v1220_v18  ;;  %v6727_v12 = vcombine.low %v3574_v28, %v3584_v52  ;;  %v10757_v10 = vld [vmem:[#allocation11_spill] sm:$0xff]  ;;  %v3957_v26 = vld [vmem:[#allocation2 + $0x54] sm:$0xe]  ;;  %v3959_v56 = vld [vmem:[#allocation2 + $0x6c] sm:$0xe] }
 0x120   : > { %1218 = vst [vmem:[#allocation2 + $0xc0] sm:$0xf] %v1217_v54  ;;  %1219 = vst.msk [vmem:[#allocation2 + $0xc4] sm:$0xf] %vm1106_vm8, %v1055_v60  ;;  %v4038_v13 = vrot.slane %v8716_v2, 5  ;;  %v9066_v21 = vcombine.low %v3598_v38, %v3608_v57  ;;  %v3622_v8 = vsel %vm7879_vm7, %v3617_v55, %v9024_v11  ;;  %v3632_v51 = vsel %vm7879_vm7, %v3627_v27, %v3631_v17  ;;  %v7619_v18 = vld [vmem:[#allocation2 + $0x6c] sm:$0xff]  }
 0x121   : > { %1222 = vst [vmem:[#allocation2 + $0xc8] sm:$0x1] %v1221_v45  ;;  %v10756_v53 = vmov 0   ;;  %v4041_v14 = vrot.slane %v8743_v46, 5  ;;  %v6751_v9 = vrot.slane %v3955_v29, 9  ;;  %v4045_v28 = vrot.slane %v8722_v39, 5 }
 0x122   : > { %1336 = vst.msk [vmem:[#allocation2 + $0xc4] sm:$0xf] %vm1223_vm12, %v10756_v53  ;;  %v9079_v2 = vsel %vm8415_vm11, %v6750_v37, %v4038_v13  ;;  %v4040_v20 = vrot.slane %v4038_v13, 4  ;;  %v4017_v11 = vrot.slane %v10757_v10, 5  ;;  %v6752_v55 = vrot.slane %v3956_v40, 9  ;;  %v7618_v39 = vld [vmem:[#allocation2 + $0x60] sm:$0xff]  }
 0x123   : > { %7380 = vmatmul.mubr.msk.bf16.gmra.mxu1 %vm1904_vm2, %v7616_v44  ;;  %v4048_v44 = vrot.slane %v8760_v3, 5  ;;  %v4052_v17 = vrot.slane %v8765_v61, 5  ;;  %v6729_v35 = vcombine.low %v3622_v8, %v3632_v51  ;;  %v9091_v48 = vsel %vm8415_vm11, %v6751_v9, %v4045_v28  ;;  %v3958_v27 = vld [vmem:[#allocation2 + $0x60] sm:$0xe] }
 0x124   : > { %7383 = vmatprep.mubr.msk.bf16.mxu1 %vm1904_vm2, %v7617_v62  ;;  %v9087_v46 = vsel %vm8415_vm11, %v4040_v20, %v4041_v14  ;;  %v4047_v52 = vrot.slane %v4045_v28, 4  ;;  %v4055_v6 = vrot.slane %v8793_v43, 5  ;;  %v6753_v57 = vrot.slane %v3957_v26, 9 }
 0x125   : > { %v9098_v61 = vsel %vm8415_vm11, %v6752_v55, %v4052_v17  ;;  %v4054_v15 = vrot.slane %v4052_v17, 4  ;;  %v4059_v1 = vrot.slane %v8795_v31, 5  ;;  %v4062_v54 = vrot.slane %v8822_v41, 5  ;;  %v3961_v55 = vld [vmem:[#allocation2 + $0x84] sm:$0xe]  ;;  %v7634_v41 = vld [vmem:[#allocation2 + $0x6c] sm:$0xff]  }
 0x126   : > { %7426 = vmatmul.mubr.msk.bf16.gmra.mxu0 %vm1904_vm2, %v6726_v7  ;;  %v9104_v38 = vsel %vm8415_vm11, %v4047_v52, %v4048_v44  ;;  %v6754_v29 = vrot.slane %v3958_v27, 9  ;;  %v3960_v7 = vld [vmem:[#allocation2 + $0x78] sm:$0xe]  ;;  %v4066_v53 = vrot.slane %v8803_v0, 5  ;;  %v4069_v14 = vrot.slane %v8841_v42, 5 }
 0x127   : > { %7429 = vmatprep.mubr.msk.bf16.mxu0 %vm1904_vm2, %v6727_v12  ;;  %v1333_v62 = vld [vmem:[#allocation2 + $0xc0] sm:$0xf]  ;;  %v9114_v45 = vsel %vm8415_vm11, %v4054_v15, %v4055_v6  ;;  %v9124_v13 = vsel %vm8415_vm11, %v6753_v57, %v4059_v1  ;;  %v4061_v40 = vrot.slane %v4059_v1, 4  ;;  %v6755_v9 = vrot.slane %v3959_v56, 9  ;;  %v7620_v15 = vld [vmem:[#allocation2 + $0x78] sm:$0xff]  }
 0x128   : > { %v1334_v60 = vsel %vm7900_vm9, 0, %v1333_v62  ;;  %v1337_v47 = vld [vmem:[#allocation2 + $0xc8] sm:$0x1]  ;;  %v4073_v28 = vrot.slane %v8838_v50, 5  ;;  %v4076_v44 = vrot.slane %v8884_v58, 5  ;;  %v9144_v42 = vsel %vm8415_vm11, %v6754_v29, %v4066_v53 }
 0x129   : > { %1335 = vst [vmem:[#allocation2 + $0xc0] sm:$0xf] %v1334_v60  ;;  %v1338_v37 = vsel %vm7908_vm10, 0, %v1337_v47  ;;  %v9118_v31 = vld [vmem:[#allocation2 + $0xc4] sm:$0xf]  ;;  %v9134_v20 = vsel %vm8415_vm11, %v4061_v40, %v4062_v54  ;;  %v4068_v52 = vrot.slane %v4066_v53, 4 }
 0x12a   : > { %1339 = vst [vmem:[#allocation2 + $0xc8] sm:$0x1] %v1338_v37  ;;  %v3643_v8 = vshll.u32 %v9118_v31, 16  ;;  %v3647_v51 = vshrl.u32 %v9118_v31, 16  ;;  %v9148_v27 = vsel %vm8415_vm11, %v6755_v9, %v4073_v28  ;;  %v6756_v50 = vrot.slane %v3960_v7, 9  ;;  %v7621_v62 = vld [vmem:[#allocation2 + $0x84] sm:$0xff]  }
 0x12b   : > { %7384 = vmatmul.mubr.msk.bf16.gmra.mxu1 %vm1904_vm2, %v7618_v39  ;;  %v4075_v39 = vrot.slane %v4073_v28, 4  ;;  %v4080_v6 = vrot.slane %v8861_v23, 5  ;;  %v4083_v56 = vrot.slane %v8892_v33, 5  ;;  %v9158_v57 = vsel %vm8415_vm11, %v4068_v52, %v4069_v14  ;;  %v3963_v29 = vld [vmem:[#allocation2 + $0x9c] sm:$0xe] }
 0x12c   : > { %7387 = vmatprep.mubr.msk.bf16.mxu1 %vm1904_vm2, %v7619_v18  ;;  %v9138_v17 = vrot.slane %v3643_v8, 5  ;;  %v3649_v26 = vrot.slane %v3647_v51, 4  ;;  %v6757_v18 = vrot.slane %v3961_v55, 9  ;;  %v4090_v54 = vrot.slane %v8930_v19, 5  ;;  %v3964_v55 = vld [vmem:[#allocation2 + $0xa8] sm:$0xe] }
 0x12d   : > { %v9162_v1 = vsel %vm8415_vm11, %v4075_v39, %v4076_v44  ;;  %v9172_v47 = vsel %vm8415_vm11, %v6756_v50, %v4080_v6  ;;  %v4082_v37 = vrot.slane %v4080_v6, 4  ;;  %v6758_v51 = vrot.slane %v3962_v36, 9  ;;  %v7623_v36 = vld [vmem:[#allocation2 + $0x9c] sm:$0xff]   ;;  %v5507_v52 = vld [vmem:[#allocation2 + $0x24] sm:$0xe] }
 0x12e   : > { %7430 = vmatmul.mubr.msk.bf16.gmra.mxu0 %vm1904_vm2, %v9066_v21  ;;  %v3650_v58 = vor.u32 %v3649_v26, %v9138_v17  ;;  %v4087_v21 = vrot.slane %v8896_v5, 5  ;;  %v4094_v53 = vrot.slane %v8947_v32, 5  ;;  %v4097_v44 = vrot.slane %v8968_v63, 5  ;;  %v3965_v63 = vld [vmem:[#allocation2 + $0xb4] sm:$0xe] }
 0x12f   : > { %7433 = vmatprep.mubr.msk.bf16.mxu0 %vm1904_vm2, %v6729_v35  ;;  %v9186_v28 = vsel %vm8415_vm11, %v4082_v37, %v4083_v56  ;;  %v6759_v6 = vrot.slane %v3963_v29, 9  ;;  %v7622_v56 = vld [vmem:[#allocation2 + $0x90] sm:$0xff]   ;;  %v4111_v29 = vrot.slane %v9013_v22, 5  ;;  %v596_v37 = vld [vmem:[#allocation2 + $0xcc] sm:$0x1]  ;;  %v6863_v3 = vrot.slane %v5507_v52, 9 }
 0x130   : > { %v3270_v23 = vld [vmem:[#allocation2 + $0xc0] sm:$0xf]  ;;  %v3651_v60 = vrot.slane %v3650_v58, 4  ;;  %v9178_v19 = vsel %vm8415_vm11, %v6757_v18, %v4087_v21  ;;  %v4089_v8 = vrot.slane %v4087_v21, 4  ;;  %v9197_v32 = vsel %vm8415_vm11, %v6758_v51, %v4094_v53  ;;  %v7627_v51 = vld [vmem:[#allocation2 + $0x18] sm:$0xff]  }
 0x131   : > { %v9174_v7 = vld [vmem:[#allocation2 + $0xc8] sm:$0x1]  ;;  %v3634_v12 = vshrl.u32 %v3270_v23, 16  ;;  %v3637_v5 = vshll.u32 %v3270_v23, 16  ;;  %v4096_v58 = vrot.slane %v4094_v53, 4  ;;  %v4104_v21 = vrot.slane %v8984_v30, 5 }
 0x132   : > { %v3653_v40 = vshll.u32 %v9174_v7, 16  ;;  %v9193_v39 = vsel %vm8415_vm11, %v4089_v8, %v4090_v54  ;;  %v6760_v54 = vrot.slane %v3964_v55, 9  ;;  %v4115_v53 = vrot.slane %v8990_v34, 5 }
 0x133   : > { %7388 = vmatmul.mubr.msk.bf16.gmra.mxu1 %vm1904_vm2, %v7620_v15  ;;  %v3636_v14 = vrot.slane %v3634_v12, 4  ;;  %v3639_v9 = vrot.slane %v3637_v5, 5  ;;  %v9207_v12 = vsel %vm8415_vm11, %v4096_v58, %v4097_v44  ;;  %v4108_v5 = vrot.slane %v8972_v24, 5 }
 0x134   : > { %7391 = vmatprep.mubr.msk.bf16.mxu1 %vm1904_vm2, %v7621_v62  ;;  %v3655_v26 = vrot.slane %v3653_v40, 5  ;;  %v4101_v62 = vrot.slane %v8960_v4, 5  ;;  %v4118_v55 = vrot.slane %v9022_v59, 5  ;;  %v4117_v58 = vrot.slane %v4115_v53, 4 }
 0x135   : > { %v3640_v50 = vor.u32 %v3639_v9, %v3636_v14  ;;  %v9222_v24 = vsel %vm8415_vm11, %v6760_v54, %v4108_v5  ;;  %v4110_v22 = vrot.slane %v4108_v5, 4  ;;  %v3966_v14 = vld [vmem:[#allocation2 + $0xc0] sm:$0xe]  ;;  %v7667_v5 = vld [vmem:[#allocation2 + $0x14] sm:$0x1]  ;;  %v10769_v52 = vcombine.low %v9091_v48, %v9104_v38 }
 0x136   : > { %v3656_v18 = vsel %vm7879_vm7, %v3651_v60, %v3655_v26  ;;  %v9215_v4 = vsel %vm8415_vm11, %v6759_v6, %v4101_v62  ;;  %v4103_v30 = vrot.slane %v4101_v62, 4  ;;  %v6761_v60 = vrot.slane %v3965_v63, 9  ;;  %v7624_v62 = vld [vmem:[#allocation2 + $0xa8] sm:$0xff]  }
 0x137   : > { %v3641_v23 = vrot.slane %v3640_v50, 4  ;;  %v9238_v34 = vsel %vm8415_vm11, %v4110_v22, %v4111_v29  ;;  %v6762_v49 = vrot.slane %v3966_v14, 9  ;;  %v4122_v6 = vrot.slane %v9118_v31, 5 }
 0x138   : > { %v9228_v44 = vsel %vm8415_vm11, %v4103_v30, %v4104_v21  ;;  %v9242_v50 = vsel %vm8415_vm11, %v6761_v60, %v4115_v53  ;;  %v4125_v63 = vrot.slane %v9174_v7, 5  ;;  %v4019_v7 = vrot.slane %v4017_v11, 4  ;;  %v7629_v60 = vld [vmem:[#allocation2 + $0x30] sm:$0xff]   ;;  %v7668_v53 = vld [vmem:[#allocation2 + $0x1c] sm:$0xf] }
 0x139   : > { %v3646_v8 = vsel %vm7879_vm7, %v3641_v23, %v9138_v17  ;;  %v597_v17 = vsel %vm7783_vm5, 0, %v596_v37  ;;  %v9258_v54 = vsel %vm8415_vm11, %v6762_v49, %v4122_v6  ;;  %v7625_v23 = vld [vmem:[#allocation2 + $0xb4] sm:$0xff]   ;;  %v4020_v29 = vrot.slane %v7667_v5, 5  ;;  %v7628_v37 = vld [vmem:[#allocation2 + $0x24] sm:$0xff]  }
 0x13a   : > { %v6730_v9 = vcombine.low %v3646_v8, %v3656_v18  ;;  %598 = vst [vmem:[#allocation2 + $0xcc] sm:$0x1] %v597_v17  ;;  %v9252_v18 = vsel %vm8415_vm11, %v4117_v58, %v4118_v55  ;;  %v4024_v14 = vrot.slane %v7668_v53, 5  ;;  %v3952_v17 = vld [vmem:[#allocation2 + $0x18] sm:$0xe] }
 0x13b   : > { %7392 = vmatmul.mubr.msk.bf16.gmra.mxu1 %vm1904_vm2, %v7622_v56  ;;  %v3951_v56 = vld [vmem:[#allocation2 + $0xc] sm:$0xe]  ;;  %v4021_v55 = vsel %vm8415_vm11, %v4019_v7, %v4020_v29  ;;  %v7669_v58 = vld [vmem:[#allocation2 + $0x28] sm:$0xf]  ;;  %v6748_v10 = vrot.slane %v3952_v17, 9 }
 0x13c   : > { %7395 = vmatprep.mubr.msk.bf16.mxu1 %vm1904_vm2, %v7623_v36  ;;  %7434 = vmatmul.mubr.msk.bf16.gmra.mxu0 %vm1904_vm2, %v6730_v9  ;;  %v4124_v36 = vrot.slane %v4122_v6, 4  ;;  %v6747_v31 = vrot.slane %v3951_v56, 9  ;;  %v4031_v49 = vrot.slane %v7669_v58, 5  ;;  %v3953_v6 = vld [vmem:[#allocation2 + $0x24] sm:$0xe]  ;;  %v9280_v56 = vpop.f32.mrf.mxu0 }
 0x13d   : > { %7473 = vmatprep.mubr.msk.bf16.mxu0 %vm1904_vm2, %v7627_v51  ;;  %v10760_v51 = vld [vmem:[#allocation12_spill] sm:$0xff]  ;;  %v7671_v7 = vld [vmem:[#allocation2 + $0x2c] sm:$0x1]  ;;  %v9308_v21 = vld [vmem:[#allocation2 + $0x34] sm:$0xf] }
 0x13e   : > { %v9264_v30 = vsel %vm8415_vm11, %v4124_v36, %v4125_v63  ;;  %v5781_v22 = vsel %vm1953_vm0, %v10760_v51, 0  ;;  %v4018_v9 = vsel %vm8415_vm11, %v6747_v31, %v4017_v11  ;;  %v7626_v63 = vld [vmem:[#allocation2 + $0xc0] sm:$0xff]   ;;  %v4026_v36 = vrot.slane %v4024_v14, 4  ;;  %v7631_v51 = vld [vmem:[#allocation2 + $0x48] sm:$0xff]  }
 0x13f   : > { %v6749_v31 = vrot.slane %v3953_v6, 9  ;;  %v4033_v5 = vrot.slane %v4031_v49, 4  ;;  %v4034_v29 = vrot.slane %v7671_v7, 5  ;;  %v7633_v7 = vld [vmem:[#allocation2 + $0x60] sm:$0xff]  }
 0x141   : > { %v4035_v17 = vsel %vm8415_vm11, %v4033_v5, %v4034_v29  ;;  %v9302_v5 = vld [vmem:[#allocation2 + $0x20] sm:$0x1]  ;;  %v5506_v29 = vld [vmem:[#allocation2 + $0x18] sm:$0xe] }
 0x142   : > { %v6862_v59 = vrot.slane %v5506_v29, 9  ;;  %v5575_v26 = vrot.slane %v9302_v5, 5  ;;  %v4890_v29 = vshrl.u32 %v9308_v21, 16 }
 0x143   : > { %7396 = vmatmul.mubr.msk.bf16.gmra.mxu1 %vm1904_vm2, %v7624_v62  ;;  %v6764_v62 = vcombine.low %v4018_v9, %v4021_v55  ;;  %v4780_v9 = vld [vmem:[#allocation2 + $0x18] sm:$0xf]  ;;  %v4032_v55 = vsel %vm8415_vm11, %v6749_v31, %v4031_v49  ;;  %v9300_v49 = vld [vmem:[#allocation2 + $0x28] sm:$0xf]  ;;  %v4783_v31 = vld [vmem:[#allocation2 + $0x24] sm:$0xf] }
 0x144   : > { %7399 = vmatprep.mubr.msk.bf16.mxu1 %vm1904_vm2, %v7625_v23  ;;  %7474 = vmatmul.mubr.msk.bf16.vlgmr.msra.gmra.mxu0 %vm1904_vm2, %v7628_v37  ;;  %v7670_v23 = vld [vmem:[#allocation2 + $0x20] sm:$0x1]  ;;  %v4856_v8 = vshll.u32 %v4783_v31, 16  ;;  %v4866_v40 = vshrl.u32 %v9300_v49, 16  ;;  %v5579_v35 = vrot.slane %v9300_v49, 5 }
 0x145   : > { %7540 = vmatpush3.bf16.msra.mxu0 %v5781_v22  ;;  %7477 = vmatprep.mubr.msk.bf16.mxu0 %vm1904_vm2, %v7629_v60  ;;  %v4027_v11 = vrot.slane %v7670_v23, 5  ;;  %v7630_v37 = vld [vmem:[#allocation2 + $0x3c] sm:$0xff]   ;;  %v9283_v22 = vpop.f32.mrf.mxu0  ;;  %v4025_v60 = vsel %vm8415_vm11, %v6748_v10, %v4024_v14  ;;  %v4832_v14 = vshll.u32 %v4780_v9, 16  ;;  %v6766_v10 = vcombine.low %v4032_v55, %v4035_v17  ;;  %v7632_v23 = vld [vmem:[#allocation2 + $0x54] sm:$0xff]   ;;  %v4786_v17 = vld [vmem:[#allocation2 + $0x30] sm:$0xf] }
 0x146   : > { %10761 = vst [vmem:[#allocation3_spill] sm:$0xff] %v9283_v22  ;;  %v4858_v0 = vrot.slane %v4856_v8, 5  ;;  %v10766_v8 = vcombine.low %v9079_v2, %v9087_v46  ;;  %v9358_v38 = vsel %vm8415_vm11, %v6863_v3, %v5579_v35 }
 0x147   : > { %v4028_v53 = vsel %vm8415_vm11, %v4026_v36, %v4027_v11  ;;  %v9296_v6 = vpop.f32.mrf.mxu0  ;;  %v10763_v36 = vld [vmem:[#allocation10_spill] sm:$0xff] }
 0x148   : > { %v6765_v58 = vcombine.low %v4025_v60, %v4028_v53  ;;  %10762 = vst [vmem:[#allocation6_spill] sm:$0xff] %v9296_v6  ;;  %v5311_v11 = vsel %vm1953_vm0, %v10763_v36, 0  ;;  %v4853_v36 = vshrl.u32 %v4783_v31, 16  ;;  %v10772_v6 = vcombine.low %v9098_v61, %v9114_v45 }
 0x149   : > { %v9305_v60 = vpop.f32.mrf.mxu0 }
 0x14a   : > { %10764 = vst [vmem:[#allocation5_spill] sm:$0xff] %v9305_v60  ;;  %v4855_v33 = vrot.slane %v4853_v36, 4 }
 0x14b   : > { %7400 = vmatmul.mubr.msk.bf16.gmra.mxu1 %vm1904_vm2, %v7626_v63  ;;  %v4781_v63 = vld [vmem:[#allocation2 + $0x1c] sm:$0xf] }
 0x14c   : > { %7439 = vmatprep.mubr.msk.bf16.mxu1 %vm1904_vm2, %v6764_v62  ;;  %7478 = vmatmul.mubr.msk.bf16.gmra.mxu0 %vm1904_vm2, %v7630_v37  ;;  %v4829_v62 = vshrl.u32 %v4780_v9, 16  ;;  %v5572_v37 = vrot.slane %v4781_v63, 5  ;;  %v4834_v9 = vrot.slane %v4832_v14, 5  ;;  %v4842_v55 = vshrl.u32 %v4781_v63, 16 }
 0x14d   : > { %7481 = vmatprep.mubr.msk.bf16.mxu0 %vm1904_vm2, %v7631_v51  ;;  %v4838_v51 = vshll.u32 %v4781_v63, 16  ;;  %v4877_v14 = vshrl.u32 %v4786_v17, 16  ;;  %v4859_v46 = vor.u32 %v4858_v0, %v4855_v33 }
 0x14e   : > { %v4831_v53 = vrot.slane %v4829_v62, 4  ;;  %v5574_v63 = vrot.slane %v5572_v37, 4  ;;  %v4844_v15 = vrot.slane %v4842_v55, 4 }
 0x14f   : > { %v9315_v62 = vrot.slane %v4838_v51, 5  ;;  %v4848_v51 = vshll.u32 %v9302_v5, 16 }
 0x150   : > { %v4835_v31 = vor.u32 %v4834_v9, %v4831_v53  ;;  %v4868_v53 = vrot.slane %v4866_v40, 4  ;;  %v7635_v9 = vld [vmem:[#allocation2 + $0x78] sm:$0xff]   ;;  %v9331_v55 = vsel %vm8415_vm11, %v5574_v63, %v5575_v26  ;;  %v4892_v26 = vrot.slane %v4890_v29, 4 }
 0x151   : > { %v4845_v40 = vor.u32 %v4844_v15, %v9315_v62  ;;  %v5581_v63 = vrot.slane %v5579_v35, 4  ;;  %v5586_v15 = vrot.slane %v9308_v21, 5  ;;  %v4850_v48 = vrot.slane %v4848_v51, 5  ;;  %v4789_v51 = vld [vmem:[#allocation2 + $0x3c] sm:$0xf] }
 0x152   : > { %v4860_v35 = vrot.slane %v4859_v46, 4 }
 0x153   : > { %7440 = vmatmul.mubr.msk.bf16.vlgmr.msra.gmra.mxu1 %vm1904_vm2, %v6765_v58  ;;  %v4862_v58 = vshll.u32 %v9300_v49, 16  ;;  %v4879_v49 = vrot.slane %v4877_v14, 4 }
 0x154   : > { %7506 = vmatpush3.bf16.msra.mxu1 %v5311_v11  ;;  %7443 = vmatprep.mubr.msk.bf16.mxu1 %vm1904_vm2, %v6766_v10  ;;  %v4880_v10 = vshll.u32 %v4786_v17, 16  ;;  %v9317_v11 = vpop.f32.mrf.mxu0  ;;  %v4785_v17 = vld [vmem:[#allocation2 + $0x2c] sm:$0x1] }
 0x155   : > { %7482 = vmatmul.mubr.msk.bf16.gmra.mxu0 %vm1904_vm2, %v7632_v23  ;;  %10765 = vst [vmem:[#allocation7_spill] sm:$0xff] %v9317_v11  ;;  %v4886_v23 = vshll.u32 %v9308_v21, 16  ;;  %v9327_v43 = vrot.slane %v4862_v58, 5  ;;  %v5582_v2 = vrot.slane %v4785_v17, 5  ;;  %v4872_v14 = vshll.u32 %v4785_v17, 16 }
 0x156   : > { %7485 = vmatprep.mubr.msk.bf16.mxu0 %vm1904_vm2, %v7633_v7  ;;  %v9324_v7 = vsel %vm8415_vm11, %v6862_v59, %v5572_v37  ;;  %v4882_v36 = vrot.slane %v4880_v10, 5  ;;  %v9337_v59 = vpop.f32.mrf.mxu1  ;;  %v9339_v5 = vpop.f32.mrf.mxu0  ;;  %v9341_v37 = vrot.slane %v4835_v31, 4  ;;  %v4788_v10 = vld [vmem:[#allocation2 + $0x38] sm:$0x1]  ;;  %v4846_v21 = vrot.slane %v4845_v40, 4 }
 0x157   : > { %10767 = vst [vmem:[#allocation11_spill] sm:$0xff] %v9337_v59  ;;  %10768 = vst [vmem:[#allocation8_spill] sm:$0xff] %v9339_v5  ;;  %v9344_v58 = vrot.slane %v4886_v23, 5  ;;  %v4869_v31 = vor.u32 %v4868_v53, %v9327_v43  ;;  %v4896_v53 = vshll.u32 %v4788_v10, 16  ;;  %v7637_v23 = vld [vmem:[#allocation2 + $0x90] sm:$0xff]   ;;  %v9371_v3 = vsel %vm8415_vm11, %v5581_v63, %v5582_v2 }
 0x158   : > { %v4883_v0 = vor.u32 %v4882_v36, %v4879_v49  ;;  %v9360_v33 = vpop.f32.mrf.mxu1  ;;  %v9362_v29 = vpop.f32.mrf.mxu0  ;;  %v4874_v49 = vrot.slane %v4872_v14, 5  ;;  %v5588_v59 = vrot.slane %v5586_v15, 4  ;;  %v5509_v5 = vld [vmem:[#allocation2 + $0x3c] sm:$0xe]  ;;  %v9373_v40 = vld [vmem:[#allocation2 + $0x44] sm:$0x1]  ;;  %v4851_v46 = vsel %vm7879_vm7, %v4846_v21, %v4850_v48 }
 0x159   : > { %10770 = vst [vmem:[#allocation9_spill] sm:$0xff] %v9360_v33  ;;  %10771 = vst [vmem:[#allocation12_spill] sm:$0xff] %v9362_v29  ;;  %v4893_v17 = vor.u32 %v4892_v26, %v9344_v58  ;;  %v4870_v33 = vrot.slane %v4869_v31, 4  ;;  %v5589_v29 = vrot.slane %v4788_v10, 5  ;;  %v4901_v26 = vshrl.u32 %v4789_v51, 16 }
 0x15a   : > { %v4904_v11 = vshll.u32 %v4789_v51, 16  ;;  %v9379_v63 = vpop.f32.mrf.mxu1  ;;  %v9381_v2 = vpop.f32.mrf.mxu0  ;;  %v4898_v10 = vrot.slane %v4896_v53, 5  ;;  %v4865_v45 = vsel %vm7879_vm7, %v4860_v35, %v9327_v43  ;;  %v6865_v48 = vrot.slane %v5509_v5, 9 }
 0x15b   : > { %7444 = vmatmul.mubr.msk.bf16.gmra.mxu1 %vm1904_vm2, %v10766_v8  ;;  %v5508_v8 = vld [vmem:[#allocation2 + $0x30] sm:$0xe]  ;;  %10773 = vst [vmem:[#allocation10_spill] sm:$0xff] %v9379_v63  ;;  %10774 = vst [vmem:[#allocation13_spill] sm:$0xff] %v9381_v2  ;;  %v4894_v14 = vrot.slane %v4893_v17, 4  ;;  %v5596_v17 = vrot.slane %v9373_v40, 5 }
 0x15c   : > { %7447 = vmatprep.mubr.msk.bf16.mxu1 %vm1904_vm2, %v10769_v52  ;;  %v7636_v52 = vld [vmem:[#allocation2 + $0x84] sm:$0xff]   ;;  %v6864_v36 = vrot.slane %v5508_v8, 9  ;;  %v10775_v8 = vcombine.low %v9124_v13, %v9134_v20  ;;  %v4875_v13 = vsel %vm7879_vm7, %v4870_v33, %v4874_v49  ;;  %v9403_v20 = vsel %vm8415_vm11, %v5588_v59, %v5589_v29  ;;  %v9412_v51 = vpop.f32.mrf.mxu1  ;;  %v9414_v33 = vpop.f32.mrf.mxu0  ;;  %v7640_v63 = vld [vmem:[#allocation2 + $0xb4] sm:$0xff]  }
 0x15d   : > { %7486 = vmatmul.mubr.msk.bf16.gmra.mxu0 %vm1904_vm2, %v7634_v41  ;;  %v4841_v41 = vsel %vm7879_vm7, %v9341_v37, %v9315_v62  ;;  %v4884_v37 = vrot.slane %v4883_v0, 4  ;;  %v4792_v0 = vld [vmem:[#allocation2 + $0x48] sm:$0xf]  ;;  %v4903_v5 = vrot.slane %v4901_v26, 4  ;;  %10776 = vst [vmem:[#allocation14_spill] sm:$0xff] %v9412_v51  ;;  %10777 = vst [vmem:[#allocation15_spill] sm:$0xff] %v9414_v33  ;;  %v4899_v59 = vsel %vm7879_vm7, %v4894_v14, %v4898_v10 }
 0x15e   : > { %7489 = vmatprep.mubr.msk.bf16.mxu0 %vm1904_vm2, %v7635_v9  ;;  %v4790_v9 = vld [vmem:[#allocation2 + $0x40] sm:$0xf]  ;;  %v9418_v49 = vcombine.low %v4841_v41, %v4851_v46  ;;  %v4928_v41 = vshll.u32 %v4792_v0, 16  ;;  %v9443_v61 = vpop.f32.mrf.mxu1 }
 0x15f   : > { %v5593_v62 = vrot.slane %v4790_v9, 5  ;;  %v4910_v60 = vshll.u32 %v4790_v9, 16  ;;  %v4914_v31 = vshrl.u32 %v4790_v9, 16  ;;  %v4889_v43 = vsel %vm7879_vm7, %v4884_v37, %v9344_v58  ;;  %v4793_v9 = vld [vmem:[#allocation2 + $0x4c] sm:$0xf]  ;;  %v7638_v26 = vld [vmem:[#allocation2 + $0x9c] sm:$0xff]  }
 0x160   : > { %v5600_v35 = vrot.slane %v4793_v9, 5  ;;  %v9428_v58 = vld [vmem:[#allocation2 + $0x50] sm:$0x1]  ;;  %v9430_v37 = vld [vmem:[#allocation2 + $0x58] sm:$0xf]  ;;  %v4934_v46 = vshll.u32 %v4793_v9, 16 }
 0x161   : > { %v5595_v21 = vrot.slane %v5593_v62, 4  ;;  %v9410_v53 = vrot.slane %v4910_v60, 5  ;;  %v4916_v29 = vrot.slane %v4914_v31, 4  ;;  %v4938_v10 = vshrl.u32 %v4793_v9, 16  ;;  %v4795_v31 = vld [vmem:[#allocation2 + $0x54] sm:$0xf] }
 0x162   : > { %v10778_v60 = vcombine.low %v9144_v42, %v9158_v57  ;;  %10779 = vst [vmem:[#allocation16_spill] sm:$0xff] %v9443_v61  ;;  %v5603_v9 = vrot.slane %v9428_v58, 5  ;;  %v4952_v42 = vshll.u32 %v4795_v31, 16  ;;  %v4958_v57 = vshll.u32 %v9430_v37, 16 }
 0x163   : > { %7448 = vmatmul.mubr.msk.bf16.gmra.mxu1 %vm1904_vm2, %v10772_v6  ;;  %v9396_v6 = vsel %vm8415_vm11, %v6864_v36, %v5586_v15  ;;  %v4906_v15 = vrot.slane %v4904_v11, 5  ;;  %v9420_v36 = vcombine.low %v4865_v45, %v4875_v13  ;;  %v9426_v11 = vsel %vm8415_vm11, %v6865_v48, %v5593_v62 }
 0x164   : > { %7451 = vmatprep.mubr.msk.bf16.mxu1 %vm1904_vm2, %v10775_v8  ;;  %v9434_v14 = vsel %vm8415_vm11, %v5595_v21, %v5596_v17  ;;  %v7639_v8 = vld [vmem:[#allocation2 + $0xa8] sm:$0xff]   ;;  %v9436_v45 = vcombine.low %v4889_v43, %v4899_v59  ;;  %v4920_v62 = vshll.u32 %v9373_v40, 16  ;;  %v9445_v21 = vpop.f32.mrf.mxu0  ;;  %v5602_v17 = vrot.slane %v5600_v35, 4  ;;  %v5511_v40 = vld [vmem:[#allocation2 + $0x54] sm:$0xe] }
 0x165   : > { %7490 = vmatmul.mubr.msk.bf16.gmra.mxu0 %vm1904_vm2, %v7636_v52  ;;  %v5510_v52 = vld [vmem:[#allocation2 + $0x48] sm:$0xe]  ;;  %v4907_v13 = vor.u32 %v4906_v15, %v4903_v5  ;;  %10780 = vst [vmem:[#allocation17_spill] sm:$0xff] %v9445_v21  ;;  %v10781_v5 = vcombine.low %v9148_v27, %v9162_v1  ;;  %v4949_v15 = vshrl.u32 %v4795_v31, 16  ;;  %v4962_v59 = vshrl.u32 %v9430_v37, 16 }
 0x166   : > { %7493 = vmatprep.mubr.msk.bf16.mxu0 %vm1904_vm2, %v7637_v23  ;;  %v4925_v23 = vshrl.u32 %v4792_v0, 16  ;;  %v6866_v48 = vrot.slane %v5510_v52, 9  ;;  %v4917_v0 = vor.u32 %v4916_v29, %v9410_v53  ;;  %v4930_v52 = vrot.slane %v4928_v41, 5  ;;  %v9470_v41 = vld [vmem:[#allocation2 + $0x64] sm:$0xf] }
 0x167   : > { %v9456_v29 = vrot.slane %v4934_v46, 5  ;;  %v9462_v1 = vrot.slane %v4907_v13, 4  ;;  %v9464_v31 = vrot.slane %v4920_v62, 5  ;;  %v9472_v46 = vpop.f32.mrf.mxu1  ;;  %v4944_v13 = vshll.u32 %v9428_v58, 16  ;;  %v4798_v27 = vld [vmem:[#allocation2 + $0x60] sm:$0xf] }
 0x168   : > { %v4927_v43 = vrot.slane %v4925_v23, 4  ;;  %v5607_v23 = vrot.slane %v9430_v37, 5  ;;  %10782 = vst [vmem:[#allocation18_spill] sm:$0xff] %v9472_v46  ;;  %v4918_v37 = vrot.slane %v4917_v0, 4  ;;  %v6867_v62 = vrot.slane %v5511_v40, 9  ;;  %v7641_v0 = vld [vmem:[#allocation2 + $0xc0] sm:$0xff]  }
 0x169   : > { %v4951_v61 = vrot.slane %v4949_v15, 4  ;;  %v4954_v51 = vrot.slane %v4952_v42, 5  ;;  %v4973_v2 = vshrl.u32 %v4798_v27, 16  ;;  %v4976_v22 = vshll.u32 %v4798_v27, 16  ;;  %v9490_v40 = vpop.f32.mrf.mxu1  ;;  %v5512_v27 = vld [vmem:[#allocation2 + $0x60] sm:$0xe] }
 0x16a   : > { %v4931_v21 = vor.u32 %v4930_v52, %v4927_v43  ;;  %v5609_v33 = vrot.slane %v5607_v23, 4  ;;  %v4986_v58 = vshrl.u32 %v9470_v41, 16  ;;  %10785 = vst [vmem:[#allocation20_spill] sm:$0xff] %v9490_v40  ;;  %v4913_v43 = vsel %vm7879_vm7, %v9462_v1, %v9410_v53  ;;  %v4801_v1 = vld [vmem:[#allocation2 + $0x6c] sm:$0xf] }
 0x16b   : > { %7452 = vmatmul.mubr.msk.bf16.gmra.mxu1 %vm1904_vm2, %v10778_v60  ;;  %v4940_v60 = vrot.slane %v4938_v10, 4  ;;  %v9474_v10 = vpop.f32.mrf.mxu0  ;;  %v4923_v42 = vsel %vm7879_vm7, %v4918_v37, %v9464_v31  ;;  %v4955_v52 = vor.u32 %v4954_v51, %v4951_v61  ;;  %v5614_v53 = vrot.slane %v9470_v41, 5  ;;  %v7642_v40 = vld [vmem:[#allocation2 + $0xcc] sm:$0xff]  }
 0x16c   : > { %7455 = vmatprep.mubr.msk.bf16.mxu1 %vm1904_vm2, %v10781_v5  ;;  %v9468_v5 = vsel %vm8415_vm11, %v6866_v48, %v5600_v35  ;;  %10783 = vst [vmem:[#allocation19_spill] sm:$0xff] %v9474_v10  ;;  %v9481_v35 = vrot.slane %v4958_v57, 5  ;;  %v4964_v48 = vrot.slane %v4962_v59, 4  ;;  %v4932_v31 = vrot.slane %v4931_v21, 4 }
 0x16d   : > { %7494 = vmatmul.mubr.msk.bf16.gmra.mxu0 %vm1904_vm2, %v7638_v26  ;;  %v4797_v26 = vld [vmem:[#allocation2 + $0x5c] sm:$0x1]  ;;  %v4941_v46 = vor.u32 %v4940_v60, %v9456_v29  ;;  %v9492_v15 = vpop.f32.mrf.mxu0  ;;  %v4975_v61 = vrot.slane %v4973_v2, 4  ;;  %v4978_v51 = vrot.slane %v4976_v22, 5  ;;  %v9529_v22 = vcombine.low %v4913_v43, %v4923_v42 }
 0x16e   : > { %7497 = vmatprep.mubr.msk.bf16.mxu0 %vm1904_vm2, %v7639_v8  ;;  %v9478_v8 = vsel %vm8415_vm11, %v5602_v17, %v5603_v9  ;;  %v5610_v10 = vrot.slane %v4797_v26, 5  ;;  %v4982_v17 = vshll.u32 %v9470_v41, 16  ;;  %v10784_v9 = vcombine.low %v9172_v47, %v9186_v28  ;;  %10786 = vst [vmem:[#allocation21_spill] sm:$0xff] %v9492_v15 }
 0x16f   : > { %v4968_v59 = vshll.u32 %v4797_v26, 16  ;;  %v10787_v47 = vcombine.low %v9178_v19, %v9193_v39  ;;  %v9507_v28 = vrot.slane %v4944_v13, 5  ;;  %v4965_v60 = vor.u32 %v4964_v48, %v9481_v35  ;;  %v4800_v39 = vld [vmem:[#allocation2 + $0x68] sm:$0x1]  ;;  %v4802_v48 = vld [vmem:[#allocation2 + $0x70] sm:$0xf] }
 0x170   : > { %v4942_v37 = vrot.slane %v4941_v46, 4  ;;  %v9514_v26 = vsel %vm8415_vm11, %v6867_v62, %v5607_v23  ;;  %v9518_v19 = vsel %vm8415_vm11, %v5609_v33, %v5610_v10  ;;  %v9521_v13 = vrot.slane %v4982_v17, 5  ;;  %v5513_v17 = vld [vmem:[#allocation2 + $0x6c] sm:$0xe] }
 0x171   : > { %v4988_v41 = vrot.slane %v4986_v58, 4  ;;  %v4970_v46 = vrot.slane %v4968_v59, 5  ;;  %v6868_v23 = vrot.slane %v5512_v27, 9  ;;  %v4997_v62 = vshrl.u32 %v4801_v1, 16 }
 0x172   : > { %v4966_v33 = vrot.slane %v4965_v60, 4  ;;  %v5616_v10 = vrot.slane %v5614_v53, 4  ;;  %v5617_v57 = vrot.slane %v4800_v39, 5  ;;  %v4992_v2 = vshll.u32 %v4800_v39, 16  ;;  %v9601_v39 = vld [vmem:[#allocation2 + $0x88] sm:$0xf] }
 0x173   : > { %7456 = vmatmul.mubr.msk.bf16.gmra.mxu1 %vm1904_vm2, %v10784_v9  ;;  %v5000_v9 = vshll.u32 %v4801_v1, 16  ;;  %v5006_v58 = vshll.u32 %v4802_v48, 16  ;;  %v5010_v15 = vshrl.u32 %v4802_v48, 16  ;;  %v4937_v59 = vsel %vm7879_vm7, %v4932_v31, %v9456_v29 }
 0x174   : > { %7459 = vmatprep.mubr.msk.bf16.mxu1 %vm1904_vm2, %v10787_v47  ;;  %v4956_v47 = vrot.slane %v4955_v52, 4  ;;  %v4947_v52 = vsel %vm7879_vm7, %v4942_v37, %v9507_v28  ;;  %v4979_v60 = vor.u32 %v4978_v51, %v4975_v61  ;;  %v4989_v27 = vor.u32 %v4988_v41, %v9521_v13  ;;  %v4804_v37 = vld [vmem:[#allocation2 + $0x78] sm:$0xf]  ;;  %v9565_v41 = vld [vmem:[#allocation2 + $0x7c] sm:$0xf] }
 0x175   : > { %7498 = vmatmul.mubr.msk.bf16.gmra.mxu0 %vm1904_vm2, %v7640_v63  ;;  %v9523_v63 = vpop.f32.mrf.mxu1  ;;  %v10791_v1 = vcombine.low %v9197_v32, %v9207_v12  ;;  %v9550_v29 = vsel %vm8415_vm11, %v6868_v23, %v5614_v53  ;;  %v4999_v28 = vrot.slane %v4997_v62, 4  ;;  %v5002_v31 = vrot.slane %v5000_v9, 5 }
 0x176   : > { %7501 = vmatprep.mubr.msk.bf16.mxu0 %vm1904_vm2, %v7641_v0  ;;  %10788 = vst [vmem:[#allocation22_spill] sm:$0xff] %v9523_v63  ;;  %v9525_v21 = vpop.f32.mrf.mxu0  ;;  %v10794_v61 = vcombine.low %v9215_v4, %v9228_v44  ;;  %v4961_v32 = vsel %vm7879_vm7, %v4956_v47, %v9481_v35  ;;  %v4971_v12 = vsel %vm7879_vm7, %v4966_v33, %v4970_v46  ;;  %v6869_v53 = vrot.slane %v5513_v17, 9  ;;  %v4803_v44 = vld [vmem:[#allocation2 + $0x74] sm:$0x1] }
 0x177   : > { %10789 = vst [vmem:[#allocation23_spill] sm:$0xff] %v9525_v21  ;;  %v9542_v43 = vpop.f32.mrf.mxu1  ;;  %v9563_v51 = vsel %vm8415_vm11, %v5616_v10, %v5617_v57  ;;  %v4994_v4 = vrot.slane %v4992_v2, 5  ;;  %v5621_v62 = vrot.slane %v4802_v48, 5  ;;  %v9570_v9 = vrot.slane %v5006_v58, 5 }
 0x178   : > { %v9527_v0 = vpop.f32.mrf.mxu0  ;;  %10792 = vst [vmem:[#allocation25_spill] sm:$0xff] %v9542_v43  ;;  %v5012_v35 = vrot.slane %v5010_v15, 4  ;;  %v10796_v46 = vcombine.low %v9324_v7, %v9331_v55  ;;  %v4980_v57 = vrot.slane %v4979_v60, 4  ;;  %v4990_v47 = vrot.slane %v4989_v27, 4  ;;  %v5514_v27 = vld [vmem:[#allocation2 + $0x78] sm:$0xe] }
 0x179   : > { %10790 = vst [vmem:[#allocation24_spill] sm:$0xff] %v9527_v0  ;;  %v5021_v33 = vshrl.u32 %v4804_v37, 16  ;;  %v5024_v10 = vshll.u32 %v4804_v37, 16  ;;  %v9576_v17 = vpop.f32.mrf.mxu1  ;;  %v5003_v2 = vor.u32 %v5002_v31, %v4999_v28  ;;  %v5030_v48 = vshll.u32 %v9565_v41, 16  ;;  %v4806_v28 = vld [vmem:[#allocation2 + $0x80] sm:$0x1] }
 0x17a   : > { %v9544_v42 = vpop.f32.mrf.mxu0  ;;  %10797 = vst [vmem:[#allocation28_spill] sm:$0xff] %v9576_v17  ;;  %v5034_v15 = vshrl.u32 %v9565_v41, 16  ;;  %v9584_v58 = vcombine.low %v4961_v32, %v4971_v12  ;;  %v5624_v55 = vrot.slane %v4803_v44, 5  ;;  %v5016_v60 = vshll.u32 %v4803_v44, 16  ;;  %v4807_v32 = vld [vmem:[#allocation2 + $0x84] sm:$0xf] }
 0x17b   : > { %7460 = vmatmul.mubr.msk.bf16.gmra.mxu1 %vm1904_vm2, %v10791_v1  ;;  %10793 = vst [vmem:[#allocation26_spill] sm:$0xff] %v9544_v42  ;;  %v9580_v1 = vcombine.low %v4937_v59, %v4947_v52  ;;  %v5623_v59 = vrot.slane %v5621_v62, 4  ;;  %v5013_v52 = vor.u32 %v5012_v35, %v9570_v9  ;;  %v5628_v31 = vrot.slane %v9565_v41, 5 }
 0x17c   : > { %7463 = vmatprep.mubr.msk.bf16.mxu1 %vm1904_vm2, %v10794_v61  ;;  %v9568_v23 = vpop.f32.mrf.mxu0  ;;  %v9592_v61 = vsel %vm8415_vm11, %v6869_v53, %v5621_v62  ;;  %v4985_v12 = vsel %vm7879_vm7, %v4980_v57, %v9521_v13  ;;  %v4995_v44 = vsel %vm7879_vm7, %v4990_v47, %v4994_v4  ;;  %v5026_v7 = vrot.slane %v5024_v10, 5  ;;  %v9607_v62 = vpop.f32.mrf.mxu1 }
 0x17d   : > { %7502 = vmatmul.mubr.msk.bf16.gmra.mxu0 %vm1904_vm2, %v7642_v40  ;;  %10795 = vst [vmem:[#allocation27_spill] sm:$0xff] %v9568_v23  ;;  %v10798_v53 = vcombine.low %v9222_v24, %v9238_v34  ;;  %10799 = vst [vmem:[#allocation29_spill] sm:$0xff] %v9607_v62  ;;  %v5004_v35 = vrot.slane %v5003_v2, 4  ;;  %v6870_v17 = vrot.slane %v5514_v27, 9  ;;  %v9611_v43 = vrot.slane %v5030_v48, 5 }
 0x17e   : > { %7541 = vmatprep.mubr.msk.bf16.mxu0 %vm1904_vm2, %v10796_v46  ;;  %v9578_v40 = vpop.f32.mrf.mxu0  ;;  %v5023_v46 = vrot.slane %v5021_v33, 4  ;;  %v5036_v13 = vrot.slane %v5034_v15, 4  ;;  %v10800_v4 = vcombine.low %v9242_v50, %v9252_v18  ;;  %v5018_v57 = vrot.slane %v5016_v60, 5  ;;  %v4810_v50 = vld [vmem:[#allocation2 + $0x90] sm:$0xf] }
 0x17f   : > { %v5631_v47 = vrot.slane %v4806_v28, 5  ;;  %v5045_v33 = vshrl.u32 %v4807_v32, 16  ;;  %v5048_v24 = vshll.u32 %v4807_v32, 16  ;;  %v10801_v34 = vcombine.low %v9358_v38, %v9371_v3  ;;  %v9636_v32 = vpop.f32.mrf.mxu1 }
 0x180   : > { %v9588_v37 = vpop.f32.mrf.mxu0  ;;  %v5014_v2 = vrot.slane %v5013_v52, 4  ;;  %v5630_v48 = vrot.slane %v5628_v31, 4  ;;  %v5054_v15 = vshll.u32 %v9601_v39, 16  ;;  %v5058_v27 = vshrl.u32 %v9601_v39, 16  ;;  %10803 = vst [vmem:[#allocation30_spill] sm:$0xff] %v9636_v32 }
 0x181   : > { %v10802_v18 = vcombine.low %v9396_v6, %v9403_v20  ;;  %v9629_v60 = vcombine.low %v4985_v12, %v4995_v44  ;;  %v9633_v38 = vsel %vm8415_vm11, %v5623_v59, %v5624_v55  ;;  %v5027_v3 = vor.u32 %v5026_v7, %v5023_v46  ;;  %v4809_v55 = vld [vmem:[#allocation2 + $0x8c] sm:$0x1]  ;;  %v5515_v59 = vld [vmem:[#allocation2 + $0x84] sm:$0xe] }
 0x182   : > { %v9609_v41 = vpop.f32.mrf.mxu0  ;;  %v5635_v52 = vrot.slane %v9601_v39, 5  ;;  %v9645_v6 = vsel %vm8415_vm11, %v6870_v17, %v5628_v31  ;;  %v5037_v20 = vor.u32 %v5036_v13, %v9611_v43  ;;  %v5040_v12 = vshll.u32 %v4806_v28, 16  ;;  %v9648_v39 = vld [vmem:[#allocation2 + $0x94] sm:$0xf] }
 0x183   : > { %7464 = vmatmul.mubr.msk.bf16.gmra.mxu1 %vm1904_vm2, %v10798_v53  ;;  %v5047_v7 = vrot.slane %v5045_v33, 4  ;;  %v5050_v44 = vrot.slane %v5048_v24, 5  ;;  %v5069_v46 = vshrl.u32 %v4810_v50, 16  ;;  %v9656_v17 = vsel %vm8415_vm11, %v5630_v48, %v5631_v47 }
 0x184   : > { %7467 = vmatprep.mubr.msk.bf16.mxu1 %vm1904_vm2, %v10800_v4  ;;  %v9621_v10 = vpop.f32.mrf.mxu0  ;;  %v5009_v4 = vsel %vm7879_vm7, %v5004_v35, %v9570_v9  ;;  %v5019_v9 = vsel %vm7879_vm7, %v5014_v2, %v5018_v57  ;;  %v9658_v31 = vrot.slane %v5054_v15, 5  ;;  %v5060_v28 = vrot.slane %v5058_v27, 4  ;;  %v5516_v27 = vld [vmem:[#allocation2 + $0x90] sm:$0xe] }
 0x185   : > { %7542 = vmatmul.mubr.msk.bf16.vlgmr.msra.gmra.mxu0 %vm1904_vm2, %v10801_v34  ;;  %v5072_v34 = vshll.u32 %v4810_v50, 16  ;;  %v5028_v35 = vrot.slane %v5027_v3, 4  ;;  %v6871_v13 = vrot.slane %v5515_v59, 9  ;;  %v5637_v33 = vrot.slane %v5635_v52, 4 }
 0x186   : > { %7545 = vmatprep.mubr.msk.bf16.mxu0 %vm1904_vm2, %v10802_v18  ;;  %v9638_v53 = vpop.f32.mrf.mxu0  ;;  %v5638_v24 = vrot.slane %v4809_v55, 5  ;;  %v10805_v50 = vcombine.low %v9258_v54, %v9264_v30  ;;  %v5038_v57 = vrot.slane %v5037_v20, 4  ;;  %v5042_v2 = vrot.slane %v5040_v12, 5 }
 0x187   : > { %v5078_v47 = vshll.u32 %v9648_v39, 16  ;;  %v5082_v48 = vshrl.u32 %v9648_v39, 16  ;;  %v5051_v15 = vor.u32 %v5050_v44, %v5047_v7  ;;  %v5642_v3 = vrot.slane %v9648_v39, 5  ;;  %v4812_v44 = vld [vmem:[#allocation2 + $0x98] sm:$0x1] }
 0x188   : > { %v9650_v18 = vpop.f32.mrf.mxu0  ;;  %v5071_v59 = vrot.slane %v5069_v46, 4  ;;  %v10807_v30 = vcombine.low %v9426_v11, %v9434_v14  ;;  %v5064_v7 = vshll.u32 %v4809_v55, 16  ;;  %v10808_v39 = vcombine.low %v9468_v5, %v9478_v8  ;;  %v4814_v46 = vld [vmem:[#allocation2 + $0xa0] sm:$0xf] }
 0x189   : > { %v5033_v14 = vsel %vm7879_vm7, %v5028_v35, %v9611_v43  ;;  %v9701_v55 = vsel %vm8415_vm11, %v5637_v33, %v5638_v24  ;;  %v5043_v8 = vsel %vm7879_vm7, %v5038_v57, %v5042_v2  ;;  %v5084_v43 = vrot.slane %v5082_v48, 4  ;;  %v4813_v35 = vld [vmem:[#allocation2 + $0x9c] sm:$0xf] }
 0x18a   : > { %v9666_v62 = vpop.f32.mrf.mxu0  ;;  %v5517_v33 = vld [vmem:[#allocation2 + $0x9c] sm:$0xe]  ;;  %v5088_v57 = vshll.u32 %v4812_v44, 16  ;;  %v5649_v2 = vrot.slane %v4814_v46, 5  ;;  %v5096_v48 = vshll.u32 %v4813_v35, 16 }
 0x18b   : > { %v9660_v32 = vpop.f32.mrf.mxu1  ;;  %7468 = vmatmul.mubr.msk.bf16.gmra.mxu1 %vm1904_vm2, %v10805_v50  ;;  %v9683_v50 = vcombine.low %v5009_v4, %v5019_v9  ;;  %v9697_v4 = vsel %vm8415_vm11, %v6871_v13, %v5635_v52  ;;  %v6872_v9 = vrot.slane %v5516_v27, 9  ;;  %v5644_v52 = vrot.slane %v5642_v3, 4 }
 0x18c   : > { %10804 = vst [vmem:[#allocation31_spill] sm:$0xff] %v9660_v32  ;;  %7507 = vmatprep.mubr.msk.bf16.mxu1 %vm1904_vm2, %v9418_v49  ;;  %v5074_v32 = vrot.slane %v5072_v34, 5  ;;  %v9679_v20 = vpop.f32.mrf.mxu0  ;;  %v5061_v49 = vor.u32 %v5060_v28, %v9658_v31  ;;  %v9709_v28 = vrot.slane %v5078_v47, 5  ;;  %v5645_v13 = vrot.slane %v4812_v44, 5  ;;  %v4815_v47 = vld [vmem:[#allocation2 + $0xa4] sm:$0x1] }
 0x18d   : > { %v9673_v54 = vpop.f32.mrf.mxu1  ;;  %7546 = vmatmul.mubr.msk.bf16.gmra.mxu0 %vm1904_vm2, %v10807_v30  ;;  %v9711_v30 = vrot.slane %v5051_v15, 4  ;;  %v5093_v27 = vshrl.u32 %v4813_v35, 16  ;;  %v5106_v15 = vshrl.u32 %v4814_v46, 16  ;;  %v6873_v44 = vrot.slane %v5517_v33, 9  ;;  %v652_v35 = vld [vmem:[#allocation2 + $0xd4] sm:$0x1] }
 0x18e   : > { %10806 = vst [vmem:[#allocation32_spill] sm:$0xff] %v9673_v54  ;;  %7549 = vmatprep.mubr.msk.bf16.mxu0 %vm1904_vm2, %v10808_v39  ;;  %v9705_v5 = vpop.f32.mrf.mxu0  ;;  %v5075_v39 = vor.u32 %v5074_v32, %v5071_v59  ;;  %v9717_v12 = vrot.slane %v5061_v49, 4  ;;  %v5102_v54 = vshll.u32 %v4814_v46, 16  ;;  %v9725_v59 = vcombine.low %v5033_v14, %v5043_v8 }
 0x18f   : > { %v9703_v34 = vpop.f32.mrf.mxu1  ;;  %v9742_v14 = vsel %vm8415_vm11, %v5644_v52, %v5645_v13  ;;  %v5651_v52 = vrot.slane %v5649_v2, 4  ;;  %v5652_v13 = vrot.slane %v4815_v47, 5  ;;  %v10814_v46 = vcombine.low %v9550_v29, %v9563_v51  ;;  %v9778_v51 = vld [vmem:[#allocation2 + $0xa8] sm:$0xe] }
 0x190   : > { %10809 = vst [vmem:[#allocation33_spill] sm:$0xff] %v9703_v34  ;;  %v9715_v11 = vpop.f32.mrf.mxu0  ;;  %v9719_v34 = vrot.slane %v5064_v7, 5  ;;  %10811 = vst [vmem:[#allocation35_spill] sm:$0xff] %v9725_v59  ;;  %v5085_v7 = vor.u32 %v5084_v43, %v9709_v28  ;;  %v9744_v8 = vrot.slane %v5075_v39, 4  ;;  %v9746_v43 = vld [vmem:[#allocation2 + $0xac] sm:$0xf] }
 0x191   : > { %v9713_v24 = vpop.f32.mrf.mxu1  ;;  %v4816_v39 = vld [vmem:[#allocation2 + $0xa8] sm:$0xf]  ;;  %v653_v59 = vsel %vm7790_vm6, 0, %v652_v35  ;;  %v5130_v35 = vshrl.u32 %v9746_v43, 16 }
 0x192   : > { %10810 = vst [vmem:[#allocation34_spill] sm:$0xff] %v9713_v24  ;;  %v9723_v32 = vpop.f32.mrf.mxu0  ;;  %v5108_v24 = vrot.slane %v5106_v15, 4  ;;  %v5086_v0 = vrot.slane %v5085_v7, 4  ;;  %v5081_v29 = vsel %vm7879_vm7, %v9744_v8, %v9709_v28  ;;  %654 = vst [vmem:[#allocation2 + $0xd4] sm:$0x1] %v653_v59  ;;  %v9790_v8 = vsel %vm8415_vm11, %v5651_v52, %v5652_v13  ;;  %v10820_v52 = vld [vmem:[#allocation7_spill] sm:$0xff] }
 0x193   : > { %v7305_v63 = vpop.f32.mrf.mxu1  ;;  %7508 = vmatmul.mubr.msk.bf16.vlgmr.msra.gmra.mxu1 %vm1904_vm2, %v9420_v36  ;;  %v9738_v36 = vsel %vm8415_vm11, %v6872_v9, %v5642_v3  ;;  %v9758_v9 = vrot.slane %v5088_v57, 5  ;;  %v9770_v57 = vsel %vm8415_vm11, %v6873_v44, %v5649_v2  ;;  %v5112_v3 = vshll.u32 %v4815_v47, 16  ;;  %v10817_v2 = vld [vmem:[#allocation3_spill] sm:$0xff]  ;;  %v10818_v47 = vld [vmem:[#allocation6_spill] sm:$0xff] }
 0x194   : > { %7511 = vmatprep.mubr.msk.bf16.mxu1 %vm1904_vm2, %v9436_v45  ;;  %v10812_v45 = vcombine.low %v9514_v26, %v9518_v19  ;;  %v9752_v49 = vpop.f32.mrf.mxu0  ;;  %v5095_v26 = vrot.slane %v5093_v27, 4  ;;  %v5098_v19 = vrot.slane %v5096_v48, 5  ;;  %v5120_v27 = vshll.u32 %v4816_v39, 16 }
 0x195   : > { %v2283_v33 = vpop.f32.mrf.mxu1  ;;  %10813 = vst [vmem:[#allocation36_spill] sm:$0xff] %v9752_v49  ;;  %v5126_v48 = vshll.u32 %v9746_v43, 16  ;;  %v2292_v15 = vadd.f32 %v7305_v63, %v9280_v56  ;;  %v5091_v63 = vsel %vm7879_vm7, %v5086_v0, %v9758_v9  ;;  %v10822_v9 = vld [vmem:[#allocation8_spill] sm:$0xff] }
 0x196   : > { %7550 = vmatmul.mubr.msk.bf16.gmra.mxu0 %vm1904_vm2, %v10812_v45  ;;  %v9764_v45 = vrot.slane %v5102_v54, 5  ;;  %v9766_v42 = vpop.f32.mrf.mxu0  ;;  %v5117_v54 = vshrl.u32 %v4816_v39, 16  ;;  %v2284_v7 = vadd.f32 %v2283_v33, %v10817_v2  ;;  %v5099_v39 = vor.u32 %v5098_v19, %v5095_v26 }
 0x197   : > { %7553 = vmatprep.mubr.msk.bf16.mxu0 %vm1904_vm2, %v10814_v46  ;;  %v7306_v23 = vpop.f32.mrf.mxu1  ;;  %10815 = vst [vmem:[#allocation37_spill] sm:$0xff] %v9766_v42  ;;  %v10819_v42 = vld [vmem:[#allocation5_spill] sm:$0xff]  ;;  %v5656_v33 = vrot.slane %v9746_v43, 5  ;;  %v5122_v19 = vrot.slane %v5120_v27, 5  ;;  %v9814_v43 = vadd.f32 %v9578_v40, %v2292_v15 }
 0x198   : > { %v2295_v44 = vadd.f32 %v7306_v23, %v10818_v47  ;;  %v9784_v46 = vpop.f32.mrf.mxu0  ;;  %v5109_v59 = vor.u32 %v5108_v24, %v9764_v45  ;;  %v5114_v23 = vrot.slane %v5112_v3, 5  ;;  %v4818_v24 = vld [vmem:[#allocation2 + $0xb0] sm:$0x1]  ;;  %v5119_v26 = vrot.slane %v5117_v54, 4 }
 0x199   : > { %v2286_v49 = vpop.f32.mrf.mxu1  ;;  %v10821_v47 = vcombine.low %v9592_v61, %v9633_v38  ;;  %v5132_v3 = vrot.slane %v5130_v35, 4  ;;  %v10823_v54 = vcombine.low %v9645_v6, %v9656_v17  ;;  %v5100_v61 = vrot.slane %v5099_v39, 4 }
 0x19a   : > { %v2287_v28 = vadd.f32 %v2286_v49, %v10819_v42  ;;  %v9795_v56 = vpop.f32.mrf.mxu0  ;;  %v6874_v42 = vrot.slane %v9778_v51, 9  ;;  %v5110_v38 = vrot.slane %v5109_v59, 4  ;;  %v5659_v15 = vrot.slane %v4818_v24, 5 }
 0x19b   : > { %v7309_v21 = vpop.f32.mrf.mxu1  ;;  %7512 = vmatmul.mubr.msk.bf16.gmra.mxu1 %vm1904_vm2, %v9529_v22  ;;  %v9805_v22 = vrot.slane %v5126_v48, 5  ;;  %v10825_v17 = vsel %vm7879_vm7, %v9717_v12, %v9719_v34  ;;  %v9854_v39 = vcombine.low %v5081_v29, %v5091_v63  ;;  %v5136_v12 = vshll.u32 %v4818_v24, 16  ;;  %v4819_v34 = vld [vmem:[#allocation2 + $0xb4] sm:$0xf]  ;;  %v9870_v63 = vld [vmem:[#allocation2 + $0xb8] sm:$0xf] }
 0x19c   : > { %v2308_v13 = vadd.f32 %v7309_v21, %v10820_v52  ;;  %7515 = vmatprep.mubr.msk.bf16.mxu1 %vm1904_vm2, %v9580_v1  ;;  %v9811_v0 = vpop.f32.mrf.mxu0  ;;  %v9817_v21 = vadd.f32 %v9588_v37, %v2284_v7  ;;  %v9820_v1 = vadd.f32 %v9609_v41, %v2295_v44  ;;  %v9828_v27 = vadd.f32 %v9621_v10, %v2287_v28  ;;  %v10824_v44 = vld [vmem:[#allocation12_spill] sm:$0xff] }
 0x19d   : > { %v2299_v2 = vpop.f32.mrf.mxu1  ;;  %v6889_v37 = vcombine.low %v9738_v36, %v9742_v14  ;;  %v5658_v41 = vrot.slane %v5656_v33, 4  ;;  %v10826_v10 = vsel %vm7879_vm7, %v9711_v30, %v9658_v31  ;;  %v6890_v36 = vcombine.low %v9770_v57, %v9790_v8  ;;  %v10827_v31 = vld [vmem:[#allocation13_spill] sm:$0xff] }
 0x19e   : > { %7554 = vmatmul.mubr.msk.bf16.gmra.mxu0 %vm1904_vm2, %v10821_v47  ;;  %v2300_v51 = vadd.f32 %v2299_v2, %v10822_v9  ;;  %v9830_v48 = vpop.f32.mrf.mxu0  ;;  %v9835_v7 = vadd.f32 %v9638_v53, %v2308_v13  ;;  %v9848_v49 = vcombine.low %v10826_v10, %v10825_v17  ;;  %v5123_v14 = vor.u32 %v5122_v19, %v5119_v26  ;;  %v5519_v53 = vld [vmem:[#allocation2 + $0xb4] sm:$0xe]  ;;  %v5521_v8 = vld [vmem:[#allocation2 + $0xcc] sm:$0xe] }
 0x19f   : > { %7557 = vmatprep.mubr.msk.bf16.mxu0 %vm1904_vm2, %v10823_v54  ;;  %v7310_v40 = vpop.f32.mrf.mxu1  ;;  %v5133_v59 = vor.u32 %v5132_v3, %v9805_v22  ;;  %v5105_v13 = vsel %vm7879_vm7, %v5100_v61, %v9764_v45  ;;  %v5115_v26 = vsel %vm7879_vm7, %v5110_v38, %v5114_v23  ;;  %v9868_v29 = vsel %vm8415_vm11, %v6874_v42, %v5656_v33  ;;  %v10828_v42 = vld [vmem:[#allocation15_spill] sm:$0xff] }
 0x1a0   : > { %v2311_v6 = vadd.f32 %v7310_v40, %v10824_v44  ;;  %v9852_v28 = vpop.f32.mrf.mxu0  ;;  %v9858_v52 = vadd.f32 %v9650_v18, %v2300_v51  ;;  %v9878_v19 = vsel %vm8415_vm11, %v5658_v41, %v5659_v15  ;;  %v6875_v45 = vrot.slane %v5519_v53, 9  ;;  %v9887_v3 = vld [vmem:[#allocation2 + $0xbc] sm:$0x1]  ;;  %v4823_v41 = vld [vmem:[#allocation2 + $0xc4] sm:$0xf]  ;;  %v10830_v15 = vld [vmem:[#allocation17_spill] sm:$0xff] }
 0x1a1   : > { %v2302_v35 = vpop.f32.mrf.mxu1  ;;  %v5663_v2 = vrot.slane %v9870_v63, 5  ;;  %v5124_v47 = vrot.slane %v5123_v14, 4  ;;  %v10829_v54 = vcombine.low %v9697_v4, %v9701_v55  ;;  %v9898_v61 = vcombine.low %v5105_v13, %v5115_v26 }
 0x1a2   : > { %v2303_v30 = vadd.f32 %v2302_v35, %v10827_v31  ;;  %v9874_v18 = vpop.f32.mrf.mxu0  ;;  %v9882_v23 = vadd.f32 %v9666_v62, %v2311_v6  ;;  %v5134_v38 = vrot.slane %v5133_v59, 4  ;;  %v5138_v40 = vrot.slane %v5136_v12, 5  ;;  %v5520_v6 = vld [vmem:[#allocation2 + $0xc0] sm:$0xe]  ;;  %v9915_v59 = vld [vmem:[#allocation2 + $0xc8] sm:$0x1] }
 0x1a3   : > { %v7313_v24 = vpop.f32.mrf.mxu1  ;;  %7516 = vmatmul.mubr.msk.bf16.gmra.mxu1 %vm1904_vm2, %v9584_v58  ;;  %v5141_v58 = vshrl.u32 %v4819_v34, 16  ;;  %v5670_v17 = vrot.slane %v4823_v41, 5  ;;  %v9911_v14 = vsel %vm8415_vm11, %v6875_v45, %v5663_v2  ;;  %v5665_v53 = vrot.slane %v5663_v2, 4  ;;  %v10831_v12 = vld [vmem:[#allocation19_spill] sm:$0xff] }
 0x1a4   : > { %v2324_v33 = vadd.f32 %v7313_v24, %v10828_v42  ;;  %7519 = vmatprep.mubr.msk.bf16.mxu1 %vm1904_vm2, %v9629_v60  ;;  %v9890_v9 = vadd.f32 %v9679_v20, %v2303_v30  ;;  %v9896_v62 = vpop.f32.mrf.mxu0  ;;  %v5144_v60 = vshll.u32 %v4819_v34, 16  ;;  %v6891_v20 = vcombine.low %v9868_v29, %v9878_v19  ;;  %v4822_v30 = vld [vmem:[#allocation2 + $0xc0] sm:$0xf]  ;;  %v10832_v42 = vld [vmem:[#allocation21_spill] sm:$0xff] }
 0x1a5   : > { %v2315_v51 = vpop.f32.mrf.mxu1  ;;  %v5666_v35 = vrot.slane %v9887_v3, 5  ;;  %v9921_v31 = vrot.slane %v5141_v58, 4  ;;  %v5139_v24 = vsel %vm7879_vm7, %v5134_v38, %v5138_v40  ;;  %v5154_v45 = vshrl.u32 %v9870_v63, 16 }
 0x1a6   : > { %7558 = vmatmul.mubr.msk.bf16.gmra.mxu0 %vm1904_vm2, %v10829_v54  ;;  %v2316_v44 = vadd.f32 %v2315_v51, %v10830_v15  ;;  %v9905_v4 = vadd.f32 %v9705_v5, %v2324_v33  ;;  %v9907_v10 = vpop.f32.mrf.mxu0  ;;  %v5129_v5 = vsel %vm7879_vm7, %v5124_v47, %v9805_v22  ;;  %v9930_v19 = vrot.slane %v5144_v60, 5 }
 0x1a7   : > { %7561 = vmatprep.mubr.msk.bf16.mxu0 %vm1904_vm2, %v6889_v37  ;;  %v7314_v55 = vpop.f32.mrf.mxu1  ;;  %v5150_v37 = vshll.u32 %v9870_v63, 16  ;;  %v6876_v2 = vrot.slane %v5520_v6, 9  ;;  %v5672_v22 = vrot.slane %v5670_v17, 4  ;;  %v5673_v47 = vrot.slane %v9915_v59, 5  ;;  %v10833_v63 = vld [vmem:[#allocation23_spill] sm:$0xff] }
 0x1a8   : > { %v2327_v34 = vadd.f32 %v7314_v55, %v10831_v12  ;;  %v9924_v13 = vadd.f32 %v9715_v11, %v2316_v44  ;;  %v9926_v29 = vpop.f32.mrf.mxu0  ;;  %v5165_v54 = vshrl.u32 %v4822_v30, 16  ;;  %v5168_v38 = vshll.u32 %v4822_v30, 16  ;;  %v10834_v44 = vld [vmem:[#allocation35_spill] sm:$0xff]  ;;  %v10835_v55 = vld [vmem:[#allocation36_spill] sm:$0xff] }
 0x1a9   : > { %v2318_v26 = vpop.f32.mrf.mxu1  ;;  %v5174_v40 = vshll.u32 %v4823_v41, 16  ;;  %v5178_v60 = vshrl.u32 %v4823_v41, 16  ;;  %v5667_v6 = vsel %vm8415_vm11, %v5665_v53, %v5666_v35  ;;  %v5156_v30 = vrot.slane %v5154_v45, 4  ;;  %v4826_v35 = vld [vmem:[#allocation2 + $0xd0] sm:$0xf] }
 0x1aa   : > { %v2319_v33 = vadd.f32 %v2318_v26, %v10832_v42  ;;  %v9936_v58 = vadd.f32 %v9723_v32, %v2327_v34  ;;  %v9940_v51 = vpop.f32.mrf.mxu0  ;;  %v9947_v32 = vrot.slane %v5150_v37, 5  ;;  %v9958_v34 = vcombine.low %v5129_v5, %v5139_v24  ;;  %v10836_v37 = vld [vmem:[#allocation24_spill] sm:$0xff] }
 0x1ab   : > { %v7317_v11 = vpop.f32.mrf.mxu1  ;;  %7520 = vmatmul.mubr.msk.bf16.gmra.mxu1 %vm1904_vm2, %v9683_v50  ;;  %v5160_v26 = vshll.u32 %v9887_v3, 16  ;;  %v5671_v53 = vsel %vm8415_vm11, %v6876_v2, %v5670_v17  ;;  %v5674_v57 = vsel %vm8415_vm11, %v5672_v22, %v5673_v47  ;;  %v5167_v3 = vrot.slane %v5165_v54, 4  ;;  %v9974_v2 = vld [vmem:[#allocation2 + $0xd4] sm:$0x1]  ;;  %v4825_v47 = vld [vmem:[#allocation2 + $0xcc] sm:$0xf] }
 0x1ac   : > { %v2340_v15 = vadd.f32 %v7317_v11, %v10833_v63  ;;  %7523 = vmatprep.mubr.msk.bf16.mxu1 %vm1904_vm2, %v10834_v44  ;;  %v9950_v12 = vadd.f32 %v10835_v55, %v2319_v33  ;;  %v9956_v41 = vpop.f32.mrf.mxu0  ;;  %v10837_v33 = vld [vmem:[#allocation37_spill] sm:$0xff]  ;;  %v5170_v45 = vrot.slane %v5168_v38, 5  ;;  %v9972_v63 = vrot.slane %v5174_v40, 5  ;;  %v10838_v44 = vld [vmem:[#allocation26_spill] sm:$0xff] }
 0x1ad   : > { %v2331_v50 = vpop.f32.mrf.mxu1  ;;  %v5180_v17 = vrot.slane %v5178_v60, 4  ;;  %v6892_v55 = vcombine.low %v9911_v14, %v5667_v6  ;;  %v5147_v22 = vor.u32 %v9930_v19, %v9921_v31  ;;  %v5157_v54 = vor.u32 %v5156_v30, %v9947_v32 }
 0x1ae   : > { %7562 = vmatmul.mubr.msk.bf16.gmra.mxu0 %vm1904_vm2, %v6890_v36  ;;  %v2332_v42 = vadd.f32 %v2331_v50, %v10836_v37  ;;  %v5677_v36 = vrot.slane %v4826_v35, 5  ;;  %v9968_v11 = vadd.f32 %v10837_v33, %v2340_v15  ;;  %v9970_v24 = vpop.f32.mrf.mxu0  ;;  %v6893_v40 = vcombine.low %v5671_v53, %v5674_v57  ;;  %v10839_v33 = vld [vmem:[#allocation27_spill] sm:$0xff] }
 0x1af   : > { %7565 = vmatprep.mubr.msk.bf16.mxu0 %vm1904_vm2, %v6891_v20  ;;  %v7318_v5 = vpop.f32.mrf.mxu1  ;;  %v5184_v60 = vshll.u32 %v9915_v59, 16  ;;  %v6877_v37 = vrot.slane %v5521_v8, 9  ;;  %v5680_v14 = vrot.slane %v9974_v2, 5  ;;  %v5171_v6 = vor.u32 %v5170_v45, %v5167_v3 }
 0x1b0   : > { %v2343_v20 = vadd.f32 %v7318_v5, %v10838_v44  ;;  %v9981_v15 = vadd.f32 %v9784_v46, %v2332_v42  ;;  %v9984_v38 = vpop.f32.mrf.mxu0  ;;  %v5679_v44 = vrot.slane %v5677_v36, 4  ;;  %v5181_v30 = vor.u32 %v5180_v17, %v9972_v63  ;;  %v10841_v42 = vld [vmem:[#allocation11_spill] sm:$0xff] }
 0x1b1   : > { %v2334_v50 = vpop.f32.mrf.mxu1  ;;  %v5189_v53 = vshrl.u32 %v4825_v47, 16  ;;  %v5192_v59 = vshll.u32 %v4825_v47, 16  ;;  %v5198_v8 = vshll.u32 %v4826_v35, 16  ;;  %v5162_v3 = vrot.slane %v5160_v26, 5  ;;  %v10842_v47 = vld [vmem:[#allocation9_spill] sm:$0xff] }
 0x1b2   : > { %v2335_v5 = vadd.f32 %v2334_v50, %v10839_v33  ;;  %v9990_v31 = vadd.f32 %v9795_v56, %v2343_v20  ;;  %v9994_v46 = vpop.f32.mrf.mxu0  ;;  %v5202_v50 = vshrl.u32 %v4826_v35, 16  ;;  %v5158_v33 = vrot.slane %v5157_v54, 4 }
 0x1b3   : > { %v7321_v19 = vpop.f32.mrf.mxu1  ;;  %7524 = vmatmul.mubr.msk.bf16.gmra.mxu1 %vm1904_vm2, %v9848_v49  ;;  %v5148_v49 = vrot.slane %v5147_v22, 4  ;;  %v5186_v17 = vrot.slane %v5184_v60, 5  ;;  %v5172_v26 = vrot.slane %v5171_v6, 4  ;;  %v5182_v54 = vrot.slane %v5181_v30, 4 }
 0x1b4   : > { %10840 = vst [vmem:[#allocation4_spill] sm:$0xff] %v9990_v31  ;;  %v2356_v57 = vadd.f32 %v7321_v19, %v10841_v42  ;;  %7527 = vmatprep.mubr.msk.bf16.mxu1 %vm1904_vm2, %v9854_v39  ;;  %v10001_v56 = vadd.f32 %v9811_v0, %v2335_v5  ;;  %v10004_v45 = vpop.f32.mrf.mxu0  ;;  %v5678_v39 = vsel %vm8415_vm11, %v6877_v37, %v5677_v36  ;;  %v5191_v5 = vrot.slane %v5189_v53, 4  ;;  %v10843_v19 = vld [vmem:[#allocation10_spill] sm:$0xff] }
 0x1b5   : > { %v2347_v20 = vpop.f32.mrf.mxu1  ;;  %v5681_v0 = vsel %vm8415_vm11, %v5679_v44, %v5680_v14  ;;  %v5194_v60 = vrot.slane %v5192_v59, 5  ;;  %v5153_v14 = vsel %vm7879_vm7, %v5148_v49, %v9947_v32  ;;  %v5187_v53 = vsel %vm7879_vm7, %v5182_v54, %v5186_v17  ;;  %v10845_v32 = vld [vmem:[#allocation16_spill] sm:$0xff] }
 0x1b6   : > { %7566 = vmatmul.mubr.msk.bf16.gmra.mxu0 %vm1904_vm2, %v6892_v55  ;;  %v2348_v31 = vadd.f32 %v2347_v20, %v10842_v47  ;;  %v10013_v35 = vadd.f32 %v9830_v48, %v2356_v57  ;;  %v10015_v22 = vpop.f32.mrf.mxu0  ;;  %v5200_v20 = vrot.slane %v5198_v8, 5  ;;  %v6894_v25 = vcombine.low %v5678_v39, %v5681_v0  ;;  %v10844_v48 = vld [vmem:[#allocation14_spill] sm:$0xff]  ;;  %v10847_v54 = vld [vmem:[#allocation20_spill] sm:$0xff] }
 0x1b7   : > { %7569 = vmatprep.mubr.msk.bf16.mxu0 %vm1904_vm2, %v6893_v40  ;;  %v7322_v55 = vpop.f32.mrf.mxu1  ;;  %v5204_v40 = vrot.slane %v5202_v50, 4  ;;  %v5195_v59 = vor.u32 %v5194_v60, %v5191_v5 }
 0x1b8   : > { %v2359_v42 = vadd.f32 %v7322_v55, %v10843_v19  ;;  %v10019_v47 = vadd.f32 %v9852_v28, %v2348_v31  ;;  %v10021_v37 = vpop.f32.mrf.mxu0  ;;  %v5163_v28 = vsel %vm7879_vm7, %v5158_v33, %v5162_v3  ;;  %v5177_v31 = vsel %vm7879_vm7, %v5172_v26, %v9972_v63  ;;  %v10846_v33 = vld [vmem:[#allocation18_spill] sm:$0xff] }
 0x1b9   : > { %v2350_v36 = vpop.f32.mrf.mxu1  ;;  %v6843_v0 = vcombine.low %v5153_v14, %v5163_v28  ;;  %v6844_v55 = vcombine.low %v5177_v31, %v5187_v53  ;;  %v5196_v26 = vrot.slane %v5195_v59, 4  ;;  %v10850_v53 = vld [vmem:[#allocation28_spill] sm:$0xff] }
 0x1ba   : > { %v2351_v44 = vadd.f32 %v2350_v36, %v10844_v48  ;;  %v10028_v6 = vadd.f32 %v9874_v18, %v2359_v42  ;;  %v7368_v57 = vpop.f32.mrf.mxu0  ;;  %v5205_v18 = vor.u32 %v5204_v40, %v5200_v20  ;;  %v10848_v40 = vld [vmem:[#allocation22_spill] sm:$0xff] }
 0x1bb   : > { %v7325_v30 = vpop.f32.mrf.mxu1  ;;  %7528 = vmatmul.mubr.msk.bf16.gmra.mxu1 %vm1904_vm2, %v9898_v61  ;;  %v5208_v61 = vshll.u32 %v9974_v2, 16 }
 0x1bc   : > { %v2372_v8 = vadd.f32 %v7325_v30, %v10845_v32  ;;  %7531 = vmatprep.mubr.msk.bf16.mxu1 %vm1904_vm2, %v9958_v34  ;;  %v10044_v50 = vadd.f32 %v9896_v62, %v2351_v44  ;;  %v2823_v63 = vpop.f32.mrf.mxu0  ;;  %v5206_v2 = vrot.slane %v5205_v18, 4  ;;  %v10849_v44 = vld [vmem:[#allocation25_spill] sm:$0xff]  ;;  %v5201_v30 = vsel %vm7879_vm7, %v5196_v26, %v5200_v20  ;;  %v10853_v26 = vld [vmem:[#allocation31_spill] sm:$0xff] }
 0x1bd   : > { %v2363_v49 = vpop.f32.mrf.mxu1  ;;  %v5210_v60 = vrot.slane %v5208_v61, 5 }
 0x1be   : > { %7570 = vmatmul.mubr.msk.bf16.gmra.mxu0 %vm1904_vm2, %v6894_v25  ;;  %v2364_v3 = vadd.f32 %v2363_v49, %v10846_v33  ;;  %v10049_v17 = vadd.f32 %v9907_v10, %v2372_v8  ;;  %v7407_v34 = vpop.f32.mrf.mxu0  ;;  %v10851_v49 = vld [vmem:[#allocation29_spill] sm:$0xff] }
 0x1bf   : > { %v7326_v39 = vpop.f32.mrf.mxu1 }
 0x1c0   : > { %v2375_v5 = vadd.f32 %v7326_v39, %v10847_v54  ;;  %v10053_v62 = vadd.f32 %v9926_v29, %v2364_v3  ;;  %v3792_v42 = vpop.f32.mrf.mxu0  ;;  %v5211_v29 = vsel %vm7879_vm7, %v5206_v2, %v5210_v60  ;;  %v10852_v39 = vld [vmem:[#allocation30_spill] sm:$0xff] }
 0x1c1   : > { %v2366_v19 = vpop.f32.mrf.mxu1  ;;  %v6845_v18 = vcombine.low %v5201_v30, %v5211_v29 }
 0x1c2   : > { %v2367_v36 = vadd.f32 %v2366_v19, %v10848_v40  ;;  %v10057_v25 = vadd.f32 %v9940_v51, %v2375_v5  ;;  %v7408_v48 = vpop.f32.mrf.mxu0 }
 0x1c3   : > { %v7329_v10 = vpop.f32.mrf.mxu1  ;;  %7532 = vmatmul.mubr.msk.bf16.gmra.mxu1 %vm1904_vm2, %v6843_v0 }
 0x1c4   : > { %v2388_v14 = vadd.f32 %v7329_v10, %v10849_v44  ;;  %7535 = vmatprep.mubr.msk.bf16.mxu1 %vm1904_vm2, %v6844_v55  ;;  %v10067_v28 = vadd.f32 %v9956_v41, %v2367_v36  ;;  %v3795_v51 = vpop.f32.mrf.mxu0 }
 0x1c5   : > { %v2379_v31 = vpop.f32.mrf.mxu1 }
 0x1c6   : > { %v2380_v59 = vadd.f32 %v2379_v31, %v10850_v53  ;;  %v10071_v32 = vadd.f32 %v9970_v24, %v2388_v14  ;;  %v7411_v61 = vpop.f32.mrf.mxu0  ;;  %v10856_v31 = vld [vmem:[#allocation34_spill] sm:$0xff] }
 0x1c7   : > { %v7330_v8 = vpop.f32.mrf.mxu1 }
 0x1c8   : > { %v2391_v33 = vadd.f32 %v7330_v8, %v10851_v49  ;;  %v10075_v20 = vadd.f32 %v9984_v38, %v2380_v59  ;;  %v3808_v3 = vpop.f32.mrf.mxu0  ;;  %v10854_v38 = vld [vmem:[#allocation32_spill] sm:$0xff] }
 0x1c9   : > { %v2382_v16 = vpop.f32.mrf.mxu1 }
 0x1ca   : > { %v2383_v41 = vadd.f32 %v2382_v16, %v10852_v39  ;;  %v10079_v0 = vadd.f32 %v9994_v46, %v2391_v33  ;;  %v7412_v24 = vpop.f32.mrf.mxu0  ;;  %v10855_v46 = vld [vmem:[#allocation33_spill] sm:$0xff] }
 0x1cb   : > { %v7333_v55 = vpop.f32.mrf.mxu1  ;;  %7536 = vmatmul.mubr.msk.bf16.gmra.mxu1 %vm1904_vm2, %v6845_v18 }
 0x1cc   : > { %v2404_v54 = vadd.f32 %v7333_v55, %v10853_v26  ;;  %v10084_v5 = vadd.f32 %v10004_v45, %v2383_v41  ;;  %v3811_v60 = vpop.f32.mrf.mxu0 }
 0x1cd   : > { %v2395_v2 = vpop.f32.mrf.mxu1 }
 0x1ce   : > { %v2396_v19 = vadd.f32 %v2395_v2, %v10854_v38  ;;  %v10088_v40 = vadd.f32 %v10015_v22, %v2404_v54  ;;  %v7415_v10 = vpop.f32.mrf.mxu0 }
 0x1cf   : > { %v7334_v36 = vpop.f32.mrf.mxu1 }
 0x1d0   : > { %v2407_v44 = vadd.f32 %v7334_v36, %v10855_v46  ;;  %v10092_v14 = vadd.f32 %v10021_v37, %v2396_v19  ;;  %v3824_v29 = vpop.f32.mrf.mxu0 }
 0x1d1   : > { %v2398_v30 = vpop.f32.mrf.mxu1 }
 0x1d2   : > { %v2399_v53 = vadd.f32 %v2398_v30, %v10856_v31  ;;  %v10095_v45 = vadd.f32 %v7368_v57, %v2407_v44  ;;  %v7416_v8 = vpop.f32.mrf.mxu0 }
 0x1d3   : > { %v7373_v59 = vpop.f32.mrf.mxu1 }
 0x1d4   : > { %v3195_v18 = vadd.f32 %v7373_v59, %v9814_v43  ;;  %v10098_v49 = vadd.f32 %v2823_v63, %v2399_v53  ;;  %v3827_v33 = vpop.f32.mrf.mxu0 }
 0x1d5   : > { %v3066_v22 = vpop.f32.mrf.mxu1 }
 0x1d6   : > { %v3193_v16 = vadd.f32 %v3066_v22, %v9817_v21  ;;  %v10101_v39 = vadd.f32 %v7407_v34, %v3195_v18  ;;  %v7419_v41 = vpop.f32.mrf.mxu0 }
 0x1d7   : > { %v7374_v37 = vpop.f32.mrf.mxu1 }
 0x1d8   : > { %v3196_v55 = vadd.f32 %v7374_v37, %v9820_v1  ;;  %v10104_v26 = vadd.f32 %v3792_v42, %v3193_v16  ;;  %v3840_v54 = vpop.f32.mrf.mxu0 }
 0x1d9   : > { %v3069_v57 = vpop.f32.mrf.mxu1 }
 0x1da   : > { %v3194_v2 = vadd.f32 %v3069_v57, %v9828_v27  ;;  %v10107_v38 = vadd.f32 %v7408_v48, %v3196_v55  ;;  %v7420_v63 = vpop.f32.mrf.mxu0 }
 0x1db   : > { %v7377_v43 = vpop.f32.mrf.mxu1 }
 0x1dc   : > { %v3199_v19 = vadd.f32 %v7377_v43, %v9835_v7  ;;  %v10110_v36 = vadd.f32 %v3795_v51, %v3194_v2  ;;  %v3843_v34 = vpop.f32.mrf.mxu0 }
 0x1dd   : > { %v3082_v21 = vpop.f32.mrf.mxu1 }
 0x1de   : > { %v3197_v46 = vadd.f32 %v3082_v21, %v9858_v52  ;;  %v10113_v44 = vadd.f32 %v7411_v61, %v3199_v19  ;;  %v7423_v42 = vpop.f32.mrf.mxu0 }
 0x1df   : > { %v7378_v1 = vpop.f32.mrf.mxu1 }
 0x1e0   : > { %v3200_v30 = vadd.f32 %v7378_v1, %v9882_v23  ;;  %v10116_v31 = vadd.f32 %v3808_v3, %v3197_v46  ;;  %v3856_v48 = vpop.f32.mrf.mxu0 }
 0x1e1   : > { %v3085_v27 = vpop.f32.mrf.mxu1 }
 0x1e2   : > { %v3198_v53 = vadd.f32 %v3085_v27, %v9890_v9  ;;  %v10119_v59 = vadd.f32 %v7412_v24, %v3200_v30  ;;  %v7424_v51 = vpop.f32.mrf.mxu0  ;;  %v10857_v30 = vld [vmem:[#allocation4_spill] sm:$0xff] }
 0x1e3   : > { %v7381_v7 = vpop.f32.mrf.mxu1 }
 0x1e4   : > { %v3203_v18 = vadd.f32 %v7381_v7, %v9905_v4  ;;  %v10122_v22 = vadd.f32 %v3811_v60, %v3198_v53  ;;  %v3859_v61 = vpop.f32.mrf.mxu0 }
 0x1e5   : > { %v3098_v52 = vpop.f32.mrf.mxu1 }
 0x1e6   : > { %v3201_v16 = vadd.f32 %v3098_v52, %v9924_v13  ;;  %v10125_v37 = vadd.f32 %v7415_v10, %v3203_v18  ;;  %v7427_v3 = vpop.f32.mrf.mxu0 }
 0x1e7   : > { %v7382_v23 = vpop.f32.mrf.mxu1 }
 0x1e8   : > { %v3204_v55 = vadd.f32 %v7382_v23, %v9936_v58  ;;  %v10128_v57 = vadd.f32 %v3824_v29, %v3201_v16  ;;  %v3872_v24 = vpop.f32.mrf.mxu0 }
 0x1e9   : > { %v3101_v9 = vpop.f32.mrf.mxu1 }
 0x1ea   : > { %v3202_v2 = vadd.f32 %v3101_v9, %v9950_v12  ;;  %v10131_v43 = vadd.f32 %v7416_v8, %v3204_v55  ;;  %v7428_v60 = vpop.f32.mrf.mxu0 }
 0x1eb   : > { %v7385_v4 = vpop.f32.mrf.mxu1 }
 0x1ec   : > { %v3207_v19 = vadd.f32 %v7385_v4, %v9968_v11  ;;  %v10134_v21 = vadd.f32 %v3827_v33, %v3202_v2  ;;  %v3875_v10 = vpop.f32.mrf.mxu0 }
 0x1ed   : > { %v3114_v13 = vpop.f32.mrf.mxu1 }
 0x1ee   : > { %v3205_v46 = vadd.f32 %v3114_v13, %v9981_v15  ;;  %v10137_v1 = vadd.f32 %v7419_v41, %v3207_v19  ;;  %v7431_v29 = vpop.f32.mrf.mxu0 }
 0x1ef   : > { %v7386_v58 = vpop.f32.mrf.mxu1 }
 0x1f0   : > { %v3208_v27 = vadd.f32 %v7386_v58, %v10857_v30  ;;  %v10140_v53 = vadd.f32 %v3840_v54, %v3205_v46  ;;  %v3888_v8 = vpop.f32.mrf.mxu0 }
 0x1f1   : > { %v3117_v12 = vpop.f32.mrf.mxu1 }
 0x1f2   : > { %v3206_v7 = vadd.f32 %v3117_v12, %v10001_v56  ;;  %v10143_v18 = vadd.f32 %v7420_v63, %v3208_v27  ;;  %v7432_v41 = vpop.f32.mrf.mxu0 }
 0x1f3   : > { %v7389_v11 = vpop.f32.mrf.mxu1 }
 0x1f4   : > { %v3211_v33 = vadd.f32 %v7389_v11, %v10013_v35  ;;  %v10146_v52 = vadd.f32 %v3843_v34, %v3206_v7  ;;  %v3891_v56 = vpop.f32.mrf.mxu0 }
 0x1f5   : > { %v3130_v15 = vpop.f32.mrf.mxu1 }
 0x1f6   : > { %v3209_v16 = vadd.f32 %v3130_v15, %v10019_v47  ;;  %v10149_v23 = vadd.f32 %v7423_v42, %v3211_v33 }
 0x1f7   : > { %v7390_v55 = vpop.f32.mrf.mxu1 }
 0x1f8   : > { %v3212_v54 = vadd.f32 %v7390_v55, %v10028_v6  ;;  %v10152_v9 = vadd.f32 %v3856_v48, %v3209_v16 }
 0x1f9   : > { %v3133_v2 = vpop.f32.mrf.mxu1 }
 0x1fa   : > { %v3210_v63 = vadd.f32 %v3133_v2, %v10044_v50  ;;  %v10155_v4 = vadd.f32 %v7424_v51, %v3212_v54 }
 0x1fb   : > { %v7393_v35 = vpop.f32.mrf.mxu1 }
 0x1fc   : > { %v3215_v34 = vadd.f32 %v7393_v35, %v10049_v17  ;;  %v10158_v19 = vadd.f32 %v3859_v61, %v3210_v63  ;;  %v7435_v47 = vpop.f32.mrf.mxu0 }
 0x1fd   : > { %v3146_v13 = vpop.f32.mrf.mxu1 }
 0x1fe   : > { %v3213_v42 = vadd.f32 %v3146_v13, %v10053_v62  ;;  %v10161_v46 = vadd.f32 %v7427_v3, %v3215_v34  ;;  %v3904_v48 = vpop.f32.mrf.mxu0 }
 0x1ff   : > { %v7394_v6 = vpop.f32.mrf.mxu1 }
 0x200   : > { %v3216_v58 = vadd.f32 %v7394_v6, %v10057_v25  ;;  %v10164_v30 = vadd.f32 %v3872_v24, %v3213_v42  ;;  %v7436_v51 = vpop.f32.mrf.mxu0 }
 0x201   : > { %v3149_v50 = vpop.f32.mrf.mxu1 }
 0x202   : > { %10858 = vst [vmem:[#allocation3_spill] sm:$0xff] %v10164_v30  ;;  %v3214_v27 = vadd.f32 %v3149_v50, %v10067_v28  ;;  %v10167_v12 = vadd.f32 %v7428_v60, %v3216_v58  ;;  %v3907_v61 = vpop.f32.mrf.mxu0 }
 0x203   : > { %v7397_v17 = vpop.f32.mrf.mxu1 }
 0x204   : > { %10859 = vst [vmem:[#allocation6_spill] sm:$0xff] %v10167_v12  ;;  %v3219_v7 = vadd.f32 %v7397_v17, %v10071_v32  ;;  %v10170_v11 = vadd.f32 %v3875_v10, %v3214_v27  ;;  %v7475_v3 = vpop.f32.mrf.mxu0 }
 0x205   : > { %v3162_v62 = vpop.f32.mrf.mxu1 }
 0x206   : > { %10860 = vst [vmem:[#allocation5_spill] sm:$0xff] %v10170_v11  ;;  %v3217_v33 = vadd.f32 %v3162_v62, %v10075_v20  ;;  %v10173_v15 = vadd.f32 %v7431_v29, %v3219_v7  ;;  %v4621_v24 = vpop.f32.mrf.mxu0 }
 0x207   : > { %v7398_v25 = vpop.f32.mrf.mxu1 }
 0x208   : > { %v3220_v16 = vadd.f32 %v7398_v25, %v10079_v0  ;;  %v10176_v55 = vadd.f32 %v3888_v8, %v3217_v33  ;;  %v10178_v60 = vpop.f32.mrf.mxu0 }
 0x209   : > { %v3165_v28 = vpop.f32.mrf.mxu1 }
 0x20a   : > { %10861 = vst [vmem:[#allocation7_spill] sm:$0xff] %v10176_v55  ;;  %v3218_v54 = vadd.f32 %v3165_v28, %v10084_v5  ;;  %v10181_v32 = vadd.f32 %v7432_v41, %v3220_v16  ;;  %v10183_v2 = vpop.f32.mrf.mxu0 }
 0x20b   : > { %v7401_v10 = vpop.f32.mrf.mxu1 }
 0x20c   : > { %10862 = vst [vmem:[#allocation8_spill] sm:$0xff] %v10181_v32  ;;  %v3223_v20 = vadd.f32 %v7401_v10, %v10088_v40  ;;  %v10186_v29 = vadd.f32 %v3891_v56, %v3218_v54  ;;  %v7479_v35 = vpop.f32.mrf.mxu0 }
 0x20d   : > { %v3178_v63 = vpop.f32.mrf.mxu1 }
 0x20e   : > { %10863 = vst [vmem:[#allocation12_spill] sm:$0xff] %v10186_v29  ;;  %v3221_v0 = vadd.f32 %v3178_v63, %v10092_v14  ;;  %v10189_v8 = vadd.f32 %v7435_v47, %v3223_v20  ;;  %v10191_v13 = vpop.f32.mrf.mxu0 }
 0x20f   : > { %v7402_v34 = vpop.f32.mrf.mxu1 }
 0x210   : > { %v3224_v5 = vadd.f32 %v7402_v34, %v10095_v45  ;;  %v10194_v41 = vadd.f32 %v3904_v48, %v3221_v0  ;;  %v10196_v6 = vpop.f32.mrf.mxu0 }
 0x211   : > { %v3181_v42 = vpop.f32.mrf.mxu1 }
 0x212   : > { %10864 = vst [vmem:[#allocation13_spill] sm:$0xff] %v10194_v41  ;;  %v3222_v40 = vadd.f32 %v3181_v42, %v10098_v49  ;;  %v10199_v56 = vadd.f32 %v7436_v51, %v3224_v5  ;;  %v10201_v50 = vpop.f32.mrf.mxu0 }
 0x213   : > { %v7441_v58 = vpop.f32.mrf.mxu1 }
 0x214   : > { %10865 = vst [vmem:[#allocation15_spill] sm:$0xff] %v10199_v56  ;;  %v4391_v14 = vadd.f32 %v7441_v58, %v10101_v39  ;;  %v10204_v47 = vadd.f32 %v3907_v61, %v3222_v40 }
 0x215   : > { %v4262_v27 = vpop.f32.mrf.mxu1  ;;  %v7483_v17 = vpop.f32.mrf.mxu0 }
 0x216   : > { %10866 = vst [vmem:[#allocation17_spill] sm:$0xff] %v10204_v47  ;;  %v4389_v45 = vadd.f32 %v4262_v27, %v10104_v26  ;;  %v10207_v48 = vadd.f32 %v7475_v3, %v4391_v14 }
 0x217   : > { %v10209_v7 = vpop.f32.mrf.mxu1  ;;  %v10211_v62 = vpop.f32.mrf.mxu0 }
 0x218   : > { %v10213_v49 = vadd.f32 %v4621_v24, %v4389_v45 }
 0x219   : > { %v10215_v51 = vpop.f32.mrf.mxu1  ;;  %v10217_v33 = vpop.f32.mrf.mxu0 }
 0x21b   : > { %v7445_v25 = vpop.f32.mrf.mxu1  ;;  %v10219_v39 = vpop.f32.mrf.mxu0 }
 0x21c   : > { %v4395_v61 = vadd.f32 %v7445_v25, %v10113_v44 }
 0x21d   : > { %v10222_v16 = vpop.f32.mrf.mxu1  ;;  %v7487_v26 = vpop.f32.mrf.mxu0 }
 0x21e   : > { %v10224_v3 = vadd.f32 %v7479_v35, %v4395_v61 }
 0x21f   : > { %v10226_v28 = vpop.f32.mrf.mxu1  ;;  %v10228_v54 = vpop.f32.mrf.mxu0 }
 0x221   : > { %v10230_v24 = vpop.f32.mrf.mxu1  ;;  %v10232_v10 = vpop.f32.mrf.mxu0 }
 0x223   : > { %v7449_v20 = vpop.f32.mrf.mxu1  ;;  %v10234_v63 = vpop.f32.mrf.mxu0 }
 0x224   : > { %v4399_v0 = vadd.f32 %v7449_v20, %v10125_v37 }
 0x225   : > { %v10237_v34 = vpop.f32.mrf.mxu1  ;;  %v7491_v44 = vpop.f32.mrf.mxu0 }
 0x226   : > { %v10239_v5 = vadd.f32 %v7483_v17, %v4399_v0 }
 0x227   : > { %v10241_v35 = vpop.f32.mrf.mxu1  ;;  %v10243_v42 = vpop.f32.mrf.mxu0 }
 0x229   : > { %v10245_v40 = vpop.f32.mrf.mxu1  ;;  %v10247_v58 = vpop.f32.mrf.mxu0 }
 0x22a   : > { %10867 = vst [vmem:[#allocation19_spill] sm:$0xff] %v10247_v58 }
 0x22b   : > { %v7453_v14 = vpop.f32.mrf.mxu1  ;;  %v10249_v27 = vpop.f32.mrf.mxu0 }
 0x22c   : > { %10868 = vst [vmem:[#allocation21_spill] sm:$0xff] %v10249_v27  ;;  %v4403_v45 = vadd.f32 %v7453_v14, %v10137_v1 }
 0x22d   : > { %v10252_v25 = vpop.f32.mrf.mxu1  ;;  %v7495_v37 = vpop.f32.mrf.mxu0 }
 0x22e   : > { %v10254_v61 = vadd.f32 %v7487_v26, %v4403_v45 }
 0x22f   : > { %v10256_v17 = vpop.f32.mrf.mxu1  ;;  %v10258_v20 = vpop.f32.mrf.mxu0 }
 0x230   : > { %10869 = vst [vmem:[#allocation23_spill] sm:$0xff] %v10258_v20 }
 0x231   : > { %v10260_v0 = vpop.f32.mrf.mxu1  ;;  %v10262_v47 = vpop.f32.mrf.mxu0 }
 0x232   : > { %10870 = vst [vmem:[#allocation35_spill] sm:$0xff] %v10262_v47 }
 0x233   : > { %v7457_v56 = vpop.f32.mrf.mxu1  ;;  %v10264_v41 = vpop.f32.mrf.mxu0 }
 0x234   : > { %10871 = vst [vmem:[#allocation36_spill] sm:$0xff] %v10264_v41  ;;  %v4407_v29 = vadd.f32 %v7457_v56, %v10149_v23 }
 0x235   : > { %v10267_v32 = vpop.f32.mrf.mxu1  ;;  %v7499_v1 = vpop.f32.mrf.mxu0 }
 0x236   : > { %v10269_v14 = vadd.f32 %v7491_v44, %v4407_v29 }
 0x237   : > { %v10271_v26 = vpop.f32.mrf.mxu1  ;;  %v10273_v45 = vpop.f32.mrf.mxu0 }
 0x238   : > { %10872 = vst [vmem:[#allocation24_spill] sm:$0xff] %v10269_v14  ;;  %10873 = vst [vmem:[#allocation37_spill] sm:$0xff] %v10273_v45 }
 0x239   : > { %v10275_v55 = vpop.f32.mrf.mxu1  ;;  %v10277_v11 = vpop.f32.mrf.mxu0 }
 0x23a   : > { %10874 = vst [vmem:[#allocation26_spill] sm:$0xff] %v10277_v11 }
 0x23b   : > { %v7461_v20 = vpop.f32.mrf.mxu1  ;;  %v10279_v47 = vpop.f32.mrf.mxu0 }
 0x23c   : > { %10875 = vst [vmem:[#allocation27_spill] sm:$0xff] %v10279_v47  ;;  %v4411_v41 = vadd.f32 %v7461_v20, %v10161_v46 }
 0x23d   : > { %v10282_v12 = vpop.f32.mrf.mxu1  ;;  %v7503_v23 = vpop.f32.mrf.mxu0 }
 0x23e   : > { %10876 = vst [vmem:[#allocation11_spill] sm:$0xff] %v10282_v12  ;;  %v10284_v56 = vadd.f32 %v7495_v37, %v4411_v41 }
 0x23f   : > { %v10286_v29 = vpop.f32.mrf.mxu1  ;;  %v10288_v44 = vpop.f32.mrf.mxu0 }
 0x240   : > { %10877 = vst [vmem:[#allocation9_spill] sm:$0xff] %v10284_v56  ;;  %10878 = vst [vmem:[#allocation10_spill] sm:$0xff] %v10286_v29 }
 0x241   : > { %10879 = vst [vmem:[#allocation14_spill] sm:$0xff] %v10288_v44  ;;  %v10290_v27 = vpop.f32.mrf.mxu1  ;;  %v10292_v45 = vpop.f32.mrf.mxu0 }
 0x242   : > { %10880 = vst [vmem:[#allocation16_spill] sm:$0xff] %v10290_v27  ;;  %10881 = vst [vmem:[#allocation18_spill] sm:$0xff] %v10292_v45 }
 0x243   : > { %v7465_v58 = vpop.f32.mrf.mxu1  ;;  %v10294_v11 = vpop.f32.mrf.mxu0 }
 0x244   : > { %10882 = vst [vmem:[#allocation20_spill] sm:$0xff] %v10294_v11  ;;  %v4415_v47 = vadd.f32 %v7465_v58, %v10173_v15 }
 0x245   : > { %v10297_v30 = vpop.f32.mrf.mxu1  ;;  %v7543_v46 = vpop.f32.mrf.mxu0 }
 0x246   : > { %10883 = vst [vmem:[#allocation22_spill] sm:$0xff] %v10297_v30  ;;  %v10299_v20 = vadd.f32 %v7499_v1, %v4415_v47  ;;  %v4390_v30 = vadd.f32 %v10215_v51, %v10110_v36 }
 0x247   : > { %v10301_v41 = vpop.f32.mrf.mxu1  ;;  %v5817_v37 = vpop.f32.mrf.mxu0 }
 0x248   : > { %10884 = vst [vmem:[#allocation25_spill] sm:$0xff] %v10299_v20  ;;  %10885 = vst [vmem:[#allocation28_spill] sm:$0xff] %v10301_v41  ;;  %v4392_v20 = vadd.f32 %v10209_v7, %v10107_v38  ;;  %v4749_v36 = vadd.f32 %v10183_v2, %v4390_v30  ;;  %v4394_v30 = vadd.f32 %v10230_v24, %v10122_v22 }
 0x249   : > { %v10303_v56 = vpop.f32.mrf.mxu1  ;;  %v7544_v44 = vpop.f32.mrf.mxu0 }
 0x24a   : > { %10886 = vst [vmem:[#allocation29_spill] sm:$0xff] %v10303_v56 }
 0x24b   : > { %v7469_v29 = vpop.f32.mrf.mxu1  ;;  %v5820_v27 = vpop.f32.mrf.mxu0 }
 0x24c   : > { %v4419_v45 = vadd.f32 %v7469_v29, %v10189_v8 }
 0x24d   : > { %v10306_v12 = vpop.f32.mrf.mxu1  ;;  %v7547_v11 = vpop.f32.mrf.mxu0 }
 0x24e   : > { %10887 = vst [vmem:[#allocation30_spill] sm:$0xff] %v10306_v12  ;;  %v10308_v14 = vadd.f32 %v7503_v23, %v4419_v45 }
 0x24f   : > { %v10310_v15 = vpop.f32.mrf.mxu1  ;;  %v5833_v58 = vpop.f32.mrf.mxu0 }
 0x250   : > { %10888 = vst [vmem:[#allocation31_spill] sm:$0xff] %v10308_v14  ;;  %10889 = vst [vmem:[#allocation32_spill] sm:$0xff] %v10310_v15  ;;  %v4751_v14 = vadd.f32 %v10178_v60, %v4392_v20 }
 0x251   : > { %v10312_v47 = vpop.f32.mrf.mxu1  ;;  %v7548_v1 = vpop.f32.mrf.mxu0 }
 0x252   : > { %10890 = vst [vmem:[#allocation33_spill] sm:$0xff] %v10312_v47  ;;  %v4393_v47 = vadd.f32 %v10222_v16, %v10116_v31  ;;  %v4396_v31 = vadd.f32 %v10226_v28, %v10119_v59 }
 0x253   : > { %v7509_v56 = vpop.f32.mrf.mxu1  ;;  %v5836_v41 = vpop.f32.mrf.mxu0 }
 0x254   : > { %v5476_v8 = vadd.f32 %v7509_v56, %v10207_v48  ;;  %v10331_v48 = vld [vmem:[%s10686_s4] ss:$0 sm:$0xff] }
 0x255   : > { %v5347_v29 = vpop.f32.mrf.mxu1 }
 0x256   : > { %v10319_v45 = vpop.f32.mrf.mxu0  ;;  %v5474_v23 = vadd.f32 %v5347_v29, %v10213_v49  ;;  %v5946_v7 = vadd.f32 %v7543_v46, %v5476_v8 }
 0x257   : > { %v7510_v15 = vpop.f32.mrf.mxu1 }
 0x258   : > { %v10325_v38 = vpop.f32.mrf.mxu0  ;;  %v5477_v12 = vadd.f32 %v7510_v15, %v4751_v14  ;;  %v5944_v49 = vadd.f32 %v5817_v37, %v5474_v23  ;;  %v4752_v14 = vadd.f32 %v10191_v13, %v4393_v47  ;;  %v10344_v2 = vadd.f32 %v10331_v48, %v5946_v7 }
 0x259   : > { %v5350_v51 = vpop.f32.mrf.mxu1  ;;  %v4755_v47 = vadd.f32 %v10196_v6, %v4396_v31 }
 0x25a   : > { %v10333_v56 = vpop.f32.mrf.mxu0  ;;  %v5947_v60 = vadd.f32 %v7544_v44, %v5477_v12  ;;  %v5475_v20 = vadd.f32 %v5350_v51, %v4749_v36  ;;  %v10358_v22 = vadd.f32 %v10331_v48, %v5944_v49  ;;  %v4397_v44 = vadd.f32 %v10237_v34, %v10128_v57 }
 0x25b   : > { %v7513_v16 = vpop.f32.mrf.mxu1  ;;  %v4753_v36 = vadd.f32 %v10201_v50, %v4394_v30  ;;  %v4400_v34 = vadd.f32 %v10241_v35, %v10131_v43 }
 0x25c   : > { %v10339_v46 = vpop.f32.mrf.mxu0  ;;  %v10347_v15 = vadd.f32 %v10331_v48, %v5947_v60  ;;  %v5945_v37 = vadd.f32 %v5820_v27, %v5475_v20  ;;  %v5480_v59 = vadd.f32 %v7513_v16, %v10224_v3 }
 0x25d   : > { %v5363_v12 = vpop.f32.mrf.mxu1 }
 0x25e   : > { %v10355_v13 = vpop.f32.mrf.mxu0  ;;  %v7027_v28 = vpack.c.bf16 %v10347_v15, %v10344_v2  ;;  %v10363_v24 = vadd.f32 %v10331_v48, %v5945_v37  ;;  %v5478_v27 = vadd.f32 %v5363_v12, %v4752_v14  ;;  %v5950_v51 = vadd.f32 %v7547_v11, %v5480_v59 }
 0x25f   : > { %v7514_v3 = vpop.f32.mrf.mxu1  ;;  %v4756_v14 = vadd.f32 %v10211_v62, %v4397_v44  ;;  %v4398_v11 = vadd.f32 %v10245_v40, %v10134_v21 }
 0x260   : > { %v10368_v8 = vpop.f32.mrf.mxu0  ;;  %7099 = vst [vmem:[%s10352_s19 + $0x8] sm:$0xff] %v7027_v28   ;;  %v7022_v29 = vpack.c.bf16 %v10363_v24, %v10358_v22  ;;  %v6175_v23 = vadd.f32 %v10363_v24, %v10358_v22  ;;  %v5948_v7 = vadd.f32 %v5833_v58, %v5478_v27  ;;  %v5481_v49 = vadd.f32 %v7514_v3, %v4755_v47 }
 0x261   : > { %v5366_v60 = vpop.f32.mrf.mxu1  ;;  %v10392_v59 = vadd.f32 %v10331_v48, %v5950_v51  ;;  %v4759_v27 = vadd.f32 %v10217_v33, %v4400_v34 }
 0x262   : > { %v10376_v20 = vpop.f32.mrf.mxu0  ;;  %7023 = vst [vmem:[%s10352_s19] sm:$0xff] %v7022_v29   ;;  %v6176_v57 = vadd.f32 %v6175_v23, %v10344_v2  ;;  %v5479_v6 = vadd.f32 %v5366_v60, %v4753_v36  ;;  %v5951_v31 = vadd.f32 %v7548_v1, %v5481_v49  ;;  %v10388_v50 = vadd.f32 %v10331_v48, %v5948_v7 }
 0x263   : > { %v7517_v16 = vpop.f32.mrf.mxu1  ;;  %v4757_v23 = vadd.f32 %v10219_v39, %v4398_v11  ;;  %v4404_v49 = vadd.f32 %v10256_v17, %v10143_v18 }
 0x264   : > { %v10383_v37 = vpop.f32.mrf.mxu0  ;;  %v6177_v58 = vadd.f32 %v6176_v57, %v10347_v15  ;;  %v5949_v30 = vadd.f32 %v5836_v41, %v5479_v6  ;;  %v10395_v43 = vadd.f32 %v10331_v48, %v5951_v31  ;;  %v5484_v62 = vadd.f32 %v7517_v16, %v10239_v5 }
 0x265   : > { %v5379_v35 = vpop.f32.mrf.mxu1  ;;  %v4401_v41 = vadd.f32 %v10252_v25, %v10140_v53 }
 0x266   : > { %v10398_v1 = vpop.f32.mrf.mxu0  ;;  %v6178_v21 = vadd.f32 %v6177_v58, %v10388_v50  ;;  %v10402_v40 = vadd.f32 %v10331_v48, %v5949_v30  ;;  %v5482_v12 = vadd.f32 %v5379_v35, %v4756_v14  ;;  %v7037_v28 = vpack.c.bf16 %v10395_v43, %v10392_v59 }
 0x267   : > { %v7518_v44 = vpop.f32.mrf.mxu1  ;;  %v5954_v53 = vadd.f32 %v10319_v45, %v5484_v62  ;;  %v4402_v45 = vadd.f32 %v10260_v0, %v10146_v52  ;;  %v4763_v58 = vadd.f32 %v10232_v10, %v4404_v49 }
 0x268   : > { %v10409_v5 = vpop.f32.mrf.mxu0  ;;  %v7032_v47 = vpack.c.bf16 %v10402_v40, %v10388_v50  ;;  %v6179_v3 = vadd.f32 %v6178_v21, %v10402_v40  ;;  %v5952_v29 = vadd.f32 %v10325_v38, %v5482_v12  ;;  %7101 = vst [vmem:[%s10352_s19 + $0x18] sm:$0xff] %v7037_v28   ;;  %v5485_v25 = vadd.f32 %v7518_v44, %v4759_v27 }
 0x269   : > { %v5382_v7 = vpop.f32.mrf.mxu1  ;;  %v4760_v38 = vadd.f32 %v10228_v54, %v4401_v41  ;;  %v10436_v16 = vadd.f32 %v10331_v48, %v5954_v53  ;;  %v4761_v12 = vadd.f32 %v10234_v63, %v4402_v45  ;;  %v4408_v44 = vadd.f32 %v10271_v26, %v10155_v4 }
 0x26a   : > { %v10418_v36 = vpop.f32.mrf.mxu0  ;;  %7100 = vst [vmem:[%s10352_s19 + $0x10] sm:$0xff] %v7032_v47   ;;  %v6180_v33 = vadd.f32 %v6179_v3, %v10392_v59  ;;  %v5483_v51 = vadd.f32 %v5382_v7, %v4757_v23  ;;  %v5955_v60 = vadd.f32 %v10333_v56, %v5485_v25  ;;  %v10431_v6 = vadd.f32 %v10331_v48, %v5952_v29 }
 0x26b   : > { %v7521_v57 = vpop.f32.mrf.mxu1 }
 0x26c   : > { %v10426_v39 = vpop.f32.mrf.mxu0  ;;  %v6181_v34 = vadd.f32 %v6180_v33, %v10395_v43  ;;  %v5953_v31 = vadd.f32 %v10339_v46, %v5483_v51  ;;  %v10439_v18 = vadd.f32 %v10331_v48, %v5955_v60  ;;  %v5488_v54 = vadd.f32 %v7521_v57, %v10254_v61  ;;  %v10892_v33 = vld [vmem:[#allocation3_spill] sm:$0xff] }
 0x26d   : > { %v5395_v17 = vpop.f32.mrf.mxu1  ;;  %v4405_v46 = vadd.f32 %v10267_v32, %v10152_v9  ;;  %v10893_v51 = vld [vmem:[#allocation11_spill] sm:$0xff] }
 0x26e   : > { %v10442_v56 = vpop.f32.mrf.mxu0  ;;  %v6182_v52 = vadd.f32 %v6181_v34, %v10431_v6  ;;  %v10446_v0 = vadd.f32 %v10331_v48, %v5953_v31  ;;  %v5486_v14 = vadd.f32 %v5395_v17, %v4760_v38  ;;  %v7047_v11 = vpack.c.bf16 %v10439_v18, %v10436_v16  ;;  %v10894_v60 = vld [vmem:[#allocation19_spill] sm:$0xff]  ;;  %v10895_v17 = vld [vmem:[#allocation21_spill] sm:$0xff] }
 0x26f   : > { %v7522_v30 = vpop.f32.mrf.mxu1  ;;  %v5958_v9 = vadd.f32 %v10355_v13, %v5488_v54  ;;  %v4406_v13 = vadd.f32 %v10275_v55, %v10158_v19  ;;  %v4767_v57 = vadd.f32 %v10894_v60, %v4408_v44 }
 0x270   : > { %v10453_v61 = vpop.f32.mrf.mxu0  ;;  %v7042_v62 = vpack.c.bf16 %v10446_v0, %v10431_v6  ;;  %v6183_v35 = vadd.f32 %v6182_v52, %v10446_v0  ;;  %v5956_v21 = vadd.f32 %v10368_v8, %v5486_v14  ;;  %7103 = vst [vmem:[%s10352_s19 + $0x28] sm:$0xff] %v7047_v11   ;;  %v5489_v32 = vadd.f32 %v7522_v30, %v4763_v58 }
 0x271   : > { %v5398_v41 = vpop.f32.mrf.mxu1  ;;  %v4764_v8 = vadd.f32 %v10243_v42, %v4405_v46  ;;  %v10480_v25 = vadd.f32 %v10331_v48, %v5958_v9  ;;  %v10891_v42 = vld [vmem:[#allocation24_spill] sm:$0xff]  ;;  %v4765_v52 = vadd.f32 %v10895_v17, %v4406_v13  ;;  %v10901_v13 = vld [vmem:[#allocation9_spill] sm:$0xff] }
 0x272   : > { %v10462_v28 = vpop.f32.mrf.mxu0  ;;  %7102 = vst [vmem:[%s10352_s19 + $0x20] sm:$0xff] %v7042_v62   ;;  %v6184_v10 = vadd.f32 %v6183_v35, %v10436_v16  ;;  %v5487_v27 = vadd.f32 %v5398_v41, %v4761_v12  ;;  %v5959_v47 = vadd.f32 %v10376_v20, %v5489_v32  ;;  %v10475_v29 = vadd.f32 %v10331_v48, %v5956_v21  ;;  %v10896_v62 = vld [vmem:[#allocation6_spill] sm:$0xff]  ;;  %v10898_v32 = vld [vmem:[#allocation23_spill] sm:$0xff] }
 0x273   : > { %v7525_v3 = vpop.f32.mrf.mxu1  ;;  %v10897_v35 = vld [vmem:[#allocation10_spill] sm:$0xff] }
 0x274   : > { %v10470_v63 = vpop.f32.mrf.mxu0  ;;  %v6185_v23 = vadd.f32 %v6184_v10, %v10439_v18  ;;  %v5957_v53 = vadd.f32 %v10383_v37, %v5487_v27  ;;  %v10483_v4 = vadd.f32 %v10331_v48, %v5959_v47  ;;  %v5492_v26 = vadd.f32 %v7525_v3, %v10891_v42  ;;  %v10899_v10 = vld [vmem:[#allocation5_spill] sm:$0xff]  ;;  %v10900_v27 = vld [vmem:[#allocation16_spill] sm:$0xff] }
 0x275   : > { %v5411_v20 = vpop.f32.mrf.mxu1  ;;  %v4409_v37 = vadd.f32 %v10893_v51, %v10892_v33  ;;  %v4412_v21 = vadd.f32 %v10897_v35, %v10896_v62  ;;  %v4410_v44 = vadd.f32 %v10900_v27, %v10899_v10  ;;  %v10904_v51 = vld [vmem:[#allocation35_spill] sm:$0xff] }
 0x276   : > { %v6186_v7 = vadd.f32 %v6185_v23, %v10475_v29  ;;  %v10488_v19 = vadd.f32 %v10331_v48, %v5957_v53  ;;  %v5490_v55 = vadd.f32 %v5411_v20, %v4764_v8  ;;  %v7057_v49 = vpack.c.bf16 %v10483_v4, %v10480_v25  ;;  %v10495_v45 = vpop.f32.mrf.mxu0 }
 0x277   : > { %v7526_v38 = vpop.f32.mrf.mxu1  ;;  %v5962_v14 = vadd.f32 %v10398_v1, %v5492_v26  ;;  %v4768_v41 = vadd.f32 %v10898_v32, %v4409_v37  ;;  %v4771_v37 = vadd.f32 %v10904_v51, %v4412_v21  ;;  %v10909_v32 = vld [vmem:[#allocation12_spill] sm:$0xff] }
 0x278   : > { %v7052_v34 = vpack.c.bf16 %v10488_v19, %v10475_v29  ;;  %v6187_v31 = vadd.f32 %v6186_v7, %v10488_v19  ;;  %v5960_v54 = vadd.f32 %v10409_v5, %v5490_v55  ;;  %7105 = vst [vmem:[%s10352_s19 + $0x38] sm:$0xff] %v7057_v49   ;;  %v5493_v46 = vadd.f32 %v7526_v38, %v4767_v57  ;;  %v5913_v5 = vpop.f32.mrf.mxu0  ;;  %v10902_v7 = vld [vmem:[#allocation7_spill] sm:$0xff]  ;;  %v10903_v55 = vld [vmem:[#allocation22_spill] sm:$0xff] }
 0x279   : > { %v5414_v11 = vpop.f32.mrf.mxu1  ;;  %v10518_v8 = vadd.f32 %v10331_v48, %v5962_v14 }
 0x27a   : > { %7104 = vst [vmem:[%s10352_s19 + $0x30] sm:$0xff] %v7052_v34   ;;  %v6188_v58 = vadd.f32 %v6187_v31, %v10480_v25  ;;  %v5491_v30 = vadd.f32 %v5414_v11, %v4765_v52  ;;  %v5963_v12 = vadd.f32 %v10418_v36, %v5493_v46  ;;  %v10513_v1 = vadd.f32 %v10331_v48, %v5960_v54  ;;  %v7568_v60 = vpop.f32.mrf.mxu0  ;;  %v10905_v31 = vld [vmem:[#allocation36_spill] sm:$0xff] }
 0x27b   : > { %v7529_v9 = vpop.f32.mrf.mxu1  ;;  %v4769_v54 = vadd.f32 %v10905_v31, %v4410_v44  ;;  %v10915_v31 = vld [vmem:[#allocation27_spill] sm:$0xff] }
 0x27c   : > { %v6189_v47 = vadd.f32 %v6188_v58, %v10483_v4  ;;  %v5961_v3 = vadd.f32 %v10426_v39, %v5491_v30  ;;  %v10521_v36 = vadd.f32 %v10331_v48, %v5963_v12  ;;  %v5496_v23 = vadd.f32 %v7529_v9, %v10901_v13  ;;  %v10906_v58 = vld [vmem:[#allocation8_spill] sm:$0xff]  ;;  %v10908_v12 = vld [vmem:[#allocation37_spill] sm:$0xff] }
 0x27d   : > { %v5427_v53 = vpop.f32.mrf.mxu1  ;;  %v4413_v39 = vadd.f32 %v10903_v55, %v10902_v7  ;;  %v10907_v30 = vld [vmem:[#allocation28_spill] sm:$0xff]  ;;  %v10912_v7 = vld [vmem:[#allocation13_spill] sm:$0xff]  ;;  %v10913_v55 = vld [vmem:[#allocation30_spill] sm:$0xff] }
 0x27e   : > { %v6190_v42 = vadd.f32 %v6189_v47, %v10513_v1  ;;  %v10526_v26 = vadd.f32 %v10331_v48, %v5961_v3  ;;  %v5494_v20 = vadd.f32 %v5427_v53, %v4768_v41  ;;  %v7067_v33 = vpack.c.bf16 %v10521_v36, %v10518_v8  ;;  %v10910_v41 = vld [vmem:[#allocation29_spill] sm:$0xff] }
 0x27f   : > { %v7530_v49 = vpop.f32.mrf.mxu1  ;;  %v5966_v17 = vadd.f32 %v10442_v56, %v5496_v23  ;;  %v4416_v62 = vadd.f32 %v10907_v30, %v10906_v58  ;;  %v4772_v9 = vadd.f32 %v10908_v12, %v4413_v39  ;;  %v4414_v10 = vadd.f32 %v10910_v41, %v10909_v32  ;;  %v10911_v3 = vld [vmem:[#allocation25_spill] sm:$0xff]  ;;  %v10916_v58 = vld [vmem:[#allocation15_spill] sm:$0xff]  ;;  %v10917_v30 = vld [vmem:[#allocation32_spill] sm:$0xff] }
 0x280   : > { %v7062_v57 = vpack.c.bf16 %v10526_v26, %v10513_v1  ;;  %v6191_v38 = vadd.f32 %v6190_v42, %v10526_v26  ;;  %v5964_v34 = vadd.f32 %v10453_v61, %v5494_v20  ;;  %7107 = vst [vmem:[%s10352_s19 + $0x48] sm:$0xff] %v7067_v33   ;;  %v5497_v52 = vadd.f32 %v7530_v49, %v4771_v37  ;;  %v5916_v61 = vpop.f32.mrf.mxu0  ;;  %v10914_v33 = vld [vmem:[#allocation26_spill] sm:$0xff]  ;;  %v10920_v41 = vld [vmem:[#allocation33_spill] sm:$0xff] }
 0x281   : > { %v5430_v14 = vpop.f32.mrf.mxu1  ;;  %v10554_v47 = vadd.f32 %v10331_v48, %v5966_v17  ;;  %v4775_v51 = vadd.f32 %v10914_v33, %v4416_v62  ;;  %v4420_v62 = vadd.f32 %v10917_v30, %v10916_v58 }
 0x282   : > { %7106 = vst [vmem:[%s10352_s19 + $0x40] sm:$0xff] %v7062_v57   ;;  %v6192_v46 = vadd.f32 %v6191_v38, %v10518_v8  ;;  %v5495_v11 = vadd.f32 %v5430_v14, %v4769_v54  ;;  %v5967_v35 = vadd.f32 %v10462_v28, %v5497_v52  ;;  %v10549_v56 = vadd.f32 %v10331_v48, %v5964_v34  ;;  %v7571_v49 = vpop.f32.mrf.mxu0 }
 0x283   : > { %v7533_v21 = vpop.f32.mrf.mxu1  ;;  %v4773_v54 = vadd.f32 %v10915_v31, %v4414_v10 }
 0x284   : > { %v6193_v27 = vadd.f32 %v6192_v46, %v10521_v36  ;;  %v5965_v44 = vadd.f32 %v10470_v63, %v5495_v11  ;;  %v10557_v28 = vadd.f32 %v10331_v48, %v5967_v35  ;;  %v5500_v13 = vadd.f32 %v7533_v21, %v10911_v3  ;;  %v5929_v12 = vpop.f32.mrf.mxu0 }
 0x285   : > { %v5443_v23 = vpop.f32.mrf.mxu1  ;;  %v4417_v63 = vadd.f32 %v10913_v55, %v10912_v7 }
 0x286   : > { %v6194_v53 = vadd.f32 %v6193_v27, %v10549_v56  ;;  %v10562_v42 = vadd.f32 %v10331_v48, %v5965_v44  ;;  %v5498_v20 = vadd.f32 %v5443_v23, %v4772_v9  ;;  %v7077_v39 = vpack.c.bf16 %v10557_v28, %v10554_v47  ;;  %v10918_v9 = vld [vmem:[#allocation14_spill] sm:$0xff] }
 0x287   : > { %v7534_v37 = vpop.f32.mrf.mxu1  ;;  %v5970_v17 = vadd.f32 %v10495_v45, %v5500_v13  ;;  %v4776_v32 = vadd.f32 %v10918_v9, %v4417_v63 }
 0x288   : > { %v7072_v57 = vpack.c.bf16 %v10562_v42, %v10549_v56  ;;  %v6195_v38 = vadd.f32 %v6194_v53, %v10562_v42  ;;  %v5968_v34 = vadd.f32 %v5913_v5, %v5498_v20  ;;  %7109 = vst [vmem:[%s10352_s19 + $0x58] sm:$0xff] %v7077_v39   ;;  %v5501_v52 = vadd.f32 %v7534_v37, %v4775_v51  ;;  %v10919_v5 = vld [vmem:[#allocation17_spill] sm:$0xff]  ;;  %v10922_v39 = vld [vmem:[#allocation18_spill] sm:$0xff] }
 0x289   : > { %v5446_v14 = vpop.f32.mrf.mxu1  ;;  %v4418_v10 = vadd.f32 %v10920_v41, %v10919_v5  ;;  %v10587_v3 = vadd.f32 %v10331_v48, %v5970_v17  ;;  %v4779_v33 = vadd.f32 %v10922_v39, %v4420_v62 }
 0x28a   : > { %7108 = vst [vmem:[%s10352_s19 + $0x50] sm:$0xff] %v7072_v57   ;;  %v6196_v46 = vadd.f32 %v6195_v38, %v10554_v47  ;;  %v5499_v11 = vadd.f32 %v5446_v14, %v4773_v54  ;;  %v5971_v35 = vadd.f32 %v7568_v60, %v5501_v52  ;;  %v10583_v27 = vadd.f32 %v10331_v48, %v5968_v34  ;;  %v10921_v60 = vld [vmem:[#allocation31_spill] sm:$0xff]  ;;  %v10923_v34 = vld [vmem:[#allocation20_spill] sm:$0xff] }
 0x28b   : > { %v7537_v21 = vpop.f32.mrf.mxu1  ;;  %v4777_v31 = vadd.f32 %v10923_v34, %v4418_v10 }
 0x28c   : > { %v6197_v45 = vadd.f32 %v6196_v46, %v10557_v28  ;;  %v5969_v44 = vadd.f32 %v5916_v61, %v5499_v11  ;;  %v10590_v13 = vadd.f32 %v10331_v48, %v5971_v35  ;;  %v5504_v23 = vadd.f32 %v7537_v21, %v10921_v60  ;;  %v7572_v61 = vpop.f32.mrf.mxu0 }
 0x28d   : > { %v5459_v53 = vpop.f32.mrf.mxu1 }
 0x28e   : > { %v6198_v20 = vadd.f32 %v6197_v45, %v10583_v27  ;;  %v6008_v7 = vadd.f32 %v10331_v48, %v5969_v44  ;;  %v5502_v55 = vadd.f32 %v5459_v53, %v4776_v32  ;;  %v7087_v63 = vpack.c.bf16 %v10590_v13, %v10587_v3  ;;  %v5932_v58 = vpop.f32.mrf.mxu0 }
 0x28f   : > { %v7538_v51 = vpop.f32.mrf.mxu1  ;;  %v5974_v54 = vadd.f32 %v7571_v49, %v5504_v23 }
 0x290   : > { %v7082_v37 = vpack.c.bf16 %v6008_v7, %v10583_v27  ;;  %v6199_v57 = vadd.f32 %v6198_v20, %v6008_v7  ;;  %v5972_v38 = vadd.f32 %v5929_v12, %v5502_v55  ;;  %7111 = vst [vmem:[%s10352_s19 + $0x68] sm:$0xff] %v7087_v63   ;;  %v5505_v17 = vadd.f32 %v7538_v51, %v4779_v33 }
 0x291   : > { %v5462_v52 = vpop.f32.mrf.mxu1  ;;  %v6013_v21 = vadd.f32 %v10331_v48, %v5974_v54 }
 0x292   : > { %7110 = vst [vmem:[%s10352_s19 + $0x60] sm:$0xff] %v7082_v37   ;;  %v6200_v14 = vadd.f32 %v6199_v57, %v10587_v3  ;;  %v5503_v46 = vadd.f32 %v5462_v52, %v4777_v31  ;;  %v5975_v11 = vadd.f32 %v7572_v61, %v5505_v17  ;;  %v6011_v30 = vadd.f32 %v10331_v48, %v5972_v38 }
 0x294   : > { %v6201_v62 = vadd.f32 %v6200_v14, %v10590_v13  ;;  %v5973_v35 = vadd.f32 %v5932_v58, %v5503_v46  ;;  %v6014_v49 = vadd.f32 %v10331_v48, %v5975_v11 }
 0x296   : > { %v6202_v12 = vadd.f32 %v6201_v62, %v6011_v30  ;;  %v6012_v9 = vadd.f32 %v10331_v48, %v5973_v35  ;;  %v7097_v32 = vpack.c.bf16 %v6014_v49, %v6013_v21 }
 0x298   : > { %v7092_v5 = vpack.c.bf16 %v6012_v9, %v6011_v30  ;;  %v6203_v41 = vadd.f32 %v6202_v12, %v6012_v9  ;;  %7113 = vst [vmem:[%s10352_s19 + $0x78] sm:$0xff] %v7097_v32  }
 0x29a   : > { %7112 = vst [vmem:[%s10352_s19 + $0x70] sm:$0xff] %v7092_v5   ;;  %v6204_v10 = vadd.f32 %v6203_v41, %v6013_v21 }
 0x29c   : > { %v6205_v45 = vadd.f32 %v6204_v10, %v6014_v49 }
 0x29e   : > { %v6206_v44 = vrot.slane %v6205_v45, 4 }
 0x2a0   : > { %v6207_v60 = vadd.f32 %v6206_v44, %v6205_v45 }
 0x2a2   : > { %v6208_v23 = vrot.slane %v6207_v60, 2 }
 0x2a4   : > { %v6209_v53 = vadd.f32 %v6208_v23, %v6207_v60 }
 0x2a6   : > { %v6210_v20 = vrot.slane %v6209_v53, 1 }
 0x2a8   : > { %v6211_v55 = vadd.f32 %v6210_v20, %v6209_v53 }
 0x2aa   : > { %v6212_v63 = vmul.f32 0.00390625, %v6211_v55  ;;  %6245 = vst [vmem:[%s525_s22] sm:$0x1] %v6211_v55 }
 0x2ac   : > { %v6221_v48 = vsub.f32 %v10431_v6, %v6212_v63  ;;  %v6222_v61 = vsub.f32 %v10446_v0, %v6212_v63  ;;  %v6223_v39 = vsub.f32 %v10436_v16, %v6212_v63  ;;  %v6224_v33 = vsub.f32 %v10439_v18, %v6212_v63 }
 0x2ad   : > { %v6225_v51 = vsub.f32 %v10475_v29, %v6212_v63  ;;  %v6226_v37 = vsub.f32 %v10488_v19, %v6212_v63  ;;  %v6227_v57 = vsub.f32 %v10480_v25, %v6212_v63  ;;  %v6228_v38 = vsub.f32 %v10483_v4, %v6212_v63 }
 0x2ae   : > { %v6229_v34 = vsub.f32 %v10513_v1, %v6212_v63  ;;  %v6230_v31 = vsub.f32 %v10526_v26, %v6212_v63  ;;  %v6231_v6 = vsub.f32 %v10518_v8, %v6212_v63  ;;  %v6232_v0 = vsub.f32 %v10521_v36, %v6212_v63 }
 0x2af   : > { %v6233_v16 = vsub.f32 %v10549_v56, %v6212_v63  ;;  %v6234_v18 = vsub.f32 %v10562_v42, %v6212_v63  ;;  %v6235_v29 = vsub.f32 %v10554_v47, %v6212_v63  ;;  %v6236_v19 = vsub.f32 %v10557_v28, %v6212_v63 }
 0x2b0   : > { %v6237_v25 = vsub.f32 %v10583_v27, %v6212_v63  ;;  %v10631_v54 = vsub.f32 %v6008_v7, %v6212_v63  ;;  %v10634_v4 = vsub.f32 %v10587_v3, %v6212_v63  ;;  %v10637_v1 = vsub.f32 %v10590_v13, %v6212_v63 }
 0x2b1   : > { %v10639_v8 = vsub.f32 %v6011_v30, %v6212_v63  ;;  %v10641_v36 = vsub.f32 %v6012_v9, %v6212_v63  ;;  %v10643_v26 = vsub.f32 %v6013_v21, %v6212_v63  ;;  %v10645_v56 = vsub.f32 %v6014_v49, %v6212_v63 }
 0x2b2   : > { %v6213_v47 = vsub.f32 %v10358_v22, %v6212_v63  ;;  %v6214_v28 = vsub.f32 %v10363_v24, %v6212_v63  ;;  %v6215_v42 = vsub.f32 %v10344_v2, %v6212_v63  ;;  %v6216_v7 = vsub.f32 %v10347_v15, %v6212_v63 }
 0x2b3   : > { %v6217_v13 = vsub.f32 %v10388_v50, %v6212_v63  ;;  %v6218_v14 = vsub.f32 %v10402_v40, %v6212_v63  ;;  %v6219_v58 = vsub.f32 %v10392_v59, %v6212_v63  ;;  %v6220_v24 = vsub.f32 %v10395_v43, %v6212_v63 }
 0x2b4   : > { %v6246_v27 = vmul.f32 %v6213_v47, %v6213_v47  ;;  %v6247_v3 = vmul.f32 %v6214_v28, %v6214_v28  ;;  %v6248_v17 = vmul.f32 %v6215_v42, %v6215_v42  ;;  %v6249_v46 = vmul.f32 %v6216_v7, %v6216_v7 }
 0x2b5   : > { %v6250_v30 = vmul.f32 %v6217_v13, %v6217_v13  ;;  %v6251_v62 = vmul.f32 %v6218_v14, %v6218_v14  ;;  %v6252_v35 = vmul.f32 %v6219_v58, %v6219_v58  ;;  %v6253_v49 = vmul.f32 %v6220_v24, %v6220_v24 }
 0x2b6   : > { %v6278_v52 = vadd.f32 %v6247_v3, %v6246_v27  ;;  %v6254_v12 = vmul.f32 %v6221_v48, %v6221_v48  ;;  %v6255_v9 = vmul.f32 %v6222_v61, %v6222_v61  ;;  %v6256_v5 = vmul.f32 %v6223_v39, %v6223_v39 }
 0x2b7   : > { %v6257_v41 = vmul.f32 %v6224_v33, %v6224_v33  ;;  %v6258_v45 = vmul.f32 %v6225_v51, %v6225_v51  ;;  %v6259_v44 = vmul.f32 %v6226_v37, %v6226_v37  ;;  %v6260_v23 = vmul.f32 %v6227_v57, %v6227_v57 }
 0x2b8   : > { %v6279_v11 = vadd.f32 %v6278_v52, %v6248_v17  ;;  %v6261_v53 = vmul.f32 %v6228_v38, %v6228_v38  ;;  %v6262_v55 = vmul.f32 %v6229_v34, %v6229_v34  ;;  %v6263_v47 = vmul.f32 %v6230_v31, %v6230_v31 }
 0x2b9   : > { %v6264_v48 = vmul.f32 %v6231_v6, %v6231_v6  ;;  %v6265_v61 = vmul.f32 %v6232_v0, %v6232_v0  ;;  %v6266_v39 = vmul.f32 %v6233_v16, %v6233_v16  ;;  %v6267_v33 = vmul.f32 %v6234_v18, %v6234_v18 }
 0x2ba   : > { %v6280_v22 = vadd.f32 %v6279_v11, %v6249_v46  ;;  %v6268_v51 = vmul.f32 %v6235_v29, %v6235_v29  ;;  %v6269_v37 = vmul.f32 %v6236_v19, %v6236_v19  ;;  %v6270_v57 = vmul.f32 %v6237_v25, %v6237_v25 }
 0x2bb   : > { %v6271_v38 = vmul.f32 %v10631_v54, %v10631_v54  ;;  %v6272_v31 = vmul.f32 %v10634_v4, %v10634_v4  ;;  %v6273_v0 = vmul.f32 %v10637_v1, %v10637_v1  ;;  %v6274_v18 = vmul.f32 %v10639_v8, %v10639_v8 }
 0x2bc   : > { %v6281_v2 = vadd.f32 %v6280_v22, %v6250_v30  ;;  %v6275_v19 = vmul.f32 %v10641_v36, %v10641_v36  ;;  %v6276_v54 = vmul.f32 %v10643_v26, %v10643_v26  ;;  %v6277_v4 = vmul.f32 %v10645_v56, %v10645_v56 }
 0x2be   : > { %v6282_v21 = vadd.f32 %v6281_v2, %v6251_v62 }
 0x2c0   : > { %v6283_v15 = vadd.f32 %v6282_v21, %v6252_v35 }
 0x2c2   : > { %v6284_v50 = vadd.f32 %v6283_v15, %v6253_v49 }
 0x2c4   : > { %v6285_v32 = vadd.f32 %v6284_v50, %v6254_v12 }
 0x2c6   : > { %v6286_v40 = vadd.f32 %v6285_v32, %v6255_v9 }
 0x2c8   : > { %v6287_v10 = vadd.f32 %v6286_v40, %v6256_v5 }
 0x2ca   : > { %v6288_v59 = vadd.f32 %v6287_v10, %v6257_v41 }
 0x2cc   : > { %v6289_v60 = vadd.f32 %v6288_v59, %v6258_v45 }
 0x2ce   : > { %v6290_v43 = vadd.f32 %v6289_v60, %v6259_v44 }
 0x2d0   : > { %v6291_v20 = vadd.f32 %v6290_v43, %v6260_v23 }
 0x2d2   : > { %v6292_v63 = vadd.f32 %v6291_v20, %v6261_v53 }
 0x2d4   : > { %v6293_v28 = vadd.f32 %v6292_v63, %v6262_v55 }
 0x2d6   : > { %v6294_v42 = vadd.f32 %v6293_v28, %v6263_v47 }
 0x2d8   : > { %v6295_v27 = vadd.f32 %v6294_v42, %v6264_v48 }
 0x2da   : > { %v6296_v3 = vadd.f32 %v6295_v27, %v6265_v61 }
 0x2dc   : > { %v6297_v7 = vadd.f32 %v6296_v3, %v6266_v39 }
 0x2de   : > { %v6298_v13 = vadd.f32 %v6297_v7, %v6267_v33 }
 0x2e0   : > { %v6299_v17 = vadd.f32 %v6298_v13, %v6268_v51 }
 0x2e2   : > { %v6300_v52 = vadd.f32 %v6299_v17, %v6269_v37 }
 0x2e4   : > { %v6301_v34 = vadd.f32 %v6300_v52, %v6270_v57 }
 0x2e6   : > { %v6302_v6 = vadd.f32 %v6301_v34, %v6271_v38 }
 0x2e8   : > { %v6303_v16 = vadd.f32 %v6302_v6, %v6272_v31 }
 0x2ea   : > { %v6304_v29 = vadd.f32 %v6303_v16, %v6273_v0 }
 0x2ec   : > { %v6305_v25 = vadd.f32 %v6304_v29, %v6274_v18 }
 0x2ee   : > { %v6306_v14 = vadd.f32 %v6305_v25, %v6275_v19 }
 0x2f0   : > { %v6307_v46 = vadd.f32 %v6306_v14, %v6276_v54 }
 0x2f2   : > { %v6308_v11 = vadd.f32 %v6307_v46, %v6277_v4 }
 0x2f4   : > { %v6309_v1 = vrot.slane %v6308_v11, 4 }
 0x2f6   : > { %v6310_v58 = vadd.f32 %v6309_v1, %v6308_v11 }
 0x2f8   : > { %v6311_v30 = vrot.slane %v6310_v58, 2 }
 0x2fa   : > { %v6312_v22 = vadd.f32 %v6311_v30, %v6310_v58 }
 0x2fc   : > { %v6313_v24 = vrot.slane %v6312_v22, 1 }
 0x2fe   : > { %v6314_v8 = vadd.f32 %v6313_v24, %v6312_v22 }
 0x300   : > { %6315 = vst [vmem:[%s531_s25] sm:$0x1] %v6314_v8 }
 0x301 PF: > { %s20_s30 = sadd.s32 1, %s7694_s30   ;;  %s10924_s28 = smov %s7690_s29 }
 0x302   : > { %p17_p5 = scmp.ge.s32.totalorder %s20_s30, 4   ;;  %s10925_s29 = smov %s10927_s5 }
 0x304   :  { %19 = sbr.rel (!%p17_p5) target bundleno = 2 (0x2), region = 127 }

</bundles_post_ra>
